<compile_context>
chip_gen: v5e
topology: v5e:2x2
jax: 0.10.0
libtpu: 0.0.40
codegen_flags: <defaults>
</compile_context>

<pallas_src>
import jax
import jax.numpy as jnp
from jax.experimental import pallas as pl
from jax.experimental.pallas import tpu as pltpu

Z_DIM = 128
N_LATENT = 12
N_CLASSES = 10
CLS_PAD = 128            # lane-dense class dimension (wrapper slices back to 10)
IN_DIM = 784
HID = 1024


def _tpu_generation():
    """Best-effort TPU generation from device_kind; conservative fallback."""
    try:
        kind = jax.devices()[0].device_kind.lower()
    except Exception:
        return 7
    for g in (5, 6, 7):
        if f"v{g}" in kind:
            return g
    if "7x" in kind:
        return 7
    return 7   # unknown -> use the tightest (v7x-like) budgets


_TPU_GEN = _tpu_generation()
IN_PAD = 896 if _TPU_GEN == 5 else 1024            # 7*128 on v5e, 4*256 on v6e/v7x
VMEM_LIMIT = (96 << 20) if _TPU_GEN in (5, 6) else (48 << 20)


def vib_kernel(x_ref, w1_ref, b1_ref, w2_ref, b2_ref, wms_ref, bms_ref,
               wd_ref, bd_ref, noise_ref,
               pyz_ref, mu_ref, logsig_ref):
    f32 = jnp.float32
    bf16 = jnp.bfloat16

    # x arrives in bf16; affine stays bf16 (it feeds the first MXU matmul).
    # Padded x columns are -1 but the matching w1 rows are 0.
    xb = 2.0 * x_ref[...] - 1.0

    # encoder MLP: bf16 operands on the MXU, f32 accumulation, f32 elementwise
    h1 = jnp.maximum(
        jnp.dot(xb, w1_ref[...], preferred_element_type=f32) + b1_ref[...], 0.0)
    h2 = jnp.maximum(
        jnp.dot(h1.astype(bf16), w2_ref[...], preferred_element_type=f32)
        + b2_ref[...], 0.0)

    # fused mu / logsig projection: one (HID, 2*Z_DIM) matmul, lane-aligned slice
    ms = jnp.dot(h2.astype(bf16), wms_ref[...],
                 preferred_element_type=f32) + bms_ref[...]
    mu = ms[:, :Z_DIM]
    logsig = ms[:, Z_DIM:]
    mu_ref[...] = mu
    logsig_ref[...] = logsig

    tb = mu_ref.shape[0]
    nl = noise_ref.shape[0] // tb          # latent axis is flattened into rows

    # z = mu + noise + exp(logsig)  (exact module semantics).  Replicate
    # s = mu + exp(logsig) over each batch row's nl noise rows; all big tensors
    # stay flat (tb*nl, 128) = (8,128)-aligned.
    s = (mu + jnp.exp(logsig)).astype(bf16)                           # (tb, Z)
    s_rep = jnp.broadcast_to(s[:, None, :],
                             (tb, nl, Z_DIM)).reshape(tb * nl, Z_DIM)
    z = s_rep + noise_ref[...]                                        # (tb*nl, Z) bf16

    # decoder; padded class lanes carry bias = -1e30 so exp() flushes them to 0
    # (mask is folded into bd in prepare_params -> no iota/where here).
    logits = jnp.dot(z, wd_ref[...], preferred_element_type=f32) + bd_ref[...]

    m = jnp.max(logits, axis=1, keepdims=True)
    e = jnp.exp(logits - m)
    denom = jnp.sum(e, axis=1, keepdims=True)
    p = e * pl.reciprocal(denom, approx=True)      # EUP reciprocal, not VPU divide

    pyz_ref[...] = p.astype(pyz_ref.dtype)         # bf16 writeback (halves HBM)


def _batch_tile(b):
    if b <= 128:
        return max(8, ((b + 7) // 8) * 8)          # small batches: single tile
    cap = 512 if _TPU_GEN in (5, 6) else 256       # 128 MiB VMEM vs v7x's 64 MiB
    if _TPU_GEN == 7:
        # keep the grid length >= 2 so ("parallel",) can use both v7x TensorCores
        cap = min(cap, max(128, ((-(-b // 2) + 127) // 128) * 128))
    return min(cap, ((b + 127) // 128) * 128)


@jax.jit
def vib_forward(x, prep, noise):
    (w1, b1, w2, b2, wms, bms, wd, bd) = prep
    B = x.shape[0]
    nl = noise.shape[1]
    tb = _batch_tile(B)
    b_pad = ((B + tb - 1) // tb) * tb
    bf16 = jnp.bfloat16

    # bf16 inputs: x padded (batch -> tile multiple, IN_DIM -> IN_PAD with zero
    # columns matching the zero w1 rows); noise flattened to (b_pad*nl, Z).
    xp = jnp.zeros((b_pad, IN_PAD), bf16).at[:B, :IN_DIM].set(x.astype(bf16))
    nflat = jnp.zeros((b_pad * nl, Z_DIM), bf16).at[:B * nl].set(
        noise.reshape(B * nl, Z_DIM).astype(bf16))

    def wspec(shape):
        # weights/biases: constant block index -> VMEM-resident across the grid.
        # (pipeline_mode=pl.Buffered(1) would also drop their redundant second
        #  buffer, ~4.5 MiB; left at default buffering for lowering safety.)
        return pl.BlockSpec(shape, lambda i: (0,) * len(shape))

    in_specs = [
        pl.BlockSpec((tb, IN_PAD), lambda i: (i, 0)),        # x (bf16)
        wspec((IN_PAD, HID)),                                # w1 (bf16)
        wspec((1, HID)),                                     # b1
        wspec((HID, HID)),                                   # w2 (bf16)
        wspec((1, HID)),                                     # b2
        wspec((HID, 2 * Z_DIM)),                             # [wm | ws] (bf16)
        wspec((1, 2 * Z_DIM)),                               # [bm | bs]
        wspec((Z_DIM, CLS_PAD)),                             # wd padded (bf16)
        wspec((1, CLS_PAD)),                                 # bd (+ -1e30 mask lanes)
        pl.BlockSpec((tb * nl, Z_DIM), lambda i: (i, 0)),    # noise, flat (bf16)
    ]
    out_specs = (
        pl.BlockSpec((tb * nl, CLS_PAD), lambda i: (i, 0)),  # p_Y1Z, flat (bf16)
        pl.BlockSpec((tb, Z_DIM), lambda i: (i, 0)),         # mu
        pl.BlockSpec((tb, Z_DIM), lambda i: (i, 0)),         # logsig
    )
    out_shape = (
        jax.ShapeDtypeStruct((b_pad * nl, CLS_PAD), bf16),
        jax.ShapeDtypeStruct((b_pad, Z_DIM), jnp.float32),
        jax.ShapeDtypeStruct((b_pad, Z_DIM), jnp.float32),
    )

    # advisory cost hint so XLA overlaps the one-time weight DMA / host ops
    flops = (2 * b_pad * (IN_PAD * HID + HID * HID + HID * 2 * Z_DIM)
             + 2 * b_pad * nl * Z_DIM * CLS_PAD)
    transcendentals = b_pad * Z_DIM + b_pad * nl * (CLS_PAD + 1)
    w_bytes = sum(int(a.size) * a.dtype.itemsize for a in prep)
    io_bytes = ((xp.size + nflat.size + b_pad * nl * CLS_PAD) * 2
                + 2 * b_pad * Z_DIM * 4)
    cost = pl.CostEstimate(flops=flops, transcendentals=transcendentals,
                           bytes_accessed=w_bytes + io_bytes)

    pyz_flat, mu, logsig = pl.pallas_call(
        vib_kernel,
        grid=(b_pad // tb,),
        in_specs=in_specs,
        out_specs=out_specs,
        out_shape=out_shape,
        compiler_params=pltpu.CompilerParams(
            dimension_semantics=("parallel",),
            vmem_limit_bytes=VMEM_LIMIT),
        cost_estimate=cost,
    )(xp, w1, b1, w2, b2, wms, bms, wd, bd, nflat)

    # un-flatten, drop batch / class padding, restore f32; p_Y1X reduced here
    p_y1z = pyz_flat.reshape(b_pad, nl, CLS_PAD)[:B, :, :N_CLASSES].astype(jnp.float32)
    p_y1x = jnp.mean(p_y1z, axis=1)
    return p_y1z, p_y1x, mu[:B], logsig[:B]


def xavier_uniform(key, fan_in, fan_out):
    # matches nn.init.xavier_uniform_ on a Linear(in, out) weight (stored as (in, out))
    bound = (6.0 / (fan_in + fan_out)) ** 0.5
    return jax.random.uniform(key, (fan_in, fan_out), jnp.float32, -bound, bound)


def init_params(key):
    ks = jax.random.split(key, 5)
    w1 = xavier_uniform(ks[0], IN_DIM, HID)
    b1 = jnp.zeros((1, HID), jnp.float32)
    w2 = xavier_uniform(ks[1], HID, HID)
    b2 = jnp.zeros((1, HID), jnp.float32)
    wm = xavier_uniform(ks[2], HID, Z_DIM)
    bm = jnp.zeros((1, Z_DIM), jnp.float32)
    ws = xavier_uniform(ks[3], HID, Z_DIM)
    bs = jnp.zeros((1, Z_DIM), jnp.float32)
    wd = xavier_uniform(ks[4], Z_DIM, N_CLASSES)
    bd = jnp.zeros((1, N_CLASSES), jnp.float32)
    return (w1, b1, w2, b2, wm, bm, ws, bs, wd, bd)


def prepare_params(params):
    """One-time preprocessing: pad to lane multiples, fuse mu/logsig, cast bf16,
    and fold the padded-class mask into the decoder bias."""
    (w1, b1, w2, b2, wm, bm, ws, bs, wd, bd) = params
    bf16 = jnp.bfloat16
    w1p = jnp.zeros((IN_PAD, HID), jnp.float32).at[:IN_DIM].set(w1).astype(bf16)
    wms = jnp.concatenate([wm, ws], axis=1).astype(bf16)
    bms = jnp.concatenate([bm, bs], axis=1)
    wdp = jnp.zeros((Z_DIM, CLS_PAD), jnp.float32).at[:, :N_CLASSES].set(wd).astype(bf16)
    # padded class lanes get -1e30 so the in-kernel softmax sees exp(...)=0 there
    bdp = jnp.full((1, CLS_PAD), -1e30, jnp.float32).at[:, :N_CLASSES].set(bd)
    return (w1p, b1, w2.astype(bf16), b2, wms, bms, wdp, bdp)


def vib_reference(x, params, noise):
    # pure-JAX reference mirroring the kernel's bf16 operand casts / f32 accum
    (w1, b1, w2, b2, wm, bm, ws, bs, wd, bd) = params
    f32 = jnp.float32
    c = lambda a: a.astype(jnp.bfloat16)
    xb = 2.0 * c(x) - 1.0
    h1 = jax.nn.relu(jnp.dot(xb, c(w1), preferred_element_type=f32) + b1)
    h2 = jax.nn.relu(jnp.dot(c(h1), c(w2), preferred_element_type=f32) + b2)
    mu = jnp.dot(c(h2), c(wm), preferred_element_type=f32) + bm
    logsig = jnp.dot(c(h2), c(ws), preferred_element_type=f32) + bs
    s = c(mu + jnp.exp(logsig))
    z = s[:, None, :] + c(noise)                     # z = mu + noise + exp(logsig)
    logits = jnp.dot(z, c(wd), preferred_element_type=f32) + bd
    p_y1z = jax.nn.softmax(logits, axis=2)
    return p_y1z, p_y1z.mean(axis=1), mu, logsig


if __name__ == "__main__":
    key = jax.random.PRNGKey(0)
    k_x, k_p, k_n = jax.random.split(key, 3)

    B = 8
    x = jax.random.uniform(k_x, (B, IN_DIM), jnp.float32)   # "flattened image"
    params = init_params(k_p)
    prep = prepare_params(params)
    # noise replaces torch.randn((B, n_latent, z_dim)) — deterministic here
    noise = jax.random.normal(k_n, (B, N_LATENT, Z_DIM), jnp.float32)

    p_y1z, p_y1x, mu, logsig = jax.block_until_ready(vib_forward(x, prep, noise))

    r_y1z, r_y1x, r_mu, r_ls = vib_reference(x, params, noise)
    assert p_y1z.shape == (B, N_LATENT, N_CLASSES)
    assert p_y1x.shape == (B, N_CLASSES)
    assert mu.shape == (B, Z_DIM) and logsig.shape == (B, Z_DIM)
    # bf16 weights / I/O + approx reciprocal => relaxed tolerances vs. the
    # bf16-mirroring reference
    assert jnp.allclose(p_y1z, r_y1z, atol=1e-2, rtol=1e-2)
    assert jnp.allclose(p_y1x, r_y1x, atol=1e-2, rtol=1e-2)
    assert jnp.allclose(mu, r_mu, atol=2e-2, rtol=2e-2)
    assert jnp.allclose(logsig, r_ls, atol=2e-2, rtol=2e-2)
    # probs are stored in bf16, so the per-row sum is 1 only to ~2e-3
    assert jnp.max(jnp.abs(p_y1x.sum(axis=-1) - 1.0)) < 5e-3

    print("KERNEL_OK")
</pallas_src>

<mosaic_0001>
module attributes {stable_mosaic.version = 11 : i64} {
  func.func @vib_kernel(%arg0: i32, %arg1: memref<8x1024xbf16, #tpu.memory_space<vmem>>, %arg2: memref<1024x1024xbf16, #tpu.memory_space<vmem>>, %arg3: memref<1x1024xf32, #tpu.memory_space<vmem>>, %arg4: memref<1024x1024xbf16, #tpu.memory_space<vmem>>, %arg5: memref<1x1024xf32, #tpu.memory_space<vmem>>, %arg6: memref<1024x256xbf16, #tpu.memory_space<vmem>>, %arg7: memref<1x256xf32, #tpu.memory_space<vmem>>, %arg8: memref<128x128xbf16, #tpu.memory_space<vmem>>, %arg9: memref<1x128xf32, #tpu.memory_space<vmem>>, %arg10: memref<96x128xbf16, #tpu.memory_space<vmem>>, %arg11: memref<96x128xbf16, #tpu.memory_space<vmem>>, %arg12: memref<8x128xf32, #tpu.memory_space<vmem>>, %arg13: memref<8x128xf32, #tpu.memory_space<vmem>>) attributes {dimension_semantics = [#tpu.dimension_semantics<parallel>], iteration_bounds = array<i64: 1>, scalar_prefetch = 0 : i64, scratch_operands = 0 : i64, tpu.core_type = #tpu.core_type<tc>, window_params = [{transform_indices = @transform_0, window_bounds = array<i64: 8, 1024>}, {pipeline_mode = #tpu.pipeline_mode<synchronous>, transform_indices = @transform_1, window_bounds = array<i64: 1024, 1024>}, {pipeline_mode = #tpu.pipeline_mode<synchronous>, transform_indices = @transform_2, window_bounds = array<i64: 1, 1024>}, {pipeline_mode = #tpu.pipeline_mode<synchronous>, transform_indices = @transform_3, window_bounds = array<i64: 1024, 1024>}, {pipeline_mode = #tpu.pipeline_mode<synchronous>, transform_indices = @transform_4, window_bounds = array<i64: 1, 1024>}, {pipeline_mode = #tpu.pipeline_mode<synchronous>, transform_indices = @transform_5, window_bounds = array<i64: 1024, 256>}, {pipeline_mode = #tpu.pipeline_mode<synchronous>, transform_indices = @transform_6, window_bounds = array<i64: 1, 256>}, {pipeline_mode = #tpu.pipeline_mode<synchronous>, transform_indices = @transform_7, window_bounds = array<i64: 128, 128>}, {pipeline_mode = #tpu.pipeline_mode<synchronous>, transform_indices = @transform_8, window_bounds = array<i64: 1, 128>}, {transform_indices = @transform_9, window_bounds = array<i64: 96, 128>}, {transform_indices = @transform_10, window_bounds = array<i64: 96, 128>}, {transform_indices = @transform_11, window_bounds = array<i64: 8, 128>}, {transform_indices = @transform_12, window_bounds = array<i64: 8, 128>}]} {
    %c0 = arith.constant 0 : index
    %c0_0 = arith.constant 0 : index
    %0 = vector.load %arg1[%c0, %c0_0] : memref<8x1024xbf16, #tpu.memory_space<vmem>>, vector<8x1024xbf16>
    %cst = arith.constant 2.000000e+00 : bf16
    %1 = vector.broadcast %cst : bf16 to vector<8x1024xbf16>
    %2 = arith.mulf %1, %0 : vector<8x1024xbf16>
    %cst_1 = arith.constant 1.000000e+00 : bf16
    %3 = vector.broadcast %cst_1 : bf16 to vector<8x1024xbf16>
    %4 = arith.subf %2, %3 : vector<8x1024xbf16>
    %c0_2 = arith.constant 0 : index
    %c0_3 = arith.constant 0 : index
    %5 = vector.load %arg2[%c0_2, %c0_3] : memref<1024x1024xbf16, #tpu.memory_space<vmem>>, vector<1024x1024xbf16>
    %cst_4 = arith.constant dense<0.000000e+00> : vector<8x1024xf32>
    %6 = tpu.matmul %4, %5, %cst_4 {dimension_numbers = #tpu.dot_dimension_numbers<[1], [0], [0], [1], [0, 0, 1, 1], [], []>} : vector<8x1024xbf16>, vector<1024x1024xbf16>, vector<8x1024xf32> -> vector<8x1024xf32>
    %c0_5 = arith.constant 0 : index
    %c0_6 = arith.constant 0 : index
    %7 = vector.load %arg3[%c0_5, %c0_6] : memref<1x1024xf32, #tpu.memory_space<vmem>>, vector<1x1024xf32>
    %8 = vector.broadcast %7 : vector<1x1024xf32> to vector<8x1024xf32>
    %9 = arith.addf %6, %8 : vector<8x1024xf32>
    %cst_7 = arith.constant 0.000000e+00 : f32
    %10 = vector.broadcast %cst_7 : f32 to vector<8x1024xf32>
    %11 = arith.maximumf %9, %10 : vector<8x1024xf32>
    %12 = arith.truncf %11 : vector<8x1024xf32> to vector<8x1024xbf16>
    %c0_8 = arith.constant 0 : index
    %c0_9 = arith.constant 0 : index
    %13 = vector.load %arg4[%c0_8, %c0_9] : memref<1024x1024xbf16, #tpu.memory_space<vmem>>, vector<1024x1024xbf16>
    %cst_10 = arith.constant dense<0.000000e+00> : vector<8x1024xf32>
    %14 = tpu.matmul %12, %13, %cst_10 {dimension_numbers = #tpu.dot_dimension_numbers<[1], [0], [0], [1], [0, 0, 1, 1], [], []>} : vector<8x1024xbf16>, vector<1024x1024xbf16>, vector<8x1024xf32> -> vector<8x1024xf32>
    %c0_11 = arith.constant 0 : index
    %c0_12 = arith.constant 0 : index
    %15 = vector.load %arg5[%c0_11, %c0_12] : memref<1x1024xf32, #tpu.memory_space<vmem>>, vector<1x1024xf32>
    %16 = vector.broadcast %15 : vector<1x1024xf32> to vector<8x1024xf32>
    %17 = arith.addf %14, %16 : vector<8x1024xf32>
    %cst_13 = arith.constant 0.000000e+00 : f32
    %18 = vector.broadcast %cst_13 : f32 to vector<8x1024xf32>
    %19 = arith.maximumf %17, %18 : vector<8x1024xf32>
    %20 = arith.truncf %19 : vector<8x1024xf32> to vector<8x1024xbf16>
    %c0_14 = arith.constant 0 : index
    %c0_15 = arith.constant 0 : index
    %21 = vector.load %arg6[%c0_14, %c0_15] : memref<1024x256xbf16, #tpu.memory_space<vmem>>, vector<1024x256xbf16>
    %cst_16 = arith.constant dense<0.000000e+00> : vector<8x256xf32>
    %22 = tpu.matmul %20, %21, %cst_16 {dimension_numbers = #tpu.dot_dimension_numbers<[1], [0], [0], [1], [0, 0, 1, 1], [], []>} : vector<8x1024xbf16>, vector<1024x256xbf16>, vector<8x256xf32> -> vector<8x256xf32>
    %c0_17 = arith.constant 0 : index
    %c0_18 = arith.constant 0 : index
    %23 = vector.load %arg7[%c0_17, %c0_18] : memref<1x256xf32, #tpu.memory_space<vmem>>, vector<1x256xf32>
    %24 = vector.broadcast %23 : vector<1x256xf32> to vector<8x256xf32>
    %25 = arith.addf %22, %24 : vector<8x256xf32>
    %26 = vector.extract_strided_slice %25 {offsets = [0, 0], sizes = [8, 128], strides = [1, 1]} : vector<8x256xf32> to vector<8x128xf32>
    %27 = vector.extract_strided_slice %25 {offsets = [0, 128], sizes = [8, 128], strides = [1, 1]} : vector<8x256xf32> to vector<8x128xf32>
    %c0_19 = arith.constant 0 : index
    %c0_20 = arith.constant 0 : index
    %28 = vector.load %arg12[%c0_19, %c0_20] : memref<8x128xf32, #tpu.memory_space<vmem>>, vector<8x128xf32>
    tpu.vector_store %arg12[%c0_19, %c0_20], %26 {strides = array<i32>} : memref<8x128xf32, #tpu.memory_space<vmem>>, vector<8x128xf32>,
    %c0_21 = arith.constant 0 : index
    %c0_22 = arith.constant 0 : index
    %29 = vector.load %arg13[%c0_21, %c0_22] : memref<8x128xf32, #tpu.memory_space<vmem>>, vector<8x128xf32>
    tpu.vector_store %arg13[%c0_21, %c0_22], %27 {strides = array<i32>} : memref<8x128xf32, #tpu.memory_space<vmem>>, vector<8x128xf32>,
    %30 = math.exp %27 : vector<8x128xf32>
    %31 = arith.addf %26, %30 : vector<8x128xf32>
    %32 = arith.truncf %31 : vector<8x128xf32> to vector<8x128xbf16>
    %33 = vector.shape_cast %32 : vector<8x128xbf16> to vector<8x1x128xbf16>
    %34 = vector.shape_cast %33 : vector<8x1x128xbf16> to vector<8x1x128xbf16>
    %35 = vector.broadcast %34 : vector<8x1x128xbf16> to vector<8x12x128xbf16>
    %36 = vector.shape_cast %35 : vector<8x12x128xbf16> to vector<96x128xbf16>
    %c0_23 = arith.constant 0 : index
    %c0_24 = arith.constant 0 : index
    %37 = vector.load %arg10[%c0_23, %c0_24] : memref<96x128xbf16, #tpu.memory_space<vmem>>, vector<96x128xbf16>
    %38 = arith.addf %36, %37 : vector<96x128xbf16>
    %c0_25 = arith.constant 0 : index
    %c0_26 = arith.constant 0 : index
    %39 = vector.load %arg8[%c0_25, %c0_26] : memref<128x128xbf16, #tpu.memory_space<vmem>>, vector<128x128xbf16>
    %cst_27 = arith.constant dense<0.000000e+00> : vector<96x128xf32>
    %40 = tpu.matmul %38, %39, %cst_27 {dimension_numbers = #tpu.dot_dimension_numbers<[1], [0], [0], [1], [0, 0, 1, 1], [], []>} : vector<96x128xbf16>, vector<128x128xbf16>, vector<96x128xf32> -> vector<96x128xf32>
    %c0_28 = arith.constant 0 : index
    %c0_29 = arith.constant 0 : index
    %41 = vector.load %arg9[%c0_28, %c0_29] : memref<1x128xf32, #tpu.memory_space<vmem>>, vector<1x128xf32>
    %42 = vector.broadcast %41 : vector<1x128xf32> to vector<96x128xf32>
    %43 = arith.addf %40, %42 : vector<96x128xf32>
    %cst_30 = arith.constant dense<0xFF800000> : vector<96xf32>
    %44 = vector.multi_reduction <maximumf>, %43, %cst_30 [1] : vector<96x128xf32> to vector<96xf32>
    %45 = vector.shape_cast %44 : vector<96xf32> to vector<96x1xf32>
    %46 = vector.broadcast %45 : vector<96x1xf32> to vector<96x128xf32>
    %47 = arith.subf %43, %46 : vector<96x128xf32>
    %48 = math.exp %47 : vector<96x128xf32>
    %cst_31 = arith.constant dense<0.000000e+00> : vector<96xf32>
    %49 = vector.multi_reduction <add>, %48, %cst_31 [1] : vector<96x128xf32> to vector<96xf32>
    %50 = vector.shape_cast %49 : vector<96xf32> to vector<96x1xf32>
    %51 = tpu.reciprocal %50 {approx = true} : vector<96x1xf32> -> vector<96x1xf32>
    %52 = vector.broadcast %51 : vector<96x1xf32> to vector<96x128xf32>
    %53 = arith.mulf %48, %52 : vector<96x128xf32>
    %54 = arith.truncf %53 : vector<96x128xf32> to vector<96x128xbf16>
    %c0_32 = arith.constant 0 : index
    %c0_33 = arith.constant 0 : index
    %55 = vector.load %arg11[%c0_32, %c0_33] : memref<96x128xbf16, #tpu.memory_space<vmem>>, vector<96x128xbf16>
    tpu.vector_store %arg11[%c0_32, %c0_33], %54 {strides = array<i32>} : memref<96x128xbf16, #tpu.memory_space<vmem>>, vector<96x128xbf16>,
    return
  }
  func.func @transform_0(%arg0: i32) -> (i32, i32) {
    %c0_i32 = arith.constant 0 : i32
    %c0_i32_0 = arith.constant 0 : i32
    return %arg0, %c0_i32 : i32, i32
  }
  func.func @transform_1(%arg0: i32) -> (i32, i32) {
    %c0_i32 = arith.constant 0 : i32
    %c0_i32_0 = arith.constant 0 : i32
    %c0_i32_1 = arith.constant 0 : i32
    return %c0_i32, %c0_i32_0 : i32, i32
  }
  func.func @transform_2(%arg0: i32) -> (i32, i32) {
    %c0_i32 = arith.constant 0 : i32
    %c0_i32_0 = arith.constant 0 : i32
    %c0_i32_1 = arith.constant 0 : i32
    return %c0_i32, %c0_i32_0 : i32, i32
  }
  func.func @transform_3(%arg0: i32) -> (i32, i32) {
    %c0_i32 = arith.constant 0 : i32
    %c0_i32_0 = arith.constant 0 : i32
    %c0_i32_1 = arith.constant 0 : i32
    return %c0_i32, %c0_i32_0 : i32, i32
  }
  func.func @transform_4(%arg0: i32) -> (i32, i32) {
    %c0_i32 = arith.constant 0 : i32
    %c0_i32_0 = arith.constant 0 : i32
    %c0_i32_1 = arith.constant 0 : i32
    return %c0_i32, %c0_i32_0 : i32, i32
  }
  func.func @transform_5(%arg0: i32) -> (i32, i32) {
    %c0_i32 = arith.constant 0 : i32
    %c0_i32_0 = arith.constant 0 : i32
    %c0_i32_1 = arith.constant 0 : i32
    return %c0_i32, %c0_i32_0 : i32, i32
  }
  func.func @transform_6(%arg0: i32) -> (i32, i32) {
    %c0_i32 = arith.constant 0 : i32
    %c0_i32_0 = arith.constant 0 : i32
    %c0_i32_1 = arith.constant 0 : i32
    return %c0_i32, %c0_i32_0 : i32, i32
  }
  func.func @transform_7(%arg0: i32) -> (i32, i32) {
    %c0_i32 = arith.constant 0 : i32
    %c0_i32_0 = arith.constant 0 : i32
    %c0_i32_1 = arith.constant 0 : i32
    return %c0_i32, %c0_i32_0 : i32, i32
  }
  func.func @transform_8(%arg0: i32) -> (i32, i32) {
    %c0_i32 = arith.constant 0 : i32
    %c0_i32_0 = arith.constant 0 : i32
    %c0_i32_1 = arith.constant 0 : i32
    return %c0_i32, %c0_i32_0 : i32, i32
  }
  func.func @transform_9(%arg0: i32) -> (i32, i32) {
    %c0_i32 = arith.constant 0 : i32
    %c0_i32_0 = arith.constant 0 : i32
    return %arg0, %c0_i32 : i32, i32
  }
  func.func @transform_10(%arg0: i32) -> (i32, i32) {
    %c0_i32 = arith.constant 0 : i32
    %c0_i32_0 = arith.constant 0 : i32
    return %arg0, %c0_i32 : i32, i32
  }
  func.func @transform_11(%arg0: i32) -> (i32, i32) {
    %c0_i32 = arith.constant 0 : i32
    %c0_i32_0 = arith.constant 0 : i32
    return %arg0, %c0_i32 : i32, i32
  }
  func.func @transform_12(%arg0: i32) -> (i32, i32) {
    %c0_i32 = arith.constant 0 : i32
    %c0_i32_0 = arith.constant 0 : i32
    return %arg0, %c0_i32 : i32, i32
  }
}

</mosaic_0001>

<bundles_post_ra>
// kernel: vib_forward.1
= control target key start
LH: loop header
LB: loop body
LE: loop exit
PB: predicated region body
PF: predicated region fallthrough
CT: control target
= control target key end

     0   :  { %18 = vsyncpa [#allocation3], 0  ;;  %s16584_s0 = inlined_call_operand.vmem [shape: bf16[8,1024], index: 0, kind: input, shape index: {}]   ;;  %s16585_s1 = inlined_call_operand.hbm [shape: bf16[1024,1024], index: 1, kind: input, shape index: {}]   ;;  %s16586_s2 = inlined_call_operand.hbm [shape: f32[1,1024], index: 2, kind: input, shape index: {}]   ;;  %s16587_s3 = inlined_call_operand.hbm [shape: bf16[1024,1024], index: 3, kind: input, shape index: {}]   ;;  %s16588_s4 = inlined_call_operand.hbm [shape: f32[1,1024], index: 4, kind: input, shape index: {}]   ;;  %s16589_s5 = inlined_call_operand.hbm [shape: bf16[1024,256], index: 5, kind: input, shape index: {}]   ;;  %s16590_s6 = inlined_call_operand.hbm [shape: f32[1,256], index: 6, kind: input, shape index: {}]   ;;  %s16591_s7 = inlined_call_operand.hbm [shape: bf16[128,128], index: 7, kind: input, shape index: {}]   ;;  %s16592_s8 = inlined_call_operand.hbm [shape: f32[1,128], index: 8, kind: input, shape index: {}]   ;;  %s16593_s9 = inlined_call_operand.vmem [shape: bf16[96,128], index: 9, kind: input, shape index: {}]   ;;  %s16594_s10 = inlined_call_operand.vmem [shape: bf16[96,128], index: 10, kind: output, shape index: {0}]   ;;  %s16595_s11 = inlined_call_operand.hbm [shape: f32[8,128], index: 11, kind: output, shape index: {1}]   ;;  %s16596_s12 = inlined_call_operand.hbm [shape: f32[8,128], index: 12, kind: output, shape index: {2}]  }
   0x1   :  { %19 = vsyncpa [#allocation6], 0 }
   0x2   :  { %20 = vsyncpa [#allocation9], 0 }
   0x3   :  { %21 = vsyncpa [#allocation12], 0 }
   0x4   :  { %22 = vsyncpa [#allocation15], 0 }
   0x5   :  { %23 = vsyncpa [#allocation4], 0  ;;  %s45_s23 = sshll.u32 %s16586_s2, 4  ;;  %s46_s23 = int_to_ptr.hbm [resolvable:$true] %s45_s23 }
   0x6   :  { %24 = vsyncpa [#allocation18], 0  ;;  %s15860_s24 = smov [#allocation5]   ;;  %s69_s28 = sshll.u32 %s16588_s4, 4  ;;  %s70_s28 = int_to_ptr.hbm [resolvable:$true] %s69_s28 }
   0x7   :  { %s47_s25 = sshll.u32 %s15860_s24, 4  ;;  %s15861_s29 = smov [#allocation8]   ;;  %s48_s25 = int_to_ptr.vmem [resolvable:$true] %s47_s25 }
   0x8   :  { %50 = dma.hbm_to_vmem [thread:$0]  %s46_s23, 128, %s48_s25, [#allocation6]  }
   0x9   :  { %s71_s30 = sshll.u32 %s15861_s29, 4  ;;  %s93_s15 = sshll.u32 %s16590_s6, 4  ;;  %s72_s30 = int_to_ptr.vmem [resolvable:$true] %s71_s30  ;;  %s94_s15 = int_to_ptr.hbm [resolvable:$true] %s93_s15 }
   0xa   :  { %74 = dma.hbm_to_vmem [thread:$0]  %s70_s28, 128, %s72_s30, [#allocation9]  }
   0xb   :  { %s31_s17 = sshll.u32 %s16585_s1, 4  ;;  %s15862_s18 = smov [#allocation11]   ;;  %s32_s17 = int_to_ptr.hbm [resolvable:$true] %s31_s17 }
   0xc   :  { %s95_s19 = sshll.u32 %s15862_s18, 4  ;;  %s15863_s4 = smov [#allocation2]   ;;  %s96_s19 = int_to_ptr.vmem [resolvable:$true] %s95_s19 }
   0xd   :  { %98 = dma.hbm_to_vmem [thread:$0]  %s94_s15, 32, %s96_s19, [#allocation12]  }
   0xe   :  { %s33_s20 = sshll.u32 %s15863_s4, 4  ;;  %s15864_s21 = smov 512   ;;  %s34_s20 = int_to_ptr.vmem [resolvable:$true] %s33_s20 }
   0xf   :  { %s15865_s22 = smov 32   ;;  %s55_s24 = sshll.u32 %s16587_s3, 4  ;;  %s56_s24 = int_to_ptr.hbm [resolvable:$true] %s55_s24 }
  0x10   :  { %39 = dma.hbm_to_vmem [thread:$0]  %s32_s17, 65536, %s34_s20, [#allocation3], %s15864_s21, %s15864_s21, %s15865_s22  }
  0x11   :  { %s15866_s25 = smov [#allocation7]   ;;  %s79_s28 = sshll.u32 %s16589_s5, 4  ;;  %s80_s28 = int_to_ptr.hbm [resolvable:$true] %s79_s28 }
  0x12   :  { %s57_s26 = sshll.u32 %s15866_s25, 4  ;;  %s15867_s29 = smov [#allocation10]   ;;  %s58_s26 = int_to_ptr.vmem [resolvable:$true] %s57_s26 }
  0x13   :  { %63 = dma.hbm_to_vmem [thread:$0]  %s56_s24, 65536, %s58_s26, [#allocation6], %s15864_s21, %s15864_s21, %s15865_s22  }
  0x14   :  { %s81_s30 = sshll.u32 %s15867_s29, 4  ;;  %s15868_s13 = smov 128   ;;  %s82_s30 = int_to_ptr.vmem [resolvable:$true] %s81_s30 }
  0x15   :  { %s15869_s14 = smov 8   ;;  %s103_s3 = sshll.u32 %s16591_s7, 4  ;;  %s104_s3 = int_to_ptr.hbm [resolvable:$true] %s103_s3 }
  0x16   :  { %87 = dma.hbm_to_vmem [thread:$0]  %s80_s28, 16384, %s82_s30, [#allocation9], %s15868_s13, %s15868_s13, %s15869_s14  }
  0x17   :  { %s15870_s16 = smov [#allocation13]   ;;  %s117_s5 = sshll.u32 %s16592_s8, 4  ;;  %s118_s5 = int_to_ptr.hbm [resolvable:$true] %s117_s5 }
  0x18   :  { %s105_s17 = sshll.u32 %s15870_s16, 4  ;;  %s15871_s4 = smov 64   ;;  %s106_s17 = int_to_ptr.vmem [resolvable:$true] %s105_s17 }
  0x19   :  { %s15872_s20 = smov 4   ;;  %s15873_s21 = smov [#allocation14]  }
  0x1a   :  { %111 = dma.hbm_to_vmem [thread:$0]  %s104_s3, 1024, %s106_s17, [#allocation12], %s15871_s4, %s15871_s4, %s15872_s20  }
  0x1b   :  { %s119_s22 = sshll.u32 %s15873_s21, 4  ;;  %s120_s22 = int_to_ptr.vmem [resolvable:$true] %s119_s22 }
  0x1c   :  { %122 = dma.hbm_to_vmem [thread:$0]  %s118_s5, 16, %s120_s22, [#allocation15]  }
  0x1d   :  { %15846 = dma.done.wait [#allocation3], 65536  }
  0x1e   :  { %15847 = vsyncadd [#allocation3], 4294901760 }
  0x1f   :  { %15848 = dma.done.wait [#allocation6], 65664  }
  0x20   :  { %15849 = vsyncadd [#allocation6], 4294901632 }
  0x21   :  { %15850 = dma.done.wait [#allocation9], 16512  }
  0x22   :  { %15851 = vsyncadd [#allocation9], 4294950784 }
  0x23   :  { %15852 = dma.done.wait [#allocation12], 1056  }
  0x24   :  { %15853 = vsyncadd [#allocation12], 4294966240 }
  0x25   :  { %15854 = dma.done.wait [#allocation15], 16  }
  0x26   :  { %15855 = vsyncadd [#allocation15], 4294967280  ;;  %v9891_v0 = vld [vmem:[#allocation2 + $0x1c0] sm:$0xf]  ;;  %v14621_v9 = vld [vmem:[#allocation2 + $0x9c4] sm:$0xf] }
  0x27   :  { %v14369_v1 = vld [vmem:[#allocation2 + $0x1dc] sm:$0xf0]  ;;  %v10917_v10 = vld [vmem:[#allocation2 + $0x9e0] sm:$0xf0]  ;;  %vm9071_vm0 = vcmask 1040384   ;;  %vm9076_vm1 = vcmask 1041409  }
  0x28   :  { %v10403_v2 = vld [vmem:[#allocation2 + $0x5c0] sm:$0xf]  ;;  %v9892_v3 = vor.u32 %v14369_v1, %v9891_v0  ;;  %v10920_v12 = vor.u32 %v14621_v9, %v10917_v10  ;;  %v14613_v20 = vld [vmem:[#allocation2 + $0x984] sm:$0xf]  ;;  %vm9080_vm2 = vcmask 1042434   ;;  %vm9084_vm3 = vcmask 1043459  }
  0x29   :  { %v14497_v4 = vld [vmem:[#allocation2 + $0x5dc] sm:$0xf0]  ;;  %v10885_v22 = vld [vmem:[#allocation2 + $0x9a0] sm:$0xf0]  ;;  %s9625_s19 = sshll.u32 %s16595_s11, 4  ;;  %s15874_s5 = smov [#allocation16]   ;;  %s9626_s19 = int_to_ptr.hbm [resolvable:$true] %s9625_s19 }
  0x2a   :  { %v10659_v5 = vld [vmem:[#allocation2 + $0x7c0] sm:$0xf]  ;;  %v10404_v7 = vor.u32 %v14497_v4, %v10403_v2  ;;  %3295 = vmatpush.bf16.msra.mxu1 %v9892_v3  ;;  %3451 = vmatpush.bf16.msra.mxu0 %v10920_v12  ;;  %v10888_v25 = vor.u32 %v14613_v20, %v10885_v22  ;;  %v14605_v31 = vld [vmem:[#allocation2 + $0x944] sm:$0xf]  ;;  %s9623_s4 = sshll.u32 %s15874_s5, 4  ;;  %s15875_s20 = smov [#allocation17]   ;;  %s9624_s4 = int_to_ptr.vmem [resolvable:$true] %s9623_s4 }
  0x2b   :  { %v14561_v6 = vld [vmem:[#allocation2 + $0x7dc] sm:$0xf0]  ;;  %v10853_v32 = vld [vmem:[#allocation2 + $0x960] sm:$0xf0]  ;;  %s9634_s21 = sshll.u32 %s15875_s20, 4  ;;  %s9636_s8 = sshll.u32 %s16596_s12, 4  ;;  %s9635_s21 = int_to_ptr.vmem [resolvable:$true] %s9634_s21  ;;  %s9637_s8 = int_to_ptr.hbm [resolvable:$true] %s9636_s8 }
  0x2c   :  { %v10660_v8 = vor.u32 %v14561_v6, %v10659_v5  ;;  %v9859_v11 = vld [vmem:[#allocation2 + $0x180] sm:$0xf]  ;;  %3321 = vmatpush.bf16.msra.mxu2 %v10404_v7  ;;  %v10856_v38 = vor.u32 %v14605_v31, %v10853_v32  ;;  %v14597_v42 = vld [vmem:[#allocation2 + $0x904] sm:$0xf] }
  0x2d   :  { %v14361_v13 = vld [vmem:[#allocation2 + $0x19c] sm:$0xf0]  ;;  %v10821_v43 = vld [vmem:[#allocation2 + $0x920] sm:$0xf0] }
  0x2e   :  { %v10371_v14 = vld [vmem:[#allocation2 + $0x580] sm:$0xf]  ;;  %3334 = vmatpush.bf16.msra.mxu3 %v10660_v8  ;;  %v9860_v16 = vor.u32 %v14361_v13, %v9859_v11  ;;  %3452 = vmatpush.bf16.msra.mxu0 %v10888_v25  ;;  %v10824_v50 = vor.u32 %v14597_v42, %v10821_v43  ;;  %v14589_v54 = vld [vmem:[#allocation2 + $0x8c4] sm:$0xf] }
  0x2f   :  { %v14489_v15 = vld [vmem:[#allocation2 + $0x59c] sm:$0xf0]  ;;  %v10789_v55 = vld [vmem:[#allocation2 + $0x8e0] sm:$0xf0] }
  0x30   :  { %v10372_v17 = vor.u32 %v14489_v15, %v10371_v14  ;;  %v10627_v18 = vld [vmem:[#allocation2 + $0x780] sm:$0xf]  ;;  %3296 = vmatpush.bf16.msra.mxu1 %v9860_v16  ;;  %v10792_v62 = vor.u32 %v14589_v54, %v10789_v55  ;;  %v14581_v2 = vld [vmem:[#allocation2 + $0x884] sm:$0xf] }
  0x31   :  { %v14553_v19 = vld [vmem:[#allocation2 + $0x79c] sm:$0xf0]  ;;  %v10757_v3 = vld [vmem:[#allocation2 + $0x8a0] sm:$0xf0] }
  0x32   :  { %v10628_v21 = vor.u32 %v14553_v19, %v10627_v18  ;;  %v9827_v23 = vld [vmem:[#allocation2 + $0x140] sm:$0xf]  ;;  %3322 = vmatpush.bf16.msra.mxu2 %v10372_v17  ;;  %3453 = vmatpush.bf16.msra.mxu0 %v10856_v38  ;;  %v10760_v10 = vor.u32 %v14581_v2, %v10757_v3  ;;  %v14573_v14 = vld [vmem:[#allocation2 + $0x844] sm:$0xf]  ;;  %v14370_v38 = vld [vmem:[#allocation2 + $0x1e4] sm:$0xf0] }
  0x33   :  { %v14353_v24 = vld [vmem:[#allocation2 + $0x15c] sm:$0xf0]  ;;  %v10725_v15 = vld [vmem:[#allocation2 + $0x860] sm:$0xf0]  ;;  %v9835_v2 = vld [vmem:[#allocation2 + $0x148] sm:$0xf] }
  0x34   :  { %v10339_v26 = vld [vmem:[#allocation2 + $0x540] sm:$0xf]  ;;  %v9828_v29 = vor.u32 %v14353_v24, %v9827_v23  ;;  %3335 = vmatpush.bf16.msra.mxu3 %v10628_v21  ;;  %v10728_v24 = vor.u32 %v14573_v14, %v10725_v15  ;;  %v14354_v3 = vld [vmem:[#allocation2 + $0x164] sm:$0xf0] }
  0x35   :  { %v14481_v27 = vld [vmem:[#allocation2 + $0x55c] sm:$0xf0] }
  0x36   :  { %v10595_v28 = vld [vmem:[#allocation2 + $0x740] sm:$0xf]  ;;  %v10340_v33 = vor.u32 %v14481_v27, %v10339_v26  ;;  %3297 = vmatpush.bf16.msra.mxu1 %v9828_v29  ;;  %3454 = vmatpush.bf16.msra.mxu0 %v10824_v50  ;;  %v14565_v26 = vld [vmem:[#allocation2 + $0x804] sm:$0xf]  ;;  %v9867_v50 = vld [vmem:[#allocation2 + $0x188] sm:$0xf] }
  0x37   :  { %v14545_v30 = vld [vmem:[#allocation2 + $0x75c] sm:$0xf0]  ;;  %v10693_v27 = vld [vmem:[#allocation2 + $0x820] sm:$0xf0] }
  0x38   :  { %v10596_v34 = vor.u32 %v14545_v30, %v10595_v28  ;;  %v9795_v35 = vld [vmem:[#allocation2 + $0x100] sm:$0xf]  ;;  %3323 = vmatpush.bf16.msra.mxu2 %v10340_v33 }
  0x39   :  { %v14345_v36 = vld [vmem:[#allocation2 + $0x11c] sm:$0xf0] }
  0x3a   :  { %v10307_v37 = vld [vmem:[#allocation2 + $0x500] sm:$0xf]  ;;  %v9796_v44 = vor.u32 %v14345_v36, %v9795_v35  ;;  %3336 = vmatpush.bf16.msra.mxu3 %v10596_v34  ;;  %3455 = vmatpush.bf16.msra.mxu0 %v10792_v62 }
  0x3b   :  { %v14473_v39 = vld [vmem:[#allocation2 + $0x51c] sm:$0xf0] }
  0x3c   :  { %v10563_v40 = vld [vmem:[#allocation2 + $0x700] sm:$0xf]  ;;  %v10308_v45 = vor.u32 %v14473_v39, %v10307_v37  ;;  %3298 = vmatpush.bf16.msra.mxu1 %v9796_v44  ;;  %v9899_v37 = vld [vmem:[#allocation2 + $0x1c8] sm:$0xf]  ;;  %v10696_v39 = vor.u32 %v14565_v26, %v10693_v27 }
  0x3d   :  { %v14537_v41 = vld [vmem:[#allocation2 + $0x71c] sm:$0xf0] }
  0x3e   :  { %v10564_v46 = vor.u32 %v14537_v41, %v10563_v40  ;;  %v9763_v47 = vld [vmem:[#allocation2 + $0xc0] sm:$0xf]  ;;  %3324 = vmatpush.bf16.msra.mxu2 %v10308_v45  ;;  %3456 = vmatpush.bf16.msra.mxu0 %v10760_v10 }
  0x3f   :  { %v14337_v48 = vld [vmem:[#allocation2 + $0xdc] sm:$0xf0] }
  0x40   :  { %v10275_v49 = vld [vmem:[#allocation2 + $0x4c0] sm:$0xf]  ;;  %v9764_v56 = vor.u32 %v14337_v48, %v9763_v47  ;;  %3337 = vmatpush.bf16.msra.mxu3 %v10564_v46  ;;  %v9900_v46 = vor.u32 %v14370_v38, %v9899_v37  ;;  %v159_v38 = vld [vmem:[%s16584_s0 + $0x10] sm:$0xff] }
  0x41   :  { %v14465_v51 = vld [vmem:[#allocation2 + $0x4dc] sm:$0xf0] }
  0x42   :  { %v10531_v52 = vld [vmem:[#allocation2 + $0x6c0] sm:$0xf]  ;;  %v10276_v57 = vor.u32 %v14465_v51, %v10275_v49  ;;  %3299 = vmatpush.bf16.msra.mxu1 %v9764_v56  ;;  %3457 = vmatpush.bf16.msra.mxu0 %v10728_v24  ;;  %v14362_v51 = vld [vmem:[#allocation2 + $0x1a4] sm:$0xf0] }
  0x43   :  { %v14529_v53 = vld [vmem:[#allocation2 + $0x6dc] sm:$0xf0] }
  0x44   :  { %v10532_v58 = vor.u32 %v14529_v53, %v10531_v52  ;;  %v9731_v59 = vld [vmem:[#allocation2 + $0x80] sm:$0xf]  ;;  %3325 = vmatpush.bf16.msra.mxu2 %v10276_v57 }
  0x45   :  { %v14329_v60 = vld [vmem:[#allocation2 + $0x9c] sm:$0xf0] }
  0x46   :  { %v10243_v61 = vld [vmem:[#allocation2 + $0x480] sm:$0xf]  ;;  %v9732_v4 = vor.u32 %v14329_v60, %v9731_v59  ;;  %3338 = vmatpush.bf16.msra.mxu3 %v10532_v58  ;;  %3458 = vmatpush.bf16.msra.mxu0 %v10696_v39  ;;  %v157_v59 = vld [vmem:[%s16584_s0] sm:$0xff]  ;;  %v9868_v60 = vor.u32 %v14362_v51, %v9867_v50  ;;  %v9771_v39 = vld [vmem:[#allocation2 + $0xc8] sm:$0xf] }
  0x47   :  { %v14457_v63 = vld [vmem:[#allocation2 + $0x49c] sm:$0xf0] }
  0x48   :  { %v10499_v0 = vld [vmem:[#allocation2 + $0x680] sm:$0xf]  ;;  %v10244_v5 = vor.u32 %v14457_v63, %v10243_v61  ;;  %3300 = vmatpush.bf16.msra.mxu1 %v9732_v4  ;;  %v161_v63 = vunpack.c.l.bf16 %v157_v59 }
  0x49   :  { %v14521_v1 = vld [vmem:[#allocation2 + $0x69c] sm:$0xf0] }
  0x4a   :  { %v10500_v6 = vor.u32 %v14521_v1, %v10499_v0  ;;  %v9699_v7 = vld [vmem:[#allocation2 + $0x40] sm:$0xf]  ;;  %3326 = vmatpush.bf16.msra.mxu2 %v10244_v5  ;;  %3503 = vmatpush.bf16.msrb.mxu0 %v9900_v46  ;;  %v162_v0 = vunpack.c.h.bf16 %v157_v59 }
  0x4b   :  { %v14321_v8 = vld [vmem:[#allocation2 + $0x5c] sm:$0xf0] }
  0x4c   :  { %v10211_v9 = vld [vmem:[#allocation2 + $0x440] sm:$0xf]  ;;  %v9700_v16 = vor.u32 %v14321_v8, %v9699_v7  ;;  %3339 = vmatpush.bf16.msra.mxu3 %v10500_v6  ;;  %v169_v8 = vmul.f32 2.0, %v161_v63 }
  0x4d   :  { %v14449_v11 = vld [vmem:[#allocation2 + $0x45c] sm:$0xf0] }
  0x4e   :  { %v10467_v12 = vld [vmem:[#allocation2 + $0x640] sm:$0xf]  ;;  %v10212_v19 = vor.u32 %v14449_v11, %v10211_v9  ;;  %3301 = vmatpush.bf16.msra.mxu1 %v9700_v16  ;;  %v170_v9 = vmul.f32 2.0, %v162_v0  ;;  %3504 = vmatpush.bf16.msrb.mxu0 %v9868_v60  ;;  %v9836_v16 = vor.u32 %v14354_v3, %v9835_v2  ;;  %v9739_v60 = vld [vmem:[#allocation2 + $0x88] sm:$0xf] }
  0x4f   :  { %v14513_v13 = vld [vmem:[#allocation2 + $0x65c] sm:$0xf0] }
  0x50   :  { %v9667_v17 = vld [vmem:[#allocation2] sm:$0xf]  ;;  %v10468_v20 = vor.u32 %v14513_v13, %v10467_v12  ;;  %3327 = vmatpush.bf16.msra.mxu2 %v10212_v19 }
  0x51   :  { %v14313_v18 = vld [vmem:[#allocation2 + $0x1c] sm:$0xf0] }
  0x52   :  { %v10179_v21 = vld [vmem:[#allocation2 + $0x400] sm:$0xf]  ;;  %v9668_v31 = vor.u32 %v14313_v18, %v9667_v17  ;;  %3340 = vmatpush.bf16.msra.mxu3 %v10468_v20  ;;  %v15971_v20 = vpack.c.bf16 %v170_v9, %v169_v8  ;;  %3505 = vmatpush.bf16.msrb.mxu0 %v9836_v16  ;;  %v9707_v9 = vld [vmem:[#allocation2 + $0x48] sm:$0xf] }
  0x53   :  { %v14441_v22 = vld [vmem:[#allocation2 + $0x41c] sm:$0xf0] }
  0x54   :  { %v10435_v23 = vld [vmem:[#allocation2 + $0x600] sm:$0xf]  ;;  %v10180_v35 = vor.u32 %v14441_v22, %v10179_v21  ;;  %3302 = vmatpush.bf16.msra.mxu1 %v9668_v31  ;;  %v9803_v21 = vld [vmem:[#allocation2 + $0x108] sm:$0xf]  ;;  %v181_v26 = vunpack.c.l.bf16 %v15971_v20 }
  0x55   :  { %v14505_v25 = vld [vmem:[#allocation2 + $0x61c] sm:$0xf0]  ;;  %v14346_v22 = vld [vmem:[#allocation2 + $0x124] sm:$0xf0] }
  0x56   :  { %v10147_v28 = vld [vmem:[#allocation2 + $0x3c0] sm:$0xf]  ;;  %v10436_v36 = vor.u32 %v14505_v25, %v10435_v23  ;;  %3328 = vmatpush.bf16.msra.mxu2 %v10180_v35  ;;  %v9657_v37 = vadd.f32 -1.0, %v181_v26  ;;  %v9675_v26 = vld [vmem:[#allocation2 + $0x8] sm:$0xf] }
  0x57   :  { %v14433_v29 = vld [vmem:[#allocation2 + $0x3dc] sm:$0xf0] }
  0x58   :  { %v10915_v30 = vld [vmem:[#allocation2 + $0x9c0] sm:$0xf]  ;;  %v10148_v40 = vor.u32 %v14433_v29, %v10147_v28  ;;  %3341 = vmatpush.bf16.msra.mxu3 %v10436_v36  ;;  %v15977_v46 = vpack.c.bf16 %v9657_v37, %v9657_v37 }
  0x59   :  { %v14625_v32 = vld [vmem:[#allocation2 + $0x9dc] sm:$0xf0] }
  0x5a   :  { %v11683_v33 = vld [vmem:[#allocation2 + $0xfc0] sm:$0xf]  ;;  %v10916_v41 = vor.u32 %v14625_v32, %v10915_v30  ;;  %3308 = vmatpush.bf16.msrb.mxu1 %v10148_v40  ;;  %v14338_v40 = vld [vmem:[#allocation2 + $0xe4] sm:$0xf0] }
  0x5b   :  { %v14817_v34 = vld [vmem:[#allocation2 + $0xfdc] sm:$0xf0]  ;;  %3303 = vmatmul.bf16.vlgmr.msra.gmra.mxu1 %v15977_v46 }
  0x5c   :  { %v11684_v42 = vor.u32 %v14817_v34, %v11683_v33  ;;  %v10115_v43 = vld [vmem:[#allocation2 + $0x380] sm:$0xf]  ;;  %3347 = vmatpush.bf16.msrb.mxu2 %v10916_v41  ;;  %v9804_v34 = vor.u32 %v14346_v22, %v9803_v21 }
  0x5d   :  { %v14425_v44 = vld [vmem:[#allocation2 + $0x39c] sm:$0xf0] }
  0x5e   :  { %v10883_v45 = vld [vmem:[#allocation2 + $0x980] sm:$0xf]  ;;  %v10116_v52 = vor.u32 %v14425_v44, %v10115_v43  ;;  %3386 = vmatpush.bf16.msrb.mxu3 %v11684_v42  ;;  %v165_v43 = vunpack.c.l.bf16 %v159_v38  ;;  %3506 = vmatpush.bf16.msrb.mxu0 %v9804_v34  ;;  %v14365_v34 = vld [vmem:[#allocation2 + $0x1c4] sm:$0xf] }
  0x5f   :  { %v14617_v47 = vld [vmem:[#allocation2 + $0x99c] sm:$0xf0] }
  0x60   :  { %v11651_v48 = vld [vmem:[#allocation2 + $0xf80] sm:$0xf]  ;;  %v10884_v55 = vor.u32 %v14617_v47, %v10883_v45  ;;  %3309 = vmatpush.bf16.msrb.mxu1 %v10116_v52 }
  0x61   :  { %v14809_v49 = vld [vmem:[#allocation2 + $0xf9c] sm:$0xf0] }
  0x62   :  { %v10083_v53 = vld [vmem:[#allocation2 + $0x340] sm:$0xf]  ;;  %v11652_v56 = vor.u32 %v14809_v49, %v11651_v48  ;;  %3348 = vmatpush.bf16.msrb.mxu2 %v10884_v55  ;;  %v166_v49 = vunpack.c.h.bf16 %v159_v38  ;;  %v173_v55 = vmul.f32 2.0, %v165_v43 }
  0x63   :  { %v14417_v54 = vld [vmem:[#allocation2 + $0x35c] sm:$0xf0] }
  0x64   :  { %v10851_v57 = vld [vmem:[#allocation2 + $0x940] sm:$0xf]  ;;  %v10084_v6 = vor.u32 %v14417_v54, %v10083_v53  ;;  %3387 = vmatpush.bf16.msrb.mxu3 %v11652_v56  ;;  %v9772_v56 = vor.u32 %v14338_v40, %v9771_v39  ;;  %v174_v59 = vmul.f32 2.0, %v166_v49  ;;  %v10923_v40 = vld [vmem:[#allocation2 + $0x9c8] sm:$0xf] }
  0x65   :  { %v14609_v58 = vld [vmem:[#allocation2 + $0x95c] sm:$0xf0] }
  0x66   :  { %v11619_v61 = vld [vmem:[#allocation2 + $0xf40] sm:$0xf]  ;;  %v10852_v10 = vor.u32 %v14609_v58, %v10851_v57  ;;  %3310 = vmatpush.bf16.msrb.mxu1 %v10084_v6  ;;  %v15986_v0 = vpack.c.bf16 %v174_v59, %v173_v55  ;;  %3507 = vmatpush.bf16.msrb.mxu0 %v9772_v56  ;;  %v14357_v56 = vld [vmem:[#allocation2 + $0x184] sm:$0xf]  ;;  %v10891_v59 = vld [vmem:[#allocation2 + $0x988] sm:$0xf] }
  0x67   :  { %v14801_v62 = vld [vmem:[#allocation2 + $0xf5c] sm:$0xf0] }
  0x68   :  { %v158_v1 = vld [vmem:[%s16584_s0 + $0x8] sm:$0xff]  ;;  %v11620_v11 = vor.u32 %v14801_v62, %v11619_v61  ;;  %3349 = vmatpush.bf16.msrb.mxu2 %v10852_v10  ;;  %v14330_v61 = vld [vmem:[#allocation2 + $0xa4] sm:$0xf0]  ;;  %v185_v10 = vunpack.c.l.bf16 %v15986_v0 }
  0x69   :  { %v163_v4 = vunpack.c.l.bf16 %v158_v1  ;;  %v164_v5 = vunpack.c.h.bf16 %v158_v1  ;;  %v10051_v7 = vld [vmem:[#allocation2 + $0x300] sm:$0xf]  ;;  %v9740_v6 = vor.u32 %v14330_v61, %v9739_v60  ;;  %v14618_v60 = vld [vmem:[#allocation2 + $0x9a4] sm:$0xf0] }
  0x6a   :  { %v14409_v12 = vld [vmem:[#allocation2 + $0x31c] sm:$0xf0]  ;;  %3388 = vmatpush.bf16.msrb.mxu3 %v11620_v11  ;;  %v14322_v11 = vld [vmem:[#allocation2 + $0x64] sm:$0xf0] }
  0x6b   :  { %v10819_v13 = vld [vmem:[#allocation2 + $0x900] sm:$0xf]  ;;  %v171_v14 = vmul.f32 2.0, %v163_v4  ;;  %v172_v15 = vmul.f32 2.0, %v164_v5  ;;  %v10052_v24 = vor.u32 %v14409_v12, %v10051_v7  ;;  %3508 = vmatpush.bf16.msrb.mxu0 %v9740_v6 }
  0x6c   :  { %v14601_v17 = vld [vmem:[#allocation2 + $0x91c] sm:$0xf0] }
  0x6d   :  { %v11587_v18 = vld [vmem:[#allocation2 + $0xf00] sm:$0xf]  ;;  %v178_v23 = vpack.c.bf16 %v172_v15, %v171_v14  ;;  %v10820_v27 = vor.u32 %v14601_v17, %v10819_v13  ;;  %3311 = vmatpush.bf16.msrb.mxu1 %v10052_v24  ;;  %v160_v13 = vld [vmem:[%s16584_s0 + $0x18] sm:$0xff]  ;;  %v9661_v17 = vadd.f32 -1.0, %v185_v10  ;;  %v10859_v10 = vld [vmem:[#allocation2 + $0x948] sm:$0xf] }
  0x6e   :  { %v14793_v19 = vld [vmem:[#allocation2 + $0xf1c] sm:$0xf0]  ;;  %v168_v37 = vunpack.c.h.bf16 %v160_v13 }
  0x6f   :  { %v10019_v25 = vld [vmem:[#allocation2 + $0x2c0] sm:$0xf]  ;;  %v11588_v28 = vor.u32 %v14793_v19, %v11587_v18  ;;  %v183_v32 = vunpack.c.l.bf16 %v178_v23  ;;  %v184_v33 = vunpack.c.h.bf16 %v178_v23  ;;  %3350 = vmatpush.bf16.msrb.mxu2 %v10820_v27  ;;  %v182_v18 = vunpack.c.h.bf16 %v15971_v20  ;;  %v14314_v27 = vld [vmem:[#allocation2 + $0x24] sm:$0xf0] }
  0x70   :  { %v14401_v29 = vld [vmem:[#allocation2 + $0x2dc] sm:$0xf0] }
  0x71   :  { %v10787_v30 = vld [vmem:[#allocation2 + $0x8c0] sm:$0xf]  ;;  %v9659_v41 = vadd.f32 -1.0, %v183_v32  ;;  %v9660_v42 = vadd.f32 -1.0, %v184_v33  ;;  %v10020_v44 = vor.u32 %v14401_v29, %v10019_v25  ;;  %3389 = vmatpush.bf16.msrb.mxu3 %v11588_v28  ;;  %v9708_v25 = vor.u32 %v14322_v11, %v9707_v9  ;;  %v14610_v11 = vld [vmem:[#allocation2 + $0x964] sm:$0xf0] }
  0x72   :  { %v14593_v31 = vld [vmem:[#allocation2 + $0x8dc] sm:$0xf0]  ;;  %v15993_v29 = vpack.c.bf16 %v9661_v17, %v9661_v17 }
  0x73   :  { %v11555_v35 = vld [vmem:[#allocation2 + $0xec0] sm:$0xf]  ;;  %v10788_v45 = vor.u32 %v14593_v31, %v10787_v30  ;;  %v15979_v51 = vpack.c.bf16 %v9659_v41, %v9659_v41  ;;  %v15981_v54 = vpack.c.bf16 %v9660_v42, %v9660_v42  ;;  %3312 = vmatpush.bf16.msrb.mxu1 %v10020_v44  ;;  %v167_v30 = vunpack.c.l.bf16 %v160_v13  ;;  %v14626_v41 = vld [vmem:[#allocation2 + $0x9e4] sm:$0xf0]  ;;  %3509 = vmatpush.bf16.msrb.mxu0 %v9708_v25 }
  0x74   :  { %v14785_v36 = vld [vmem:[#allocation2 + $0xedc] sm:$0xf0]  ;;  %3459 = vmatmul.bf16.vlgmr.msra.gmra.mxu0 %v15993_v29  ;;  %v9676_v42 = vor.u32 %v14314_v27, %v9675_v26  ;;  %v10827_v25 = vld [vmem:[#allocation2 + $0x908] sm:$0xf] }
  0x75   :  { %v9987_v47 = vld [vmem:[#allocation2 + $0x280] sm:$0xf]  ;;  %v11556_v50 = vor.u32 %v14785_v36, %v11555_v35  ;;  %3329 = vmatmul.bf16.vlgmr.msra.gmra.mxu2 %v15979_v51  ;;  %3342 = vmatmul.bf16.vlgmr.msra.gmra.mxu3 %v15981_v54  ;;  %v9893_v35 = vld [vmem:[#allocation2 + $0x1e0] sm:$0xf0]  ;;  %v9658_v36 = vadd.f32 -1.0, %v182_v18 }
  0x76   :  { %v14393_v48 = vld [vmem:[#allocation2 + $0x29c] sm:$0xf0]  ;;  %3351 = vmatpush.bf16.msrb.mxu2 %v10788_v45  ;;  %v175_v45 = vmul.f32 2.0, %v167_v30  ;;  %v14602_v26 = vld [vmem:[#allocation2 + $0x924] sm:$0xf0] }
  0x77   :  { %v10755_v52 = vld [vmem:[#allocation2 + $0x880] sm:$0xf]  ;;  %v9988_v62 = vor.u32 %v14393_v48, %v9987_v47  ;;  %3390 = vmatpush.bf16.msrb.mxu3 %v11556_v50  ;;  %v9896_v48 = vor.u32 %v14365_v34, %v9893_v35  ;;  %v15996_v55 = vpack.c.bf16 %v9658_v36, %v9658_v36  ;;  %3510 = vmatpush.bf16.msrb.mxu0 %v9676_v42  ;;  %v14333_v35 = vld [vmem:[#allocation2 + $0xc4] sm:$0xf] }
  0x78   :  { %v14585_v53 = vld [vmem:[#allocation2 + $0x89c] sm:$0xf0]  ;;  %v9765_v36 = vld [vmem:[#allocation2 + $0xe0] sm:$0xf0] }
  0x79   :  { %v11523_v57 = vld [vmem:[#allocation2 + $0xe80] sm:$0xf]  ;;  %v10756_v1 = vor.u32 %v14585_v53, %v10755_v52  ;;  %3313 = vmatpush.bf16.msrb.mxu1 %v9988_v62  ;;  %v10924_v53 = vor.u32 %v14626_v41, %v10923_v40  ;;  %v9768_v41 = vor.u32 %v14333_v35, %v9765_v36  ;;  %v14421_v36 = vld [vmem:[#allocation2 + $0x384] sm:$0xf] }
  0x7a   :  { %v14777_v58 = vld [vmem:[#allocation2 + $0xe9c] sm:$0xf0] }
  0x7b   :  { %v9955_v63 = vld [vmem:[#allocation2 + $0x240] sm:$0xf]  ;;  %v11524_v2 = vor.u32 %v14777_v58, %v11523_v57  ;;  %3352 = vmatpush.bf16.msrb.mxu2 %v10756_v1  ;;  %v9861_v57 = vld [vmem:[#allocation2 + $0x1a0] sm:$0xf0]  ;;  %v176_v58 = vmul.f32 2.0, %v168_v37  ;;  %3555 = vmatpush.bf16.msra.mxu0 %v10924_v53  ;;  %v186_v53 = vunpack.c.h.bf16 %v15986_v0 }
  0x7c   :  { %v14385_v3 = vld [vmem:[#allocation2 + $0x25c] sm:$0xf0]  ;;  %v9864_v1 = vor.u32 %v14357_v56, %v9861_v57  ;;  %v10795_v37 = vld [vmem:[#allocation2 + $0x8c8] sm:$0xf] }
  0x7d   :  { %v10723_v4 = vld [vmem:[#allocation2 + $0x840] sm:$0xf]  ;;  %v9956_v14 = vor.u32 %v14385_v3, %v9955_v63  ;;  %3391 = vmatpush.bf16.msrb.mxu3 %v11524_v2  ;;  %v15998_v62 = vpack.c.bf16 %v176_v58, %v175_v45 }
  0x7e   :  { %v14577_v5 = vld [vmem:[#allocation2 + $0x85c] sm:$0xf0] }
  0x7f   :  { %v11491_v7 = vld [vmem:[#allocation2 + $0xe40] sm:$0xf]  ;;  %v10724_v19 = vor.u32 %v14577_v5, %v10723_v4  ;;  %3314 = vmatpush.bf16.msrb.mxu1 %v9956_v14  ;;  %v10892_v5 = vor.u32 %v14618_v60, %v10891_v59  ;;  %v188_v9 = vunpack.c.h.bf16 %v15998_v62 }
  0x80   :  { %v14769_v8 = vld [vmem:[#allocation2 + $0xe5c] sm:$0xf0] }
  0x81   :  { %v9923_v12 = vld [vmem:[#allocation2 + $0x200] sm:$0xf]  ;;  %v11492_v21 = vor.u32 %v14769_v8, %v11491_v7  ;;  %3353 = vmatpush.bf16.msrb.mxu2 %v10724_v19  ;;  %v14349_v7 = vld [vmem:[#allocation2 + $0x144] sm:$0xf]  ;;  %v9664_v13 = vadd.f32 -1.0, %v188_v9  ;;  %3556 = vmatpush.bf16.msra.mxu0 %v10892_v5  ;;  %v10860_v19 = vor.u32 %v14610_v11, %v10859_v10 }
  0x82   :  { %v14377_v15 = vld [vmem:[#allocation2 + $0x21c] sm:$0xf0]  ;;  %v9829_v8 = vld [vmem:[#allocation2 + $0x160] sm:$0xf0]  ;;  %v14578_v5 = vld [vmem:[#allocation2 + $0x864] sm:$0xf0] }
  0x83   :  { %v10691_v16 = vld [vmem:[#allocation2 + $0x800] sm:$0xf]  ;;  %v9924_v20 = vor.u32 %v14377_v15, %v9923_v12  ;;  %3392 = vmatpush.bf16.msrb.mxu3 %v11492_v21  ;;  %v9832_v15 = vor.u32 %v14349_v7, %v9829_v8 }
  0x84   :  { %v14569_v22 = vld [vmem:[#allocation2 + $0x81c] sm:$0xf0]  ;;  %3511 = vmatmul.bf16.vlgmr.msrb.gmra.mxu0 %v15977_v46 }
  0x85   :  { %v11459_v23 = vld [vmem:[#allocation2 + $0xe00] sm:$0xf]  ;;  %v10692_v38 = vor.u32 %v14569_v22, %v10691_v16  ;;  %3315 = vmatpush.bf16.msrb.mxu1 %v9924_v20  ;;  %v14341_v22 = vld [vmem:[#allocation2 + $0x104] sm:$0xf]  ;;  %3557 = vmatpush.bf16.msra.mxu0 %v10860_v19  ;;  %v10828_v20 = vor.u32 %v14602_v26, %v10827_v25 }
  0x86   :  { %v14761_v24 = vld [vmem:[#allocation2 + $0xe1c] sm:$0xf0]  ;;  %v14429_v19 = vld [vmem:[#allocation2 + $0x3c4] sm:$0xf] }
  0x87   :  { %v11171_v28 = vld [vmem:[#allocation2 + $0xbc0] sm:$0xf]  ;;  %v11460_v39 = vor.u32 %v14761_v24, %v11459_v23  ;;  %3354 = vmatpush.bf16.msrb.mxu2 %v10692_v38  ;;  %v9797_v23 = vld [vmem:[#allocation2 + $0x120] sm:$0xf0]  ;;  %v16003_v24 = vpack.c.bf16 %v9664_v13, %v9664_v13  ;;  %v14594_v38 = vld [vmem:[#allocation2 + $0x8e4] sm:$0xf0] }
  0x88   :  { %v14689_v31 = vld [vmem:[#allocation2 + $0xbdc] sm:$0xf0]  ;;  %3316 = vmatmul.bf16.vlgmr.msrb.gmra.mxu1 %v15996_v55  ;;  %v9800_v30 = vor.u32 %v14341_v22, %v9797_v23  ;;  %v10796_v45 = vor.u32 %v14594_v38, %v10795_v37  ;;  %v14309_v13 = vld [vmem:[#allocation2 + $0x4] sm:$0xf] }
  0x89   :  { %v11427_v32 = vld [vmem:[#allocation2 + $0xdc0] sm:$0xf]  ;;  %v11172_v43 = vor.u32 %v14689_v31, %v11171_v28  ;;  %3393 = vmatpush.bf16.msrb.mxu3 %v11460_v39  ;;  %3558 = vmatpush.bf16.msra.mxu0 %v10828_v20  ;;  %v14493_v22 = vld [vmem:[#allocation2 + $0x5c4] sm:$0xf] }
  0x8a   :  { %v14753_v33 = vld [vmem:[#allocation2 + $0xddc] sm:$0xf0]  ;;  %3355 = vmatmul.bf16.vlgmr.msrb.gmra.mxu2 %v15993_v29  ;;  %v10405_v25 = vld [vmem:[#allocation2 + $0x5e0] sm:$0xf0] }
  0x8b   :  { %v11139_v44 = vld [vmem:[#allocation2 + $0xb80] sm:$0xf]  ;;  %v11428_v47 = vor.u32 %v14753_v33, %v11427_v32  ;;  %3360 = vmatpush.bf16.msra.mxu1 %v11172_v43  ;;  %v14557_v26 = vld [vmem:[#allocation2 + $0x7c4] sm:$0xf] }
  0x8c   :  { %v14681_v49 = vld [vmem:[#allocation2 + $0xb9c] sm:$0xf0]  ;;  %3394 = vmatmul.bf16.vlgmr.msrb.gmra.mxu3 %v16003_v24  ;;  %v10117_v37 = vld [vmem:[#allocation2 + $0x3a0] sm:$0xf0] }
  0x8d   :  { %v11395_v50 = vld [vmem:[#allocation2 + $0xd80] sm:$0xf]  ;;  %v11140_v61 = vor.u32 %v14681_v49, %v11139_v44  ;;  %3373 = vmatpush.bf16.msra.mxu2 %v11428_v47  ;;  %3399 = vmatpush.bf16.msra.mxu3 %v9896_v48  ;;  %v14325_v48 = vld [vmem:[#allocation2 + $0x84] sm:$0xf] }
  0x8e   :  { %v14745_v52 = vld [vmem:[#allocation2 + $0xd9c] sm:$0xf0]  ;;  %v9733_v49 = vld [vmem:[#allocation2 + $0xa0] sm:$0xf0]  ;;  %3559 = vmatpush.bf16.msra.mxu0 %v10796_v45  ;;  %v14358_v45 = vld [vmem:[#allocation2 + $0x18c] sm:$0xf] }
  0x8f   :  { %v11396_v63 = vor.u32 %v14745_v52, %v11395_v50  ;;  %v11107_v2 = vld [vmem:[#allocation2 + $0xb40] sm:$0xf]  ;;  %3361 = vmatpush.bf16.msra.mxu1 %v11140_v61  ;;  %v10763_v50 = vld [vmem:[#allocation2 + $0x888] sm:$0xf]  ;;  %v9736_v58 = vor.u32 %v14325_v48, %v9733_v49  ;;  %v14485_v38 = vld [vmem:[#allocation2 + $0x584] sm:$0xf]  ;;  %v10120_v48 = vor.u32 %v14421_v36, %v10117_v37 }
  0x90   :  { %v14673_v3 = vld [vmem:[#allocation2 + $0xb5c] sm:$0xf0]  ;;  %v14586_v52 = vld [vmem:[#allocation2 + $0x8a4] sm:$0xf0]  ;;  %v9741_v36 = vld [vmem:[#allocation2 + $0xa8] sm:$0xf0] }
  0x91   :  { %v11363_v4 = vld [vmem:[#allocation2 + $0xd40] sm:$0xf]  ;;  %v11108_v12 = vor.u32 %v14673_v3, %v11107_v2  ;;  %3374 = vmatpush.bf16.msra.mxu2 %v11396_v63  ;;  %3400 = vmatpush.bf16.msra.mxu3 %v9864_v1  ;;  %v10764_v63 = vor.u32 %v14586_v52, %v10763_v50  ;;  %v14317_v2 = vld [vmem:[#allocation2 + $0x44] sm:$0xf] }
  0x92   :  { %v14737_v6 = vld [vmem:[#allocation2 + $0xd5c] sm:$0xf0]  ;;  %v9701_v3 = vld [vmem:[#allocation2 + $0x60] sm:$0xf0] }
  0x93   :  { %v11364_v14 = vor.u32 %v14737_v6, %v11363_v4  ;;  %v11075_v16 = vld [vmem:[#allocation2 + $0xb00] sm:$0xf]  ;;  %3362 = vmatpush.bf16.msra.mxu1 %v11108_v12  ;;  %v10731_v4 = vld [vmem:[#allocation2 + $0x848] sm:$0xf]  ;;  %v9662_v6 = vadd.f32 -1.0, %v186_v53  ;;  %v9704_v11 = vor.u32 %v14317_v2, %v9701_v3  ;;  %3560 = vmatpush.bf16.msra.mxu0 %v10764_v63 }
  0x94   :  { %v14665_v17 = vld [vmem:[#allocation2 + $0xb1c] sm:$0xf0]  ;;  %v14413_v52 = vld [vmem:[#allocation2 + $0x344] sm:$0xf]  ;;  %v9837_v63 = vld [vmem:[#allocation2 + $0x168] sm:$0xf0] }
  0x95   :  { %v11331_v18 = vld [vmem:[#allocation2 + $0xd00] sm:$0xf]  ;;  %v11076_v27 = vor.u32 %v14665_v17, %v11075_v16  ;;  %3375 = vmatpush.bf16.msra.mxu2 %v11364_v14  ;;  %3401 = vmatpush.bf16.msra.mxu3 %v9832_v15  ;;  %v9669_v14 = vld [vmem:[#allocation2 + $0x20] sm:$0xf0]  ;;  %v187_v15 = vunpack.c.l.bf16 %v15998_v62  ;;  %v10732_v16 = vor.u32 %v14578_v5, %v10731_v4  ;;  %v10699_v17 = vld [vmem:[#allocation2 + $0x808] sm:$0xf] }
  0x96   :  { %v14729_v21 = vld [vmem:[#allocation2 + $0xd1c] sm:$0xf0]  ;;  %v10085_v53 = vld [vmem:[#allocation2 + $0x360] sm:$0xf0] }
  0x97   :  { %v11332_v28 = vor.u32 %v14729_v21, %v11331_v18  ;;  %v11043_v31 = vld [vmem:[#allocation2 + $0xac0] sm:$0xf]  ;;  %3363 = vmatpush.bf16.msra.mxu1 %v11076_v27  ;;  %v14570_v18 = vld [vmem:[#allocation2 + $0x824] sm:$0xf0]  ;;  %v10149_v21 = vld [vmem:[#allocation2 + $0x3e0] sm:$0xf0]  ;;  %3561 = vmatpush.bf16.msra.mxu0 %v10732_v16 }
  0x98   :  { %v14657_v32 = vld [vmem:[#allocation2 + $0xadc] sm:$0xf0]  ;;  %v10661_v27 = vld [vmem:[#allocation2 + $0x7e0] sm:$0xf0]  ;;  %v10700_v62 = vor.u32 %v14570_v18, %v10699_v17  ;;  %v10152_v20 = vor.u32 %v14429_v19, %v10149_v21 }
  0x99   :  { %v11299_v33 = vld [vmem:[#allocation2 + $0xcc0] sm:$0xf]  ;;  %v11044_v39 = vor.u32 %v14657_v32, %v11043_v31  ;;  %3376 = vmatpush.bf16.msra.mxu2 %v11332_v28  ;;  %3402 = vmatpush.bf16.msra.mxu3 %v9800_v30  ;;  %v9672_v30 = vor.u32 %v14309_v13, %v9669_v14  ;;  %v14366_v31 = vld [vmem:[#allocation2 + $0x1cc] sm:$0xf]  ;;  %v10664_v35 = vor.u32 %v14557_v26, %v10661_v27  ;;  %v14405_v4 = vld [vmem:[#allocation2 + $0x304] sm:$0xf] }
  0x9a   :  { %v14721_v34 = vld [vmem:[#allocation2 + $0xcdc] sm:$0xf0]  ;;  %v9901_v32 = vld [vmem:[#allocation2 + $0x1e8] sm:$0xf0]  ;;  %v10053_v5 = vld [vmem:[#allocation2 + $0x320] sm:$0xf0] }
  0x9b   :  { %v11300_v40 = vor.u32 %v14721_v34, %v11299_v33  ;;  %v11011_v42 = vld [vmem:[#allocation2 + $0xa80] sm:$0xf]  ;;  %3364 = vmatpush.bf16.msra.mxu1 %v11044_v39  ;;  %v9663_v33 = vadd.f32 -1.0, %v187_v15  ;;  %v10408_v34 = vor.u32 %v14493_v22, %v10405_v25  ;;  %v9904_v39 = vor.u32 %v14366_v31, %v9901_v32  ;;  %3562 = vmatpush.bf16.msra.mxu0 %v10700_v62  ;;  %v14397_v15 = vld [vmem:[#allocation2 + $0x2c4] sm:$0xf] }
  0x9c   :  { %v14649_v43 = vld [vmem:[#allocation2 + $0xa9c] sm:$0xf0]  ;;  %v10021_v16 = vld [vmem:[#allocation2 + $0x2e0] sm:$0xf0]  ;;  %v9773_v25 = vld [vmem:[#allocation2 + $0xe8] sm:$0xf0] }
  0x9d   :  { %v11267_v44 = vld [vmem:[#allocation2 + $0xc80] sm:$0xf]  ;;  %v11012_v56 = vor.u32 %v14649_v43, %v11011_v42  ;;  %3377 = vmatpush.bf16.msra.mxu2 %v11300_v40  ;;  %3403 = vmatpush.bf16.msra.mxu3 %v9768_v41  ;;  %v16009_v40 = vpack.c.bf16 %v9662_v6, %v9662_v6  ;;  %v10373_v41 = vld [vmem:[#allocation2 + $0x5a0] sm:$0xf0]  ;;  %v10024_v26 = vor.u32 %v14397_v15, %v10021_v16 }
  0x9e   :  { %v14713_v47 = vld [vmem:[#allocation2 + $0xc9c] sm:$0xf0]  ;;  %v14549_v42 = vld [vmem:[#allocation2 + $0x784] sm:$0xf]  ;;  %v10376_v49 = vor.u32 %v14485_v38, %v10373_v41  ;;  %3563 = vmatmul.bf16.vlgmr.msra.gmra.mxu0 %v15993_v29 }
  0x9f   :  { %v11268_v57 = vor.u32 %v14713_v47, %v11267_v44  ;;  %v10979_v59 = vld [vmem:[#allocation2 + $0xa40] sm:$0xf]  ;;  %3365 = vmatpush.bf16.msra.mxu1 %v11012_v56  ;;  %v10629_v43 = vld [vmem:[#allocation2 + $0x7a0] sm:$0xf0]  ;;  %v16011_v44 = vpack.c.bf16 %v9663_v33, %v9663_v33  ;;  %v9869_v47 = vld [vmem:[#allocation2 + $0x1a8] sm:$0xf0]  ;;  %3607 = vmatpush.bf16.msrb.mxu0 %v9904_v39 }
  0xa0   :  { %v14641_v60 = vld [vmem:[#allocation2 + $0xa5c] sm:$0xf0]  ;;  %v10632_v50 = vor.u32 %v14549_v42, %v10629_v43  ;;  %v14477_v56 = vld [vmem:[#allocation2 + $0x544] sm:$0xf] }
  0xa1   :  { %v11235_v61 = vld [vmem:[#allocation2 + $0xc40] sm:$0xf]  ;;  %v10980_v7 = vor.u32 %v14641_v60, %v10979_v59  ;;  %3378 = vmatpush.bf16.msra.mxu2 %v11268_v57  ;;  %3404 = vmatpush.bf16.msra.mxu3 %v9736_v58  ;;  %v9872_v57 = vor.u32 %v14358_v45, %v9869_v47  ;;  %v10341_v58 = vld [vmem:[#allocation2 + $0x560] sm:$0xf0] }
  0xa2   :  { %v14705_v1 = vld [vmem:[#allocation2 + $0xc5c] sm:$0xf0]  ;;  %v14541_v59 = vld [vmem:[#allocation2 + $0x744] sm:$0xf]  ;;  %v10344_v2 = vor.u32 %v14477_v56, %v10341_v58 }
  0xa3   :  { %v10947_v0 = vld [vmem:[#allocation2 + $0xa00] sm:$0xf]  ;;  %v11236_v10 = vor.u32 %v14705_v1, %v11235_v61  ;;  %3366 = vmatpush.bf16.msra.mxu1 %v10980_v7  ;;  %v10597_v60 = vld [vmem:[#allocation2 + $0x760] sm:$0xf0]  ;;  %v14350_v61 = vld [vmem:[#allocation2 + $0x14c] sm:$0xf]  ;;  %v10088_v1 = vor.u32 %v14413_v52, %v10085_v53  ;;  %3608 = vmatpush.bf16.msrb.mxu0 %v9872_v57 }
  0xa4   :  { %v14633_v8 = vld [vmem:[#allocation2 + $0xa1c] sm:$0xf0]  ;;  %v10600_v3 = vor.u32 %v14541_v59, %v10597_v60  ;;  %v14469_v6 = vld [vmem:[#allocation2 + $0x504] sm:$0xf]  ;;  %v9840_v7 = vor.u32 %v14350_v61, %v9837_v63  ;;  %v9709_v52 = vld [vmem:[#allocation2 + $0x68] sm:$0xf0] }
  0xa5   :  { %v11203_v9 = vld [vmem:[#allocation2 + $0xc00] sm:$0xf]  ;;  %v10948_v23 = vor.u32 %v14633_v8, %v10947_v0  ;;  %3379 = vmatpush.bf16.msra.mxu2 %v11236_v10  ;;  %3405 = vmatpush.bf16.msra.mxu3 %v9704_v11  ;;  %v10309_v0 = vld [vmem:[#allocation2 + $0x520] sm:$0xf0]  ;;  %v14342_v10 = vld [vmem:[#allocation2 + $0x10c] sm:$0xf] }
  0xa6   :  { %v14697_v12 = vld [vmem:[#allocation2 + $0xc1c] sm:$0xf0]  ;;  %v14533_v8 = vld [vmem:[#allocation2 + $0x704] sm:$0xf]  ;;  %v9805_v11 = vld [vmem:[#allocation2 + $0x128] sm:$0xf0]  ;;  %v10312_v13 = vor.u32 %v14469_v6, %v10309_v0 }
  0xa7   :  { %v11204_v28 = vor.u32 %v14697_v12, %v11203_v9  ;;  %3367 = vmatpush.bf16.msra.mxu1 %v10948_v23  ;;  %v10565_v9 = vld [vmem:[#allocation2 + $0x720] sm:$0xf0]  ;;  %v10056_v12 = vor.u32 %v14405_v4, %v10053_v5  ;;  %3609 = vmatpush.bf16.msrb.mxu0 %v9840_v7  ;;  %v9808_v18 = vor.u32 %v14342_v10, %v9805_v11  ;;  %v14334_v23 = vld [vmem:[#allocation2 + $0xcc] sm:$0xf] }
  0xa8   :  { %v10568_v14 = vor.u32 %v14533_v8, %v10565_v9  ;;  %v14461_v17 = vld [vmem:[#allocation2 + $0x4c4] sm:$0xf]  ;;  %v9776_v33 = vor.u32 %v14334_v23, %v9773_v25  ;;  %v9677_v4 = vld [vmem:[#allocation2 + $0x28] sm:$0xf0] }
  0xa9   :  { %3380 = vmatpush.bf16.msra.mxu2 %v11204_v28  ;;  %3406 = vmatpush.bf16.msra.mxu3 %v9672_v30  ;;  %v10277_v19 = vld [vmem:[#allocation2 + $0x4e0] sm:$0xf0] }
  0xaa   :  { %3368 = vmatmul.bf16.vlgmr.msra.gmra.mxu1 %v16009_v40  ;;  %v14525_v21 = vld [vmem:[#allocation2 + $0x6c4] sm:$0xf]  ;;  %v10280_v27 = vor.u32 %v14461_v17, %v10277_v19 }
  0xab   :  { %3412 = vmatpush.bf16.msrb.mxu1 %v10152_v20  ;;  %v10533_v22 = vld [vmem:[#allocation2 + $0x6e0] sm:$0xf0]  ;;  %3610 = vmatpush.bf16.msrb.mxu0 %v9808_v18 }
  0xac   :  { %3381 = vmatmul.bf16.vlgmr.msra.gmra.mxu2 %v16011_v44  ;;  %3407 = vmatmul.bf16.vlgmr.msra.gmra.mxu3 %v15977_v46  ;;  %v10536_v28 = vor.u32 %v14525_v21, %v10533_v22  ;;  %v14389_v30 = vld [vmem:[#allocation2 + $0x284] sm:$0xf] }
  0xad   :  { %3425 = vmatpush.bf16.msrb.mxu2 %v10408_v34  ;;  %3438 = vmatpush.bf16.msrb.mxu3 %v10664_v35  ;;  %v9989_v31 = vld [vmem:[#allocation2 + $0x2a0] sm:$0xf0]  ;;  %v14326_v35 = vld [vmem:[#allocation2 + $0x8c] sm:$0xf] }
  0xae   :  { %v14453_v32 = vld [vmem:[#allocation2 + $0x484] sm:$0xf]  ;;  %v9992_v37 = vor.u32 %v14389_v30, %v9989_v31  ;;  %v9744_v45 = vor.u32 %v14326_v35, %v9741_v36  ;;  %v10893_v30 = vld [vmem:[#allocation2 + $0x9a8] sm:$0xf0] }
  0xaf   :  { %3413 = vmatpush.bf16.msrb.mxu1 %v10120_v48  ;;  %v10245_v62 = vld [vmem:[#allocation2 + $0x4a0] sm:$0xf0]  ;;  %3611 = vmatpush.bf16.msrb.mxu0 %v9776_v33 }
  0xb0   :  { %v14517_v20 = vld [vmem:[#allocation2 + $0x684] sm:$0xf]  ;;  %v10248_v38 = vor.u32 %v14453_v32, %v10245_v62 }
  0xb1   :  { %3426 = vmatpush.bf16.msrb.mxu2 %v10376_v49  ;;  %3439 = vmatpush.bf16.msrb.mxu3 %v10632_v50  ;;  %v10501_v34 = vld [vmem:[#allocation2 + $0x6a0] sm:$0xf0]  ;;  %v14318_v50 = vld [vmem:[#allocation2 + $0x4c] sm:$0xf] }
  0xb2   :  { %v10504_v39 = vor.u32 %v14517_v20, %v10501_v34  ;;  %v14381_v41 = vld [vmem:[#allocation2 + $0x244] sm:$0xf] }
  0xb3   :  { %3414 = vmatpush.bf16.msrb.mxu1 %v10088_v1  ;;  %v9957_v42 = vld [vmem:[#allocation2 + $0x260] sm:$0xf0]  ;;  %3612 = vmatpush.bf16.msrb.mxu0 %v9744_v45  ;;  %v9712_v1 = vor.u32 %v14318_v50, %v9709_v52 }
  0xb4   :  { %v14445_v43 = vld [vmem:[#allocation2 + $0x444] sm:$0xf]  ;;  %v9960_v53 = vor.u32 %v14381_v41, %v9957_v42  ;;  %v10861_v41 = vld [vmem:[#allocation2 + $0x968] sm:$0xf0] }
  0xb5   :  { %3427 = vmatpush.bf16.msrb.mxu2 %v10344_v2  ;;  %3440 = vmatpush.bf16.msrb.mxu3 %v10600_v3  ;;  %v10213_v47 = vld [vmem:[#allocation2 + $0x460] sm:$0xf0]  ;;  %v14310_v3 = vld [vmem:[#allocation2 + $0xc] sm:$0xf] }
  0xb6   :  { %v14509_v48 = vld [vmem:[#allocation2 + $0x644] sm:$0xf]  ;;  %v10216_v58 = vor.u32 %v14445_v43, %v10213_v47  ;;  %v9680_v15 = vor.u32 %v14310_v3, %v9677_v4 }
  0xb7   :  { %3415 = vmatpush.bf16.msrb.mxu1 %v10056_v12  ;;  %v10469_v49 = vld [vmem:[#allocation2 + $0x660] sm:$0xf0]  ;;  %3613 = vmatpush.bf16.msrb.mxu0 %v9712_v1 }
  0xb8   :  { %v14373_v56 = vld [vmem:[#allocation2 + $0x204] sm:$0xf]  ;;  %v10472_v59 = vor.u32 %v14509_v48, %v10469_v49 }
  0xb9   :  { %3428 = vmatpush.bf16.msrb.mxu2 %v10312_v13  ;;  %3441 = vmatpush.bf16.msrb.mxu3 %v10568_v14  ;;  %v9925_v57 = vld [vmem:[#allocation2 + $0x220] sm:$0xf0]  ;;  %v14622_v13 = vld [vmem:[#allocation2 + $0x9cc] sm:$0xf] }
  0xba   :  { %v14437_v60 = vld [vmem:[#allocation2 + $0x404] sm:$0xf]  ;;  %v9928_v0 = vor.u32 %v14373_v56, %v9925_v57  ;;  %v10925_v14 = vld [vmem:[#allocation2 + $0x9e8] sm:$0xf0] }
  0xbb   :  { %3416 = vmatpush.bf16.msrb.mxu1 %v10024_v26  ;;  %v10181_v61 = vld [vmem:[#allocation2 + $0x420] sm:$0xf0]  ;;  %v10928_v23 = vor.u32 %v14622_v13, %v10925_v14  ;;  %3614 = vmatpush.bf16.msrb.mxu0 %v9680_v15  ;;  %v14598_v57 = vld [vmem:[#allocation2 + $0x90c] sm:$0xf] }
  0xbc   :  { %v14501_v63 = vld [vmem:[#allocation2 + $0x604] sm:$0xf]  ;;  %v10184_v11 = vor.u32 %v14437_v60, %v10181_v61 }
  0xbd   :  { %3429 = vmatpush.bf16.msrb.mxu2 %v10280_v27  ;;  %3442 = vmatpush.bf16.msrb.mxu3 %v10536_v28  ;;  %v10437_v2 = vld [vmem:[#allocation2 + $0x620] sm:$0xf0]  ;;  %v14614_v28 = vld [vmem:[#allocation2 + $0x98c] sm:$0xf] }
  0xbe   :  { %v14685_v5 = vld [vmem:[#allocation2 + $0xbc4] sm:$0xf]  ;;  %v10440_v12 = vor.u32 %v14501_v63, %v10437_v2  ;;  %v10896_v35 = vor.u32 %v14614_v28, %v10893_v30  ;;  %3615 = vmatmul.bf16.vlgmr.msrb.gmra.mxu0 %v15977_v46 }
  0xbf   :  { %3417 = vmatpush.bf16.msrb.mxu1 %v9992_v37  ;;  %v11173_v6 = vld [vmem:[#allocation2 + $0xbe0] sm:$0xf0]  ;;  %3659 = vmatpush.bf16.msra.mxu0 %v10928_v23 }
  0xc0   :  { %v14749_v7 = vld [vmem:[#allocation2 + $0xdc4] sm:$0xf]  ;;  %v11176_v16 = vor.u32 %v14685_v5, %v11173_v6 }
  0xc1   :  { %3430 = vmatpush.bf16.msrb.mxu2 %v10248_v38  ;;  %3443 = vmatpush.bf16.msrb.mxu3 %v10504_v39  ;;  %v11429_v8 = vld [vmem:[#allocation2 + $0xde0] sm:$0xf0]  ;;  %v14606_v39 = vld [vmem:[#allocation2 + $0x94c] sm:$0xf] }
  0xc2   :  { %v14813_v9 = vld [vmem:[#allocation2 + $0xfc4] sm:$0xf]  ;;  %v11432_v17 = vor.u32 %v14749_v7, %v11429_v8  ;;  %v10864_v50 = vor.u32 %v14606_v39, %v10861_v41  ;;  %v14590_v7 = vld [vmem:[#allocation2 + $0x8cc] sm:$0xf] }
  0xc3   :  { %3418 = vmatpush.bf16.msrb.mxu1 %v9960_v53  ;;  %v11685_v10 = vld [vmem:[#allocation2 + $0xfe0] sm:$0xf0]  ;;  %3660 = vmatpush.bf16.msra.mxu0 %v10896_v35 }
  0xc4   :  { %v11688_v18 = vor.u32 %v14813_v9, %v11685_v10  ;;  %v14677_v19 = vld [vmem:[#allocation2 + $0xb84] sm:$0xf] }
  0xc5   :  { %3431 = vmatpush.bf16.msrb.mxu2 %v10216_v58  ;;  %3444 = vmatpush.bf16.msrb.mxu3 %v10472_v59  ;;  %v11141_v21 = vld [vmem:[#allocation2 + $0xba0] sm:$0xf0]  ;;  %v10829_v58 = vld [vmem:[#allocation2 + $0x928] sm:$0xf0] }
  0xc6   :  { %v14741_v22 = vld [vmem:[#allocation2 + $0xd84] sm:$0xf]  ;;  %v11144_v31 = vor.u32 %v14677_v19, %v11141_v21  ;;  %v10832_v3 = vor.u32 %v14598_v57, %v10829_v58  ;;  %v10765_v19 = vld [vmem:[#allocation2 + $0x8a8] sm:$0xf0]  ;;  %v14562_v57 = vld [vmem:[#allocation2 + $0x7e4] sm:$0xf0] }
  0xc7   :  { %3419 = vmatpush.bf16.msrb.mxu1 %v9928_v0  ;;  %v11397_v25 = vld [vmem:[#allocation2 + $0xda0] sm:$0xf0]  ;;  %3661 = vmatpush.bf16.msra.mxu0 %v10864_v50  ;;  %v10797_v0 = vld [vmem:[#allocation2 + $0x8e8] sm:$0xf0]  ;;  %v10411_v50 = vld [vmem:[#allocation2 + $0x5c8] sm:$0xf] }
  0xc8   :  { %v14805_v26 = vld [vmem:[#allocation2 + $0xf84] sm:$0xf]  ;;  %v11400_v32 = vor.u32 %v14741_v22, %v11397_v25  ;;  %v10800_v14 = vor.u32 %v14590_v7, %v10797_v0  ;;  %v14490_v0 = vld [vmem:[#allocation2 + $0x5a4] sm:$0xf0] }
  0xc9   :  { %v11653_v27 = vld [vmem:[#allocation2 + $0xfa0] sm:$0xf0]  ;;  %3432 = vmatpush.bf16.msrb.mxu2 %v10184_v11  ;;  %3445 = vmatpush.bf16.msrb.mxu3 %v10440_v12 }
  0xca   :  { %v11656_v33 = vor.u32 %v14805_v26, %v11653_v27  ;;  %v14669_v62 = vld [vmem:[#allocation2 + $0xb44] sm:$0xf]  ;;  %3420 = vmatmul.bf16.vlgmr.msrb.gmra.mxu1 %v15996_v55 }
  0xcb   :  { %3464 = vmatpush.bf16.msra.mxu1 %v11176_v16  ;;  %v11109_v20 = vld [vmem:[#allocation2 + $0xb60] sm:$0xf0]  ;;  %3662 = vmatpush.bf16.msra.mxu0 %v10832_v3 }
  0xcc   :  { %v14733_v34 = vld [vmem:[#allocation2 + $0xd44] sm:$0xf]  ;;  %3433 = vmatmul.bf16.vlgmr.msrb.gmra.mxu2 %v15979_v51  ;;  %3446 = vmatmul.bf16.vlgmr.msrb.gmra.mxu3 %v15981_v54  ;;  %v11112_v42 = vor.u32 %v14669_v62, %v11109_v20  ;;  %v10733_v62 = vld [vmem:[#allocation2 + $0x868] sm:$0xf0] }
  0xcd   :  { %3477 = vmatpush.bf16.msra.mxu2 %v11432_v17  ;;  %3490 = vmatpush.bf16.msra.mxu3 %v11688_v18  ;;  %v11365_v36 = vld [vmem:[#allocation2 + $0xd60] sm:$0xf0]  ;;  %v14582_v18 = vld [vmem:[#allocation2 + $0x88c] sm:$0xf] }
  0xce   :  { %v14797_v37 = vld [vmem:[#allocation2 + $0xf44] sm:$0xf]  ;;  %v11368_v43 = vor.u32 %v14733_v34, %v11365_v36  ;;  %v10768_v28 = vor.u32 %v14582_v18, %v10765_v19  ;;  %v14482_v19 = vld [vmem:[#allocation2 + $0x564] sm:$0xf0] }
  0xcf   :  { %v11621_v38 = vld [vmem:[#allocation2 + $0xf60] sm:$0xf0]  ;;  %3465 = vmatpush.bf16.msra.mxu1 %v11144_v31  ;;  %3663 = vmatpush.bf16.msra.mxu0 %v10800_v14 }
  0xd0   :  { %v11624_v45 = vor.u32 %v14797_v37, %v11621_v38  ;;  %v14661_v47 = vld [vmem:[#allocation2 + $0xb04] sm:$0xf] }
  0xd1   :  { %3478 = vmatpush.bf16.msra.mxu2 %v11400_v32  ;;  %3491 = vmatpush.bf16.msra.mxu3 %v11656_v33  ;;  %v11077_v48 = vld [vmem:[#allocation2 + $0xb20] sm:$0xf0]  ;;  %v14574_v33 = vld [vmem:[#allocation2 + $0x84c] sm:$0xf] }
  0xd2   :  { %v14725_v49 = vld [vmem:[#allocation2 + $0xd04] sm:$0xf]  ;;  %v11080_v59 = vor.u32 %v14661_v47, %v11077_v48  ;;  %v10701_v47 = vld [vmem:[#allocation2 + $0x828] sm:$0xf0]  ;;  %v10155_v48 = vld [vmem:[#allocation2 + $0x3c8] sm:$0xf] }
  0xd3   :  { %v11333_v52 = vld [vmem:[#allocation2 + $0xd20] sm:$0xf0]  ;;  %3466 = vmatpush.bf16.msra.mxu1 %v11112_v42  ;;  %3664 = vmatpush.bf16.msra.mxu0 %v10768_v28  ;;  %v10736_v42 = vor.u32 %v14574_v33, %v10733_v62  ;;  %v14474_v62 = vld [vmem:[#allocation2 + $0x524] sm:$0xf0] }
  0xd4   :  { %v14789_v53 = vld [vmem:[#allocation2 + $0xf04] sm:$0xf]  ;;  %v11336_v60 = vor.u32 %v14725_v49, %v11333_v52  ;;  %v14434_v49 = vld [vmem:[#allocation2 + $0x3e4] sm:$0xf0] }
  0xd5   :  { %v11589_v56 = vld [vmem:[#allocation2 + $0xf20] sm:$0xf0]  ;;  %3479 = vmatpush.bf16.msra.mxu2 %v11368_v43  ;;  %3492 = vmatpush.bf16.msra.mxu3 %v11624_v45  ;;  %v14566_v45 = vld [vmem:[#allocation2 + $0x80c] sm:$0xf] }
  0xd6   :  { %v11592_v61 = vor.u32 %v14789_v53, %v11589_v56  ;;  %v14653_v63 = vld [vmem:[#allocation2 + $0xac4] sm:$0xf]  ;;  %v14498_v53 = vld [vmem:[#allocation2 + $0x5e4] sm:$0xf0] }
  0xd7   :  { %v11045_v1 = vld [vmem:[#allocation2 + $0xae0] sm:$0xf0]  ;;  %3467 = vmatpush.bf16.msra.mxu1 %v11080_v59  ;;  %v10667_v56 = vld [vmem:[#allocation2 + $0x7c8] sm:$0xf]  ;;  %3665 = vmatpush.bf16.msra.mxu0 %v10736_v42 }
  0xd8   :  { %v14717_v2 = vld [vmem:[#allocation2 + $0xcc4] sm:$0xf]  ;;  %v11048_v8 = vor.u32 %v14653_v63, %v11045_v1  ;;  %v10704_v63 = vor.u32 %v14566_v45, %v10701_v47  ;;  %v10156_v1 = vor.u32 %v14434_v49, %v10155_v48  ;;  %v10668_v3 = vor.u32 %v14562_v57, %v10667_v56  ;;  %v14402_v42 = vld [vmem:[#allocation2 + $0x2e4] sm:$0xf0] }
  0xd9   :  { %v11301_v4 = vld [vmem:[#allocation2 + $0xce0] sm:$0xf0]  ;;  %3480 = vmatpush.bf16.msra.mxu2 %v11336_v60  ;;  %3493 = vmatpush.bf16.msra.mxu3 %v11592_v61  ;;  %v9907_v60 = vld [vmem:[#allocation2 + $0x1d0] sm:$0xf]  ;;  %v14466_v47 = vld [vmem:[#allocation2 + $0x4e4] sm:$0xf0] }
  0xda   :  { %v14781_v5 = vld [vmem:[#allocation2 + $0xec4] sm:$0xf]  ;;  %v11304_v9 = vor.u32 %v14717_v2, %v11301_v4  ;;  %v14371_v61 = vld [vmem:[#allocation2 + $0x1ec] sm:$0xf0]  ;;  %v10412_v2 = vor.u32 %v14498_v53, %v10411_v50  ;;  %v10123_v4 = vld [vmem:[#allocation2 + $0x388] sm:$0xf] }
  0xdb   :  { %v11557_v6 = vld [vmem:[#allocation2 + $0xee0] sm:$0xf0]  ;;  %3468 = vmatpush.bf16.msra.mxu1 %v11048_v8  ;;  %v9908_v7 = vor.u32 %v14371_v61, %v9907_v60  ;;  %v10635_v8 = vld [vmem:[#allocation2 + $0x788] sm:$0xf]  ;;  %3666 = vmatpush.bf16.msra.mxu0 %v10704_v63  ;;  %v9779_v50 = vld [vmem:[#allocation2 + $0xd0] sm:$0xf] }
  0xdc   :  { %v11560_v10 = vor.u32 %v14781_v5, %v11557_v6  ;;  %v14645_v11 = vld [vmem:[#allocation2 + $0xa84] sm:$0xf]  ;;  %v14426_v5 = vld [vmem:[#allocation2 + $0x3a4] sm:$0xf0] }
  0xdd   :  { %v11013_v12 = vld [vmem:[#allocation2 + $0xaa0] sm:$0xf0]  ;;  %3481 = vmatpush.bf16.msra.mxu2 %v11304_v9  ;;  %v10379_v6 = vld [vmem:[#allocation2 + $0x588] sm:$0xf] }
  0xde   :  { %v14709_v13 = vld [vmem:[#allocation2 + $0xc84] sm:$0xf]  ;;  %v11016_v21 = vor.u32 %v14645_v11, %v11013_v12  ;;  %3494 = vmatpush.bf16.msra.mxu3 %v11560_v10  ;;  %v14554_v9 = vld [vmem:[#allocation2 + $0x7a4] sm:$0xf0]  ;;  %v9875_v10 = vld [vmem:[#allocation2 + $0x190] sm:$0xf]  ;;  %v10124_v12 = vor.u32 %v14426_v5, %v10123_v4  ;;  %3667 = vmatmul.bf16.vlgmr.msra.gmra.mxu0 %v15993_v29 }
  0xdf   :  { %v11269_v15 = vld [vmem:[#allocation2 + $0xca0] sm:$0xf0]  ;;  %v14363_v11 = vld [vmem:[#allocation2 + $0x1ac] sm:$0xf0]  ;;  %v10636_v14 = vor.u32 %v14554_v9, %v10635_v8  ;;  %3711 = vmatpush.bf16.msrb.mxu0 %v9908_v7  ;;  %v10539_v48 = vld [vmem:[#allocation2 + $0x6c8] sm:$0xf] }
  0xe0   :  { %v14773_v16 = vld [vmem:[#allocation2 + $0xe84] sm:$0xf]  ;;  %v11272_v22 = vor.u32 %v14709_v13, %v11269_v15  ;;  %3469 = vmatpush.bf16.msra.mxu1 %v11016_v21  ;;  %v10380_v13 = vor.u32 %v14490_v0, %v10379_v6  ;;  %v10091_v15 = vld [vmem:[#allocation2 + $0x348] sm:$0xf]  ;;  %v9876_v18 = vor.u32 %v14363_v11, %v9875_v10  ;;  %v14331_v4 = vld [vmem:[#allocation2 + $0xac] sm:$0xf0] }
  0xe1   :  { %v11525_v17 = vld [vmem:[#allocation2 + $0xea0] sm:$0xf0]  ;;  %v10603_v21 = vld [vmem:[#allocation2 + $0x748] sm:$0xf] }
  0xe2   :  { %v11528_v23 = vor.u32 %v14773_v16, %v11525_v17  ;;  %v14637_v25 = vld [vmem:[#allocation2 + $0xa44] sm:$0xf]  ;;  %3482 = vmatpush.bf16.msra.mxu2 %v11272_v22  ;;  %v14418_v16 = vld [vmem:[#allocation2 + $0x364] sm:$0xf0] }
  0xe3   :  { %v10981_v26 = vld [vmem:[#allocation2 + $0xa60] sm:$0xf0]  ;;  %v10347_v17 = vld [vmem:[#allocation2 + $0x548] sm:$0xf]  ;;  %3712 = vmatpush.bf16.msrb.mxu0 %v9876_v18 }
  0xe4   :  { %v14701_v27 = vld [vmem:[#allocation2 + $0xc44] sm:$0xf]  ;;  %v10984_v20 = vor.u32 %v14637_v25, %v10981_v26  ;;  %3495 = vmatpush.bf16.msra.mxu3 %v11528_v23  ;;  %v14546_v22 = vld [vmem:[#allocation2 + $0x764] sm:$0xf0]  ;;  %v9843_v23 = vld [vmem:[#allocation2 + $0x150] sm:$0xf]  ;;  %v10092_v26 = vor.u32 %v14418_v16, %v10091_v15  ;;  %v16025_v16 = vpop.f32.mrf.mxu1 }
  0xe5   :  { %v11237_v30 = vld [vmem:[#allocation2 + $0xc60] sm:$0xf0]  ;;  %v14355_v25 = vld [vmem:[#allocation2 + $0x16c] sm:$0xf0]  ;;  %v10604_v28 = vor.u32 %v14546_v22, %v10603_v21  ;;  %v14530_v49 = vld [vmem:[#allocation2 + $0x6e4] sm:$0xf0] }
  0xe6   :  { %v14765_v31 = vld [vmem:[#allocation2 + $0xe44] sm:$0xf]  ;;  %v11240_v36 = vor.u32 %v14701_v27, %v11237_v30  ;;  %3470 = vmatpush.bf16.msra.mxu1 %v10984_v20  ;;  %v10348_v27 = vor.u32 %v14482_v19, %v10347_v17  ;;  %v10059_v30 = vld [vmem:[#allocation2 + $0x308] sm:$0xf]  ;;  %v9844_v33 = vor.u32 %v14355_v25, %v9843_v23  ;;  %v10540_v57 = vor.u32 %v14530_v49, %v10539_v48  ;;  %v14323_v15 = vld [vmem:[#allocation2 + $0x6c] sm:$0xf0] }
  0xe7   :  { %v11493_v32 = vld [vmem:[#allocation2 + $0xe60] sm:$0xf0]  ;;  %v10571_v20 = vld [vmem:[#allocation2 + $0x708] sm:$0xf] }
  0xe8   :  { %v14629_v34 = vld [vmem:[#allocation2 + $0xa04] sm:$0xf]  ;;  %v11496_v37 = vor.u32 %v14765_v31, %v11493_v32  ;;  %3483 = vmatpush.bf16.msra.mxu2 %v11240_v36  ;;  %v14410_v31 = vld [vmem:[#allocation2 + $0x324] sm:$0xf0]  ;;  %v14347_v36 = vld [vmem:[#allocation2 + $0x12c] sm:$0xf0]  ;;  %3713 = vmatpush.bf16.msrb.mxu0 %v9844_v33 }
  0xe9   :  { %v10949_v35 = vld [vmem:[#allocation2 + $0xa20] sm:$0xf0]  ;;  %v10315_v32 = vld [vmem:[#allocation2 + $0x508] sm:$0xf] }
  0xea   :  { %v14693_v38 = vld [vmem:[#allocation2 + $0xc04] sm:$0xf]  ;;  %v10952_v52 = vor.u32 %v14629_v34, %v10949_v35  ;;  %3496 = vmatpush.bf16.msra.mxu3 %v11496_v37  ;;  %v14538_v34 = vld [vmem:[#allocation2 + $0x724] sm:$0xf0]  ;;  %v9811_v35 = vld [vmem:[#allocation2 + $0x110] sm:$0xf]  ;;  %v10060_v37 = vor.u32 %v14410_v31, %v10059_v30 }
  0xeb   :  { %v11205_v39 = vld [vmem:[#allocation2 + $0xc20] sm:$0xf0]  ;;  %v9812_v45 = vor.u32 %v14347_v36, %v9811_v35  ;;  %v10251_v60 = vld [vmem:[#allocation2 + $0x488] sm:$0xf]  ;;  %v9683_v30 = vld [vmem:[#allocation2 + $0x10] sm:$0xf] }
  0xec   :  { %v14757_v41 = vld [vmem:[#allocation2 + $0xe04] sm:$0xf]  ;;  %v11208_v58 = vor.u32 %v14693_v38, %v11205_v39  ;;  %3471 = vmatpush.bf16.msra.mxu1 %v10952_v52  ;;  %v10316_v38 = vor.u32 %v14474_v62, %v10315_v32  ;;  %v10572_v39 = vor.u32 %v14538_v34, %v10571_v20  ;;  %v14339_v52 = vld [vmem:[#allocation2 + $0xec] sm:$0xf0]  ;;  %v14458_v63 = vld [vmem:[#allocation2 + $0x4a4] sm:$0xf0] }
  0xed   :  { %v11461_v43 = vld [vmem:[#allocation2 + $0xe20] sm:$0xf0]  ;;  %3714 = vmatpush.bf16.msrb.mxu0 %v9812_v45  ;;  %v9780_v61 = vor.u32 %v14339_v52, %v9779_v50  ;;  %v10252_v6 = vor.u32 %v14458_v63, %v10251_v60  ;;  %v9963_v0 = vld [vmem:[#allocation2 + $0x248] sm:$0xf]  ;;  %v14315_v31 = vld [vmem:[#allocation2 + $0x2c] sm:$0xf0] }
  0xee   :  { %v11464_v59 = vor.u32 %v14757_v41, %v11461_v43  ;;  %3484 = vmatpush.bf16.msra.mxu2 %v11208_v58  ;;  %v10027_v41 = vld [vmem:[#allocation2 + $0x2c8] sm:$0xf]  ;;  %v10899_v63 = vld [vmem:[#allocation2 + $0x990] sm:$0xf] }
  0xef   :  { %3472 = vmatmul.bf16.vlgmr.msra.gmra.mxu1 %v16009_v40  ;;  %v10283_v43 = vld [vmem:[#allocation2 + $0x4c8] sm:$0xf]  ;;  %v10028_v53 = vor.u32 %v14402_v42, %v10027_v41  ;;  %v14627_v41 = vld [vmem:[#allocation2 + $0x9ec] sm:$0xf0]  ;;  %v16027_v42 = vld [vmem:[#allocation5] sm:$0xff] }
  0xf0   :  { %3497 = vmatpush.bf16.msra.mxu3 %v11464_v59  ;;  %3516 = vmatpush.bf16.msrb.mxu1 %v10156_v1  ;;  %v10284_v56 = vor.u32 %v14466_v47, %v10283_v43  ;;  %v9995_v58 = vld [vmem:[#allocation2 + $0x288] sm:$0xf]  ;;  %v9684_v43 = vor.u32 %v14315_v31, %v9683_v30  ;;  %v10835_v31 = vld [vmem:[#allocation2 + $0x910] sm:$0xf] }
  0xf1   :  { %3485 = vmatmul.bf16.vlgmr.msra.gmra.mxu2 %v16011_v44  ;;  %v14394_v59 = vld [vmem:[#allocation2 + $0x2a4] sm:$0xf0]  ;;  %3715 = vmatpush.bf16.msrb.mxu0 %v9780_v61 }
  0xf2   :  { %3529 = vmatpush.bf16.msrb.mxu2 %v10412_v2  ;;  %v10507_v1 = vld [vmem:[#allocation2 + $0x688] sm:$0xf]  ;;  %v9996_v5 = vor.u32 %v14394_v59, %v9995_v58 }
  0xf3   :  { %3498 = vmatmul.bf16.vlgmr.msra.gmra.mxu3 %v16003_v24  ;;  %v14522_v2 = vld [vmem:[#allocation2 + $0x6a4] sm:$0xf0] }
  0xf4   :  { %3542 = vmatpush.bf16.msrb.mxu3 %v10668_v3  ;;  %3517 = vmatpush.bf16.msrb.mxu1 %v10124_v12  ;;  %v9747_v3 = vld [vmem:[#allocation2 + $0x90] sm:$0xf]  ;;  %v10508_v7 = vor.u32 %v14522_v2, %v10507_v1  ;;  %v14386_v8 = vld [vmem:[#allocation2 + $0x264] sm:$0xf0]  ;;  %v719_v2 = vperm.slane %v16027_v42, 0 }
  0xf5   :  { %v10219_v9 = vld [vmem:[#allocation2 + $0x448] sm:$0xf]  ;;  %v9748_v10 = vor.u32 %v14331_v4, %v9747_v3  ;;  %v9964_v17 = vor.u32 %v14386_v8, %v9963_v0  ;;  %v14619_v1 = vld [vmem:[#allocation2 + $0x9ac] sm:$0xf0] }
  0xf6   :  { %3530 = vmatpush.bf16.msrb.mxu2 %v10380_v13  ;;  %v14450_v11 = vld [vmem:[#allocation2 + $0x464] sm:$0xf0]  ;;  %v10900_v8 = vor.u32 %v14619_v1, %v10899_v63 }
  0xf7   :  { %v10475_v12 = vld [vmem:[#allocation2 + $0x648] sm:$0xf]  ;;  %v10220_v21 = vor.u32 %v14450_v11, %v10219_v9  ;;  %3716 = vmatpush.bf16.msrb.mxu0 %v9748_v10 }
  0xf8   :  { %3543 = vmatpush.bf16.msrb.mxu3 %v10636_v14  ;;  %3518 = vmatpush.bf16.msrb.mxu1 %v10092_v26  ;;  %v14514_v13 = vld [vmem:[#allocation2 + $0x664] sm:$0xf0]  ;;  %v9715_v14 = vld [vmem:[#allocation2 + $0x50] sm:$0xf]  ;;  %v16029_v47 = vpop.f32.mrf.mxu2  ;;  %v16031_v48 = vpop.f32.mrf.mxu3 }
  0xf9   :  { %v9931_v18 = vld [vmem:[#allocation2 + $0x208] sm:$0xf]  ;;  %v10476_v22 = vor.u32 %v14514_v13, %v10475_v12  ;;  %v10867_v12 = vld [vmem:[#allocation2 + $0x950] sm:$0xf] }
  0xfa   :  { %3531 = vmatpush.bf16.msrb.mxu2 %v10348_v27  ;;  %v14378_v19 = vld [vmem:[#allocation2 + $0x224] sm:$0xf0]  ;;  %v9716_v27 = vor.u32 %v14323_v15, %v9715_v14  ;;  %v14611_v13 = vld [vmem:[#allocation2 + $0x96c] sm:$0xf0]  ;;  %v3305_v14 = vadd.f32 %v16025_v16, %v719_v2 }
  0xfb   :  { %v10187_v23 = vld [vmem:[#allocation2 + $0x408] sm:$0xf]  ;;  %v9932_v20 = vor.u32 %v14378_v19, %v9931_v18  ;;  %v14603_v16 = vld [vmem:[#allocation2 + $0x92c] sm:$0xf0] }
  0xfc   :  { %3544 = vmatpush.bf16.msrb.mxu3 %v10604_v28  ;;  %3519 = vmatpush.bf16.msrb.mxu1 %v10060_v37  ;;  %v14442_v25 = vld [vmem:[#allocation2 + $0x424] sm:$0xf0] }
  0xfd   :  { %v10443_v26 = vld [vmem:[#allocation2 + $0x608] sm:$0xf]  ;;  %v10188_v37 = vor.u32 %v14442_v25, %v10187_v23  ;;  %3717 = vmatpush.bf16.msrb.mxu0 %v9716_v27 }
  0xfe   :  { %3532 = vmatpush.bf16.msrb.mxu2 %v10316_v38  ;;  %v14506_v28 = vld [vmem:[#allocation2 + $0x624] sm:$0xf0] }
  0xff   :  { %v11179_v32 = vld [vmem:[#allocation2 + $0xbc8] sm:$0xf]  ;;  %v10444_v38 = vor.u32 %v14506_v28, %v10443_v26  ;;  %v10868_v26 = vor.u32 %v14611_v13, %v10867_v12 }
 0x100   :  { %3545 = vmatpush.bf16.msrb.mxu3 %v10572_v39  ;;  %3520 = vmatpush.bf16.msrb.mxu1 %v10028_v53  ;;  %v14690_v33 = vld [vmem:[#allocation2 + $0xbe4] sm:$0xf0]  ;;  %v10931_v39 = vld [vmem:[#allocation2 + $0x9d0] sm:$0xf]  ;;  %v3345_v18 = vpop.f32.mrf.mxu3 }
 0x101   :  { %v11435_v62 = vld [vmem:[#allocation2 + $0xdc8] sm:$0xf]  ;;  %v11180_v45 = vor.u32 %v14690_v33, %v11179_v32  ;;  %v10932_v58 = vor.u32 %v14627_v41, %v10931_v39  ;;  %3718 = vmatpush.bf16.msrb.mxu0 %v9684_v43 }
 0x102   :  { %3533 = vmatpush.bf16.msrb.mxu2 %v10284_v56  ;;  %v14754_v34 = vld [vmem:[#allocation2 + $0xde4] sm:$0xf0] }
 0x103   :  { %v11691_v35 = vld [vmem:[#allocation2 + $0xfc8] sm:$0xf]  ;;  %v11436_v49 = vor.u32 %v14754_v34, %v11435_v62 }
 0x104   :  { %3546 = vmatpush.bf16.msrb.mxu3 %v10540_v57  ;;  %3521 = vmatpush.bf16.msrb.mxu1 %v9996_v5  ;;  %v14818_v36 = vld [vmem:[#allocation2 + $0xfe4] sm:$0xf0]  ;;  %v3306_v57 = vpop.f32.mrf.mxu1 }
 0x105   :  { %v11692_v50 = vor.u32 %v14818_v36, %v11691_v35  ;;  %v11147_v52 = vld [vmem:[#allocation2 + $0xb88] sm:$0xf]  ;;  %3763 = vmatpush.bf16.msra.mxu0 %v10932_v58 }
 0x106   :  { %3534 = vmatpush.bf16.msrb.mxu2 %v10252_v6  ;;  %v14682_v53 = vld [vmem:[#allocation2 + $0xba4] sm:$0xf0]  ;;  %3719 = vmatmul.bf16.vlgmr.msrb.gmra.mxu0 %v15977_v46 }
 0x107   :  { %v11403_v56 = vld [vmem:[#allocation2 + $0xd88] sm:$0xf]  ;;  %v11148_v3 = vor.u32 %v14682_v53, %v11147_v52 }
 0x108   :  { %3547 = vmatpush.bf16.msrb.mxu3 %v10508_v7  ;;  %3522 = vmatpush.bf16.msrb.mxu1 %v9964_v17  ;;  %v14746_v59 = vld [vmem:[#allocation2 + $0xda4] sm:$0xf0]  ;;  %v3332_v17 = vpop.f32.mrf.mxu2 }
 0x109   :  { %v11659_v60 = vld [vmem:[#allocation2 + $0xf88] sm:$0xf]  ;;  %v11404_v4 = vor.u32 %v14746_v59, %v11403_v56  ;;  %3764 = vmatpush.bf16.msra.mxu0 %v10900_v8  ;;  %v14579_v17 = vld [vmem:[#allocation2 + $0x86c] sm:$0xf0] }
 0x10a   :  { %3535 = vmatpush.bf16.msrb.mxu2 %v10220_v21  ;;  %v14810_v61 = vld [vmem:[#allocation2 + $0xfa4] sm:$0xf0] }
 0x10b   :  { %v11660_v5 = vor.u32 %v14810_v61, %v11659_v60  ;;  %v11115_v6 = vld [vmem:[#allocation2 + $0xb48] sm:$0xf] }
 0x10c   :  { %3548 = vmatpush.bf16.msrb.mxu3 %v10476_v22  ;;  %3523 = vmatpush.bf16.msrb.mxu1 %v9932_v20  ;;  %v14674_v7 = vld [vmem:[#allocation2 + $0xb64] sm:$0xf0]  ;;  %v3317_v32 = vpop.f32.mrf.mxu1 }
 0x10d   :  { %v11371_v0 = vld [vmem:[#allocation2 + $0xd48] sm:$0xf]  ;;  %v11116_v15 = vor.u32 %v14674_v7, %v11115_v6  ;;  %v3318_v62 = vadd.f32 %v3317_v32, %v3305_v14  ;;  %3765 = vmatpush.bf16.msra.mxu0 %v10868_v26  ;;  %v14571_v32 = vld [vmem:[#allocation2 + $0x82c] sm:$0xf0] }
 0x10e   :  { %3536 = vmatpush.bf16.msrb.mxu2 %v10188_v37  ;;  %v14738_v9 = vld [vmem:[#allocation2 + $0xd64] sm:$0xf0] }
 0x10f   :  { %v11627_v10 = vld [vmem:[#allocation2 + $0xf48] sm:$0xf]  ;;  %3524 = vmatmul.bf16.vlgmr.msrb.gmra.mxu1 %v15996_v55  ;;  %v11372_v19 = vor.u32 %v14738_v9, %v11371_v0  ;;  %v3331_v39 = vadd.f32 %v16029_v47, %v3318_v62  ;;  %v16043_v18 = vpop.f32.mrf.mxu3  ;;  %v14430_v62 = vld [vmem:[#allocation2 + $0x3cc] sm:$0xf] }
 0x110   :  { %3549 = vmatpush.bf16.msrb.mxu3 %v10444_v38  ;;  %3568 = vmatpush.bf16.msra.mxu1 %v11180_v45  ;;  %v14802_v11 = vld [vmem:[#allocation2 + $0xf64] sm:$0xf0]  ;;  %v10836_v38 = vor.u32 %v14603_v16, %v10835_v31  ;;  %v3356_v63 = vpop.f32.mrf.mxu2  ;;  %v10707_v16 = vld [vmem:[#allocation2 + $0x810] sm:$0xf] }
 0x111   :  { %3537 = vmatmul.bf16.vlgmr.msrb.gmra.mxu2 %v15979_v51  ;;  %v11628_v21 = vor.u32 %v14802_v11, %v11627_v10  ;;  %v11083_v22 = vld [vmem:[#allocation2 + $0xb08] sm:$0xf]  ;;  %v3344_v53 = vadd.f32 %v16031_v48, %v3331_v39 }
 0x112   :  { %3581 = vmatpush.bf16.msra.mxu2 %v11436_v49  ;;  %v14666_v23 = vld [vmem:[#allocation2 + $0xb24] sm:$0xf0]  ;;  %v10803_v49 = vld [vmem:[#allocation2 + $0x8d0] sm:$0xf]  ;;  %3766 = vmatpush.bf16.msra.mxu0 %v10836_v38  ;;  %v10669_v38 = vld [vmem:[#allocation2 + $0x7e8] sm:$0xf0] }
 0x113   :  { %3550 = vmatmul.bf16.vlgmr.msrb.gmra.mxu3 %v15981_v54  ;;  %v11339_v25 = vld [vmem:[#allocation2 + $0xd08] sm:$0xf]  ;;  %v11084_v33 = vor.u32 %v14666_v23, %v11083_v22 }
 0x114   :  { %3594 = vmatpush.bf16.msra.mxu3 %v11692_v50  ;;  %3569 = vmatpush.bf16.msra.mxu1 %v11148_v3  ;;  %v14730_v27 = vld [vmem:[#allocation2 + $0xd24] sm:$0xf0]  ;;  %v14595_v50 = vld [vmem:[#allocation2 + $0x8ec] sm:$0xf0]  ;;  %v16041_v3 = vadd.f32 %v3356_v63, %v3344_v53  ;;  %v3319_v6 = vpop.f32.mrf.mxu1  ;;  %v14550_v63 = vld [vmem:[#allocation2 + $0x78c] sm:$0xf] }
 0x115   :  { %v11595_v28 = vld [vmem:[#allocation2 + $0xf08] sm:$0xf]  ;;  %v11340_v20 = vor.u32 %v14730_v27, %v11339_v25  ;;  %v10804_v61 = vor.u32 %v14595_v50, %v10803_v49  ;;  %v10708_v49 = vor.u32 %v14571_v32, %v10707_v16 }
 0x116   :  { %3582 = vmatpush.bf16.msra.mxu2 %v11404_v4  ;;  %v14794_v30 = vld [vmem:[#allocation2 + $0xf24] sm:$0xf0]  ;;  %v10771_v4 = vld [vmem:[#allocation2 + $0x890] sm:$0xf] }
 0x117   :  { %v11596_v34 = vor.u32 %v14794_v30, %v11595_v28  ;;  %v11051_v35 = vld [vmem:[#allocation2 + $0xac8] sm:$0xf]  ;;  %3767 = vmatpush.bf16.msra.mxu0 %v10804_v61  ;;  %v10381_v61 = vld [vmem:[#allocation2 + $0x5a8] sm:$0xf0] }
 0x118   :  { %3595 = vmatpush.bf16.msra.mxu3 %v11660_v5  ;;  %3570 = vmatpush.bf16.msra.mxu1 %v11116_v15  ;;  %v14658_v36 = vld [vmem:[#allocation2 + $0xae4] sm:$0xf0]  ;;  %v14587_v5 = vld [vmem:[#allocation2 + $0x8ac] sm:$0xf0] }
 0x119   :  { %v11307_v37 = vld [vmem:[#allocation2 + $0xcc8] sm:$0xf]  ;;  %v11052_v52 = vor.u32 %v14658_v36, %v11051_v35  ;;  %v10772_v11 = vor.u32 %v14587_v5, %v10771_v4  ;;  %v10739_v15 = vld [vmem:[#allocation2 + $0x850] sm:$0xf]  ;;  %v10413_v36 = vld [vmem:[#allocation2 + $0x5e8] sm:$0xf0] }
 0x11a   :  { %3583 = vmatpush.bf16.msra.mxu2 %v11372_v19  ;;  %v14722_v41 = vld [vmem:[#allocation2 + $0xce4] sm:$0xf0]  ;;  %v10740_v30 = vor.u32 %v14579_v17, %v10739_v15 }
 0x11b   :  { %v11563_v43 = vld [vmem:[#allocation2 + $0xec8] sm:$0xf]  ;;  %v11308_v56 = vor.u32 %v14722_v41, %v11307_v37  ;;  %3768 = vmatpush.bf16.msra.mxu0 %v10772_v11  ;;  %v14558_v37 = vld [vmem:[#allocation2 + $0x7cc] sm:$0xf] }
 0x11c   :  { %3596 = vmatpush.bf16.msra.mxu3 %v11628_v21  ;;  %v14786_v45 = vld [vmem:[#allocation2 + $0xee4] sm:$0xf0]  ;;  %3571 = vmatpush.bf16.msra.mxu1 %v11084_v33  ;;  %v3358_v33 = vpop.f32.mrf.mxu2  ;;  %v10672_v53 = vor.u32 %v14558_v37, %v10669_v38  ;;  %v10605_v11 = vld [vmem:[#allocation2 + $0x768] sm:$0xf0] }
 0x11d   :  { %v11564_v57 = vor.u32 %v14786_v45, %v11563_v43  ;;  %v11019_v58 = vld [vmem:[#allocation2 + $0xa88] sm:$0xf]  ;;  %v14367_v43 = vld [vmem:[#allocation2 + $0x1d4] sm:$0xf]  ;;  %v10285_v37 = vld [vmem:[#allocation2 + $0x4e8] sm:$0xf0] }
 0x11e   :  { %3584 = vmatpush.bf16.msra.mxu2 %v11340_v20  ;;  %v14650_v59 = vld [vmem:[#allocation2 + $0xaa4] sm:$0xf0]  ;;  %v10157_v20 = vld [vmem:[#allocation2 + $0x3e8] sm:$0xf0]  ;;  %v9909_v45 = vld [vmem:[#allocation2 + $0x1f0] sm:$0xf0] }
 0x11f   :  { %v11275_v60 = vld [vmem:[#allocation2 + $0xc88] sm:$0xf]  ;;  %v11020_v48 = vor.u32 %v14650_v59, %v11019_v58  ;;  %3769 = vmatpush.bf16.msra.mxu0 %v10740_v30  ;;  %v10160_v50 = vor.u32 %v14430_v62, %v10157_v20  ;;  %v14486_v58 = vld [vmem:[#allocation2 + $0x58c] sm:$0xf]  ;;  %v3397_v59 = vpop.f32.mrf.mxu3  ;;  %v14343_v30 = vld [vmem:[#allocation2 + $0x114] sm:$0xf] }
 0x120   :  { %3597 = vmatpush.bf16.msra.mxu3 %v11596_v34  ;;  %v14714_v47 = vld [vmem:[#allocation2 + $0xca4] sm:$0xf0]  ;;  %3572 = vmatpush.bf16.msra.mxu1 %v11052_v52  ;;  %v14494_v34 = vld [vmem:[#allocation2 + $0x5cc] sm:$0xf]  ;;  %v10384_v5 = vor.u32 %v14486_v58, %v10381_v61 }
 0x121   :  { %v11531_v1 = vld [vmem:[#allocation2 + $0xe88] sm:$0xf]  ;;  %v11276_v7 = vor.u32 %v14714_v47, %v11275_v60  ;;  %v10416_v52 = vor.u32 %v14494_v34, %v10413_v36  ;;  %v9912_v60 = vor.u32 %v14367_v43, %v9909_v45  ;;  %v10637_v47 = vld [vmem:[#allocation2 + $0x7a8] sm:$0xf0]  ;;  %v9781_v43 = vld [vmem:[#allocation2 + $0xf0] sm:$0xf0] }
 0x122   :  { %v14778_v2 = vld [vmem:[#allocation2 + $0xea4] sm:$0xf0]  ;;  %3585 = vmatpush.bf16.msra.mxu2 %v11308_v56  ;;  %v14422_v56 = vld [vmem:[#allocation2 + $0x38c] sm:$0xf]  ;;  %v10640_v6 = vor.u32 %v14550_v63, %v10637_v47  ;;  %v14327_v47 = vld [vmem:[#allocation2 + $0x94] sm:$0xf] }
 0x123   :  { %v11532_v0 = vor.u32 %v14778_v2, %v11531_v1  ;;  %v10987_v8 = vld [vmem:[#allocation2 + $0xa48] sm:$0xf]  ;;  %v14359_v1 = vld [vmem:[#allocation2 + $0x194] sm:$0xf]  ;;  %3770 = vmatpush.bf16.msra.mxu0 %v10708_v49  ;;  %v14398_v20 = vld [vmem:[#allocation2 + $0x2cc] sm:$0xf] }
 0x124   :  { %3598 = vmatpush.bf16.msra.mxu3 %v11564_v57  ;;  %v14642_v9 = vld [vmem:[#allocation2 + $0xa64] sm:$0xf0]  ;;  %3573 = vmatpush.bf16.msra.mxu1 %v11020_v48  ;;  %v10125_v57 = vld [vmem:[#allocation2 + $0x3a8] sm:$0xf0]  ;;  %v9877_v2 = vld [vmem:[#allocation2 + $0x1b0] sm:$0xf0] }
 0x125   :  { %v11243_v10 = vld [vmem:[#allocation2 + $0xc48] sm:$0xf]  ;;  %v10988_v19 = vor.u32 %v14642_v9, %v10987_v8  ;;  %v10128_v4 = vor.u32 %v14422_v56, %v10125_v57  ;;  %v14414_v48 = vld [vmem:[#allocation2 + $0x34c] sm:$0xf]  ;;  %v9880_v8 = vor.u32 %v14359_v1, %v9877_v2  ;;  %v9749_v1 = vld [vmem:[#allocation2 + $0xb0] sm:$0xf0] }
 0x126   :  { %v14706_v12 = vld [vmem:[#allocation2 + $0xc64] sm:$0xf0]  ;;  %3586 = vmatpush.bf16.msra.mxu2 %v11276_v7  ;;  %v10093_v7 = vld [vmem:[#allocation2 + $0x368] sm:$0xf0]  ;;  %3771 = vmatmul.bf16.vlgmr.msra.gmra.mxu0 %v15993_v29 }
 0x127   :  { %v11499_v13 = vld [vmem:[#allocation2 + $0xe48] sm:$0xf]  ;;  %v11244_v23 = vor.u32 %v14706_v12, %v11243_v10  ;;  %3815 = vmatpush.bf16.msrb.mxu0 %v9912_v60  ;;  %v10349_v9 = vld [vmem:[#allocation2 + $0x568] sm:$0xf0]  ;;  %v14351_v12 = vld [vmem:[#allocation2 + $0x154] sm:$0xf] }
 0x128   :  { %v14770_v14 = vld [vmem:[#allocation2 + $0xe64] sm:$0xf0]  ;;  %3599 = vmatpush.bf16.msra.mxu3 %v11532_v0  ;;  %3574 = vmatpush.bf16.msra.mxu1 %v10988_v19  ;;  %v14478_v0 = vld [vmem:[#allocation2 + $0x54c] sm:$0xf] }
 0x129   :  { %v10955_v21 = vld [vmem:[#allocation2 + $0xa08] sm:$0xf]  ;;  %v11500_v25 = vor.u32 %v14770_v14, %v11499_v13  ;;  %v14542_v10 = vld [vmem:[#allocation2 + $0x74c] sm:$0xf]  ;;  %v9845_v13 = vld [vmem:[#allocation2 + $0x170] sm:$0xf0]  ;;  %v10096_v14 = vor.u32 %v14414_v48, %v10093_v7  ;;  %v10352_v15 = vor.u32 %v14478_v0, %v10349_v9  ;;  %v9752_v9 = vor.u32 %v14327_v47, %v9749_v1 }
 0x12a   :  { %v14634_v22 = vld [vmem:[#allocation2 + $0xa24] sm:$0xf0]  ;;  %3587 = vmatpush.bf16.msra.mxu2 %v11244_v23  ;;  %v10608_v17 = vor.u32 %v14542_v10, %v10605_v11  ;;  %v14406_v19 = vld [vmem:[#allocation2 + $0x30c] sm:$0xf]  ;;  %v9848_v23 = vor.u32 %v14351_v12, %v9845_v13  ;;  %v14319_v13 = vld [vmem:[#allocation2 + $0x54] sm:$0xf] }
 0x12b   :  { %v11211_v26 = vld [vmem:[#allocation2 + $0xc08] sm:$0xf]  ;;  %v10956_v35 = vor.u32 %v14634_v22, %v10955_v21  ;;  %v10061_v21 = vld [vmem:[#allocation2 + $0x328] sm:$0xf0]  ;;  %3816 = vmatpush.bf16.msrb.mxu0 %v9880_v8  ;;  %v10901_v47 = vld [vmem:[#allocation2 + $0x9b0] sm:$0xf0] }
 0x12c   :  { %v14698_v27 = vld [vmem:[#allocation2 + $0xc24] sm:$0xf0]  ;;  %3600 = vmatpush.bf16.msra.mxu3 %v11500_v25  ;;  %v14470_v22 = vld [vmem:[#allocation2 + $0x50c] sm:$0xf]  ;;  %v10064_v32 = vor.u32 %v14406_v19, %v10061_v21 }
 0x12d   :  { %v11467_v28 = vld [vmem:[#allocation2 + $0xe08] sm:$0xf]  ;;  %v11212_v39 = vor.u32 %v14698_v27, %v11211_v26  ;;  %3575 = vmatpush.bf16.msra.mxu1 %v10956_v35  ;;  %v10317_v25 = vld [vmem:[#allocation2 + $0x528] sm:$0xf0] }
 0x12e   :  { %v14762_v31 = vld [vmem:[#allocation2 + $0xe24] sm:$0xf0]  ;;  %v14534_v26 = vld [vmem:[#allocation2 + $0x70c] sm:$0xf]  ;;  %v10320_v33 = vor.u32 %v14470_v22, %v10317_v25 }
 0x12f   :  { %v11468_v41 = vor.u32 %v14762_v31, %v11467_v28  ;;  %3588 = vmatpush.bf16.msra.mxu2 %v11212_v39  ;;  %v10573_v27 = vld [vmem:[#allocation2 + $0x728] sm:$0xf0]  ;;  %v3369_v28 = vpop.f32.mrf.mxu1  ;;  %v9813_v31 = vld [vmem:[#allocation2 + $0x130] sm:$0xf0]  ;;  %3817 = vmatpush.bf16.msrb.mxu0 %v9848_v23  ;;  %v3382_v57 = vpop.f32.mrf.mxu2 }
 0x130   :  { %3576 = vmatmul.bf16.vlgmr.msra.gmra.mxu1 %v16009_v40  ;;  %v3370_v16 = vadd.f32 %v3369_v28, %v16041_v3  ;;  %v10576_v62 = vor.u32 %v14534_v26, %v10573_v27  ;;  %v10029_v34 = vld [vmem:[#allocation2 + $0x2e8] sm:$0xf0]  ;;  %v9816_v36 = vor.u32 %v14343_v30, %v9813_v31  ;;  %v16050_v61 = vpop.f32.mrf.mxu3  ;;  %v14311_v28 = vld [vmem:[#allocation2 + $0x14] sm:$0xf] }
 0x131   :  { %3601 = vmatpush.bf16.msra.mxu3 %v11468_v41  ;;  %3620 = vmatpush.bf16.msrb.mxu1 %v10160_v50  ;;  %v14462_v35 = vld [vmem:[#allocation2 + $0x4cc] sm:$0xf]  ;;  %v14335_v41 = vld [vmem:[#allocation2 + $0xd4] sm:$0xf]  ;;  %v10032_v45 = vor.u32 %v14398_v20, %v10029_v34 }
 0x132   :  { %3589 = vmatmul.bf16.vlgmr.msra.gmra.mxu2 %v16011_v44  ;;  %v14526_v38 = vld [vmem:[#allocation2 + $0x6cc] sm:$0xf]  ;;  %v10288_v3 = vor.u32 %v14462_v35, %v10285_v37  ;;  %v9784_v56 = vor.u32 %v14335_v41, %v9781_v43  ;;  %v3383_v63 = vadd.f32 %v3382_v57, %v3370_v16  ;;  %v9685_v30 = vld [vmem:[#allocation2 + $0x30] sm:$0xf0]  ;;  %v16055_v37 = vpop.f32.mrf.mxu0 }
 0x133   :  { %3633 = vmatpush.bf16.msrb.mxu2 %v10416_v52  ;;  %v10541_v39 = vld [vmem:[#allocation2 + $0x6e8] sm:$0xf0]  ;;  %3818 = vmatpush.bf16.msrb.mxu0 %v9816_v36  ;;  %v14623_v41 = vld [vmem:[#allocation2 + $0x9d4] sm:$0xf] }
 0x134   :  { %3602 = vmatmul.bf16.vlgmr.msra.gmra.mxu3 %v16003_v24  ;;  %v10544_v49 = vor.u32 %v14526_v38, %v10541_v39  ;;  %v14390_v50 = vld [vmem:[#allocation2 + $0x28c] sm:$0xf]  ;;  %v10933_v43 = vld [vmem:[#allocation2 + $0x9f0] sm:$0xf0] }
 0x135   :  { %3646 = vmatpush.bf16.msrb.mxu3 %v10672_v53  ;;  %3621 = vmatpush.bf16.msrb.mxu1 %v10128_v4  ;;  %v9997_v52 = vld [vmem:[#allocation2 + $0x2a8] sm:$0xf0]  ;;  %v10936_v57 = vor.u32 %v14623_v41, %v10933_v43  ;;  %v14591_v41 = vld [vmem:[#allocation2 + $0x8d4] sm:$0xf] }
 0x136   :  { %v14454_v53 = vld [vmem:[#allocation2 + $0x48c] sm:$0xf]  ;;  %v10000_v4 = vor.u32 %v14390_v50, %v9997_v52  ;;  %v10805_v43 = vld [vmem:[#allocation2 + $0x8f0] sm:$0xf0] }
 0x137   :  { %3634 = vmatpush.bf16.msrb.mxu2 %v10384_v5  ;;  %v10253_v58 = vld [vmem:[#allocation2 + $0x4a8] sm:$0xf0]  ;;  %v3371_v2 = vpop.f32.mrf.mxu1  ;;  %v16053_v5 = vadd.f32 %v16043_v18, %v3383_v63  ;;  %3819 = vmatpush.bf16.msrb.mxu0 %v9784_v56  ;;  %v3384_v31 = vpop.f32.mrf.mxu2  ;;  %v14615_v63 = vld [vmem:[#allocation2 + $0x994] sm:$0xf] }
 0x138   :  { %v14518_v59 = vld [vmem:[#allocation2 + $0x68c] sm:$0xf]  ;;  %v3410_v16 = vpop.f32.mrf.mxu3  ;;  %v720_v2 = vperm.slane %v16027_v42, 1 }
 0x139   :  { %3647 = vmatpush.bf16.msrb.mxu3 %v10640_v6  ;;  %3622 = vmatpush.bf16.msrb.mxu1 %v10096_v14  ;;  %v10509_v60 = vld [vmem:[#allocation2 + $0x6a8] sm:$0xf0]  ;;  %v10256_v6 = vor.u32 %v14454_v53, %v10253_v58  ;;  %v9717_v14 = vld [vmem:[#allocation2 + $0x70] sm:$0xf0] }
 0x13a   :  { %v10512_v48 = vor.u32 %v14518_v59, %v10509_v60  ;;  %v14382_v7 = vld [vmem:[#allocation2 + $0x24c] sm:$0xf]  ;;  %v9720_v26 = vor.u32 %v14319_v13, %v9717_v14  ;;  %v14607_v13 = vld [vmem:[#allocation2 + $0x954] sm:$0xf] }
 0x13b   :  { %3635 = vmatpush.bf16.msrb.mxu2 %v10352_v15  ;;  %v9965_v0 = vld [vmem:[#allocation2 + $0x268] sm:$0xf0]  ;;  %3820 = vmatpush.bf16.msrb.mxu0 %v9752_v9  ;;  %v10869_v14 = vld [vmem:[#allocation2 + $0x970] sm:$0xf0] }
 0x13c   :  { %v14446_v8 = vld [vmem:[#allocation2 + $0x44c] sm:$0xf]  ;;  %v9968_v15 = vor.u32 %v14382_v7, %v9965_v0 }
 0x13d   :  { %3648 = vmatpush.bf16.msrb.mxu3 %v10608_v17  ;;  %3623 = vmatpush.bf16.msrb.mxu1 %v10064_v32  ;;  %v10221_v10 = vld [vmem:[#allocation2 + $0x468] sm:$0xf0] }
 0x13e   :  { %v14510_v11 = vld [vmem:[#allocation2 + $0x64c] sm:$0xf]  ;;  %v10224_v18 = vor.u32 %v14446_v8, %v10221_v10  ;;  %v10904_v8 = vor.u32 %v14615_v63, %v10901_v47 }
 0x13f   :  { %3636 = vmatpush.bf16.msrb.mxu2 %v10320_v33  ;;  %v10477_v12 = vld [vmem:[#allocation2 + $0x668] sm:$0xf0]  ;;  %3821 = vmatpush.bf16.msrb.mxu0 %v9720_v26 }
 0x140   :  { %v14374_v17 = vld [vmem:[#allocation2 + $0x20c] sm:$0xf]  ;;  %v10480_v21 = vor.u32 %v14510_v11, %v10477_v12  ;;  %v3462_v12 = vpop.f32.mrf.mxu0 }
 0x141   :  { %3649 = vmatpush.bf16.msrb.mxu3 %v10576_v62  ;;  %3624 = vmatpush.bf16.msrb.mxu1 %v10032_v45  ;;  %v9933_v19 = vld [vmem:[#allocation2 + $0x228] sm:$0xf0]  ;;  %v9688_v45 = vor.u32 %v14311_v28, %v9685_v30  ;;  %v14599_v28 = vld [vmem:[#allocation2 + $0x914] sm:$0xf] }
 0x142   :  { %v14438_v22 = vld [vmem:[#allocation2 + $0x40c] sm:$0xf]  ;;  %v9936_v20 = vor.u32 %v14374_v17, %v9933_v19  ;;  %v10837_v30 = vld [vmem:[#allocation2 + $0x930] sm:$0xf0] }
 0x143   :  { %3637 = vmatpush.bf16.msrb.mxu2 %v10288_v3  ;;  %v10189_v23 = vld [vmem:[#allocation2 + $0x428] sm:$0xf0]  ;;  %3822 = vmatpush.bf16.msrb.mxu0 %v9688_v45 }
 0x144   :  { %v14502_v25 = vld [vmem:[#allocation2 + $0x60c] sm:$0xf]  ;;  %v10192_v38 = vor.u32 %v14438_v22, %v10189_v23  ;;  %v10872_v23 = vor.u32 %v14607_v13, %v10869_v14 }
 0x145   :  { %3650 = vmatpush.bf16.msrb.mxu3 %v10544_v49  ;;  %3625 = vmatpush.bf16.msrb.mxu1 %v10000_v4  ;;  %v10445_v27 = vld [vmem:[#allocation2 + $0x628] sm:$0xf0] }
 0x146   :  { %v14686_v32 = vld [vmem:[#allocation2 + $0xbcc] sm:$0xf]  ;;  %v10448_v39 = vor.u32 %v14502_v25, %v10445_v27  ;;  %3823 = vmatmul.bf16.vlgmr.msrb.gmra.mxu0 %v15977_v46 }
 0x147   :  { %3638 = vmatpush.bf16.msrb.mxu2 %v10256_v6  ;;  %v11181_v33 = vld [vmem:[#allocation2 + $0xbe8] sm:$0xf0]  ;;  %3867 = vmatpush.bf16.msra.mxu0 %v10936_v57  ;;  %v3421_v16 = vpop.f32.mrf.mxu1  ;;  %v10808_v57 = vor.u32 %v14591_v41, %v10805_v43  ;;  %v9915_v41 = vld [vmem:[#allocation2 + $0x1d8] sm:$0xf] }
 0x148   :  { %v14750_v62 = vld [vmem:[#allocation2 + $0xdcc] sm:$0xf]  ;;  %v11184_v3 = vor.u32 %v14686_v32, %v11181_v33  ;;  %v14372_v43 = vld [vmem:[#allocation2 + $0x1f4] sm:$0xf0] }
 0x149   :  { %3651 = vmatpush.bf16.msrb.mxu3 %v10512_v48  ;;  %3626 = vmatpush.bf16.msrb.mxu1 %v9968_v15  ;;  %v11437_v34 = vld [vmem:[#allocation2 + $0xde8] sm:$0xf0]  ;;  %v3409_v15 = vadd.f32 %v16050_v61, %v720_v2  ;;  %v10773_v2 = vld [vmem:[#allocation2 + $0x8b0] sm:$0xf0] }
 0x14a   :  { %v14814_v35 = vld [vmem:[#allocation2 + $0xfcc] sm:$0xf]  ;;  %v11440_v49 = vor.u32 %v14750_v62, %v11437_v34 }
 0x14b   :  { %v11693_v36 = vld [vmem:[#allocation2 + $0xfe8] sm:$0xf0]  ;;  %3639 = vmatpush.bf16.msrb.mxu2 %v10224_v18  ;;  %3868 = vmatpush.bf16.msra.mxu0 %v10904_v8  ;;  %v3422_v34 = vadd.f32 %v3421_v16, %v3409_v15  ;;  %v14575_v15 = vld [vmem:[#allocation2 + $0x854] sm:$0xf] }
 0x14c   :  { %v11696_v50 = vor.u32 %v14814_v35, %v11693_v36  ;;  %v14678_v52 = vld [vmem:[#allocation2 + $0xb8c] sm:$0xf]  ;;  %v10840_v35 = vor.u32 %v14599_v28, %v10837_v30  ;;  %v14567_v16 = vld [vmem:[#allocation2 + $0x814] sm:$0xf] }
 0x14d   :  { %3652 = vmatpush.bf16.msrb.mxu3 %v10480_v21  ;;  %v11149_v53 = vld [vmem:[#allocation2 + $0xba8] sm:$0xf0]  ;;  %3627 = vmatpush.bf16.msrb.mxu1 %v9936_v20 }
 0x14e   :  { %v14742_v56 = vld [vmem:[#allocation2 + $0xd8c] sm:$0xf]  ;;  %v11152_v1 = vor.u32 %v14678_v52, %v11149_v53 }
 0x14f   :  { %v11405_v58 = vld [vmem:[#allocation2 + $0xda8] sm:$0xf0]  ;;  %3640 = vmatpush.bf16.msrb.mxu2 %v10192_v38  ;;  %3869 = vmatpush.bf16.msra.mxu0 %v10872_v23  ;;  %v3447_v47 = vpop.f32.mrf.mxu3 }
 0x150   :  { %v14806_v59 = vld [vmem:[#allocation2 + $0xf8c] sm:$0xf]  ;;  %v11408_v4 = vor.u32 %v14742_v56, %v11405_v58  ;;  %3628 = vmatmul.bf16.vlgmr.msrb.gmra.mxu1 %v15996_v55  ;;  %v3434_v56 = vpop.f32.mrf.mxu2 }
 0x151   :  { %v11661_v60 = vld [vmem:[#allocation2 + $0xfa8] sm:$0xf0]  ;;  %3653 = vmatpush.bf16.msrb.mxu3 %v10448_v39  ;;  %3672 = vmatpush.bf16.msra.mxu1 %v11184_v3  ;;  %v3435_v63 = vadd.f32 %v3434_v56, %v3422_v34  ;;  %v14499_v34 = vld [vmem:[#allocation2 + $0x5ec] sm:$0xf0] }
 0x152   :  { %v11664_v6 = vor.u32 %v14806_v59, %v11661_v60  ;;  %v14670_v48 = vld [vmem:[#allocation2 + $0xb4c] sm:$0xf]  ;;  %3641 = vmatmul.bf16.vlgmr.msrb.gmra.mxu2 %v15979_v51  ;;  %v10387_v56 = vld [vmem:[#allocation2 + $0x590] sm:$0xf] }
 0x153   :  { %3685 = vmatpush.bf16.msra.mxu2 %v11440_v49  ;;  %v11117_v7 = vld [vmem:[#allocation2 + $0xb68] sm:$0xf0]  ;;  %3870 = vmatpush.bf16.msra.mxu0 %v10840_v35  ;;  %v10675_v35 = vld [vmem:[#allocation2 + $0x7d0] sm:$0xf] }
 0x154   :  { %v14734_v0 = vld [vmem:[#allocation2 + $0xd4c] sm:$0xf]  ;;  %3654 = vmatmul.bf16.vlgmr.msrb.gmra.mxu3 %v15981_v54  ;;  %v11120_v42 = vor.u32 %v14670_v48, %v11117_v7  ;;  %v3423_v48 = vpop.f32.mrf.mxu1 }
 0x155   :  { %3698 = vmatpush.bf16.msra.mxu3 %v11696_v50  ;;  %v11373_v9 = vld [vmem:[#allocation2 + $0xd68] sm:$0xf0]  ;;  %3673 = vmatpush.bf16.msra.mxu1 %v11152_v1  ;;  %v14583_v1 = vld [vmem:[#allocation2 + $0x894] sm:$0xf]  ;;  %v14419_v48 = vld [vmem:[#allocation2 + $0x36c] sm:$0xf0] }
 0x156   :  { %v14798_v10 = vld [vmem:[#allocation2 + $0xf4c] sm:$0xf]  ;;  %v11376_v17 = vor.u32 %v14734_v0, %v11373_v9 }
 0x157   :  { %v11629_v11 = vld [vmem:[#allocation2 + $0xf68] sm:$0xf0]  ;;  %3686 = vmatpush.bf16.msra.mxu2 %v11408_v4  ;;  %3871 = vmatpush.bf16.msra.mxu0 %v10808_v57  ;;  %v9916_v57 = vor.u32 %v14372_v43, %v9915_v41  ;;  %v10003_v43 = vld [vmem:[#allocation2 + $0x290] sm:$0xf] }
 0x158   :  { %v11632_v19 = vor.u32 %v14798_v10, %v11629_v11  ;;  %v14662_v18 = vld [vmem:[#allocation2 + $0xb0c] sm:$0xf]  ;;  %v10776_v11 = vor.u32 %v14583_v1, %v10773_v2  ;;  %v3436_v28 = vpop.f32.mrf.mxu2 }
 0x159   :  { %3699 = vmatpush.bf16.msra.mxu3 %v11664_v6  ;;  %v11085_v21 = vld [vmem:[#allocation2 + $0xb28] sm:$0xf0]  ;;  %3674 = vmatpush.bf16.msra.mxu1 %v11120_v42  ;;  %v3448_v6 = vadd.f32 %v3447_v47, %v3435_v63  ;;  %v9883_v63 = vld [vmem:[#allocation2 + $0x198] sm:$0xf] }
 0x15a   :  { %v14726_v22 = vld [vmem:[#allocation2 + $0xd0c] sm:$0xf]  ;;  %v11088_v31 = vor.u32 %v14662_v18, %v11085_v21  ;;  %v14364_v47 = vld [vmem:[#allocation2 + $0x1b4] sm:$0xf0] }
 0x15b   :  { %v11341_v25 = vld [vmem:[#allocation2 + $0xd28] sm:$0xf0]  ;;  %3687 = vmatpush.bf16.msra.mxu2 %v11376_v17  ;;  %v16064_v42 = vadd.f32 %v16055_v37, %v3448_v6  ;;  %v10741_v17 = vld [vmem:[#allocation2 + $0x870] sm:$0xf0]  ;;  %3872 = vmatpush.bf16.msra.mxu0 %v10776_v11  ;;  %v10099_v6 = vld [vmem:[#allocation2 + $0x350] sm:$0xf] }
 0x15c   :  { %v14790_v26 = vld [vmem:[#allocation2 + $0xf0c] sm:$0xf]  ;;  %v11344_v32 = vor.u32 %v14726_v22, %v11341_v25  ;;  %v10744_v30 = vor.u32 %v14575_v15, %v10741_v17  ;;  %v10709_v37 = vld [vmem:[#allocation2 + $0x830] sm:$0xf0]  ;;  %v9851_v11 = vld [vmem:[#allocation2 + $0x158] sm:$0xf] }
 0x15d   :  { %v11597_v27 = vld [vmem:[#allocation2 + $0xf28] sm:$0xf0]  ;;  %3700 = vmatpush.bf16.msra.mxu3 %v11632_v19  ;;  %3675 = vmatpush.bf16.msra.mxu1 %v11088_v31  ;;  %v10067_v17 = vld [vmem:[#allocation2 + $0x310] sm:$0xf]  ;;  %v14348_v28 = vld [vmem:[#allocation2 + $0x134] sm:$0xf0] }
 0x15e   :  { %v11600_v33 = vor.u32 %v14790_v26, %v11597_v27  ;;  %v14654_v61 = vld [vmem:[#allocation2 + $0xacc] sm:$0xf] }
 0x15f   :  { %v11053_v62 = vld [vmem:[#allocation2 + $0xae8] sm:$0xf0]  ;;  %3688 = vmatpush.bf16.msra.mxu2 %v11344_v32  ;;  %v3449_v32 = vpop.f32.mrf.mxu3  ;;  %3873 = vmatpush.bf16.msra.mxu0 %v10744_v30 }
 0x160   :  { %v14718_v20 = vld [vmem:[#allocation2 + $0xccc] sm:$0xf]  ;;  %v11056_v45 = vor.u32 %v14654_v61, %v11053_v62  ;;  %v14435_v61 = vld [vmem:[#allocation2 + $0x3ec] sm:$0xf0] }
 0x161   :  { %v11309_v36 = vld [vmem:[#allocation2 + $0xce8] sm:$0xf0]  ;;  %3701 = vmatpush.bf16.msra.mxu3 %v11600_v33  ;;  %v10163_v33 = vld [vmem:[#allocation2 + $0x3d0] sm:$0xf] }
 0x162   :  { %v14782_v38 = vld [vmem:[#allocation2 + $0xecc] sm:$0xf]  ;;  %v11312_v3 = vor.u32 %v14718_v20, %v11309_v36  ;;  %3676 = vmatpush.bf16.msra.mxu1 %v11056_v45  ;;  %v10419_v62 = vld [vmem:[#allocation2 + $0x5d0] sm:$0xf]  ;;  %v10712_v45 = vor.u32 %v14567_v16, %v10709_v37 }
 0x163   :  { %v11565_v39 = vld [vmem:[#allocation2 + $0xee8] sm:$0xf0]  ;;  %v14563_v36 = vld [vmem:[#allocation2 + $0x7ec] sm:$0xf0] }
 0x164   :  { %v11568_v49 = vor.u32 %v14782_v38, %v11565_v39  ;;  %v14646_v50 = vld [vmem:[#allocation2 + $0xa8c] sm:$0xf]  ;;  %3689 = vmatpush.bf16.msra.mxu2 %v11312_v3  ;;  %v10164_v3 = vor.u32 %v14435_v61, %v10163_v33  ;;  %3874 = vmatpush.bf16.msra.mxu0 %v10712_v45  ;;  %v10035_v32 = vld [vmem:[#allocation2 + $0x2d0] sm:$0xf] }
 0x165   :  { %v11021_v52 = vld [vmem:[#allocation2 + $0xaa8] sm:$0xf0]  ;;  %v14403_v33 = vld [vmem:[#allocation2 + $0x2ec] sm:$0xf0] }
 0x166   :  { %v14710_v53 = vld [vmem:[#allocation2 + $0xc8c] sm:$0xf]  ;;  %v11024_v4 = vor.u32 %v14646_v50, %v11021_v52  ;;  %3702 = vmatpush.bf16.msra.mxu3 %v11568_v49  ;;  %v10420_v49 = vor.u32 %v14499_v34, %v10419_v62  ;;  %v10676_v50 = vor.u32 %v14563_v36, %v10675_v35  ;;  %v10131_v52 = vld [vmem:[#allocation2 + $0x390] sm:$0xf]  ;;  %v9787_v36 = vld [vmem:[#allocation2 + $0xd8] sm:$0xf] }
 0x167   :  { %v11277_v58 = vld [vmem:[#allocation2 + $0xca8] sm:$0xf0]  ;;  %3875 = vmatmul.bf16.vlgmr.msra.gmra.mxu0 %v15993_v29  ;;  %v10291_v61 = vld [vmem:[#allocation2 + $0x4d0] sm:$0xf] }
 0x168   :  { %v14774_v59 = vld [vmem:[#allocation2 + $0xe8c] sm:$0xf]  ;;  %v11280_v7 = vor.u32 %v14710_v53, %v11277_v58  ;;  %3677 = vmatpush.bf16.msra.mxu1 %v11024_v4  ;;  %v14427_v53 = vld [vmem:[#allocation2 + $0x3ac] sm:$0xf0]  ;;  %3919 = vmatpush.bf16.msrb.mxu0 %v9916_v57 }
 0x169   :  { %v11533_v60 = vld [vmem:[#allocation2 + $0xea8] sm:$0xf0]  ;;  %v14491_v58 = vld [vmem:[#allocation2 + $0x5ac] sm:$0xf0]  ;;  %v10132_v1 = vor.u32 %v14427_v53, %v10131_v52 }
 0x16a   :  { %v11536_v0 = vor.u32 %v14774_v59, %v11533_v60  ;;  %v14638_v8 = vld [vmem:[#allocation2 + $0xa4c] sm:$0xf]  ;;  %3690 = vmatpush.bf16.msra.mxu2 %v11280_v7  ;;  %v10643_v59 = vld [vmem:[#allocation2 + $0x790] sm:$0xf]  ;;  %v10388_v2 = vor.u32 %v14491_v58, %v10387_v56 }
 0x16b   :  { %v10989_v9 = vld [vmem:[#allocation2 + $0xa68] sm:$0xf0]  ;;  %v14555_v60 = vld [vmem:[#allocation2 + $0x7ac] sm:$0xf0] }
 0x16c   :  { %v14702_v10 = vld [vmem:[#allocation2 + $0xc4c] sm:$0xf]  ;;  %v10992_v19 = vor.u32 %v14638_v8, %v10989_v9  ;;  %3703 = vmatpush.bf16.msra.mxu3 %v11536_v0  ;;  %v10644_v4 = vor.u32 %v14555_v60, %v10643_v59  ;;  %v10355_v7 = vld [vmem:[#allocation2 + $0x550] sm:$0xf]  ;;  %v9884_v0 = vor.u32 %v14364_v47, %v9883_v63  ;;  %v9755_v59 = vld [vmem:[#allocation2 + $0x98] sm:$0xf] }
 0x16d   :  { %v11245_v12 = vld [vmem:[#allocation2 + $0xc68] sm:$0xf0]  ;;  %v14483_v8 = vld [vmem:[#allocation2 + $0x56c] sm:$0xf0]  ;;  %v14332_v60 = vld [vmem:[#allocation2 + $0xb4] sm:$0xf0] }
 0x16e   :  { %v14766_v13 = vld [vmem:[#allocation2 + $0xe4c] sm:$0xf]  ;;  %v11248_v22 = vor.u32 %v14702_v10, %v11245_v12  ;;  %3678 = vmatpush.bf16.msra.mxu1 %v10992_v19  ;;  %v10611_v9 = vld [vmem:[#allocation2 + $0x750] sm:$0xf]  ;;  %v14356_v12 = vld [vmem:[#allocation2 + $0x174] sm:$0xf0]  ;;  %3920 = vmatpush.bf16.msrb.mxu0 %v9884_v0  ;;  %v9756_v0 = vor.u32 %v14332_v60, %v9755_v59  ;;  %v3512_v60 = vpop.f32.mrf.mxu0 }
 0x16f   :  { %v11501_v14 = vld [vmem:[#allocation2 + $0xe68] sm:$0xf0]  ;;  %v14547_v10 = vld [vmem:[#allocation2 + $0x76c] sm:$0xf0] }
 0x170   :  { %v14630_v18 = vld [vmem:[#allocation2 + $0xa0c] sm:$0xf]  ;;  %v11504_v23 = vor.u32 %v14766_v13, %v11501_v14  ;;  %3691 = vmatpush.bf16.msra.mxu2 %v11248_v22  ;;  %v10100_v13 = vor.u32 %v14419_v48, %v10099_v6  ;;  %v10356_v14 = vor.u32 %v14483_v8, %v10355_v7  ;;  %v10612_v15 = vor.u32 %v14547_v10, %v10611_v9  ;;  %v14411_v19 = vld [vmem:[#allocation2 + $0x32c] sm:$0xf0] }
 0x171   :  { %v10957_v21 = vld [vmem:[#allocation2 + $0xa28] sm:$0xf0]  ;;  %v14475_v22 = vld [vmem:[#allocation2 + $0x52c] sm:$0xf0] }
 0x172   :  { %v14694_v25 = vld [vmem:[#allocation2 + $0xc0c] sm:$0xf]  ;;  %v10960_v20 = vor.u32 %v14630_v18, %v10957_v21  ;;  %3704 = vmatpush.bf16.msra.mxu3 %v11504_v23  ;;  %v10323_v18 = vld [vmem:[#allocation2 + $0x510] sm:$0xf]  ;;  %v9852_v21 = vor.u32 %v14356_v12, %v9851_v11  ;;  %v9723_v11 = vld [vmem:[#allocation2 + $0x58] sm:$0xf] }
 0x173   :  { %v11213_v26 = vld [vmem:[#allocation2 + $0xc28] sm:$0xf0]  ;;  %v10579_v23 = vld [vmem:[#allocation2 + $0x710] sm:$0xf]  ;;  %v10324_v16 = vor.u32 %v14475_v22, %v10323_v18  ;;  %v14324_v12 = vld [vmem:[#allocation2 + $0x74] sm:$0xf0] }
 0x174   :  { %v14758_v27 = vld [vmem:[#allocation2 + $0xe0c] sm:$0xf]  ;;  %v11216_v38 = vor.u32 %v14694_v25, %v11213_v26  ;;  %3679 = vmatpush.bf16.msra.mxu1 %v10960_v20  ;;  %v14539_v25 = vld [vmem:[#allocation2 + $0x72c] sm:$0xf0]  ;;  %v3473_v26 = vpop.f32.mrf.mxu1  ;;  %3921 = vmatpush.bf16.msrb.mxu0 %v9852_v21 }
 0x175   :  { %v11469_v31 = vld [vmem:[#allocation2 + $0xe28] sm:$0xf0]  ;;  %v3474_v30 = vadd.f32 %v3473_v26, %v16064_v42  ;;  %v10580_v37 = vor.u32 %v14539_v25, %v10579_v23  ;;  %v14467_v20 = vld [vmem:[#allocation2 + $0x4ec] sm:$0xf0]  ;;  %v9724_v23 = vor.u32 %v14324_v12, %v9723_v11  ;;  %v9691_v26 = vld [vmem:[#allocation2 + $0x18] sm:$0xf] }
 0x176   :  { %v11472_v39 = vor.u32 %v14758_v27, %v11469_v31  ;;  %3692 = vmatpush.bf16.msra.mxu2 %v11216_v38  ;;  %v9819_v27 = vld [vmem:[#allocation2 + $0x118] sm:$0xf]  ;;  %v10068_v31 = vor.u32 %v14411_v19, %v10067_v17  ;;  %v10547_v34 = vld [vmem:[#allocation2 + $0x6d0] sm:$0xf]  ;;  %v10292_v42 = vor.u32 %v14467_v20, %v10291_v61  ;;  %v3499_v52 = vpop.f32.mrf.mxu3 }
 0x177   :  { %3680 = vmatmul.bf16.vlgmr.msra.gmra.mxu1 %v16009_v40  ;;  %v9820_v62 = vor.u32 %v14348_v28, %v9819_v27  ;;  %v14531_v35 = vld [vmem:[#allocation2 + $0x6ec] sm:$0xf0]  ;;  %v14340_v38 = vld [vmem:[#allocation2 + $0xf4] sm:$0xf0] }
 0x178   :  { %3705 = vmatpush.bf16.msra.mxu3 %v11472_v39  ;;  %3724 = vmatpush.bf16.msrb.mxu1 %v10164_v3  ;;  %v10036_v39 = vor.u32 %v14403_v33, %v10035_v32  ;;  %v10548_v41 = vor.u32 %v14531_v35, %v10547_v34  ;;  %v14395_v45 = vld [vmem:[#allocation2 + $0x2ac] sm:$0xf0]  ;;  %v14316_v27 = vld [vmem:[#allocation2 + $0x34] sm:$0xf0] }
 0x179   :  { %3693 = vmatmul.bf16.vlgmr.msra.gmra.mxu2 %v16011_v44  ;;  %v10259_v3 = vld [vmem:[#allocation2 + $0x490] sm:$0xf]  ;;  %3922 = vmatpush.bf16.msrb.mxu0 %v9820_v62  ;;  %v10004_v47 = vor.u32 %v14395_v45, %v10003_v43  ;;  %v10939_v35 = vld [vmem:[#allocation2 + $0x9d8] sm:$0xf] }
 0x17a   :  { %3737 = vmatpush.bf16.msrb.mxu2 %v10420_v49  ;;  %v9788_v49 = vor.u32 %v14340_v38, %v9787_v36  ;;  %v14459_v53 = vld [vmem:[#allocation2 + $0x4ac] sm:$0xf0]  ;;  %v14628_v36 = vld [vmem:[#allocation2 + $0x9f4] sm:$0xf0]  ;;  %v9692_v38 = vor.u32 %v14316_v27, %v9691_v26 }
 0x17b   :  { %3706 = vmatmul.bf16.vlgmr.msra.gmra.mxu3 %v16003_v24  ;;  %v10515_v56 = vld [vmem:[#allocation2 + $0x690] sm:$0xf]  ;;  %v14612_v11 = vld [vmem:[#allocation2 + $0x974] sm:$0xf0] }
 0x17c   :  { %3750 = vmatpush.bf16.msrb.mxu3 %v10676_v50  ;;  %3725 = vmatpush.bf16.msrb.mxu1 %v10132_v1  ;;  %v3486_v50 = vpop.f32.mrf.mxu2  ;;  %v14523_v57 = vld [vmem:[#allocation2 + $0x6ac] sm:$0xf0]  ;;  %v3475_v63 = vpop.f32.mrf.mxu1  ;;  %v10843_v26 = vld [vmem:[#allocation2 + $0x918] sm:$0xf] }
 0x17d   :  { %v3487_v58 = vadd.f32 %v3486_v50, %v3474_v30  ;;  %v9971_v6 = vld [vmem:[#allocation2 + $0x250] sm:$0xf]  ;;  %3923 = vmatpush.bf16.msrb.mxu0 %v9788_v49  ;;  %v10940_v49 = vor.u32 %v14628_v36, %v10939_v35  ;;  %v14604_v27 = vld [vmem:[#allocation2 + $0x934] sm:$0xf0] }
 0x17e   :  { %3738 = vmatpush.bf16.msrb.mxu2 %v10388_v2  ;;  %v10260_v2 = vor.u32 %v14459_v53, %v10259_v3  ;;  %v14387_v48 = vld [vmem:[#allocation2 + $0x26c] sm:$0xf0]  ;;  %v3501_v30 = vpop.f32.mrf.mxu3 }
 0x17f   :  { %v16071_v1 = vadd.f32 %v3499_v52, %v3487_v58  ;;  %v10227_v7 = vld [vmem:[#allocation2 + $0x450] sm:$0xf] }
 0x180   :  { %3751 = vmatpush.bf16.msrb.mxu3 %v10644_v4  ;;  %3726 = vmatpush.bf16.msrb.mxu1 %v10100_v13  ;;  %v10516_v4 = vor.u32 %v14523_v57, %v10515_v56  ;;  %v14451_v8 = vld [vmem:[#allocation2 + $0x46c] sm:$0xf0]  ;;  %v9972_v13 = vor.u32 %v14387_v48, %v9971_v6  ;;  %v10907_v56 = vld [vmem:[#allocation2 + $0x998] sm:$0xf]  ;;  %v16073_v6 = vld [vmem:[#allocation5] sm:$0xff] }
 0x181   :  { %v10483_v9 = vld [vmem:[#allocation2 + $0x650] sm:$0xf]  ;;  %v10228_v17 = vor.u32 %v14451_v8, %v10227_v7  ;;  %3924 = vmatpush.bf16.msrb.mxu0 %v9756_v0  ;;  %v14620_v57 = vld [vmem:[#allocation2 + $0x9b4] sm:$0xf0]  ;;  %v721_v48 = vperm.slane %v16073_v6, 2 }
 0x182   :  { %3739 = vmatpush.bf16.msrb.mxu2 %v10356_v14  ;;  %v14515_v10 = vld [vmem:[#allocation2 + $0x66c] sm:$0xf0]  ;;  %v10908_v7 = vor.u32 %v14620_v57, %v10907_v56 }
 0x183   :  { %v9939_v14 = vld [vmem:[#allocation2 + $0x210] sm:$0xf]  ;;  %v10484_v19 = vor.u32 %v14515_v10, %v10483_v9  ;;  %v10875_v10 = vld [vmem:[#allocation2 + $0x958] sm:$0xf] }
 0x184   :  { %3752 = vmatpush.bf16.msrb.mxu3 %v10612_v15  ;;  %3727 = vmatpush.bf16.msrb.mxu1 %v10068_v31  ;;  %v14379_v15 = vld [vmem:[#allocation2 + $0x22c] sm:$0xf0]  ;;  %v3488_v28 = vpop.f32.mrf.mxu2 }
 0x185   :  { %v10195_v18 = vld [vmem:[#allocation2 + $0x410] sm:$0xf]  ;;  %v9940_v32 = vor.u32 %v14379_v15, %v9939_v14  ;;  %3925 = vmatpush.bf16.msrb.mxu0 %v9724_v23 }
 0x186   :  { %3740 = vmatpush.bf16.msrb.mxu2 %v10324_v16  ;;  %v14443_v21 = vld [vmem:[#allocation2 + $0x42c] sm:$0xf0] }
 0x187   :  { %v10451_v22 = vld [vmem:[#allocation2 + $0x610] sm:$0xf]  ;;  %v10196_v20 = vor.u32 %v14443_v21, %v10195_v18  ;;  %v3513_v18 = vadd.f32 %v3512_v60, %v721_v48  ;;  %v10876_v21 = vor.u32 %v14612_v11, %v10875_v10  ;;  %v10779_v60 = vld [vmem:[#allocation2 + $0x898] sm:$0xf] }
 0x188   :  { %3753 = vmatpush.bf16.msrb.mxu3 %v10580_v37  ;;  %3728 = vmatpush.bf16.msrb.mxu1 %v10036_v39  ;;  %v14507_v25 = vld [vmem:[#allocation2 + $0x62c] sm:$0xf0] }
 0x189   :  { %v11187_v31 = vld [vmem:[#allocation2 + $0xbd0] sm:$0xf]  ;;  %v10452_v34 = vor.u32 %v14507_v25, %v10451_v22  ;;  %3926 = vmatpush.bf16.msrb.mxu0 %v9692_v38  ;;  %v10811_v38 = vld [vmem:[#allocation2 + $0x8d8] sm:$0xf] }
 0x18a   :  { %3741 = vmatpush.bf16.msrb.mxu2 %v10292_v42  ;;  %v14691_v16 = vld [vmem:[#allocation2 + $0xbec] sm:$0xf0] }
 0x18b   :  { %v11443_v37 = vld [vmem:[#allocation2 + $0xdd0] sm:$0xf]  ;;  %v11188_v39 = vor.u32 %v14691_v16, %v11187_v31  ;;  %v3514_v31 = vpop.f32.mrf.mxu0 }
 0x18c   :  { %3754 = vmatpush.bf16.msrb.mxu3 %v10548_v41  ;;  %3729 = vmatpush.bf16.msrb.mxu1 %v10004_v47  ;;  %v14755_v33 = vld [vmem:[#allocation2 + $0xdec] sm:$0xf0]  ;;  %v3525_v30 = vpop.f32.mrf.mxu1 }
 0x18d   :  { %v11699_v61 = vld [vmem:[#allocation2 + $0xfd0] sm:$0xf]  ;;  %v11444_v42 = vor.u32 %v14755_v33, %v11443_v37  ;;  %3971 = vmatpush.bf16.msra.mxu0 %v10940_v49 }
 0x18e   :  { %3742 = vmatpush.bf16.msrb.mxu2 %v10260_v2  ;;  %v14819_v62 = vld [vmem:[#allocation2 + $0xfec] sm:$0xf0]  ;;  %3927 = vmatmul.bf16.vlgmr.msrb.gmra.mxu0 %v15977_v46 }
 0x18f   :  { %v11700_v41 = vor.u32 %v14819_v62, %v11699_v61  ;;  %v11155_v43 = vld [vmem:[#allocation2 + $0xb90] sm:$0xf]  ;;  %v3526_v62 = vadd.f32 %v3525_v30, %v3513_v18 }
 0x190   :  { %3755 = vmatpush.bf16.msrb.mxu3 %v10516_v4  ;;  %3730 = vmatpush.bf16.msrb.mxu1 %v9972_v13  ;;  %v14683_v45 = vld [vmem:[#allocation2 + $0xbac] sm:$0xf0] }
 0x191   :  { %v11411_v3 = vld [vmem:[#allocation2 + $0xd90] sm:$0xf]  ;;  %v11156_v58 = vor.u32 %v14683_v45, %v11155_v43  ;;  %3972 = vmatpush.bf16.msra.mxu0 %v10908_v7 }
 0x192   :  { %3743 = vmatpush.bf16.msrb.mxu2 %v10228_v17  ;;  %v14747_v50 = vld [vmem:[#allocation2 + $0xdac] sm:$0xf0] }
 0x193   :  { %v11667_v52 = vld [vmem:[#allocation2 + $0xf90] sm:$0xf]  ;;  %v11412_v63 = vor.u32 %v14747_v50, %v11411_v3  ;;  %v3564_v48 = vpop.f32.mrf.mxu0 }
 0x194   :  { %3756 = vmatpush.bf16.msrb.mxu3 %v10484_v19  ;;  %3731 = vmatpush.bf16.msrb.mxu1 %v9940_v32  ;;  %v14811_v53 = vld [vmem:[#allocation2 + $0xfac] sm:$0xf0]  ;;  %v3538_v50 = vpop.f32.mrf.mxu2 }
 0x195   :  { %v11123_v59 = vld [vmem:[#allocation2 + $0xb50] sm:$0xf]  ;;  %v11668_v47 = vor.u32 %v14811_v53, %v11667_v52  ;;  %3973 = vmatpush.bf16.msra.mxu0 %v10876_v21 }
 0x196   :  { %3744 = vmatpush.bf16.msrb.mxu2 %v10196_v20  ;;  %v14675_v2 = vld [vmem:[#allocation2 + $0xb6c] sm:$0xf0]  ;;  %v10844_v20 = vor.u32 %v14604_v27, %v10843_v26 }
 0x197   :  { %v11379_v4 = vld [vmem:[#allocation2 + $0xd50] sm:$0xf]  ;;  %3732 = vmatmul.bf16.vlgmr.msrb.gmra.mxu1 %v15996_v55  ;;  %v11124_v12 = vor.u32 %v14675_v2, %v11123_v59  ;;  %v3551_v59 = vpop.f32.mrf.mxu3 }
 0x198   :  { %3757 = vmatpush.bf16.msrb.mxu3 %v10452_v34  ;;  %3776 = vmatpush.bf16.msra.mxu1 %v11188_v39  ;;  %v14739_v0 = vld [vmem:[#allocation2 + $0xd6c] sm:$0xf0]  ;;  %v14596_v39 = vld [vmem:[#allocation2 + $0x8f4] sm:$0xf0] }
 0x199   :  { %v11635_v8 = vld [vmem:[#allocation2 + $0xf50] sm:$0xf]  ;;  %3745 = vmatmul.bf16.vlgmr.msrb.gmra.mxu2 %v15979_v51  ;;  %v11380_v13 = vor.u32 %v14739_v0, %v11379_v4  ;;  %3974 = vmatpush.bf16.msra.mxu0 %v10844_v20  ;;  %v10812_v52 = vor.u32 %v14596_v39, %v10811_v38  ;;  %v3527_v4 = vpop.f32.mrf.mxu1  ;;  %v14495_v20 = vld [vmem:[#allocation2 + $0x5d4] sm:$0xf] }
 0x19a   :  { %3789 = vmatpush.bf16.msra.mxu2 %v11444_v42  ;;  %v14803_v9 = vld [vmem:[#allocation2 + $0xf6c] sm:$0xf0]  ;;  %v10677_v38 = vld [vmem:[#allocation2 + $0x7f0] sm:$0xf0] }
 0x19b   :  { %3758 = vmatmul.bf16.vlgmr.msrb.gmra.mxu3 %v15981_v54  ;;  %v11636_v14 = vor.u32 %v14803_v9, %v11635_v8  ;;  %v11091_v15 = vld [vmem:[#allocation2 + $0xb10] sm:$0xf]  ;;  %v3566_v39 = vpop.f32.mrf.mxu0 }
 0x19c   :  { %3802 = vmatpush.bf16.msra.mxu3 %v11700_v41  ;;  %3777 = vmatpush.bf16.msra.mxu1 %v11156_v58  ;;  %v14667_v17 = vld [vmem:[#allocation2 + $0xb2c] sm:$0xf0]  ;;  %v3539_v58 = vadd.f32 %v3538_v50, %v3526_v62  ;;  %v3540_v30 = vpop.f32.mrf.mxu2  ;;  %v10165_v62 = vld [vmem:[#allocation2 + $0x3f0] sm:$0xf0] }
 0x19d   :  { %v11347_v19 = vld [vmem:[#allocation2 + $0xd10] sm:$0xf]  ;;  %v11092_v28 = vor.u32 %v14667_v17, %v11091_v15  ;;  %3975 = vmatpush.bf16.msra.mxu0 %v10812_v52  ;;  %v10747_v17 = vld [vmem:[#allocation2 + $0x858] sm:$0xf]  ;;  %v10581_v30 = vld [vmem:[#allocation2 + $0x730] sm:$0xf0] }
 0x19e   :  { %3790 = vmatpush.bf16.msra.mxu2 %v11412_v63  ;;  %v14731_v22 = vld [vmem:[#allocation2 + $0xd2c] sm:$0xf0]  ;;  %v14588_v63 = vld [vmem:[#allocation2 + $0x8b4] sm:$0xf0]  ;;  %v3552_v2 = vadd.f32 %v3551_v59, %v3539_v58  ;;  %v10389_v59 = vld [vmem:[#allocation2 + $0x5b0] sm:$0xf0] }
 0x19f   :  { %v11603_v23 = vld [vmem:[#allocation2 + $0xf10] sm:$0xf]  ;;  %v11348_v16 = vor.u32 %v14731_v22, %v11347_v19  ;;  %v10780_v11 = vor.u32 %v14588_v63, %v10779_v60  ;;  %v14580_v19 = vld [vmem:[#allocation2 + $0x874] sm:$0xf0]  ;;  %v14551_v60 = vld [vmem:[#allocation2 + $0x794] sm:$0xf] }
 0x1a0   :  { %3803 = vmatpush.bf16.msra.mxu3 %v11668_v47  ;;  %v14795_v25 = vld [vmem:[#allocation2 + $0xf2c] sm:$0xf0]  ;;  %3778 = vmatpush.bf16.msra.mxu1 %v11124_v12  ;;  %v16080_v15 = vadd.f32 %v3564_v48, %v3552_v2  ;;  %v10748_v31 = vor.u32 %v14580_v19, %v10747_v17  ;;  %v10645_v63 = vld [vmem:[#allocation2 + $0x7b0] sm:$0xf0]  ;;  %v9885_v2 = vld [vmem:[#allocation2 + $0x1b8] sm:$0xf0] }
 0x1a1   :  { %v11604_v37 = vor.u32 %v14795_v25, %v11603_v23  ;;  %v11059_v32 = vld [vmem:[#allocation2 + $0xad0] sm:$0xf]  ;;  %3976 = vmatpush.bf16.msra.mxu0 %v10780_v11  ;;  %v10357_v11 = vld [vmem:[#allocation2 + $0x570] sm:$0xf0]  ;;  %v9853_v17 = vld [vmem:[#allocation2 + $0x178] sm:$0xf0] }
 0x1a2   :  { %3791 = vmatpush.bf16.msra.mxu2 %v11380_v13  ;;  %v14659_v33 = vld [vmem:[#allocation2 + $0xaec] sm:$0xf0]  ;;  %v14527_v39 = vld [vmem:[#allocation2 + $0x6d4] sm:$0xf] }
 0x1a3   :  { %v11315_v61 = vld [vmem:[#allocation2 + $0xcd0] sm:$0xf]  ;;  %v11060_v42 = vor.u32 %v14659_v33, %v11059_v32  ;;  %v14572_v32 = vld [vmem:[#allocation2 + $0x834] sm:$0xf0]  ;;  %v3553_v33 = vpop.f32.mrf.mxu3 }
 0x1a4   :  { %3804 = vmatpush.bf16.msra.mxu3 %v11636_v14  ;;  %v14723_v34 = vld [vmem:[#allocation2 + $0xcec] sm:$0xf0]  ;;  %3779 = vmatpush.bf16.msra.mxu1 %v11092_v28 }
 0x1a5   :  { %v11571_v35 = vld [vmem:[#allocation2 + $0xed0] sm:$0xf]  ;;  %v11316_v41 = vor.u32 %v14723_v34, %v11315_v61  ;;  %v14431_v61 = vld [vmem:[#allocation2 + $0x3d4] sm:$0xf]  ;;  %3977 = vmatpush.bf16.msra.mxu0 %v10748_v31  ;;  %v14344_v31 = vld [vmem:[#allocation2 + $0x11c] sm:$0xf] }
 0x1a6   :  { %v14787_v36 = vld [vmem:[#allocation2 + $0xeec] sm:$0xf0]  ;;  %3792 = vmatpush.bf16.msra.mxu2 %v11348_v16 }
 0x1a7   :  { %v11572_v43 = vor.u32 %v14787_v36, %v11571_v35  ;;  %v11027_v45 = vld [vmem:[#allocation2 + $0xa90] sm:$0xf]  ;;  %v10421_v35 = vld [vmem:[#allocation2 + $0x5f0] sm:$0xf0] }
 0x1a8   :  { %3805 = vmatpush.bf16.msra.mxu3 %v11604_v37  ;;  %v14651_v3 = vld [vmem:[#allocation2 + $0xaac] sm:$0xf0]  ;;  %3780 = vmatpush.bf16.msra.mxu1 %v11060_v42  ;;  %v10715_v37 = vld [vmem:[#allocation2 + $0x818] sm:$0xf]  ;;  %v14559_v36 = vld [vmem:[#allocation2 + $0x7d4] sm:$0xf]  ;;  %v10424_v50 = vor.u32 %v14495_v20, %v10421_v35 }
 0x1a9   :  { %v11283_v49 = vld [vmem:[#allocation2 + $0xc90] sm:$0xf]  ;;  %v11028_v47 = vor.u32 %v14651_v3, %v11027_v45  ;;  %v9917_v45 = vld [vmem:[#allocation2 + $0x1f8] sm:$0xf0]  ;;  %v10716_v3 = vor.u32 %v14572_v32, %v10715_v37  ;;  %v10680_v52 = vor.u32 %v14559_v36, %v10677_v38  ;;  %v10037_v20 = vld [vmem:[#allocation2 + $0x2f0] sm:$0xf0] }
 0x1aa   :  { %v14715_v53 = vld [vmem:[#allocation2 + $0xcac] sm:$0xf0]  ;;  %3793 = vmatpush.bf16.msra.mxu2 %v11316_v41  ;;  %v10293_v38 = vld [vmem:[#allocation2 + $0x4f0] sm:$0xf0] }
 0x1ab   :  { %v11539_v56 = vld [vmem:[#allocation2 + $0xe90] sm:$0xf]  ;;  %v11284_v7 = vor.u32 %v14715_v53, %v11283_v49  ;;  %v10168_v49 = vor.u32 %v14431_v61, %v10165_v62  ;;  %v14423_v53 = vld [vmem:[#allocation2 + $0x394] sm:$0xf]  ;;  %3978 = vmatpush.bf16.msra.mxu0 %v10716_v3 }
 0x1ac   :  { %v14779_v57 = vld [vmem:[#allocation2 + $0xeac] sm:$0xf0]  ;;  %3806 = vmatpush.bf16.msra.mxu3 %v11572_v43  ;;  %3781 = vmatpush.bf16.msra.mxu1 %v11028_v47  ;;  %v14368_v43 = vld [vmem:[#allocation2 + $0x1dc] sm:$0xf]  ;;  %v14399_v62 = vld [vmem:[#allocation2 + $0x2d4] sm:$0xf] }
 0x1ad   :  { %v11540_v0 = vor.u32 %v14779_v57, %v11539_v56  ;;  %v10995_v8 = vld [vmem:[#allocation2 + $0xa50] sm:$0xf]  ;;  %v10133_v56 = vld [vmem:[#allocation2 + $0x3b0] sm:$0xf0]  ;;  %v9920_v58 = vor.u32 %v14368_v43, %v9917_v45  ;;  %v14360_v47 = vld [vmem:[#allocation2 + $0x19c] sm:$0xf]  ;;  %v3577_v32 = vpop.f32.mrf.mxu1  ;;  %v10040_v45 = vor.u32 %v14399_v62, %v10037_v20 }
 0x1ae   :  { %v14643_v9 = vld [vmem:[#allocation2 + $0xa6c] sm:$0xf0]  ;;  %3794 = vmatpush.bf16.msra.mxu2 %v11284_v7  ;;  %v14487_v57 = vld [vmem:[#allocation2 + $0x594] sm:$0xf]  ;;  %v10136_v4 = vor.u32 %v14423_v53, %v10133_v56  ;;  %v10648_v7 = vor.u32 %v14551_v60, %v10645_v63  ;;  %3979 = vmatmul.bf16.vlgmr.msra.gmra.mxu0 %v15993_v29  ;;  %v3578_v35 = vadd.f32 %v3577_v32, %v16080_v15  ;;  %v9789_v43 = vld [vmem:[#allocation2 + $0xf8] sm:$0xf0] }
 0x1af   :  { %v11251_v10 = vld [vmem:[#allocation2 + $0xc50] sm:$0xf]  ;;  %v10996_v18 = vor.u32 %v14643_v9, %v10995_v8  ;;  %v10392_v48 = vor.u32 %v14487_v57, %v10389_v59  ;;  %v10101_v8 = vld [vmem:[#allocation2 + $0x370] sm:$0xf0]  ;;  %4023 = vmatpush.bf16.msrb.mxu0 %v9920_v58  ;;  %v14312_v32 = vld [vmem:[#allocation2 + $0x1c] sm:$0xf] }
 0x1b0   :  { %v14707_v12 = vld [vmem:[#allocation2 + $0xc6c] sm:$0xf0]  ;;  %3807 = vmatpush.bf16.msra.mxu3 %v11540_v0  ;;  %v14415_v0 = vld [vmem:[#allocation2 + $0x354] sm:$0xf] }
 0x1b1   :  { %v11507_v13 = vld [vmem:[#allocation2 + $0xe50] sm:$0xf]  ;;  %v11252_v23 = vor.u32 %v14707_v12, %v11251_v10  ;;  %3782 = vmatpush.bf16.msra.mxu1 %v10996_v18  ;;  %v14479_v9 = vld [vmem:[#allocation2 + $0x554] sm:$0xf]  ;;  %v9888_v10 = vor.u32 %v14360_v47, %v9885_v2  ;;  %v10104_v19 = vor.u32 %v14415_v0, %v10101_v8  ;;  %v14328_v47 = vld [vmem:[#allocation2 + $0x9c] sm:$0xf] }
 0x1b2   :  { %v14771_v14 = vld [vmem:[#allocation2 + $0xe6c] sm:$0xf0]  ;;  %v14543_v12 = vld [vmem:[#allocation2 + $0x754] sm:$0xf]  ;;  %v10360_v18 = vor.u32 %v14479_v9, %v10357_v11  ;;  %v9757_v2 = vld [vmem:[#allocation2 + $0xb8] sm:$0xf0] }
 0x1b3   :  { %v10963_v21 = vld [vmem:[#allocation2 + $0xa10] sm:$0xf]  ;;  %v11508_v25 = vor.u32 %v14771_v14, %v11507_v13  ;;  %3795 = vmatpush.bf16.msra.mxu2 %v11252_v23  ;;  %v10613_v13 = vld [vmem:[#allocation2 + $0x770] sm:$0xf0]  ;;  %v14352_v14 = vld [vmem:[#allocation2 + $0x15c] sm:$0xf]  ;;  %4024 = vmatpush.bf16.msrb.mxu0 %v9888_v10 }
 0x1b4   :  { %v14635_v22 = vld [vmem:[#allocation2 + $0xa2c] sm:$0xf0]  ;;  %v10069_v23 = vld [vmem:[#allocation2 + $0x330] sm:$0xf0] }
 0x1b5   :  { %v11219_v26 = vld [vmem:[#allocation2 + $0xc10] sm:$0xf]  ;;  %v10964_v34 = vor.u32 %v14635_v22, %v10963_v21  ;;  %3808 = vmatpush.bf16.msra.mxu3 %v11508_v25  ;;  %v10616_v21 = vor.u32 %v14543_v12, %v10613_v13  ;;  %v14407_v22 = vld [vmem:[#allocation2 + $0x314] sm:$0xf]  ;;  %v3590_v56 = vpop.f32.mrf.mxu2  ;;  %v9760_v12 = vor.u32 %v14328_v47, %v9757_v2  ;;  %v14616_v47 = vld [vmem:[#allocation2 + $0x99c] sm:$0xf] }
 0x1b6   :  { %v14699_v27 = vld [vmem:[#allocation2 + $0xc2c] sm:$0xf0]  ;;  %v14471_v25 = vld [vmem:[#allocation2 + $0x514] sm:$0xf]  ;;  %v10072_v37 = vor.u32 %v14407_v22, %v10069_v23  ;;  %v3591_v60 = vadd.f32 %v3590_v56, %v3578_v35  ;;  %v10909_v2 = vld [vmem:[#allocation2 + $0x9b8] sm:$0xf0] }
 0x1b7   :  { %v11475_v28 = vld [vmem:[#allocation2 + $0xe10] sm:$0xf]  ;;  %v11220_v42 = vor.u32 %v14699_v27, %v11219_v26  ;;  %3783 = vmatpush.bf16.msra.mxu1 %v10964_v34  ;;  %v9856_v26 = vor.u32 %v14352_v14, %v9853_v17  ;;  %v10325_v27 = vld [vmem:[#allocation2 + $0x530] sm:$0xf0]  ;;  %v3603_v63 = vpop.f32.mrf.mxu3 }
 0x1b8   :  { %v14763_v16 = vld [vmem:[#allocation2 + $0xe2c] sm:$0xf0]  ;;  %v10328_v33 = vor.u32 %v14471_v25, %v10325_v27  ;;  %v14463_v34 = vld [vmem:[#allocation2 + $0x4d4] sm:$0xf] }
 0x1b9   :  { %v11476_v41 = vor.u32 %v14763_v16, %v11475_v28  ;;  %3796 = vmatpush.bf16.msra.mxu2 %v11220_v42  ;;  %v14535_v28 = vld [vmem:[#allocation2 + $0x714] sm:$0xf]  ;;  %v9821_v16 = vld [vmem:[#allocation2 + $0x138] sm:$0xf0]  ;;  %4025 = vmatpush.bf16.msrb.mxu0 %v9856_v26  ;;  %v10296_v3 = vor.u32 %v14463_v34, %v10293_v38 }
 0x1ba   :  { %3784 = vmatmul.bf16.vlgmr.msra.gmra.mxu1 %v16009_v40  ;;  %v10584_v61 = vor.u32 %v14535_v28, %v10581_v30  ;;  %v9824_v36 = vor.u32 %v14344_v31, %v9821_v16  ;;  %v10549_v42 = vld [vmem:[#allocation2 + $0x6f0] sm:$0xf0] }
 0x1bb   :  { %3809 = vmatpush.bf16.msra.mxu3 %v11476_v41  ;;  %3828 = vmatpush.bf16.msrb.mxu1 %v10168_v49  ;;  %v14336_v41 = vld [vmem:[#allocation2 + $0xdc] sm:$0xf]  ;;  %v10552_v49 = vor.u32 %v14527_v39, %v10549_v42  ;;  %v14455_v53 = vld [vmem:[#allocation2 + $0x494] sm:$0xf]  ;;  %v3616_v42 = vpop.f32.mrf.mxu0 }
 0x1bc   :  { %3797 = vmatmul.bf16.vlgmr.msra.gmra.mxu2 %v16011_v44  ;;  %v9792_v57 = vor.u32 %v14336_v41, %v9789_v43  ;;  %v10261_v15 = vld [vmem:[#allocation2 + $0x4b0] sm:$0xf0] }
 0x1bd   :  { %3841 = vmatpush.bf16.msrb.mxu2 %v10424_v50  ;;  %v14391_v50 = vld [vmem:[#allocation2 + $0x294] sm:$0xf]  ;;  %4026 = vmatpush.bf16.msrb.mxu0 %v9824_v36  ;;  %v10264_v0 = vor.u32 %v14455_v53, %v10261_v15  ;;  %v3592_v31 = vpop.f32.mrf.mxu2 }
 0x1be   :  { %3810 = vmatmul.bf16.vlgmr.msra.gmra.mxu3 %v16003_v24  ;;  %v14519_v58 = vld [vmem:[#allocation2 + $0x694] sm:$0xf] }
 0x1bf   :  { %3854 = vmatpush.bf16.msrb.mxu3 %v10680_v52  ;;  %3829 = vmatpush.bf16.msrb.mxu1 %v10136_v4  ;;  %v10005_v52 = vld [vmem:[#allocation2 + $0x2b0] sm:$0xf0] }
 0x1c0   :  { %v10517_v59 = vld [vmem:[#allocation2 + $0x6b0] sm:$0xf0]  ;;  %v10008_v4 = vor.u32 %v14391_v50, %v10005_v52 }
 0x1c1   :  { %3842 = vmatpush.bf16.msrb.mxu2 %v10392_v48  ;;  %v16087_v48 = vadd.f32 %v3603_v63, %v3591_v60  ;;  %v10520_v8 = vor.u32 %v14519_v58, %v10517_v59  ;;  %v14383_v9 = vld [vmem:[#allocation2 + $0x254] sm:$0xf]  ;;  %4027 = vmatpush.bf16.msrb.mxu0 %v9792_v57 }
 0x1c2   :  { %v9973_v10 = vld [vmem:[#allocation2 + $0x270] sm:$0xf0] }
 0x1c3   :  { %3855 = vmatpush.bf16.msrb.mxu3 %v10648_v7  ;;  %3830 = vmatpush.bf16.msrb.mxu1 %v10104_v19  ;;  %v3579_v7 = vpop.f32.mrf.mxu1  ;;  %v14447_v11 = vld [vmem:[#allocation2 + $0x454] sm:$0xf]  ;;  %v14320_v19 = vld [vmem:[#allocation2 + $0x5c] sm:$0xf] }
 0x1c4   :  { %v10229_v13 = vld [vmem:[#allocation2 + $0x470] sm:$0xf0] }
 0x1c5   :  { %3843 = vmatpush.bf16.msrb.mxu2 %v10360_v18  ;;  %v14511_v14 = vld [vmem:[#allocation2 + $0x654] sm:$0xf]  ;;  %v9725_v18 = vld [vmem:[#allocation2 + $0x78] sm:$0xf0]  ;;  %v10232_v25 = vor.u32 %v14447_v11, %v10229_v13  ;;  %4028 = vmatpush.bf16.msrb.mxu0 %v9760_v12  ;;  %v722_v11 = vperm.slane %v16073_v6, 3  ;;  %v10912_v12 = vor.u32 %v14616_v47, %v10909_v2 }
 0x1c6   :  { %v10485_v17 = vld [vmem:[#allocation2 + $0x670] sm:$0xf0]  ;;  %v9728_v16 = vor.u32 %v14320_v19, %v9725_v18  ;;  %v3618_v19 = vpop.f32.mrf.mxu0  ;;  %v14608_v18 = vld [vmem:[#allocation2 + $0x95c] sm:$0xf] }
 0x1c7   :  { %3856 = vmatpush.bf16.msrb.mxu3 %v10616_v21  ;;  %3831 = vmatpush.bf16.msrb.mxu1 %v10072_v37  ;;  %v9976_v21 = vor.u32 %v14383_v9, %v9973_v10  ;;  %v14375_v22 = vld [vmem:[#allocation2 + $0x214] sm:$0xf]  ;;  %v10488_v26 = vor.u32 %v14511_v14, %v10485_v17 }
 0x1c8   :  { %v9941_v23 = vld [vmem:[#allocation2 + $0x230] sm:$0xf0] }
 0x1c9   :  { %3844 = vmatpush.bf16.msrb.mxu2 %v10328_v33  ;;  %v14439_v27 = vld [vmem:[#allocation2 + $0x414] sm:$0xf]  ;;  %v9693_v33 = vld [vmem:[#allocation2 + $0x38] sm:$0xf0]  ;;  %v9944_v35 = vor.u32 %v14375_v22, %v9941_v23  ;;  %4029 = vmatpush.bf16.msrb.mxu0 %v9728_v16 }
 0x1ca   :  { %v10197_v28 = vld [vmem:[#allocation2 + $0x430] sm:$0xf0] }
 0x1cb   :  { %3857 = vmatpush.bf16.msrb.mxu3 %v10584_v61  ;;  %3832 = vmatpush.bf16.msrb.mxu1 %v10040_v45  ;;  %v14503_v30 = vld [vmem:[#allocation2 + $0x614] sm:$0xf]  ;;  %v3605_v61 = vpop.f32.mrf.mxu3  ;;  %v10200_v41 = vor.u32 %v14439_v27, %v10197_v28  ;;  %v14624_v45 = vld [vmem:[#allocation2 + $0x9dc] sm:$0xf]  ;;  %v3617_v28 = vadd.f32 %v3616_v42, %v722_v11 }
 0x1cc   :  { %v10453_v37 = vld [vmem:[#allocation2 + $0x630] sm:$0xf0] }
 0x1cd   :  { %3845 = vmatpush.bf16.msrb.mxu2 %v10296_v3  ;;  %v14687_v62 = vld [vmem:[#allocation2 + $0xbd4] sm:$0xf]  ;;  %v10456_v43 = vor.u32 %v14503_v30, %v10453_v37  ;;  %v10941_v3 = vld [vmem:[#allocation2 + $0x9f8] sm:$0xf0] }
 0x1ce   :  { %v11189_v20 = vld [vmem:[#allocation2 + $0xbf0] sm:$0xf0]  ;;  %v10944_v58 = vor.u32 %v14624_v45, %v10941_v3  ;;  %v3668_v45 = vpop.f32.mrf.mxu0  ;;  %v14592_v3 = vld [vmem:[#allocation2 + $0x8dc] sm:$0xf] }
 0x1cf   :  { %3858 = vmatpush.bf16.msrb.mxu3 %v10552_v49  ;;  %3833 = vmatpush.bf16.msrb.mxu1 %v10008_v4  ;;  %v14751_v34 = vld [vmem:[#allocation2 + $0xdd4] sm:$0xf]  ;;  %v9696_v49 = vor.u32 %v14312_v32, %v9693_v33  ;;  %v11192_v50 = vor.u32 %v14687_v62, %v11189_v20  ;;  %v14600_v32 = vld [vmem:[#allocation2 + $0x91c] sm:$0xf]  ;;  %v3629_v62 = vpop.f32.mrf.mxu1 }
 0x1d0   :  { %v11445_v36 = vld [vmem:[#allocation2 + $0xdf0] sm:$0xf0]  ;;  %v10845_v33 = vld [vmem:[#allocation2 + $0x938] sm:$0xf0] }
 0x1d1   :  { %3846 = vmatpush.bf16.msrb.mxu2 %v10264_v0  ;;  %v14815_v38 = vld [vmem:[#allocation2 + $0xfd4] sm:$0xf]  ;;  %v11448_v52 = vor.u32 %v14751_v34, %v11445_v36  ;;  %4030 = vmatpush.bf16.msrb.mxu0 %v9696_v49  ;;  %v10813_v49 = vld [vmem:[#allocation2 + $0x8f8] sm:$0xf0] }
 0x1d2   :  { %v11701_v39 = vld [vmem:[#allocation2 + $0xff0] sm:$0xf0] }
 0x1d3   :  { %3859 = vmatpush.bf16.msrb.mxu3 %v10520_v8  ;;  %3834 = vmatpush.bf16.msrb.mxu1 %v9976_v21  ;;  %v11704_v53 = vor.u32 %v14815_v38, %v11701_v39  ;;  %v14679_v56 = vld [vmem:[#allocation2 + $0xb94] sm:$0xf]  ;;  %v10877_v21 = vld [vmem:[#allocation2 + $0x978] sm:$0xf0]  ;;  %v3630_v38 = vadd.f32 %v3629_v62, %v3617_v28  ;;  %v10848_v39 = vor.u32 %v14600_v32, %v10845_v33 }
 0x1d4   :  { %v11157_v57 = vld [vmem:[#allocation2 + $0xbb0] sm:$0xf0]  ;;  %4031 = vmatmul.bf16.vlgmr.msrb.gmra.mxu0 %v15977_v46  ;;  %v10880_v30 = vor.u32 %v14608_v18, %v10877_v21 }
 0x1d5   :  { %3847 = vmatpush.bf16.msrb.mxu2 %v10232_v25  ;;  %v14743_v15 = vld [vmem:[#allocation2 + $0xd94] sm:$0xf]  ;;  %v11160_v4 = vor.u32 %v14679_v56, %v11157_v57  ;;  %4075 = vmatpush.bf16.msra.mxu0 %v10944_v58  ;;  %v3642_v58 = vpop.f32.mrf.mxu2 }
 0x1d6   :  { %v11413_v59 = vld [vmem:[#allocation2 + $0xdb0] sm:$0xf0]  ;;  %v3643_v2 = vadd.f32 %v3642_v58, %v3630_v38  ;;  %v14436_v38 = vld [vmem:[#allocation2 + $0x3f4] sm:$0xf0] }
 0x1d7   :  { %3860 = vmatpush.bf16.msrb.mxu3 %v10488_v26  ;;  %3835 = vmatpush.bf16.msrb.mxu1 %v9944_v35  ;;  %v14807_v60 = vld [vmem:[#allocation2 + $0xf94] sm:$0xf]  ;;  %v11416_v0 = vor.u32 %v14743_v15, %v11413_v59  ;;  %v10816_v59 = vor.u32 %v14592_v3, %v10813_v49 }
 0x1d8   :  { %v11669_v63 = vld [vmem:[#allocation2 + $0xfb0] sm:$0xf0] }
 0x1d9   :  { %3848 = vmatpush.bf16.msrb.mxu2 %v10200_v41  ;;  %v14671_v7 = vld [vmem:[#allocation2 + $0xb54] sm:$0xf]  ;;  %v11672_v8 = vor.u32 %v14807_v60, %v11669_v63  ;;  %4076 = vmatpush.bf16.msra.mxu0 %v10912_v12 }
 0x1da   :  { %v11125_v9 = vld [vmem:[#allocation2 + $0xb70] sm:$0xf0]  ;;  %3836 = vmatmul.bf16.vlgmr.msrb.gmra.mxu1 %v15996_v55 }
 0x1db   :  { %3861 = vmatpush.bf16.msrb.mxu3 %v10456_v43  ;;  %3880 = vmatpush.bf16.msra.mxu1 %v11192_v50  ;;  %v14735_v10 = vld [vmem:[#allocation2 + $0xd54] sm:$0xf]  ;;  %v11128_v22 = vor.u32 %v14671_v7, %v11125_v9  ;;  %v14584_v7 = vld [vmem:[#allocation2 + $0x89c] sm:$0xf] }
 0x1dc   :  { %v11381_v13 = vld [vmem:[#allocation2 + $0xd70] sm:$0xf0]  ;;  %3849 = vmatmul.bf16.vlgmr.msrb.gmra.mxu2 %v15979_v51 }
 0x1dd   :  { %3893 = vmatpush.bf16.msra.mxu2 %v11448_v52  ;;  %v14799_v14 = vld [vmem:[#allocation2 + $0xf54] sm:$0xf]  ;;  %v11384_v6 = vor.u32 %v14735_v10, %v11381_v13  ;;  %4077 = vmatpush.bf16.msra.mxu0 %v10880_v30  ;;  %v3631_v10 = vpop.f32.mrf.mxu1 }
 0x1de   :  { %v11637_v17 = vld [vmem:[#allocation2 + $0xf70] sm:$0xf0]  ;;  %3862 = vmatmul.bf16.vlgmr.msrb.gmra.mxu3 %v15981_v54 }
 0x1df   :  { %3906 = vmatpush.bf16.msra.mxu3 %v11704_v53  ;;  %3881 = vmatpush.bf16.msra.mxu1 %v11160_v4  ;;  %v11640_v23 = vor.u32 %v14799_v14, %v11637_v17  ;;  %v14663_v25 = vld [vmem:[#allocation2 + $0xb14] sm:$0xf]  ;;  %v3655_v4 = vpop.f32.mrf.mxu3 }
 0x1e0   :  { %v11093_v26 = vld [vmem:[#allocation2 + $0xb30] sm:$0xf0]  ;;  %v3656_v9 = vadd.f32 %v3655_v4, %v3643_v2  ;;  %v14492_v2 = vld [vmem:[#allocation2 + $0x5b4] sm:$0xf0] }
 0x1e1   :  { %3894 = vmatpush.bf16.msra.mxu2 %v11416_v0  ;;  %v14727_v27 = vld [vmem:[#allocation2 + $0xd14] sm:$0xf]  ;;  %v11096_v61 = vor.u32 %v14663_v25, %v11093_v26  ;;  %4078 = vmatpush.bf16.msra.mxu0 %v10848_v39  ;;  %v10781_v0 = vld [vmem:[#allocation2 + $0x8b8] sm:$0xf0]  ;;  %v10427_v39 = vld [vmem:[#allocation2 + $0x5d8] sm:$0xf] }
 0x1e2   :  { %v11349_v31 = vld [vmem:[#allocation2 + $0xd30] sm:$0xf0]  ;;  %v10784_v19 = vor.u32 %v14584_v7, %v10781_v0  ;;  %v14576_v25 = vld [vmem:[#allocation2 + $0x85c] sm:$0xf]  ;;  %v10651_v4 = vld [vmem:[#allocation2 + $0x798] sm:$0xf] }
 0x1e3   :  { %3907 = vmatpush.bf16.msra.mxu3 %v11672_v8  ;;  %v14791_v16 = vld [vmem:[#allocation2 + $0xf14] sm:$0xf]  ;;  %3882 = vmatpush.bf16.msra.mxu1 %v11128_v22  ;;  %v11352_v46 = vor.u32 %v14727_v27, %v11349_v31  ;;  %v10749_v26 = vld [vmem:[#allocation2 + $0x878] sm:$0xf0]  ;;  %v14556_v7 = vld [vmem:[#allocation2 + $0x7b4] sm:$0xf0] }
 0x1e4   :  { %v11605_v37 = vld [vmem:[#allocation2 + $0xf30] sm:$0xf0]  ;;  %v10752_v62 = vor.u32 %v14576_v25, %v10749_v26  ;;  %v11907_v0 = vld [vmem:[#allocation7 + $0x180] sm:$0xf] }
 0x1e5   :  { %3895 = vmatpush.bf16.msra.mxu2 %v11384_v6  ;;  %v11608_v20 = vor.u32 %v14791_v16, %v11605_v37  ;;  %v14655_v34 = vld [vmem:[#allocation2 + $0xad4] sm:$0xf]  ;;  %4079 = vmatpush.bf16.msra.mxu0 %v10816_v59  ;;  %v16094_v6 = vadd.f32 %v3668_v45, %v3656_v9  ;;  %v14564_v45 = vld [vmem:[#allocation2 + $0x7f4] sm:$0xf0] }
 0x1e6   :  { %v11061_v35 = vld [vmem:[#allocation2 + $0xaf0] sm:$0xf0]  ;;  %v10139_v59 = vld [vmem:[#allocation2 + $0x398] sm:$0xf] }
 0x1e7   :  { %3908 = vmatpush.bf16.msra.mxu3 %v11640_v23  ;;  %v14719_v36 = vld [vmem:[#allocation2 + $0xcd4] sm:$0xf]  ;;  %3883 = vmatpush.bf16.msra.mxu1 %v11096_v61  ;;  %v11064_v50 = vor.u32 %v14655_v34, %v11061_v35  ;;  %v3670_v23 = vpop.f32.mrf.mxu0  ;;  %v3644_v61 = vpop.f32.mrf.mxu2  ;;  %v10717_v34 = vld [vmem:[#allocation2 + $0x838] sm:$0xf0] }
 0x1e8   :  { %v11317_v42 = vld [vmem:[#allocation2 + $0xcf0] sm:$0xf0]  ;;  %v3657_v35 = vpop.f32.mrf.mxu3  ;;  %v14865_v23 = vld [vmem:[#allocation7 + $0x15c] sm:$0xf0]  ;;  %v14540_v61 = vld [vmem:[#allocation2 + $0x734] sm:$0xf0] }
 0x1e9   :  { %v14783_v41 = vld [vmem:[#allocation2 + $0xed4] sm:$0xf]  ;;  %3896 = vmatpush.bf16.msra.mxu2 %v11352_v46  ;;  %v11320_v52 = vor.u32 %v14719_v36, %v11317_v42  ;;  %4080 = vmatpush.bf16.msra.mxu0 %v10784_v19  ;;  %v10171_v36 = vld [vmem:[#allocation2 + $0x3d8] sm:$0xf] }
 0x1ea   :  { %v11573_v43 = vld [vmem:[#allocation2 + $0xef0] sm:$0xf0]  ;;  %v14484_v19 = vld [vmem:[#allocation2 + $0x574] sm:$0xf0] }
 0x1eb   :  { %3909 = vmatpush.bf16.msra.mxu3 %v11608_v20  ;;  %v11576_v53 = vor.u32 %v14783_v41, %v11573_v43  ;;  %v14647_v56 = vld [vmem:[#allocation2 + $0xa94] sm:$0xf]  ;;  %3884 = vmatpush.bf16.msra.mxu1 %v11064_v50  ;;  %v14568_v20 = vld [vmem:[#allocation2 + $0x81c] sm:$0xf]  ;;  %v14500_v41 = vld [vmem:[#allocation2 + $0x5f4] sm:$0xf0] }
 0x1ec   :  { %v11029_v57 = vld [vmem:[#allocation2 + $0xab0] sm:$0xf0]  ;;  %v10683_v43 = vld [vmem:[#allocation2 + $0x7d8] sm:$0xf]  ;;  %v11939_v50 = vld [vmem:[#allocation7 + $0x1c0] sm:$0xf] }
 0x1ed   :  { %v14711_v15 = vld [vmem:[#allocation2 + $0xc94] sm:$0xf]  ;;  %v11032_v8 = vor.u32 %v14647_v56, %v11029_v57  ;;  %3897 = vmatpush.bf16.msra.mxu2 %v11320_v52  ;;  %v14881_v52 = vld [vmem:[#allocation7 + $0x1dc] sm:$0xf0]  ;;  %4081 = vmatpush.bf16.msra.mxu0 %v10752_v62  ;;  %v10172_v56 = vor.u32 %v14436_v38, %v10171_v36  ;;  %v10684_v58 = vor.u32 %v14564_v45, %v10683_v43  ;;  %v10043_v36 = vld [vmem:[#allocation2 + $0x2d8] sm:$0xf] }
 0x1ee   :  { %v11285_v60 = vld [vmem:[#allocation2 + $0xcb0] sm:$0xf0]  ;;  %v11843_v62 = vld [vmem:[#allocation7 + $0x100] sm:$0xf]  ;;  %v14404_v38 = vld [vmem:[#allocation2 + $0x2f4] sm:$0xf0] }
 0x1ef   :  { %v14775_v63 = vld [vmem:[#allocation2 + $0xe94] sm:$0xf]  ;;  %3910 = vmatpush.bf16.msra.mxu3 %v11576_v53  ;;  %v11288_v11 = vor.u32 %v14711_v15, %v11285_v60  ;;  %3885 = vmatpush.bf16.msra.mxu1 %v11032_v8  ;;  %v10720_v53 = vor.u32 %v14568_v20, %v10717_v34  ;;  %v16096_v57 = vpop.f32.mrf.mxu0  ;;  %v10428_v15 = vor.u32 %v14500_v41, %v10427_v39  ;;  %v14428_v60 = vld [vmem:[#allocation2 + $0x3b4] sm:$0xf0]  ;;  %v14873_v8 = vld [vmem:[#allocation7 + $0x19c] sm:$0xf0] }
 0x1f0   :  { %v11541_v47 = vld [vmem:[#allocation2 + $0xeb0] sm:$0xf0]  ;;  %v10140_v9 = vor.u32 %v14428_v60, %v10139_v59  ;;  %v10299_v39 = vld [vmem:[#allocation2 + $0x4d8] sm:$0xf] }
 0x1f1   :  { %v11544_v12 = vor.u32 %v14775_v63, %v11541_v47  ;;  %v14639_v13 = vld [vmem:[#allocation2 + $0xa54] sm:$0xf]  ;;  %3898 = vmatpush.bf16.msra.mxu2 %v11288_v11  ;;  %v10395_v63 = vld [vmem:[#allocation2 + $0x598] sm:$0xf]  ;;  %v11940_v47 = vor.u32 %v14881_v52, %v11939_v50  ;;  %4082 = vmatpush.bf16.msra.mxu0 %v10720_v53  ;;  %v10652_v11 = vor.u32 %v14556_v7, %v10651_v4  ;;  %v14849_v50 = vld [vmem:[#allocation7 + $0xdc] sm:$0xf0] }
 0x1f2   :  { %v10997_v14 = vld [vmem:[#allocation2 + $0xa70] sm:$0xf0]  ;;  %v10396_v10 = vor.u32 %v14492_v2, %v10395_v63  ;;  %v14468_v43 = vld [vmem:[#allocation2 + $0x4f4] sm:$0xf0]  ;;  %v10044_v52 = vor.u32 %v14404_v38, %v10043_v36 }
 0x1f3   :  { %v14703_v17 = vld [vmem:[#allocation2 + $0xc54] sm:$0xf]  ;;  %v11000_v27 = vor.u32 %v14639_v13, %v10997_v14  ;;  %3911 = vmatpush.bf16.msra.mxu3 %v11544_v12  ;;  %v10107_v12 = vld [vmem:[#allocation2 + $0x358] sm:$0xf] }
 0x1f4   :  { %v11253_v18 = vld [vmem:[#allocation2 + $0xc70] sm:$0xf0]  ;;  %v14420_v13 = vld [vmem:[#allocation2 + $0x374] sm:$0xf0]  ;;  %4083 = vmatmul.bf16.vlgmr.msra.gmra.mxu0 %v15993_v29  ;;  %v3681_v34 = vpop.f32.mrf.mxu1 }
 0x1f5   :  { %v14767_v21 = vld [vmem:[#allocation2 + $0xe54] sm:$0xf]  ;;  %v11256_v31 = vor.u32 %v14703_v17, %v11253_v18  ;;  %3886 = vmatpush.bf16.msra.mxu1 %v11000_v27  ;;  %v10363_v14 = vld [vmem:[#allocation2 + $0x558] sm:$0xf]  ;;  %7233 = vmatpush.bf16.msrb.mxu0 %v11940_v47  ;;  %v11908_v17 = vor.u32 %v14873_v8, %v11907_v0  ;;  %v10108_v25 = vor.u32 %v14420_v13, %v10107_v12  ;;  %v11779_v8 = vld [vmem:[#allocation7 + $0x80] sm:$0xf] }
 0x1f6   :  { %v11509_v22 = vld [vmem:[#allocation2 + $0xe70] sm:$0xf0]  ;;  %v10619_v18 = vld [vmem:[#allocation2 + $0x758] sm:$0xf]  ;;  %v10364_v27 = vor.u32 %v14484_v19, %v10363_v14 }
 0x1f7   :  { %v14631_v28 = vld [vmem:[#allocation2 + $0xa14] sm:$0xf]  ;;  %v11512_v16 = vor.u32 %v14767_v21, %v11509_v22  ;;  %3899 = vmatpush.bf16.msra.mxu2 %v11256_v31  ;;  %v14548_v21 = vld [vmem:[#allocation2 + $0x774] sm:$0xf0]  ;;  %v11875_v22 = vld [vmem:[#allocation7 + $0x140] sm:$0xf]  ;;  %v3722_v26 = vpop.f32.mrf.mxu0 }
 0x1f8   :  { %v10965_v30 = vld [vmem:[#allocation2 + $0xa30] sm:$0xf0]  ;;  %v14412_v31 = vld [vmem:[#allocation2 + $0x334] sm:$0xf0]  ;;  %v11747_v26 = vld [vmem:[#allocation7 + $0x40] sm:$0xf] }
 0x1f9   :  { %v14695_v37 = vld [vmem:[#allocation2 + $0xc14] sm:$0xf]  ;;  %v10968_v42 = vor.u32 %v14631_v28, %v10965_v30  ;;  %3912 = vmatpush.bf16.msra.mxu3 %v11512_v16  ;;  %v10620_v28 = vor.u32 %v14548_v21, %v10619_v18  ;;  %v10075_v30 = vld [vmem:[#allocation2 + $0x318] sm:$0xf]  ;;  %7234 = vmatpush.bf16.msrb.mxu0 %v11908_v17 }
 0x1fa   :  { %v11221_v32 = vld [vmem:[#allocation2 + $0xc30] sm:$0xf0]  ;;  %v10331_v16 = vld [vmem:[#allocation2 + $0x518] sm:$0xf]  ;;  %v10076_v20 = vor.u32 %v14412_v31, %v10075_v30 }
 0x1fb   :  { %v14759_v33 = vld [vmem:[#allocation2 + $0xe14] sm:$0xf]  ;;  %v11224_v3 = vor.u32 %v14695_v37, %v11221_v32  ;;  %3887 = vmatpush.bf16.msra.mxu1 %v10968_v42  ;;  %v11876_v37 = vor.u32 %v14865_v23, %v11875_v22  ;;  %v14476_v32 = vld [vmem:[#allocation2 + $0x534] sm:$0xf0]  ;;  %v3682_v42 = vadd.f32 %v3681_v34, %v16094_v6 }
 0x1fc   :  { %v11477_v46 = vld [vmem:[#allocation2 + $0xe30] sm:$0xf0]  ;;  %v10332_v29 = vor.u32 %v14476_v32, %v10331_v16  ;;  %v10555_v45 = vld [vmem:[#allocation2 + $0x6d8] sm:$0xf]  ;;  %v3694_v63 = vpop.f32.mrf.mxu2  ;;  %v3683_v12 = vpop.f32.mrf.mxu1 }
 0x1fd   :  { %v11480_v49 = vor.u32 %v14759_v33, %v11477_v46  ;;  %3900 = vmatpush.bf16.msra.mxu2 %v11224_v3  ;;  %v10587_v33 = vld [vmem:[#allocation2 + $0x718] sm:$0xf]  ;;  %v14857_v46 = vld [vmem:[#allocation7 + $0x11c] sm:$0xf0]  ;;  %7235 = vmatpush.bf16.msrb.mxu0 %v11876_v37  ;;  %v3695_v7 = vadd.f32 %v3694_v63, %v3682_v42 }
 0x1fe   :  { %3888 = vmatmul.bf16.vlgmr.msra.gmra.mxu1 %v16009_v40  ;;  %v10588_v35 = vor.u32 %v14540_v61, %v10587_v33  ;;  %v11844_v41 = vor.u32 %v14857_v46, %v11843_v62  ;;  %v14532_v3 = vld [vmem:[#allocation2 + $0x6f4] sm:$0xf0]  ;;  %v3707_v0 = vpop.f32.mrf.mxu3 }
 0x1ff   :  { %3913 = vmatpush.bf16.msra.mxu3 %v11480_v49  ;;  %3932 = vmatpush.bf16.msrb.mxu1 %v10172_v56  ;;  %v11811_v49 = vld [vmem:[#allocation7 + $0xc0] sm:$0xf]  ;;  %v16103_v53 = vpop.f32.mrf.mxu0  ;;  %v10300_v56 = vor.u32 %v14468_v43, %v10299_v39  ;;  %v14396_v59 = vld [vmem:[#allocation2 + $0x2b4] sm:$0xf0] }
 0x200   :  { %3901 = vmatmul.bf16.vlgmr.msra.gmra.mxu2 %v16011_v44  ;;  %v10267_v60 = vld [vmem:[#allocation2 + $0x498] sm:$0xf]  ;;  %v11812_v6 = vor.u32 %v14849_v50, %v11811_v49 }
 0x201   :  { %3945 = vmatpush.bf16.msrb.mxu2 %v10428_v15  ;;  %v10556_v15 = vor.u32 %v14532_v3, %v10555_v45  ;;  %7236 = vmatpush.bf16.msrb.mxu0 %v11844_v41  ;;  %v14460_v47 = vld [vmem:[#allocation2 + $0x4b4] sm:$0xf0] }
 0x202   :  { %3914 = vmatmul.bf16.vlgmr.msra.gmra.mxu3 %v16003_v24  ;;  %v10523_v2 = vld [vmem:[#allocation2 + $0x698] sm:$0xf]  ;;  %v10268_v13 = vor.u32 %v14460_v47, %v10267_v60 }
 0x203   :  { %3958 = vmatpush.bf16.msrb.mxu3 %v10684_v58  ;;  %3933 = vmatpush.bf16.msrb.mxu1 %v10140_v9  ;;  %v10011_v58 = vld [vmem:[#allocation2 + $0x298] sm:$0xf]  ;;  %v14841_v9 = vld [vmem:[#allocation7 + $0x9c] sm:$0xf0] }
 0x204   :  { %v14524_v4 = vld [vmem:[#allocation2 + $0x6b4] sm:$0xf0]  ;;  %v11780_v21 = vor.u32 %v14841_v9, %v11779_v8  ;;  %v3696_v46 = vpop.f32.mrf.mxu2  ;;  %v12931_v9 = vld [vmem:[#allocation7 + $0x980] sm:$0xf] }
 0x205   :  { %3946 = vmatpush.bf16.msrb.mxu2 %v10396_v10  ;;  %v10012_v10 = vor.u32 %v14396_v59, %v10011_v58  ;;  %v10524_v14 = vor.u32 %v14524_v4, %v10523_v2  ;;  %v9979_v17 = vld [vmem:[#allocation2 + $0x258] sm:$0xf]  ;;  %7237 = vmatpush.bf16.msrb.mxu0 %v11812_v6 }
 0x206   :  { %v14388_v19 = vld [vmem:[#allocation2 + $0x274] sm:$0xf0]  ;;  %v3709_v36 = vpop.f32.mrf.mxu3 }
 0x207   :  { %3959 = vmatpush.bf16.msrb.mxu3 %v10652_v11  ;;  %3934 = vmatpush.bf16.msrb.mxu1 %v10108_v25  ;;  %v16105_v11 = vadd.f32 %v3707_v0, %v3695_v7  ;;  %v10235_v18 = vld [vmem:[#allocation2 + $0x458] sm:$0xf]  ;;  %v3774_v16 = vpop.f32.mrf.mxu0 }
 0x208   :  { %v14452_v22 = vld [vmem:[#allocation2 + $0x474] sm:$0xf0] }
 0x209   :  { %3947 = vmatpush.bf16.msrb.mxu2 %v10364_v27  ;;  %v10491_v23 = vld [vmem:[#allocation2 + $0x658] sm:$0xf]  ;;  %v14833_v27 = vld [vmem:[#allocation7 + $0x5c] sm:$0xf0]  ;;  %v10236_v37 = vor.u32 %v14452_v22, %v10235_v18  ;;  %7238 = vmatpush.bf16.msrb.mxu0 %v11780_v21 }
 0x20a   :  { %v14516_v25 = vld [vmem:[#allocation2 + $0x674] sm:$0xf0] }
 0x20b   :  { %3960 = vmatpush.bf16.msrb.mxu3 %v10620_v28  ;;  %3935 = vmatpush.bf16.msrb.mxu1 %v10076_v20  ;;  %v9980_v28 = vor.u32 %v14388_v19, %v9979_v17  ;;  %v9947_v30 = vld [vmem:[#allocation2 + $0x218] sm:$0xf]  ;;  %v10492_v32 = vor.u32 %v14516_v25, %v10491_v23  ;;  %v11748_v20 = vor.u32 %v14833_v27, %v11747_v26  ;;  %v12899_v27 = vld [vmem:[#allocation7 + $0x940] sm:$0xf] }
 0x20c   :  { %v14380_v31 = vld [vmem:[#allocation2 + $0x234] sm:$0xf0] }
 0x20d   :  { %3948 = vmatpush.bf16.msrb.mxu2 %v10332_v29  ;;  %v10203_v33 = vld [vmem:[#allocation2 + $0x418] sm:$0xf]  ;;  %v11715_v29 = vld [vmem:[#allocation7] sm:$0xf]  ;;  %v9948_v41 = vor.u32 %v14380_v31, %v9947_v30  ;;  %7239 = vmatpush.bf16.msrb.mxu0 %v11748_v20 }
 0x20e   :  { %v14444_v61 = vld [vmem:[#allocation2 + $0x434] sm:$0xf0] }
 0x20f   :  { %3961 = vmatpush.bf16.msrb.mxu3 %v10588_v35  ;;  %3936 = vmatpush.bf16.msrb.mxu1 %v10044_v52  ;;  %v10459_v62 = vld [vmem:[#allocation2 + $0x618] sm:$0xf]  ;;  %v14825_v35 = vld [vmem:[#allocation7 + $0x1c] sm:$0xf0]  ;;  %v10204_v49 = vor.u32 %v14444_v61, %v10203_v33  ;;  %v16108_v12 = vpop.f32.mrf.mxu0 }
 0x210   :  { %v14508_v34 = vld [vmem:[#allocation2 + $0x634] sm:$0xf0]  ;;  %v12963_v52 = vld [vmem:[#allocation7 + $0x9c0] sm:$0xf]  ;;  %v11716_v58 = vor.u32 %v14825_v35, %v11715_v29 }
 0x211   :  { %3949 = vmatpush.bf16.msrb.mxu2 %v10300_v56  ;;  %v11195_v38 = vld [vmem:[#allocation2 + $0xbd8] sm:$0xf]  ;;  %v10460_v50 = vor.u32 %v14508_v34, %v10459_v62  ;;  %v15137_v56 = vld [vmem:[#allocation7 + $0x9dc] sm:$0xf0] }
 0x212   :  { %v14692_v39 = vld [vmem:[#allocation2 + $0xbf4] sm:$0xf0]  ;;  %v12964_v4 = vor.u32 %v15137_v56, %v12963_v52  ;;  %7240 = vmatpush.bf16.msrb.mxu0 %v11716_v58  ;;  %v12867_v34 = vld [vmem:[#allocation7 + $0x900] sm:$0xf] }
 0x213   :  { %3962 = vmatpush.bf16.msrb.mxu3 %v10556_v15  ;;  %3937 = vmatpush.bf16.msrb.mxu1 %v10012_v10  ;;  %v11451_v42 = vld [vmem:[#allocation2 + $0xdd8] sm:$0xf]  ;;  %v4127_v15 = vmax.f32 %v16053_v5, 0.0  ;;  %v11196_v59 = vor.u32 %v14692_v39, %v11195_v38  ;;  %v15129_v10 = vld [vmem:[#allocation7 + $0x99c] sm:$0xf0] }
 0x214   :  { %v14756_v43 = vld [vmem:[#allocation2 + $0xdf4] sm:$0xf0]  ;;  %v12932_v22 = vor.u32 %v15129_v10, %v12931_v9  ;;  %v15113_v29 = vld [vmem:[#allocation7 + $0x91c] sm:$0xf0]  ;;  %v16116_v36 = vpop.f32.mrf.mxu1 }
 0x215   :  { %3950 = vmatpush.bf16.msrb.mxu2 %v10268_v13  ;;  %v11707_v45 = vld [vmem:[#allocation2 + $0xfd8] sm:$0xf]  ;;  %v11452_v60 = vor.u32 %v14756_v43, %v11451_v42  ;;  %v16110_v13 = vpack.c.bf16 %v4127_v15, %v4127_v15  ;;  %v12835_v56 = vld [vmem:[#allocation7 + $0x8c0] sm:$0xf] }
 0x216   :  { %v14820_v3 = vld [vmem:[#allocation2 + $0xff4] sm:$0xf0]  ;;  %7285 = vmatpush.bf16.msra.mxu0 %v12964_v4  ;;  %v15105_v15 = vld [vmem:[#allocation7 + $0x8dc] sm:$0xf0] }
 0x217   :  { %3963 = vmatpush.bf16.msrb.mxu3 %v10524_v14  ;;  %3938 = vmatpush.bf16.msrb.mxu1 %v9980_v28  ;;  %v11708_v63 = vor.u32 %v14820_v3, %v11707_v45  ;;  %v11163_v6 = vld [vmem:[#allocation2 + $0xb98] sm:$0xf]  ;;  %v15121_v28 = vld [vmem:[#allocation7 + $0x95c] sm:$0xf0]  ;;  %v3826_v38 = vpop.f32.mrf.mxu0  ;;  %v12868_v3 = vor.u32 %v15113_v29, %v12867_v34  ;;  %v12836_v4 = vor.u32 %v15105_v15, %v12835_v56  ;;  %v10429_v15 = vld [vmem:[#allocation2 + $0x5f8] sm:$0xf0] }
 0x218   :  { %v14684_v47 = vld [vmem:[#allocation2 + $0xbb4] sm:$0xf0]  ;;  %7241 = vmatmul.bf16.vlgmr.msrb.gmra.mxu0 %v16110_v13  ;;  %v12900_v61 = vor.u32 %v15121_v28, %v12899_v27  ;;  %v12803_v10 = vld [vmem:[#allocation7 + $0x880] sm:$0xf] }
 0x219   :  { %3951 = vmatpush.bf16.msrb.mxu2 %v10236_v37  ;;  %v11419_v2 = vld [vmem:[#allocation2 + $0xd98] sm:$0xf]  ;;  %v11164_v5 = vor.u32 %v14684_v47, %v11163_v6 }
 0x21a   :  { %v14748_v7 = vld [vmem:[#allocation2 + $0xdb4] sm:$0xf0]  ;;  %7286 = vmatpush.bf16.msra.mxu0 %v12932_v22 }
 0x21b   :  { %3964 = vmatpush.bf16.msrb.mxu3 %v10492_v32  ;;  %3939 = vmatpush.bf16.msrb.mxu1 %v9948_v41  ;;  %v11675_v0 = vld [vmem:[#allocation2 + $0xf98] sm:$0xf]  ;;  %v11420_v14 = vor.u32 %v14748_v7, %v11419_v2 }
 0x21c   :  { %v14812_v8 = vld [vmem:[#allocation2 + $0xfb4] sm:$0xf0]  ;;  %v16118_v2 = vpop.f32.mrf.mxu2 }
 0x21d   :  { %3952 = vmatpush.bf16.msrb.mxu2 %v10204_v49  ;;  %v11676_v17 = vor.u32 %v14812_v8, %v11675_v0  ;;  %v11131_v19 = vld [vmem:[#allocation2 + $0xb58] sm:$0xf] }
 0x21e   :  { %v14676_v18 = vld [vmem:[#allocation2 + $0xb74] sm:$0xf0]  ;;  %3940 = vmatmul.bf16.vlgmr.msrb.gmra.mxu1 %v15996_v55  ;;  %7287 = vmatpush.bf16.msra.mxu0 %v12900_v61  ;;  %v16120_v9 = vpop.f32.mrf.mxu3 }
 0x21f   :  { %3965 = vmatpush.bf16.msrb.mxu3 %v10460_v50  ;;  %3984 = vmatpush.bf16.msra.mxu1 %v11196_v59  ;;  %v11387_v21 = vld [vmem:[#allocation2 + $0xd58] sm:$0xf]  ;;  %v11132_v30 = vor.u32 %v14676_v18, %v11131_v19  ;;  %v3735_v18 = vpop.f32.mrf.mxu1 }
 0x220   :  { %v14740_v23 = vld [vmem:[#allocation2 + $0xd74] sm:$0xf0]  ;;  %3953 = vmatmul.bf16.vlgmr.msrb.gmra.mxu2 %v15979_v51 }
 0x221   :  { %3997 = vmatpush.bf16.msra.mxu2 %v11452_v60  ;;  %v11643_v25 = vld [vmem:[#allocation2 + $0xf58] sm:$0xf]  ;;  %v11388_v31 = vor.u32 %v14740_v23, %v11387_v21  ;;  %v16125_v21 = vpop.f32.mrf.mxu0 }
 0x222   :  { %v14804_v26 = vld [vmem:[#allocation2 + $0xf74] sm:$0xf0]  ;;  %3966 = vmatmul.bf16.vlgmr.msrb.gmra.mxu3 %v15981_v54  ;;  %7288 = vmatpush.bf16.msra.mxu0 %v12868_v3 }
 0x223   :  { %4010 = vmatpush.bf16.msra.mxu3 %v11708_v63  ;;  %3985 = vmatpush.bf16.msra.mxu1 %v11164_v5  ;;  %v11644_v16 = vor.u32 %v14804_v26, %v11643_v25  ;;  %v11099_v37 = vld [vmem:[#allocation2 + $0xb18] sm:$0xf]  ;;  %v15097_v5 = vld [vmem:[#allocation7 + $0x89c] sm:$0xf0] }
 0x224   :  { %v14668_v32 = vld [vmem:[#allocation2 + $0xb34] sm:$0xf0]  ;;  %v12804_v28 = vor.u32 %v15097_v5, %v12803_v10  ;;  %v14424_v5 = vld [vmem:[#allocation2 + $0x39c] sm:$0xf] }
 0x225   :  { %3998 = vmatpush.bf16.msra.mxu2 %v11420_v14  ;;  %v11355_v33 = vld [vmem:[#allocation2 + $0xd18] sm:$0xf]  ;;  %v11100_v35 = vor.u32 %v14668_v32, %v11099_v37  ;;  %v16122_v14 = vld [vmem:[#allocation5] sm:$0xff]  ;;  %v12771_v37 = vld [vmem:[#allocation7 + $0x840] sm:$0xf] }
 0x226   :  { %v14732_v62 = vld [vmem:[#allocation2 + $0xd34] sm:$0xf0]  ;;  %7289 = vmatpush.bf16.msra.mxu0 %v12836_v4  ;;  %v15089_v32 = vld [vmem:[#allocation7 + $0x85c] sm:$0xf0]  ;;  %v3761_v3 = vpop.f32.mrf.mxu3  ;;  %v11941_v4 = vld [vmem:[#allocation7 + $0x1e0] sm:$0xf0] }
 0x227   :  { %4011 = vmatpush.bf16.msra.mxu3 %v11676_v17  ;;  %v11611_v46 = vld [vmem:[#allocation2 + $0xf18] sm:$0xf]  ;;  %3986 = vmatpush.bf16.msra.mxu1 %v11132_v30  ;;  %v11356_v39 = vor.u32 %v14732_v62, %v11355_v33  ;;  %v723_v17 = vperm.slane %v16122_v14, 4  ;;  %v14536_v3 = vld [vmem:[#allocation2 + $0x71c] sm:$0xf] }
 0x228   :  { %v14796_v20 = vld [vmem:[#allocation2 + $0xf34] sm:$0xf0] }
 0x229   :  { %3999 = vmatpush.bf16.msra.mxu2 %v11388_v31  ;;  %v11612_v42 = vor.u32 %v14796_v20, %v11611_v46  ;;  %v11067_v41 = vld [vmem:[#allocation2 + $0xad8] sm:$0xf]  ;;  %v3721_v33 = vadd.f32 %v16096_v57, %v723_v17  ;;  %v10173_v57 = vld [vmem:[#allocation2 + $0x3f8] sm:$0xf0] }
 0x22a   :  { %v14660_v43 = vld [vmem:[#allocation2 + $0xaf4] sm:$0xf0]  ;;  %7290 = vmatpush.bf16.msra.mxu0 %v12804_v28  ;;  %v10141_v17 = vld [vmem:[#allocation2 + $0x3b8] sm:$0xf0] }
 0x22b   :  { %4012 = vmatpush.bf16.msra.mxu3 %v11644_v16  ;;  %v11323_v45 = vld [vmem:[#allocation2 + $0xcd8] sm:$0xf]  ;;  %3987 = vmatpush.bf16.msra.mxu1 %v11100_v35  ;;  %v11068_v58 = vor.u32 %v14660_v43, %v11067_v41  ;;  %v12739_v43 = vld [vmem:[#allocation7 + $0x800] sm:$0xf]  ;;  %v10144_v28 = vor.u32 %v14424_v5, %v10141_v17 }
 0x22c   :  { %v14724_v49 = vld [vmem:[#allocation2 + $0xcf4] sm:$0xf0] }
 0x22d   :  { %v11579_v50 = vld [vmem:[#allocation2 + $0xed8] sm:$0xf]  ;;  %4000 = vmatpush.bf16.msra.mxu2 %v11356_v39  ;;  %v11324_v59 = vor.u32 %v14724_v49, %v11323_v45  ;;  %v3748_v39 = vpop.f32.mrf.mxu2  ;;  %v15081_v45 = vld [vmem:[#allocation7 + $0x81c] sm:$0xf0]  ;;  %v14432_v49 = vld [vmem:[#allocation2 + $0x3dc] sm:$0xf] }
 0x22e   :  { %v14788_v52 = vld [vmem:[#allocation2 + $0xef4] sm:$0xf0] }
 0x22f   :  { %4013 = vmatpush.bf16.msra.mxu3 %v11612_v42  ;;  %v11580_v60 = vor.u32 %v14788_v52, %v11579_v50  ;;  %v11035_v63 = vld [vmem:[#allocation2 + $0xa98] sm:$0xf]  ;;  %3988 = vmatpush.bf16.msra.mxu1 %v11068_v58  ;;  %v12772_v42 = vor.u32 %v15089_v32, %v12771_v37  ;;  %v14496_v50 = vld [vmem:[#allocation2 + $0x5dc] sm:$0xf]  ;;  %v3734_v52 = vadd.f32 %v16116_v36, %v3721_v33 }
 0x230   :  { %v14652_v6 = vld [vmem:[#allocation2 + $0xab4] sm:$0xf0]  ;;  %v14560_v58 = vld [vmem:[#allocation2 + $0x7dc] sm:$0xf] }
 0x231   :  { %v11291_v47 = vld [vmem:[#allocation2 + $0xc98] sm:$0xf]  ;;  %v11036_v19 = vor.u32 %v14652_v6, %v11035_v63  ;;  %4001 = vmatpush.bf16.msra.mxu2 %v11324_v59  ;;  %v10685_v59 = vld [vmem:[#allocation2 + $0x7f8] sm:$0xf0]  ;;  %7291 = vmatpush.bf16.msra.mxu0 %v12772_v42  ;;  %v3747_v18 = vadd.f32 %v16118_v2, %v3734_v52  ;;  %v11845_v52 = vld [vmem:[#allocation7 + $0x120] sm:$0xf0] }
 0x232   :  { %v14716_v7 = vld [vmem:[#allocation2 + $0xcb4] sm:$0xf0]  ;;  %v10688_v10 = vor.u32 %v14560_v58, %v10685_v59  ;;  %v10109_v37 = vld [vmem:[#allocation2 + $0x378] sm:$0xf0] }
 0x233   :  { %v11547_v0 = vld [vmem:[#allocation2 + $0xe98] sm:$0xf]  ;;  %4014 = vmatpush.bf16.msra.mxu3 %v11580_v60  ;;  %v11292_v22 = vor.u32 %v14716_v7, %v11291_v47  ;;  %3989 = vmatpush.bf16.msra.mxu1 %v11036_v19  ;;  %v3878_v60 = vpop.f32.mrf.mxu0  ;;  %v14877_v47 = vld [vmem:[#allocation7 + $0x1c4] sm:$0xf]  ;;  %v12740_v7 = vor.u32 %v15081_v45, %v12739_v43  ;;  %v14488_v19 = vld [vmem:[#allocation2 + $0x59c] sm:$0xf]  ;;  %v3760_v2 = vadd.f32 %v16120_v9, %v3747_v18 }
 0x234   :  { %v14780_v8 = vld [vmem:[#allocation2 + $0xeb4] sm:$0xf0]  ;;  %v11944_v36 = vor.u32 %v14877_v47, %v11941_v4  ;;  %v14480_v32 = vld [vmem:[#allocation2 + $0x55c] sm:$0xf] }
 0x235   :  { %v11548_v23 = vor.u32 %v14780_v8, %v11547_v0  ;;  %v11003_v25 = vld [vmem:[#allocation2 + $0xa58] sm:$0xf]  ;;  %4002 = vmatpush.bf16.msra.mxu2 %v11292_v22  ;;  %v10176_v0 = vor.u32 %v14432_v49, %v10173_v57  ;;  %v10432_v8 = vor.u32 %v14496_v50, %v10429_v15  ;;  %v10397_v22 = vld [vmem:[#allocation2 + $0x5b8] sm:$0xf0]  ;;  %7292 = vmatpush.bf16.msra.mxu0 %v12740_v7  ;;  %v14853_v50 = vld [vmem:[#allocation7 + $0x104] sm:$0xf] }
 0x236   :  { %v14644_v26 = vld [vmem:[#allocation2 + $0xa74] sm:$0xf0]  ;;  %v14408_v42 = vld [vmem:[#allocation2 + $0x31c] sm:$0xf]  ;;  %v3773_v57 = vadd.f32 %v16103_v53, %v3760_v2  ;;  %v11848_v47 = vor.u32 %v14853_v50, %v11845_v52  ;;  %v11813_v53 = vld [vmem:[#allocation7 + $0xe0] sm:$0xf0] }
 0x237   :  { %v11259_v27 = vld [vmem:[#allocation2 + $0xc58] sm:$0xf]  ;;  %v11004_v61 = vor.u32 %v14644_v26, %v11003_v25  ;;  %4015 = vmatpush.bf16.msra.mxu3 %v11548_v23  ;;  %v14552_v23 = vld [vmem:[#allocation2 + $0x79c] sm:$0xf]  ;;  %v14869_v26 = vld [vmem:[#allocation7 + $0x184] sm:$0xf]  ;;  %v3785_v15 = vpop.f32.mrf.mxu1 }
 0x238   :  { %v14708_v30 = vld [vmem:[#allocation2 + $0xc74] sm:$0xf0]  ;;  %v10653_v25 = vld [vmem:[#allocation2 + $0x7b8] sm:$0xf0]  ;;  %v3786_v4 = vadd.f32 %v3785_v15, %v3773_v57 }
 0x239   :  { %v11515_v31 = vld [vmem:[#allocation2 + $0xe58] sm:$0xf]  ;;  %v11260_v20 = vor.u32 %v14708_v30, %v11259_v27  ;;  %3990 = vmatpush.bf16.msra.mxu1 %v11004_v61  ;;  %v11909_v27 = vld [vmem:[#allocation7 + $0x1a0] sm:$0xf0]  ;;  %v10400_v30 = vor.u32 %v14488_v19, %v10397_v22  ;;  %7337 = vmatpush.bf16.msrb.mxu0 %v11944_v36  ;;  %v10365_v61 = vld [vmem:[#allocation2 + $0x578] sm:$0xf0] }
 0x23a   :  { %v14772_v16 = vld [vmem:[#allocation2 + $0xe74] sm:$0xf0]  ;;  %v11912_v33 = vor.u32 %v14869_v26, %v11909_v27  ;;  %v10077_v9 = vld [vmem:[#allocation2 + $0x338] sm:$0xf0] }
 0x23b   :  { %v10971_v62 = vld [vmem:[#allocation2 + $0xa18] sm:$0xf]  ;;  %v11516_v34 = vor.u32 %v14772_v16, %v11515_v31  ;;  %4003 = vmatpush.bf16.msra.mxu2 %v11260_v20  ;;  %v10656_v31 = vor.u32 %v14552_v23, %v10653_v25  ;;  %v14416_v16 = vld [vmem:[#allocation2 + $0x35c] sm:$0xf]  ;;  %v14861_v20 = vld [vmem:[#allocation7 + $0x144] sm:$0xf] }
 0x23c   :  { %v14636_v46 = vld [vmem:[#allocation2 + $0xa34] sm:$0xf0]  ;;  %v10333_v45 = vld [vmem:[#allocation2 + $0x538] sm:$0xf0] }
 0x23d   :  { %v11227_v29 = vld [vmem:[#allocation2 + $0xc18] sm:$0xf]  ;;  %v10972_v56 = vor.u32 %v14636_v46, %v10971_v62  ;;  %4016 = vmatpush.bf16.msra.mxu3 %v11516_v34  ;;  %v14544_v62 = vld [vmem:[#allocation2 + $0x75c] sm:$0xf]  ;;  %v11877_v34 = vld [vmem:[#allocation7 + $0x160] sm:$0xf0]  ;;  %7338 = vmatpush.bf16.msrb.mxu0 %v11912_v33 }
 0x23e   :  { %v14700_v35 = vld [vmem:[#allocation2 + $0xc34] sm:$0xf0]  ;;  %v10621_v46 = vld [vmem:[#allocation2 + $0x778] sm:$0xf0]  ;;  %v11880_v43 = vor.u32 %v14861_v20, %v11877_v34 }
 0x23f   :  { %v11483_v38 = vld [vmem:[#allocation2 + $0xe18] sm:$0xf]  ;;  %v11228_v63 = vor.u32 %v14700_v35, %v11227_v29  ;;  %3991 = vmatpush.bf16.msra.mxu1 %v10972_v56  ;;  %v10112_v29 = vor.u32 %v14416_v16, %v10109_v37  ;;  %v16134_v35 = vpop.f32.mrf.mxu0  ;;  %v10624_v39 = vor.u32 %v14544_v62, %v10621_v46  ;;  %v10589_v49 = vld [vmem:[#allocation2 + $0x738] sm:$0xf0]  ;;  %v10080_v56 = vor.u32 %v14408_v42, %v10077_v9  ;;  %v3798_v18 = vpop.f32.mrf.mxu2  ;;  %v14837_v37 = vld [vmem:[#allocation7 + $0x84] sm:$0xf] }
 0x240   :  { %v14764_v41 = vld [vmem:[#allocation2 + $0xe34] sm:$0xf0]  ;;  %v10592_v59 = vor.u32 %v14536_v3, %v10589_v49  ;;  %v14400_v60 = vld [vmem:[#allocation2 + $0x2dc] sm:$0xf]  ;;  %v3799_v27 = vadd.f32 %v3798_v18, %v3786_v4  ;;  %v3787_v62 = vpop.f32.mrf.mxu1  ;;  %v14821_v4 = vld [vmem:[#allocation7 + $0x4] sm:$0xf] }
 0x241   :  { %v11484_v6 = vor.u32 %v14764_v41, %v11483_v38  ;;  %4004 = vmatpush.bf16.msra.mxu2 %v11228_v63  ;;  %v10368_v38 = vor.u32 %v14480_v32, %v10365_v61  ;;  %v14472_v41 = vld [vmem:[#allocation2 + $0x51c] sm:$0xf]  ;;  %7339 = vmatpush.bf16.msrb.mxu0 %v11880_v43  ;;  %v11781_v32 = vld [vmem:[#allocation7 + $0xa0] sm:$0xf0] }
 0x242   :  { %3992 = vmatmul.bf16.vlgmr.msra.gmra.mxu1 %v16009_v40  ;;  %v10336_v58 = vor.u32 %v14472_v41, %v10333_v45  ;;  %v10045_v63 = vld [vmem:[#allocation2 + $0x2f8] sm:$0xf0]  ;;  %v11784_v42 = vor.u32 %v14837_v37, %v11781_v32  ;;  %v14829_v43 = vld [vmem:[#allocation7 + $0x44] sm:$0xf] }
 0x243   :  { %4017 = vmatpush.bf16.msra.mxu3 %v11484_v6  ;;  %4036 = vmatpush.bf16.msrb.mxu1 %v10176_v0  ;;  %v14464_v6 = vld [vmem:[#allocation2 + $0x4dc] sm:$0xf]  ;;  %v10048_v5 = vor.u32 %v14400_v60, %v10045_v63  ;;  %v11749_v45 = vld [vmem:[#allocation7 + $0x60] sm:$0xf0] }
 0x244   :  { %4005 = vmatmul.bf16.vlgmr.msra.gmra.mxu2 %v16011_v44  ;;  %v10301_v7 = vld [vmem:[#allocation2 + $0x4f8] sm:$0xf0] }
 0x245   :  { %4049 = vmatpush.bf16.msrb.mxu2 %v10432_v8  ;;  %v14528_v0 = vld [vmem:[#allocation2 + $0x6dc] sm:$0xf]  ;;  %v10304_v19 = vor.u32 %v14464_v6, %v10301_v7  ;;  %7340 = vmatpush.bf16.msrb.mxu0 %v11848_v47  ;;  %v11752_v6 = vor.u32 %v14829_v43, %v11749_v45  ;;  %v11717_v7 = vld [vmem:[#allocation7 + $0x20] sm:$0xf0] }
 0x246   :  { %4018 = vmatmul.bf16.vlgmr.msra.gmra.mxu3 %v16003_v24  ;;  %v10557_v8 = vld [vmem:[#allocation2 + $0x6f8] sm:$0xf0] }
 0x247   :  { %4062 = vmatpush.bf16.msrb.mxu3 %v10688_v10  ;;  %4037 = vmatpush.bf16.msrb.mxu1 %v10144_v28  ;;  %v14845_v10 = vld [vmem:[#allocation7 + $0xc4] sm:$0xf]  ;;  %v3930_v17 = vpop.f32.mrf.mxu0  ;;  %v10560_v36 = vor.u32 %v14528_v0, %v10557_v8  ;;  %v14392_v22 = vld [vmem:[#allocation2 + $0x29c] sm:$0xf]  ;;  %v3811_v28 = vpop.f32.mrf.mxu3 }
 0x248   :  { %v10013_v23 = vld [vmem:[#allocation2 + $0x2b8] sm:$0xf0]  ;;  %v11816_v26 = vor.u32 %v14845_v10, %v11813_v53  ;;  %v3812_v2 = vadd.f32 %v3811_v28, %v3799_v27  ;;  %v3800_v63 = vpop.f32.mrf.mxu2 }
 0x249   :  { %4050 = vmatpush.bf16.msrb.mxu2 %v10400_v30  ;;  %v14456_v25 = vld [vmem:[#allocation2 + $0x49c] sm:$0xf]  ;;  %v10016_v33 = vor.u32 %v14392_v22, %v10013_v23  ;;  %v15133_v23 = vld [vmem:[#allocation7 + $0x9c4] sm:$0xf] }
 0x24a   :  { %v10269_v30 = vld [vmem:[#allocation2 + $0x4b8] sm:$0xf0]  ;;  %7341 = vmatpush.bf16.msrb.mxu0 %v11816_v26  ;;  %v11720_v26 = vor.u32 %v14821_v4, %v11717_v7 }
 0x24b   :  { %4063 = vmatpush.bf16.msrb.mxu3 %v10656_v31  ;;  %4038 = vmatpush.bf16.msrb.mxu1 %v10112_v29  ;;  %v14520_v31 = vld [vmem:[#allocation2 + $0x69c] sm:$0xf]  ;;  %v10272_v46 = vor.u32 %v14456_v25, %v10269_v30  ;;  %v12965_v25 = vld [vmem:[#allocation7 + $0x9e0] sm:$0xf0] }
 0x24c   :  { %v10525_v16 = vld [vmem:[#allocation2 + $0x6b8] sm:$0xf0]  ;;  %v12968_v32 = vor.u32 %v15133_v23, %v12965_v25 }
 0x24d   :  { %4051 = vmatpush.bf16.msrb.mxu2 %v10368_v38  ;;  %v14384_v61 = vld [vmem:[#allocation2 + $0x25c] sm:$0xf]  ;;  %v10528_v20 = vor.u32 %v14520_v31, %v10525_v16 }
 0x24e   :  { %v9981_v34 = vld [vmem:[#allocation2 + $0x278] sm:$0xf0]  ;;  %7342 = vmatpush.bf16.msrb.mxu0 %v11784_v42 }
 0x24f   :  { %4064 = vmatpush.bf16.msrb.mxu3 %v10624_v39  ;;  %4039 = vmatpush.bf16.msrb.mxu1 %v10080_v56  ;;  %v14448_v29 = vld [vmem:[#allocation2 + $0x45c] sm:$0xf]  ;;  %v4131_v39 = vmax.f32 %v3812_v2, 0.0  ;;  %v9984_v49 = vor.u32 %v14384_v61, %v9981_v34  ;;  %v16139_v52 = vpop.f32.mrf.mxu0  ;;  %v3813_v0 = vpop.f32.mrf.mxu3  ;;  %v724_v34 = vperm.slane %v16122_v14, 5 }
 0x250   :  { %v10237_v38 = vld [vmem:[#allocation2 + $0x478] sm:$0xf0]  ;;  %v15109_v0 = vld [vmem:[#allocation7 + $0x904] sm:$0xf] }
 0x251   :  { %4052 = vmatpush.bf16.msrb.mxu2 %v10336_v58  ;;  %v14512_v9 = vld [vmem:[#allocation2 + $0x65c] sm:$0xf]  ;;  %v16137_v3 = vpack.c.bf16 %v4131_v39, %v4131_v39  ;;  %v10240_v56 = vor.u32 %v14448_v29, %v10237_v38 }
 0x252   :  { %v10493_v41 = vld [vmem:[#allocation2 + $0x678] sm:$0xf0]  ;;  %7343 = vmatpush.bf16.msrb.mxu0 %v11752_v6 }
 0x253   :  { %4065 = vmatpush.bf16.msrb.mxu3 %v10592_v59  ;;  %4040 = vmatpush.bf16.msrb.mxu1 %v10048_v5  ;;  %v14376_v57 = vld [vmem:[#allocation2 + $0x21c] sm:$0xf]  ;;  %v10496_v15 = vor.u32 %v14512_v9, %v10493_v41 }
 0x254   :  { %v9949_v50 = vld [vmem:[#allocation2 + $0x238] sm:$0xf0]  ;;  %7293 = vmatmul.bf16.vlgmr.msra.gmra.mxu0 %v16137_v3 }
 0x255   :  { %4053 = vmatpush.bf16.msrb.mxu2 %v10304_v19  ;;  %v14440_v58 = vld [vmem:[#allocation2 + $0x41c] sm:$0xf]  ;;  %v9952_v5 = vor.u32 %v14376_v57, %v9949_v50  ;;  %v15117_v50 = vld [vmem:[#allocation7 + $0x944] sm:$0xf] }
 0x256   :  { %v10205_v59 = vld [vmem:[#allocation2 + $0x438] sm:$0xf0]  ;;  %7344 = vmatpush.bf16.msrb.mxu0 %v11720_v26  ;;  %v15101_v26 = vld [vmem:[#allocation7 + $0x8c4] sm:$0xf] }
 0x257   :  { %4066 = vmatpush.bf16.msrb.mxu3 %v10560_v36  ;;  %4041 = vmatpush.bf16.msrb.mxu1 %v10016_v33  ;;  %v14504_v60 = vld [vmem:[#allocation2 + $0x61c] sm:$0xf]  ;;  %v10208_v18 = vor.u32 %v14440_v58, %v10205_v59  ;;  %v3982_v62 = vpop.f32.mrf.mxu0 }
 0x258   :  { %v10461_v47 = vld [vmem:[#allocation2 + $0x638] sm:$0xf0] }
 0x259   :  { %4054 = vmatpush.bf16.msrb.mxu2 %v10272_v46  ;;  %v14688_v8 = vld [vmem:[#allocation2 + $0xbdc] sm:$0xf]  ;;  %v10464_v22 = vor.u32 %v14504_v60, %v10461_v47  ;;  %v15125_v46 = vld [vmem:[#allocation7 + $0x984] sm:$0xf] }
 0x25a   :  { %v11197_v10 = vld [vmem:[#allocation2 + $0xbf8] sm:$0xf0]  ;;  %7389 = vmatpush.bf16.msra.mxu0 %v12968_v32 }
 0x25b   :  { %4067 = vmatpush.bf16.msrb.mxu3 %v10528_v20  ;;  %v14752_v53 = vld [vmem:[#allocation2 + $0xddc] sm:$0xf]  ;;  %4042 = vmatpush.bf16.msrb.mxu1 %v9984_v49  ;;  %v11200_v27 = vor.u32 %v14688_v8, %v11197_v10  ;;  %v12933_v20 = vld [vmem:[#allocation7 + $0x9a0] sm:$0xf0]  ;;  %v3837_v8 = vpop.f32.mrf.mxu1 }
 0x25c   :  { %v11453_v17 = vld [vmem:[#allocation2 + $0xdf8] sm:$0xf0]  ;;  %v12936_v43 = vor.u32 %v15125_v46, %v12933_v20 }
 0x25d   :  { %v14816_v19 = vld [vmem:[#allocation2 + $0xfdc] sm:$0xf]  ;;  %4055 = vmatpush.bf16.msrb.mxu2 %v10240_v56  ;;  %v11456_v28 = vor.u32 %v14752_v53, %v11453_v17  ;;  %v12901_v56 = vld [vmem:[#allocation7 + $0x960] sm:$0xf0] }
 0x25e   :  { %v11709_v36 = vld [vmem:[#allocation2 + $0xff8] sm:$0xf0]  ;;  %7390 = vmatpush.bf16.msra.mxu0 %v12936_v43  ;;  %v12904_v6 = vor.u32 %v15117_v50, %v12901_v56 }
 0x25f   :  { %4068 = vmatpush.bf16.msrb.mxu3 %v10496_v15  ;;  %v11712_v30 = vor.u32 %v14816_v19, %v11709_v36  ;;  %v14680_v31 = vld [vmem:[#allocation2 + $0xb9c] sm:$0xf]  ;;  %4043 = vmatpush.bf16.msrb.mxu1 %v9952_v5  ;;  %v3825_v15 = vadd.f32 %v16108_v12, %v724_v34  ;;  %v16147_v36 = vpop.f32.mrf.mxu0 }
 0x260   :  { %v11165_v16 = vld [vmem:[#allocation2 + $0xbb8] sm:$0xf0] }
 0x261   :  { %v14744_v37 = vld [vmem:[#allocation2 + $0xd9c] sm:$0xf]  ;;  %4056 = vmatpush.bf16.msrb.mxu2 %v10208_v18  ;;  %v11168_v29 = vor.u32 %v14680_v31, %v11165_v16  ;;  %v3838_v19 = vadd.f32 %v3837_v8, %v3825_v15  ;;  %v3863_v34 = vpop.f32.mrf.mxu3 }
 0x262   :  { %v11421_v2 = vld [vmem:[#allocation2 + $0xdb8] sm:$0xf0]  ;;  %4044 = vmatmul.bf16.vlgmr.msrb.gmra.mxu1 %v15996_v55  ;;  %7391 = vmatpush.bf16.msra.mxu0 %v12904_v6 }
 0x263   :  { %v14808_v33 = vld [vmem:[#allocation2 + $0xf9c] sm:$0xf]  ;;  %4069 = vmatpush.bf16.msrb.mxu3 %v10464_v22  ;;  %4088 = vmatpush.bf16.msra.mxu1 %v11200_v27  ;;  %v11424_v38 = vor.u32 %v14744_v37, %v11421_v2  ;;  %v12837_v27 = vld [vmem:[#allocation7 + $0x8e0] sm:$0xf0]  ;;  %v3850_v2 = vpop.f32.mrf.mxu2 }
 0x264   :  { %v11677_v61 = vld [vmem:[#allocation2 + $0xfb8] sm:$0xf0]  ;;  %4057 = vmatmul.bf16.vlgmr.msrb.gmra.mxu2 %v15979_v51  ;;  %7345 = vmatmul.bf16.vlgmr.msrb.gmra.mxu0 %v16110_v13  ;;  %v3851_v20 = vadd.f32 %v3850_v2, %v3838_v19  ;;  %v12195_v19 = vld [vmem:[#allocation7 + $0x3c0] sm:$0xf] }
 0x265   :  { %4101 = vmatpush.bf16.msra.mxu2 %v11456_v28  ;;  %v11680_v39 = vor.u32 %v14808_v33, %v11677_v61  ;;  %v14672_v42 = vld [vmem:[#allocation2 + $0xb5c] sm:$0xf]  ;;  %v12840_v33 = vor.u32 %v15101_v26, %v12837_v27  ;;  %v15073_v26 = vld [vmem:[#allocation7 + $0x7dc] sm:$0xf0] }
 0x266   :  { %v11133_v9 = vld [vmem:[#allocation2 + $0xb78] sm:$0xf0]  ;;  %4070 = vmatmul.bf16.vlgmr.msrb.gmra.mxu3 %v15981_v54  ;;  %v12869_v54 = vld [vmem:[#allocation7 + $0x920] sm:$0xf0] }
 0x267   :  { %4114 = vmatpush.bf16.msra.mxu3 %v11712_v30  ;;  %v14736_v41 = vld [vmem:[#allocation2 + $0xd5c] sm:$0xf]  ;;  %4089 = vmatpush.bf16.msra.mxu1 %v11168_v29  ;;  %v11136_v14 = vor.u32 %v14672_v42, %v11133_v9  ;;  %v12872_v18 = vor.u32 %v15109_v0, %v12869_v54  ;;  %v15093_v29 = vld [vmem:[#allocation7 + $0x884] sm:$0xf]  ;;  %v3864_v42 = vadd.f32 %v3863_v34, %v3851_v20  ;;  %v3839_v9 = vpop.f32.mrf.mxu1  ;;  %v4034_v50 = vpop.f32.mrf.mxu0  ;;  %v15001_v20 = vld [vmem:[#allocation7 + $0x59c] sm:$0xf0] }
 0x268   :  { %v11389_v45 = vld [vmem:[#allocation2 + $0xd78] sm:$0xf0]  ;;  %v12675_v34 = vld [vmem:[#allocation7 + $0x780] sm:$0xf] }
 0x269   :  { %v14800_v49 = vld [vmem:[#allocation2 + $0xf5c] sm:$0xf]  ;;  %4102 = vmatpush.bf16.msra.mxu2 %v11424_v38  ;;  %v11392_v58 = vor.u32 %v14736_v41, %v11389_v45  ;;  %7392 = vmatpush.bf16.msra.mxu0 %v12872_v18  ;;  %v12805_v38 = vld [vmem:[#allocation7 + $0x8a0] sm:$0xf0]  ;;  %v14945_v18 = vld [vmem:[#allocation7 + $0x3dc] sm:$0xf0] }
 0x26a   :  { %v11645_v57 = vld [vmem:[#allocation2 + $0xf78] sm:$0xf0]  ;;  %v12808_v56 = vor.u32 %v15093_v29, %v12805_v38  ;;  %v15065_v29 = vld [vmem:[#allocation7 + $0x79c] sm:$0xf0]  ;;  %v11915_v38 = vld [vmem:[#allocation7 + $0x188] sm:$0xf] }
 0x26b   :  { %4115 = vmatpush.bf16.msra.mxu3 %v11680_v39  ;;  %v11648_v59 = vor.u32 %v14800_v49, %v11645_v57  ;;  %v14664_v60 = vld [vmem:[#allocation2 + $0xb1c] sm:$0xf]  ;;  %4090 = vmatpush.bf16.msra.mxu1 %v11136_v14  ;;  %v3852_v8 = vpop.f32.mrf.mxu2  ;;  %v14993_v50 = vld [vmem:[#allocation7 + $0x55c] sm:$0xf0] }
 0x26c   :  { %v11101_v63 = vld [vmem:[#allocation2 + $0xb38] sm:$0xf0] }
 0x26d   :  { %v14728_v51 = vld [vmem:[#allocation2 + $0xd1c] sm:$0xf]  ;;  %v11104_v55 = vor.u32 %v14664_v60, %v11101_v63  ;;  %4103 = vmatpush.bf16.msra.mxu2 %v11392_v58  ;;  %7393 = vmatpush.bf16.msra.mxu0 %v12840_v33  ;;  %v12773_v60 = vld [vmem:[#allocation7 + $0x860] sm:$0xf0]  ;;  %v12163_v33 = vld [vmem:[#allocation7 + $0x380] sm:$0xf] }
 0x26e   :  { %v11357_v47 = vld [vmem:[#allocation2 + $0xd38] sm:$0xf0] }
 0x26f   :  { %v14792_v4 = vld [vmem:[#allocation2 + $0xf1c] sm:$0xf]  ;;  %4116 = vmatpush.bf16.msra.mxu3 %v11648_v59  ;;  %v11360_v12 = vor.u32 %v14728_v51, %v11357_v47  ;;  %4091 = vmatpush.bf16.msra.mxu1 %v11104_v55  ;;  %v15085_v59 = vld [vmem:[#allocation7 + $0x844] sm:$0xf]  ;;  %v16151_v47 = vadd.f32 %v16125_v21, %v3864_v42 }
 0x270   :  { %v11613_v7 = vld [vmem:[#allocation2 + $0xf38] sm:$0xf0] }
 0x271   :  { %v11616_v10 = vor.u32 %v14792_v4, %v11613_v7  ;;  %v14656_v53 = vld [vmem:[#allocation2 + $0xadc] sm:$0xf]  ;;  %4104 = vmatpush.bf16.msra.mxu2 %v11360_v12  ;;  %7394 = vmatpush.bf16.msra.mxu0 %v12808_v56  ;;  %v12776_v12 = vor.u32 %v15085_v59, %v12773_v60  ;;  %v12643_v56 = vld [vmem:[#allocation7 + $0x740] sm:$0xf] }
 0x272   :  { %v11069_v5 = vld [vmem:[#allocation2 + $0xaf8] sm:$0xf0] }
 0x273   :  { %v14720_v17 = vld [vmem:[#allocation2 + $0xcdc] sm:$0xf]  ;;  %v11072_v28 = vor.u32 %v14656_v53, %v11069_v5  ;;  %4117 = vmatpush.bf16.msra.mxu3 %v11616_v10  ;;  %v15077_v53 = vld [vmem:[#allocation7 + $0x804] sm:$0xf] }
 0x274   :  { %v11325_v22 = vld [vmem:[#allocation2 + $0xcf8] sm:$0xf0]  ;;  %v12741_v5 = vld [vmem:[#allocation7 + $0x820] sm:$0xf0] }
 0x275   :  { %v14784_v23 = vld [vmem:[#allocation2 + $0xedc] sm:$0xf]  ;;  %v11328_v30 = vor.u32 %v14720_v17, %v11325_v22  ;;  %4092 = vmatpush.bf16.msra.mxu1 %v11072_v28  ;;  %v3865_v17 = vpop.f32.mrf.mxu3  ;;  %v12451_v22 = vld [vmem:[#allocation7 + $0x5c0] sm:$0xf]  ;;  %7395 = vmatpush.bf16.msra.mxu0 %v12776_v12 }
 0x276   :  { %v11581_v25 = vld [vmem:[#allocation2 + $0xef8] sm:$0xf0]  ;;  %v12323_v17 = vld [vmem:[#allocation7 + $0x4c0] sm:$0xf] }
 0x277   :  { %v11584_v31 = vor.u32 %v14784_v23, %v11581_v25  ;;  %v14648_v16 = vld [vmem:[#allocation2 + $0xa9c] sm:$0xf]  ;;  %4105 = vmatpush.bf16.msra.mxu2 %v11328_v30  ;;  %v15009_v23 = vld [vmem:[#allocation7 + $0x5dc] sm:$0xf0]  ;;  %v11947_v30 = vld [vmem:[#allocation7 + $0x1c8] sm:$0xf] }
 0x278   :  { %v11037_v37 = vld [vmem:[#allocation2 + $0xab8] sm:$0xf0]  ;;  %v12707_v25 = vld [vmem:[#allocation7 + $0x7c0] sm:$0xf] }
 0x279   :  { %v14712_v32 = vld [vmem:[#allocation2 + $0xc9c] sm:$0xf]  ;;  %v11040_v39 = vor.u32 %v14648_v16, %v11037_v37  ;;  %4118 = vmatpush.bf16.msra.mxu3 %v11584_v31  ;;  %v14882_v31 = vld [vmem:[#allocation7 + $0x1e4] sm:$0xf0]  ;;  %v12744_v16 = vor.u32 %v15077_v53, %v12741_v5  ;;  %v12196_v37 = vor.u32 %v14945_v18, %v12195_v19  ;;  %v12708_v2 = vor.u32 %v15073_v26, %v12707_v25  ;;  %v12067_v53 = vld [vmem:[#allocation7 + $0x2c0] sm:$0xf]  ;;  %v16159_v19 = vpop.f32.mrf.mxu0 }
 0x27a   :  { %v11293_v61 = vld [vmem:[#allocation2 + $0xcb8] sm:$0xf0]  ;;  %v14913_v5 = vld [vmem:[#allocation7 + $0x2dc] sm:$0xf0]  ;;  %v11819_v25 = vld [vmem:[#allocation7 + $0xc8] sm:$0xf] }
 0x27b   :  { %v14776_v62 = vld [vmem:[#allocation2 + $0xe9c] sm:$0xf]  ;;  %v11296_v41 = vor.u32 %v14712_v32, %v11293_v61  ;;  %4093 = vmatpush.bf16.msra.mxu1 %v11040_v39  ;;  %v12452_v32 = vor.u32 %v15009_v23, %v12451_v22  ;;  %v14937_v61 = vld [vmem:[#allocation7 + $0x39c] sm:$0xf0]  ;;  %v14874_v39 = vld [vmem:[#allocation7 + $0x1a4] sm:$0xf0]  ;;  %7396 = vmatpush.bf16.msra.mxu0 %v12744_v16  ;;  %v16157_v8 = vpop.f32.mrf.mxu1 }
 0x27c   :  { %v11549_v46 = vld [vmem:[#allocation2 + $0xeb8] sm:$0xf0]  ;;  %v12164_v42 = vor.u32 %v14937_v61, %v12163_v33  ;;  %v14977_v22 = vld [vmem:[#allocation7 + $0x4dc] sm:$0xf0]  ;;  %v14850_v26 = vld [vmem:[#allocation7 + $0xe4] sm:$0xf0] }
 0x27d   :  { %v11552_v43 = vor.u32 %v14776_v62, %v11549_v46  ;;  %v14640_v45 = vld [vmem:[#allocation2 + $0xa5c] sm:$0xf]  ;;  %4106 = vmatpush.bf16.msra.mxu2 %v11296_v41  ;;  %v12419_v62 = vld [vmem:[#allocation7 + $0x580] sm:$0xf]  ;;  %v11948_v46 = vor.u32 %v14882_v31, %v11947_v30  ;;  %v12676_v41 = vor.u32 %v15065_v29, %v12675_v34  ;;  %v14842_v34 = vld [vmem:[#allocation7 + $0xa4] sm:$0xf0] }
 0x27e   :  { %v11005_v49 = vld [vmem:[#allocation2 + $0xa78] sm:$0xf0]  ;;  %v12420_v9 = vor.u32 %v15001_v20, %v12419_v62  ;;  %7397 = vmatmul.bf16.vlgmr.msra.gmra.mxu0 %v16137_v3  ;;  %v15041_v23 = vld [vmem:[#allocation7 + $0x6dc] sm:$0xf0]  ;;  %v11787_v20 = vld [vmem:[#allocation7 + $0x88] sm:$0xf] }
 0x27f   :  { %v14704_v57 = vld [vmem:[#allocation2 + $0xc5c] sm:$0xf]  ;;  %v11008_v63 = vor.u32 %v14640_v45, %v11005_v49  ;;  %4119 = vmatpush.bf16.msra.mxu3 %v11552_v43  ;;  %v12131_v43 = vld [vmem:[#allocation7 + $0x340] sm:$0xf]  ;;  %7441 = vmatpush.bf16.msrb.mxu0 %v11948_v46 }
 0x280   :  { %v11261_v14 = vld [vmem:[#allocation2 + $0xc78] sm:$0xf0]  ;;  %v14929_v45 = vld [vmem:[#allocation7 + $0x35c] sm:$0xf0] }
 0x281   :  { %v14768_v15 = vld [vmem:[#allocation2 + $0xe5c] sm:$0xf]  ;;  %v11264_v4 = vor.u32 %v14704_v57, %v11261_v14  ;;  %4094 = vmatpush.bf16.msra.mxu1 %v11008_v63  ;;  %v12387_v49 = vld [vmem:[#allocation7 + $0x540] sm:$0xf]  ;;  %v11916_v57 = vor.u32 %v14874_v39, %v11915_v38  ;;  %v12132_v59 = vor.u32 %v14929_v45, %v12131_v43  ;;  %v4086_v45 = vpop.f32.mrf.mxu0 }
 0x282   :  { %v11517_v58 = vld [vmem:[#allocation2 + $0xe78] sm:$0xf0]  ;;  %v15057_v14 = vld [vmem:[#allocation7 + $0x75c] sm:$0xf0]  ;;  %v12388_v60 = vor.u32 %v14993_v50, %v12387_v49  ;;  %v11788_v49 = vor.u32 %v14842_v34, %v11787_v20  ;;  %v15122_v45 = vld [vmem:[#allocation7 + $0x964] sm:$0xf0] }
 0x283   :  { %v14632_v51 = vld [vmem:[#allocation2 + $0xa1c] sm:$0xf]  ;;  %v11520_v7 = vor.u32 %v14768_v15, %v11517_v58  ;;  %4107 = vmatpush.bf16.msra.mxu2 %v11264_v4  ;;  %v11883_v15 = vld [vmem:[#allocation7 + $0x148] sm:$0xf]  ;;  %v12644_v63 = vor.u32 %v15057_v14, %v12643_v56  ;;  %7442 = vmatpush.bf16.msrb.mxu0 %v11916_v57  ;;  %v12035_v31 = vld [vmem:[#allocation7 + $0x280] sm:$0xf]  ;;  %v3891_v38 = vpop.f32.mrf.mxu1 }
 0x284   :  { %v10973_v6 = vld [vmem:[#allocation2 + $0xa38] sm:$0xf0]  ;;  %v14866_v58 = vld [vmem:[#allocation7 + $0x164] sm:$0xf0]  ;;  %v14905_v16 = vld [vmem:[#allocation7 + $0x29c] sm:$0xf0] }
 0x285   :  { %v14696_v0 = vld [vmem:[#allocation2 + $0xc1c] sm:$0xf]  ;;  %v10976_v21 = vor.u32 %v14632_v51, %v10973_v6  ;;  %4120 = vmatpush.bf16.msra.mxu3 %v11520_v7  ;;  %v12099_v51 = vld [vmem:[#allocation7 + $0x300] sm:$0xf]  ;;  %v11884_v4 = vor.u32 %v14866_v58, %v11883_v15  ;;  %v16163_v46 = vpop.f32.mrf.mxu3  ;;  %v12036_v29 = vor.u32 %v14905_v16, %v12035_v31  ;;  %v11755_v14 = vld [vmem:[#allocation7 + $0x48] sm:$0xf] }
 0x286   :  { %v11229_v54 = vld [vmem:[#allocation2 + $0xc38] sm:$0xf0]  ;;  %v12355_v6 = vld [vmem:[#allocation7 + $0x500] sm:$0xf]  ;;  %v14834_v15 = vld [vmem:[#allocation7 + $0x64] sm:$0xf0] }
 0x287   :  { %v14760_v55 = vld [vmem:[#allocation2 + $0xe1c] sm:$0xf]  ;;  %v11232_v27 = vor.u32 %v14696_v0, %v11229_v54  ;;  %4095 = vmatpush.bf16.msra.mxu1 %v10976_v21  ;;  %v14985_v7 = vld [vmem:[#allocation7 + $0x51c] sm:$0xf0]  ;;  %v11851_v54 = vld [vmem:[#allocation7 + $0x108] sm:$0xf]  ;;  %7443 = vmatpush.bf16.msrb.mxu0 %v11884_v4 }
 0x288   :  { %v11485_v10 = vld [vmem:[#allocation2 + $0xe38] sm:$0xf0]  ;;  %v12611_v0 = vld [vmem:[#allocation7 + $0x700] sm:$0xf]  ;;  %v12356_v12 = vor.u32 %v14985_v7, %v12355_v6 }
 0x289   :  { %v11488_v28 = vor.u32 %v14760_v55, %v11485_v10  ;;  %4108 = vmatpush.bf16.msra.mxu2 %v11232_v27  ;;  %v12579_v21 = vld [vmem:[#allocation7 + $0x6c0] sm:$0xf]  ;;  %v12068_v27 = vor.u32 %v14913_v5, %v12067_v53 }
 0x28a   :  { %4096 = vmatmul.bf16.vlgmr.msra.gmra.mxu1 %v16009_v40  ;;  %v14921_v40 = vld [vmem:[#allocation7 + $0x31c] sm:$0xf0]  ;;  %v12580_v30 = vor.u32 %v15041_v23, %v12579_v21  ;;  %v4128_v21 = vmax.f32 %v16071_v1, 0.0  ;;  %v15130_v1 = vld [vmem:[#allocation7 + $0x9a4] sm:$0xf0] }
 0x28b   :  { %4121 = vmatpush.bf16.msra.mxu3 %v11488_v28  ;;  %7246 = vmatpush.bf16.msrb.mxu1 %v12196_v37  ;;  %v12100_v55 = vor.u32 %v14921_v40, %v12099_v51  ;;  %v12324_v28 = vor.u32 %v14977_v22, %v12323_v17  ;;  %v12291_v37 = vld [vmem:[#allocation7 + $0x480] sm:$0xf]  ;;  %v15138_v22 = vld [vmem:[#allocation7 + $0x9e4] sm:$0xf0] }
 0x28c   :  { %4109 = vmatmul.bf16.vlgmr.msra.gmra.mxu2 %v16011_v44  ;;  %v15049_v44 = vld [vmem:[#allocation7 + $0x71c] sm:$0xf0]  ;;  %v16168_v20 = vpack.c.bf16 %v4128_v21, %v4128_v21 }
 0x28d   :  { %7259 = vmatpush.bf16.msrb.mxu2 %v12452_v32  ;;  %v12612_v10 = vor.u32 %v15049_v44, %v12611_v0  ;;  %v16161_v32 = vpop.f32.mrf.mxu2  ;;  %v14969_v33 = vld [vmem:[#allocation7 + $0x49c] sm:$0xf0]  ;;  %v11756_v0 = vor.u32 %v14834_v15, %v11755_v14 }
 0x28e   :  { %4122 = vmatmul.bf16.vlgmr.msra.gmra.mxu3 %v16003_v24  ;;  %v14858_v24 = vld [vmem:[#allocation7 + $0x124] sm:$0xf0]  ;;  %v12547_v61 = vld [vmem:[#allocation7 + $0x680] sm:$0xf]  ;;  %v12292_v39 = vor.u32 %v14969_v33, %v12291_v37 }
 0x28f   :  { %7272 = vmatpush.bf16.msrb.mxu3 %v12708_v2  ;;  %7247 = vmatpush.bf16.msrb.mxu1 %v12164_v42  ;;  %v11852_v18 = vor.u32 %v14858_v24, %v11851_v54  ;;  %v11820_v2 = vor.u32 %v14850_v26, %v11819_v25  ;;  %v15033_v62 = vld [vmem:[#allocation7 + $0x69c] sm:$0xf0]  ;;  %v11723_v54 = vld [vmem:[#allocation7 + $0x8] sm:$0xf]  ;;  %v4129_v26 = vmax.f32 %v16087_v48, 0.0 }
 0x290   :  { %v12548_v42 = vor.u32 %v15033_v62, %v12547_v61  ;;  %v12259_v43 = vld [vmem:[#allocation7 + $0x440] sm:$0xf]  ;;  %v14826_v24 = vld [vmem:[#allocation7 + $0x24] sm:$0xf0] }
 0x291   :  { %7260 = vmatpush.bf16.msrb.mxu2 %v12420_v9  ;;  %7444 = vmatpush.bf16.msrb.mxu0 %v11852_v18  ;;  %v12003_v9 = vld [vmem:[#allocation7 + $0x240] sm:$0xf]  ;;  %v12971_v18 = vld [vmem:[#allocation7 + $0x9c8] sm:$0xf]  ;;  %v16170_v34 = vpack.c.bf16 %v4129_v26, %v4129_v26 }
 0x292   :  { %v14961_v57 = vld [vmem:[#allocation7 + $0x45c] sm:$0xf0]  ;;  %v12972_v16 = vor.u32 %v15138_v22, %v12971_v18  ;;  %v12939_v62 = vld [vmem:[#allocation7 + $0x988] sm:$0xf] }
 0x293   :  { %7273 = vmatpush.bf16.msrb.mxu3 %v12676_v41  ;;  %7248 = vmatpush.bf16.msrb.mxu1 %v12132_v59  ;;  %v14897_v41 = vld [vmem:[#allocation7 + $0x25c] sm:$0xf0]  ;;  %v12940_v38 = vor.u32 %v15130_v1, %v12939_v62  ;;  %v15098_v26 = vld [vmem:[#allocation7 + $0x8a4] sm:$0xf0] }
 0x294   :  { %v12515_v50 = vld [vmem:[#allocation7 + $0x640] sm:$0xf]  ;;  %v12004_v58 = vor.u32 %v14897_v41, %v12003_v9  ;;  %v12779_v1 = vld [vmem:[#allocation7 + $0x848] sm:$0xf] }
 0x295   :  { %7261 = vmatpush.bf16.msrb.mxu2 %v12388_v60  ;;  %7445 = vmatpush.bf16.msrb.mxu0 %v11820_v2  ;;  %v15025_v56 = vld [vmem:[#allocation7 + $0x65c] sm:$0xf0]  ;;  %v3904_v7 = vpop.f32.mrf.mxu2 }
 0x296   :  { %v11971_v59 = vld [vmem:[#allocation7 + $0x200] sm:$0xf]  ;;  %v12516_v51 = vor.u32 %v15025_v56, %v12515_v50 }
 0x297   :  { %7274 = vmatpush.bf16.msrb.mxu3 %v12644_v63  ;;  %7249 = vmatpush.bf16.msrb.mxu1 %v12100_v55  ;;  %v14889_v60 = vld [vmem:[#allocation7 + $0x21c] sm:$0xf0]  ;;  %v12260_v63 = vor.u32 %v14961_v57, %v12259_v43  ;;  %v3917_v55 = vpop.f32.mrf.mxu3  ;;  %v12907_v43 = vld [vmem:[#allocation7 + $0x948] sm:$0xf] }
 0x298   :  { %v12227_v40 = vld [vmem:[#allocation7 + $0x400] sm:$0xf]  ;;  %v11972_v5 = vor.u32 %v14889_v60, %v11971_v59  ;;  %v12908_v50 = vor.u32 %v15122_v45, %v12907_v43  ;;  %v12875_v59 = vld [vmem:[#allocation7 + $0x908] sm:$0xf] }
 0x299   :  { %7262 = vmatpush.bf16.msrb.mxu2 %v12356_v12  ;;  %v14953_v6 = vld [vmem:[#allocation7 + $0x41c] sm:$0xf0]  ;;  %7446 = vmatpush.bf16.msrb.mxu0 %v11788_v49  ;;  %v15114_v60 = vld [vmem:[#allocation7 + $0x924] sm:$0xf0] }
 0x29a   :  { %v12483_v4 = vld [vmem:[#allocation7 + $0x600] sm:$0xf]  ;;  %v12228_v23 = vor.u32 %v14953_v6, %v12227_v40  ;;  %v12876_v6 = vor.u32 %v15114_v60, %v12875_v59  ;;  %v15005_v60 = vld [vmem:[#allocation7 + $0x5c4] sm:$0xf] }
 0x29b   :  { %7275 = vmatpush.bf16.msrb.mxu3 %v12612_v10  ;;  %7250 = vmatpush.bf16.msrb.mxu1 %v12068_v27  ;;  %v15017_v44 = vld [vmem:[#allocation7 + $0x61c] sm:$0xf0]  ;;  %v4130_v27 = vmax.f32 %v16105_v11, 0.0  ;;  %v3941_v55 = vpop.f32.mrf.mxu1 }
 0x29c   :  { %v13219_v12 = vld [vmem:[#allocation7 + $0xbc0] sm:$0xf]  ;;  %v12484_v25 = vor.u32 %v15017_v44, %v12483_v4 }
 0x29d   :  { %7263 = vmatpush.bf16.msrb.mxu2 %v12324_v28  ;;  %v15201_v10 = vld [vmem:[#allocation7 + $0xbdc] sm:$0xf0]  ;;  %7447 = vmatpush.bf16.msrb.mxu0 %v11756_v0  ;;  %v11724_v28 = vor.u32 %v14826_v24, %v11723_v54  ;;  %v16172_v11 = vpack.c.bf16 %v4130_v27, %v4130_v27  ;;  %v12843_v54 = vld [vmem:[#allocation7 + $0x8c8] sm:$0xf] }
 0x29e   :  { %v13475_v53 = vld [vmem:[#allocation7 + $0xdc0] sm:$0xf]  ;;  %v15106_v24 = vld [vmem:[#allocation7 + $0x8e4] sm:$0xf0] }
 0x29f   :  { %7276 = vmatpush.bf16.msrb.mxu3 %v12580_v30  ;;  %7251 = vmatpush.bf16.msrb.mxu1 %v12036_v29  ;;  %v15265_v17 = vld [vmem:[#allocation7 + $0xddc] sm:$0xf0]  ;;  %v13220_v30 = vor.u32 %v15201_v10, %v13219_v12  ;;  %v3890_v10 = vadd.f32 %v16157_v8, %v16151_v47 }
 0x2a0   :  { %v13476_v31 = vor.u32 %v15265_v17, %v13475_v53  ;;  %v13187_v37 = vld [vmem:[#allocation7 + $0xb80] sm:$0xf] }
 0x2a1   :  { %7264 = vmatpush.bf16.msrb.mxu2 %v12292_v39  ;;  %v15193_v2 = vld [vmem:[#allocation7 + $0xb9c] sm:$0xf0]  ;;  %7448 = vmatpush.bf16.msrb.mxu0 %v11724_v28  ;;  %v16186_v28 = vld [vmem:[#allocation5] sm:$0xff] }
 0x2a2   :  { %v13443_v33 = vld [vmem:[#allocation7 + $0xd80] sm:$0xf]  ;;  %v13188_v48 = vor.u32 %v15193_v2, %v13187_v37 }
 0x2a3   :  { %7277 = vmatpush.bf16.msrb.mxu3 %v12548_v42  ;;  %7252 = vmatpush.bf16.msrb.mxu1 %v12004_v58  ;;  %v15257_v61 = vld [vmem:[#allocation7 + $0xd9c] sm:$0xf0]  ;;  %v16182_v21 = vpop.f32.mrf.mxu2 }
 0x2a4   :  { %v13444_v29 = vor.u32 %v15257_v61, %v13443_v33  ;;  %v13155_v39 = vld [vmem:[#allocation7 + $0xb40] sm:$0xf]  ;;  %7449 = vmatmul.bf16.vlgmr.msrb.gmra.mxu0 %v16110_v13 }
 0x2a5   :  { %7265 = vmatpush.bf16.msrb.mxu2 %v12260_v63  ;;  %7493 = vmatpush.bf16.msra.mxu0 %v12972_v16  ;;  %v15185_v42 = vld [vmem:[#allocation7 + $0xb5c] sm:$0xf0]  ;;  %v16178_v63 = vpop.f32.mrf.mxu0  ;;  %v16184_v27 = vpop.f32.mrf.mxu3 }
 0x2a6   :  { %v13411_v9 = vld [vmem:[#allocation7 + $0xd40] sm:$0xf]  ;;  %v13156_v49 = vor.u32 %v15185_v42, %v13155_v39 }
 0x2a7   :  { %7278 = vmatpush.bf16.msrb.mxu3 %v12516_v51  ;;  %7253 = vmatpush.bf16.msrb.mxu1 %v11972_v5  ;;  %v15249_v41 = vld [vmem:[#allocation7 + $0xd5c] sm:$0xf0]  ;;  %v12844_v5 = vor.u32 %v15106_v24, %v12843_v54 }
 0x2a8   :  { %v13412_v57 = vor.u32 %v15249_v41, %v13411_v9  ;;  %v13123_v56 = vld [vmem:[#allocation7 + $0xb00] sm:$0xf] }
 0x2a9   :  { %7266 = vmatpush.bf16.msrb.mxu2 %v12228_v23  ;;  %7494 = vmatpush.bf16.msra.mxu0 %v12940_v38  ;;  %v15177_v14 = vld [vmem:[#allocation7 + $0xb1c] sm:$0xf0] }
 0x2aa   :  { %7254 = vmatmul.bf16.vlgmr.msrb.gmra.mxu1 %v16168_v20  ;;  %v13379_v15 = vld [vmem:[#allocation7 + $0xd00] sm:$0xf]  ;;  %v13124_v51 = vor.u32 %v15177_v14, %v13123_v56  ;;  %v14941_v14 = vld [vmem:[#allocation7 + $0x3c4] sm:$0xf] }
 0x2ab   :  { %7279 = vmatpush.bf16.msrb.mxu3 %v12484_v25  ;;  %7298 = vmatpush.bf16.msra.mxu1 %v13220_v30  ;;  %v15241_v58 = vld [vmem:[#allocation7 + $0xd1c] sm:$0xf0]  ;;  %v12811_v25 = vld [vmem:[#allocation7 + $0x888] sm:$0xf]  ;;  %v725_v30 = vperm.slane %v16186_v28, 6  ;;  %v3956_v56 = vpop.f32.mrf.mxu2 }
 0x2ac   :  { %7267 = vmatmul.bf16.vlgmr.msrb.gmra.mxu2 %v16170_v34  ;;  %v13380_v40 = vor.u32 %v15241_v58, %v13379_v15  ;;  %v13091_v4 = vld [vmem:[#allocation7 + $0xac0] sm:$0xf]  ;;  %v12812_v37 = vor.u32 %v15098_v26, %v12811_v25  ;;  %v14870_v25 = vld [vmem:[#allocation7 + $0x18c] sm:$0xf] }
 0x2ad   :  { %7311 = vmatpush.bf16.msra.mxu2 %v13476_v31  ;;  %7495 = vmatpush.bf16.msra.mxu0 %v12908_v50  ;;  %v15169_v7 = vld [vmem:[#allocation7 + $0xadc] sm:$0xf0]  ;;  %v7244_v47 = vpop.f32.mrf.mxu0  ;;  %v3903_v31 = vadd.f32 %v16161_v32, %v3890_v10  ;;  %v3929_v38 = vadd.f32 %v16134_v35, %v725_v30  ;;  %v15082_v50 = vld [vmem:[#allocation7 + $0x824] sm:$0xf0]  ;;  %v3969_v15 = vpop.f32.mrf.mxu3  ;;  %v12197_v35 = vld [vmem:[#allocation7 + $0x3e0] sm:$0xf0] }
 0x2ae   :  { %7280 = vmatmul.bf16.vlgmr.msrb.gmra.mxu3 %v16172_v11  ;;  %v13347_v0 = vld [vmem:[#allocation7 + $0xcc0] sm:$0xf]  ;;  %v13092_v12 = vor.u32 %v15169_v7, %v13091_v4  ;;  %v11949_v7 = vld [vmem:[#allocation7 + $0x1e8] sm:$0xf0]  ;;  %v12200_v24 = vor.u32 %v14941_v14, %v12197_v35  ;;  %v14933_v10 = vld [vmem:[#allocation7 + $0x384] sm:$0xf] }
 0x2af   :  { %7299 = vmatpush.bf16.msra.mxu1 %v13188_v48  ;;  %v15233_v44 = vld [vmem:[#allocation7 + $0xcdc] sm:$0xf0]  ;;  %v15090_v48 = vld [vmem:[#allocation7 + $0x864] sm:$0xf0]  ;;  %v3916_v32 = vadd.f32 %v16163_v46, %v3903_v31  ;;  %v14878_v46 = vld [vmem:[#allocation7 + $0x1cc] sm:$0xf] }
 0x2b0   :  { %v13348_v53 = vor.u32 %v15233_v44, %v13347_v0  ;;  %v13059_v17 = vld [vmem:[#allocation7 + $0xa80] sm:$0xf]  ;;  %v12780_v45 = vor.u32 %v15090_v48, %v12779_v1  ;;  %v11917_v26 = vld [vmem:[#allocation7 + $0x1a8] sm:$0xf0]  ;;  %v14909_v35 = vld [vmem:[#allocation7 + $0x2c4] sm:$0xf] }
 0x2b1   :  { %7312 = vmatpush.bf16.msra.mxu2 %v13444_v29  ;;  %7496 = vmatpush.bf16.msra.mxu0 %v12876_v6  ;;  %v15161_v18 = vld [vmem:[#allocation7 + $0xa9c] sm:$0xf0]  ;;  %v3943_v29 = vpop.f32.mrf.mxu1  ;;  %v3942_v6 = vadd.f32 %v3941_v55, %v3929_v38  ;;  %v4132_v0 = vmax.f32 %v3916_v32, 0.0  ;;  %v14862_v48 = vld [vmem:[#allocation7 + $0x14c] sm:$0xf] }
 0x2b2   :  { %v13315_v22 = vld [vmem:[#allocation7 + $0xc80] sm:$0xf]  ;;  %v13060_v8 = vor.u32 %v15161_v18, %v13059_v17  ;;  %v11952_v17 = vor.u32 %v14878_v46, %v11949_v7  ;;  %v12421_v18 = vld [vmem:[#allocation7 + $0x5a0] sm:$0xf0]  ;;  %v11885_v29 = vld [vmem:[#allocation7 + $0x168] sm:$0xf0] }
 0x2b3   :  { %7300 = vmatpush.bf16.msra.mxu1 %v13156_v49  ;;  %v15225_v23 = vld [vmem:[#allocation7 + $0xc9c] sm:$0xf0]  ;;  %v3955_v55 = vadd.f32 %v16182_v21, %v3942_v6  ;;  %v16193_v47 = vpack.c.bf16 %v4132_v0, %v4132_v0  ;;  %v11853_v56 = vld [vmem:[#allocation7 + $0x128] sm:$0xf0]  ;;  %v12069_v6 = vld [vmem:[#allocation7 + $0x2e0] sm:$0xf0] }
 0x2b4   :  { %v13316_v16 = vor.u32 %v15225_v23, %v13315_v22  ;;  %v13027_v2 = vld [vmem:[#allocation7 + $0xa40] sm:$0xf]  ;;  %v12325_v46 = vld [vmem:[#allocation7 + $0x4e0] sm:$0xf0]  ;;  %v14846_v0 = vld [vmem:[#allocation7 + $0xcc] sm:$0xf] }
 0x2b5   :  { %7313 = vmatpush.bf16.msra.mxu2 %v13412_v57  ;;  %7497 = vmatpush.bf16.msra.mxu0 %v12844_v5  ;;  %v15153_v33 = vld [vmem:[#allocation7 + $0xa5c] sm:$0xf0]  ;;  %v12747_v57 = vld [vmem:[#allocation7 + $0x808] sm:$0xf]  ;;  %v14997_v5 = vld [vmem:[#allocation7 + $0x584] sm:$0xf]  ;;  %v3968_v1 = vadd.f32 %v16184_v27, %v3955_v55 }
 0x2b6   :  { %v13283_v61 = vld [vmem:[#allocation7 + $0xc40] sm:$0xf]  ;;  %v13028_v39 = vor.u32 %v15153_v33, %v13027_v2  ;;  %v12748_v54 = vor.u32 %v15082_v50, %v12747_v57  ;;  %v12424_v31 = vor.u32 %v14997_v5, %v12421_v18  ;;  %v14989_v2 = vld [vmem:[#allocation7 + $0x544] sm:$0xf]  ;;  %v11920_v33 = vor.u32 %v14870_v25, %v11917_v26  ;;  %v14854_v50 = vld [vmem:[#allocation7 + $0x10c] sm:$0xf] }
 0x2b7   :  { %7301 = vmatpush.bf16.msra.mxu1 %v13124_v51  ;;  %v15217_v62 = vld [vmem:[#allocation7 + $0xc5c] sm:$0xf0]  ;;  %v12453_v51 = vld [vmem:[#allocation7 + $0x5e0] sm:$0xf0]  ;;  %v3981_v27 = vadd.f32 %v16139_v52, %v3968_v1  ;;  %v14838_v26 = vld [vmem:[#allocation7 + $0x8c] sm:$0xf] }
 0x2b8   :  { %v12995_v42 = vld [vmem:[#allocation7 + $0xa00] sm:$0xf]  ;;  %v13284_v43 = vor.u32 %v15217_v62, %v13283_v61  ;;  %v12389_v61 = vld [vmem:[#allocation7 + $0x560] sm:$0xf0] }
 0x2b9   :  { %7314 = vmatpush.bf16.msra.mxu2 %v13380_v40  ;;  %v15145_v9 = vld [vmem:[#allocation7 + $0xa1c] sm:$0xf0]  ;;  %7498 = vmatpush.bf16.msra.mxu0 %v12812_v37  ;;  %v12133_v37 = vld [vmem:[#allocation7 + $0x360] sm:$0xf0] }
 0x2ba   :  { %v13251_v41 = vld [vmem:[#allocation7 + $0xc00] sm:$0xf]  ;;  %v12996_v4 = vor.u32 %v15145_v9, %v12995_v42  ;;  %v12392_v42 = vor.u32 %v14989_v2, %v12389_v61  ;;  %v14917_v9 = vld [vmem:[#allocation7 + $0x304] sm:$0xf] }
 0x2bb   :  { %7302 = vmatpush.bf16.msra.mxu1 %v13092_v12  ;;  %v15209_v49 = vld [vmem:[#allocation7 + $0xc1c] sm:$0xf0]  ;;  %v12456_v12 = vor.u32 %v15005_v60, %v12453_v51  ;;  %v12357_v57 = vld [vmem:[#allocation7 + $0x520] sm:$0xf0] }
 0x2bc   :  { %v13731_v58 = vld [vmem:[#allocation7 + $0xfc0] sm:$0xf]  ;;  %v13252_v44 = vor.u32 %v15209_v49, %v13251_v41  ;;  %v14981_v49 = vld [vmem:[#allocation7 + $0x504] sm:$0xf] }
 0x2bd   :  { %7315 = vmatpush.bf16.msra.mxu2 %v13348_v53  ;;  %v15329_v59 = vld [vmem:[#allocation7 + $0xfdc] sm:$0xf0]  ;;  %7499 = vmatpush.bf16.msra.mxu0 %v12780_v45  ;;  %v12165_v53 = vld [vmem:[#allocation7 + $0x3a0] sm:$0xf0] }
 0x2be   :  { %v13732_v40 = vor.u32 %v15329_v59, %v13731_v58  ;;  %v13699_v22 = vld [vmem:[#allocation7 + $0xf80] sm:$0xf]  ;;  %v12101_v45 = vld [vmem:[#allocation7 + $0x320] sm:$0xf0]  ;;  %v12360_v58 = vor.u32 %v14981_v49, %v12357_v57 }
 0x2bf   :  { %7303 = vmatpush.bf16.msra.mxu1 %v13060_v8  ;;  %v15321_v23 = vld [vmem:[#allocation7 + $0xf9c] sm:$0xf0]  ;;  %v12168_v8 = vor.u32 %v14933_v10, %v12165_v53  ;;  %v12104_v15 = vor.u32 %v14917_v9, %v12101_v45  ;;  %v3993_v59 = vpop.f32.mrf.mxu1  ;;  %v12037_v18 = vld [vmem:[#allocation7 + $0x2a0] sm:$0xf0] }
 0x2c0   :  { %7324 = vmatpush.bf16.msra.mxu3 %v13732_v40  ;;  %v13700_v30 = vor.u32 %v15321_v23, %v13699_v22  ;;  %v13667_v21 = vld [vmem:[#allocation7 + $0xf40] sm:$0xf]  ;;  %v11856_v40 = vor.u32 %v14854_v50, %v11853_v56  ;;  %v3994_v7 = vadd.f32 %v3993_v59, %v3981_v27  ;;  %v14965_v22 = vld [vmem:[#allocation7 + $0x484] sm:$0xf]  ;;  %v14822_v56 = vld [vmem:[#allocation7 + $0xc] sm:$0xf] }
 0x2c1   :  { %7316 = vmatpush.bf16.msra.mxu2 %v13316_v16  ;;  %7500 = vmatpush.bf16.msra.mxu0 %v12748_v54  ;;  %v14925_v16 = vld [vmem:[#allocation7 + $0x344] sm:$0xf]  ;;  %v15313_v62 = vld [vmem:[#allocation7 + $0xf5c] sm:$0xf0]  ;;  %v12072_v54 = vor.u32 %v14909_v35, %v12069_v6 }
 0x2c2   :  { %v13668_v38 = vor.u32 %v15313_v62, %v13667_v21  ;;  %v13635_v41 = vld [vmem:[#allocation7 + $0xf00] sm:$0xf]  ;;  %v12293_v23 = vld [vmem:[#allocation7 + $0x4a0] sm:$0xf0] }
 0x2c3   :  { %7304 = vmatpush.bf16.msra.mxu1 %v13028_v39  ;;  %v12136_v39 = vor.u32 %v14925_v16, %v12133_v37  ;;  %v15305_v32 = vld [vmem:[#allocation7 + $0xf1c] sm:$0xf0]  ;;  %v12296_v37 = vor.u32 %v14965_v22, %v12293_v23  ;;  %v14893_v2 = vld [vmem:[#allocation7 + $0x244] sm:$0xf] }
 0x2c4   :  { %7501 = vmatmul.bf16.vlgmr.msra.gmra.mxu0 %v16137_v3  ;;  %7325 = vmatpush.bf16.msra.mxu3 %v13700_v30  ;;  %v13636_v14 = vor.u32 %v15305_v32, %v13635_v41  ;;  %v13603_v60 = vld [vmem:[#allocation7 + $0xec0] sm:$0xf]  ;;  %v11789_v30 = vld [vmem:[#allocation7 + $0xa8] sm:$0xf0]  ;;  %v12005_v1 = vld [vmem:[#allocation7 + $0x260] sm:$0xf0] }
 0x2c5   :  { %7317 = vmatpush.bf16.msra.mxu2 %v13284_v43  ;;  %7545 = vmatpush.bf16.msrb.mxu0 %v11952_v17  ;;  %v11888_v43 = vor.u32 %v14862_v48, %v11885_v29  ;;  %v15297_v51 = vld [vmem:[#allocation7 + $0xedc] sm:$0xf0]  ;;  %v11792_v62 = vor.u32 %v14838_v26, %v11789_v30  ;;  %v14957_v48 = vld [vmem:[#allocation7 + $0x444] sm:$0xf]  ;;  %v12008_v57 = vor.u32 %v14893_v2, %v12005_v1  ;;  %v15126_v26 = vld [vmem:[#allocation7 + $0x98c] sm:$0xf] }
 0x2c6   :  { %v13604_v52 = vor.u32 %v15297_v51, %v13603_v60  ;;  %v13571_v10 = vld [vmem:[#allocation7 + $0xe80] sm:$0xf]  ;;  %v12261_v29 = vld [vmem:[#allocation7 + $0x460] sm:$0xf0]  ;;  %v12941_v30 = vld [vmem:[#allocation7 + $0x9a8] sm:$0xf0] }
 0x2c7   :  { %7305 = vmatpush.bf16.msra.mxu1 %v12996_v4  ;;  %v14973_v4 = vld [vmem:[#allocation7 + $0x4c4] sm:$0xf]  ;;  %v15289_v53 = vld [vmem:[#allocation7 + $0xe9c] sm:$0xf0]  ;;  %v4006_v17 = vpop.f32.mrf.mxu2  ;;  %v12264_v50 = vor.u32 %v14957_v48, %v12261_v29  ;;  %v15118_v1 = vld [vmem:[#allocation7 + $0x94c] sm:$0xf] }
 0x2c8   :  { %7326 = vmatpush.bf16.msra.mxu3 %v13668_v38  ;;  %v4007_v55 = vadd.f32 %v4006_v17, %v3994_v7  ;;  %v13539_v61 = vld [vmem:[#allocation7 + $0xe40] sm:$0xf]  ;;  %v14885_v41 = vld [vmem:[#allocation7 + $0x204] sm:$0xf]  ;;  %v12909_v48 = vld [vmem:[#allocation7 + $0x968] sm:$0xf0] }
 0x2c9   :  { %7318 = vmatpush.bf16.msra.mxu2 %v13252_v44  ;;  %7546 = vmatpush.bf16.msrb.mxu0 %v11920_v33  ;;  %v11821_v44 = vld [vmem:[#allocation7 + $0xe8] sm:$0xf0]  ;;  %v4019_v25 = vpop.f32.mrf.mxu3  ;;  %v3995_v33 = vpop.f32.mrf.mxu1  ;;  %v15281_v21 = vld [vmem:[#allocation7 + $0xe5c] sm:$0xf0]  ;;  %v11973_v32 = vld [vmem:[#allocation7 + $0x220] sm:$0xf0] }
 0x2ca   :  { %7306 = vmatmul.bf16.vlgmr.msra.gmra.mxu1 %v16193_v47  ;;  %v11824_v5 = vor.u32 %v14846_v0, %v11821_v44  ;;  %v13540_v9 = vor.u32 %v15281_v21, %v13539_v61  ;;  %v12229_v45 = vld [vmem:[#allocation7 + $0x420] sm:$0xf0]  ;;  %v13507_v27 = vld [vmem:[#allocation7 + $0xe00] sm:$0xf]  ;;  %v15134_v0 = vld [vmem:[#allocation7 + $0x9cc] sm:$0xf]  ;;  %v12944_v61 = vor.u32 %v15126_v26, %v12941_v30 }
 0x2cb   :  { %7350 = vmatpush.bf16.msrb.mxu1 %v12200_v24  ;;  %v12328_v24 = vor.u32 %v14973_v4, %v12325_v46  ;;  %v15069_v35 = vld [vmem:[#allocation7 + $0x7c4] sm:$0xf]  ;;  %v12973_v44 = vld [vmem:[#allocation7 + $0x9e8] sm:$0xf0] }
 0x2cc   :  { %7327 = vmatpush.bf16.msra.mxu3 %v13636_v14  ;;  %v15273_v14 = vld [vmem:[#allocation7 + $0xe1c] sm:$0xf0]  ;;  %v12709_v60 = vld [vmem:[#allocation7 + $0x7e0] sm:$0xf0] }
 0x2cd   :  { %7363 = vmatpush.bf16.msrb.mxu2 %v12456_v12  ;;  %7547 = vmatpush.bf16.msrb.mxu0 %v11888_v43  ;;  %v14901_v12 = vld [vmem:[#allocation7 + $0x284] sm:$0xf]  ;;  %v13508_v46 = vor.u32 %v15273_v14, %v13507_v27  ;;  %v15110_v27 = vld [vmem:[#allocation7 + $0x90c] sm:$0xf] }
 0x2ce   :  { %v12040_v16 = vor.u32 %v14901_v12, %v12037_v18  ;;  %v14949_v43 = vld [vmem:[#allocation7 + $0x404] sm:$0xf]  ;;  %v12976_v18 = vor.u32 %v15134_v0, %v12973_v44  ;;  %v12877_v14 = vld [vmem:[#allocation7 + $0x928] sm:$0xf0] }
 0x2cf   :  { %7351 = vmatpush.bf16.msrb.mxu1 %v12168_v8  ;;  %v13572_v8 = vor.u32 %v15289_v53, %v13571_v10  ;;  %v4008_v59 = vpop.f32.mrf.mxu2  ;;  %v15197_v51 = vld [vmem:[#allocation7 + $0xbc4] sm:$0xf]  ;;  %v12845_v0 = vld [vmem:[#allocation7 + $0x8e8] sm:$0xf0] }
 0x2d0   :  { %7328 = vmatpush.bf16.msra.mxu3 %v13604_v52  ;;  %v15261_v6 = vld [vmem:[#allocation7 + $0xdc4] sm:$0xf]  ;;  %v12712_v52 = vor.u32 %v15069_v35, %v12709_v60 }
 0x2d1   :  { %7364 = vmatpush.bf16.msrb.mxu2 %v12424_v31  ;;  %7548 = vmatpush.bf16.msrb.mxu0 %v11856_v40  ;;  %v4020_v31 = vadd.f32 %v4019_v25, %v4007_v55  ;;  %v13221_v40 = vld [vmem:[#allocation7 + $0xbe0] sm:$0xf0]  ;;  %v4021_v4 = vpop.f32.mrf.mxu3 }
 0x2d2   :  { %v13477_v7 = vld [vmem:[#allocation7 + $0xde0] sm:$0xf0]  ;;  %v13224_v10 = vor.u32 %v15197_v51, %v13221_v40  ;;  %v12880_v40 = vor.u32 %v15110_v27, %v12877_v14  ;;  %v15078_v14 = vld [vmem:[#allocation7 + $0x80c] sm:$0xf] }
 0x2d3   :  { %7352 = vmatpush.bf16.msrb.mxu1 %v12136_v39  ;;  %v4133_v38 = vmax.f32 %v4020_v31, 0.0  ;;  %v14830_v39 = vld [vmem:[#allocation7 + $0x4c] sm:$0xf]  ;;  %v15189_v53 = vld [vmem:[#allocation7 + $0xb84] sm:$0xf]  ;;  %v13480_v17 = vor.u32 %v15261_v6, %v13477_v7  ;;  %v16202_v31 = vpop.f32.mrf.mxu0 }
 0x2d4   :  { %7329 = vmatpush.bf16.msra.mxu3 %v13572_v8  ;;  %v15253_v22 = vld [vmem:[#allocation7 + $0xd84] sm:$0xf] }
 0x2d5   :  { %7365 = vmatpush.bf16.msrb.mxu2 %v12392_v42  ;;  %7549 = vmatpush.bf16.msrb.mxu0 %v11824_v5  ;;  %v11757_v42 = vld [vmem:[#allocation7 + $0x68] sm:$0xf0]  ;;  %v16199_v49 = vpack.c.bf16 %v4133_v38, %v4133_v38  ;;  %v13189_v5 = vld [vmem:[#allocation7 + $0xba0] sm:$0xf0] }
 0x2d6   :  { %v15061_v23 = vld [vmem:[#allocation7 + $0x784] sm:$0xf] }
 0x2d7   :  { %7353 = vmatpush.bf16.msrb.mxu1 %v12104_v15  ;;  %v11760_v15 = vor.u32 %v14830_v39, %v11757_v42  ;;  %7319 = vmatmul.bf16.vlgmr.msra.gmra.mxu2 %v16199_v49  ;;  %v12677_v55 = vld [vmem:[#allocation7 + $0x7a0] sm:$0xf0] }
 0x2d8   :  { %7330 = vmatpush.bf16.msra.mxu3 %v13540_v9  ;;  %v13445_v25 = vld [vmem:[#allocation7 + $0xda0] sm:$0xf0]  ;;  %v12680_v8 = vor.u32 %v15061_v23, %v12677_v55  ;;  %v15094_v55 = vld [vmem:[#allocation7 + $0x88c] sm:$0xf] }
 0x2d9   :  { %7366 = vmatpush.bf16.msrb.mxu2 %v12360_v58  ;;  %7550 = vmatpush.bf16.msrb.mxu0 %v11792_v62  ;;  %v11725_v58 = vld [vmem:[#allocation7 + $0x28] sm:$0xf0]  ;;  %v13157_v2 = vld [vmem:[#allocation7 + $0xb60] sm:$0xf0]  ;;  %v13448_v33 = vor.u32 %v15253_v22, %v13445_v25 }
 0x2da   :  { %v11728_v12 = vor.u32 %v14822_v56, %v11725_v58  ;;  %v15245_v21 = vld [vmem:[#allocation7 + $0xd44] sm:$0xf]  ;;  %v12813_v25 = vld [vmem:[#allocation7 + $0x8a8] sm:$0xf0] }
 0x2db   :  { %7354 = vmatpush.bf16.msrb.mxu1 %v12072_v54  ;;  %v11976_v54 = vor.u32 %v14885_v41, %v11973_v32  ;;  %v13413_v62 = vld [vmem:[#allocation7 + $0xd60] sm:$0xf0]  ;;  %v7296_v58 = vpop.f32.mrf.mxu0 }
 0x2dc   :  { %7331 = vmatpush.bf16.msra.mxu3 %v13508_v46  ;;  %v15053_v29 = vld [vmem:[#allocation7 + $0x744] sm:$0xf]  ;;  %v13416_v32 = vor.u32 %v15245_v21, %v13413_v62  ;;  %v15102_v46 = vld [vmem:[#allocation7 + $0x8cc] sm:$0xf]  ;;  %v12203_v58 = vld [vmem:[#allocation7 + $0x3c8] sm:$0xf] }
 0x2dd   :  { %7367 = vmatpush.bf16.msrb.mxu2 %v12328_v24  ;;  %v12232_v24 = vor.u32 %v14949_v43, %v12229_v45  ;;  %7551 = vmatpush.bf16.msrb.mxu0 %v11760_v15  ;;  %v12645_v38 = vld [vmem:[#allocation7 + $0x760] sm:$0xf0]  ;;  %v12912_v43 = vor.u32 %v15118_v1, %v12909_v48  ;;  %v15086_v48 = vld [vmem:[#allocation7 + $0x84c] sm:$0xf] }
 0x2de   :  { %v12648_v39 = vor.u32 %v15053_v29, %v12645_v38  ;;  %v15173_v9 = vld [vmem:[#allocation7 + $0xb04] sm:$0xf]  ;;  %v12781_v38 = vld [vmem:[#allocation7 + $0x868] sm:$0xf0] }
 0x2df   :  { %7355 = vmatpush.bf16.msrb.mxu1 %v12040_v16  ;;  %v13192_v16 = vor.u32 %v15189_v53, %v13189_v5  ;;  %v13125_v41 = vld [vmem:[#allocation7 + $0xb20] sm:$0xf0]  ;;  %v16206_v7 = vpop.f32.mrf.mxu1  ;;  %v12848_v5 = vor.u32 %v15102_v46, %v12845_v0  ;;  %v11955_v0 = vld [vmem:[#allocation7 + $0x1d0] sm:$0xf] }
 0x2e0   :  { %7376 = vmatpush.bf16.msrb.mxu3 %v12712_v52  ;;  %v15237_v45 = vld [vmem:[#allocation7 + $0xd04] sm:$0xf]  ;;  %v13128_v59 = vor.u32 %v15173_v9, %v13125_v41  ;;  %v726_v9 = vperm.slane %v16186_v28, 7  ;;  %v12459_v28 = vld [vmem:[#allocation7 + $0x5c8] sm:$0xf] }
 0x2e1   :  { %7368 = vmatpush.bf16.msrb.mxu2 %v12296_v37  ;;  %7552 = vmatpush.bf16.msrb.mxu0 %v11728_v12  ;;  %v15181_v37 = vld [vmem:[#allocation7 + $0xb44] sm:$0xf] }
 0x2e2   :  { %v13160_v42 = vor.u32 %v15181_v37, %v13157_v2  ;;  %v13381_v56 = vld [vmem:[#allocation7 + $0xd20] sm:$0xf0] }
 0x2e3   :  { %7356 = vmatpush.bf16.msrb.mxu1 %v12008_v57  ;;  %v15045_v57 = vld [vmem:[#allocation7 + $0x704] sm:$0xf]  ;;  %v13384_v51 = vor.u32 %v15237_v45, %v13381_v56  ;;  %v16213_v21 = vpop.f32.mrf.mxu0  ;;  %v12784_v56 = vor.u32 %v15086_v48, %v12781_v38  ;;  %v14867_v48 = vld [vmem:[#allocation7 + $0x16c] sm:$0xf0] }
 0x2e4   :  { %7377 = vmatpush.bf16.msrb.mxu3 %v12680_v8  ;;  %7553 = vmatmul.bf16.vlgmr.msrb.gmra.mxu0 %v16110_v13  ;;  %v15165_v35 = vld [vmem:[#allocation7 + $0xac4] sm:$0xf] }
 0x2e5   :  { %7369 = vmatpush.bf16.msrb.mxu2 %v12264_v50  ;;  %7597 = vmatpush.bf16.msra.mxu0 %v12976_v18  ;;  %v12613_v50 = vld [vmem:[#allocation7 + $0x720] sm:$0xf0] }
 0x2e6   :  { %v12616_v15 = vor.u32 %v15045_v57, %v12613_v50  ;;  %v13093_v60 = vld [vmem:[#allocation7 + $0xae0] sm:$0xf0] }
 0x2e7   :  { %7357 = vmatpush.bf16.msrb.mxu1 %v11976_v54  ;;  %v15229_v6 = vld [vmem:[#allocation7 + $0xcc4] sm:$0xf]  ;;  %v16209_v26 = vpop.f32.mrf.mxu2  ;;  %v4047_v29 = vpop.f32.mrf.mxu1 }
 0x2e8   :  { %7378 = vmatpush.bf16.msrb.mxu3 %v12648_v39  ;;  %v13349_v4 = vld [vmem:[#allocation7 + $0xce0] sm:$0xf0] }
 0x2e9   :  { %7370 = vmatpush.bf16.msrb.mxu2 %v12232_v24  ;;  %7598 = vmatpush.bf16.msra.mxu0 %v12944_v61  ;;  %v15037_v44 = vld [vmem:[#allocation7 + $0x6c4] sm:$0xf]  ;;  %v13096_v24 = vor.u32 %v15165_v35, %v13093_v60  ;;  %v13352_v53 = vor.u32 %v15229_v6, %v13349_v4  ;;  %v16211_v8 = vpop.f32.mrf.mxu3  ;;  %v12816_v61 = vor.u32 %v15094_v55, %v12813_v25  ;;  %v11923_v55 = vld [vmem:[#allocation7 + $0x190] sm:$0xf] }
 0x2ea   :  { %7358 = vmatmul.bf16.vlgmr.msrb.gmra.mxu1 %v16168_v20  ;;  %v12581_v52 = vld [vmem:[#allocation7 + $0x6e0] sm:$0xf0]  ;;  %v14875_v25 = vld [vmem:[#allocation7 + $0x1ac] sm:$0xf0] }
 0x2eb   :  { %7402 = vmatpush.bf16.msra.mxu1 %v13224_v10  ;;  %v12584_v54 = vor.u32 %v15037_v44, %v12581_v52  ;;  %v15157_v12 = vld [vmem:[#allocation7 + $0xa84] sm:$0xf]  ;;  %v14883_v44 = vld [vmem:[#allocation7 + $0x1ec] sm:$0xf0] }
 0x2ec   :  { %7371 = vmatmul.bf16.vlgmr.msrb.gmra.mxu2 %v16170_v34  ;;  %7379 = vmatpush.bf16.msrb.mxu3 %v12616_v15  ;;  %v13061_v10 = vld [vmem:[#allocation7 + $0xaa0] sm:$0xf0]  ;;  %v12749_v15 = vld [vmem:[#allocation7 + $0x828] sm:$0xf0] }
 0x2ed   :  { %7415 = vmatpush.bf16.msra.mxu2 %v13480_v17  ;;  %7599 = vmatpush.bf16.msra.mxu0 %v12912_v43  ;;  %v15221_v17 = vld [vmem:[#allocation7 + $0xc84] sm:$0xf] }
 0x2ee   :  { %v15029_v18 = vld [vmem:[#allocation7 + $0x684] sm:$0xf] }
 0x2ef   :  { %7403 = vmatpush.bf16.msra.mxu1 %v13192_v16  ;;  %v12549_v22 = vld [vmem:[#allocation7 + $0x6a0] sm:$0xf0]  ;;  %v13064_v16 = vor.u32 %v15157_v12, %v13061_v10  ;;  %v4033_v12 = vadd.f32 %v16147_v36, %v726_v9  ;;  %v12139_v36 = vld [vmem:[#allocation7 + $0x348] sm:$0xf] }
 0x2f0   :  { %v13317_v23 = vld [vmem:[#allocation7 + $0xca0] sm:$0xf0]  ;;  %7380 = vmatpush.bf16.msrb.mxu3 %v12584_v54  ;;  %v12552_v30 = vor.u32 %v15029_v18, %v12549_v22  ;;  %v12752_v54 = vor.u32 %v15078_v14, %v12749_v15  ;;  %v14938_v18 = vld [vmem:[#allocation7 + $0x3a4] sm:$0xf0] }
 0x2f1   :  { %7416 = vmatpush.bf16.msra.mxu2 %v13448_v33  ;;  %7600 = vmatpush.bf16.msra.mxu0 %v12880_v40  ;;  %v15149_v37 = vld [vmem:[#allocation7 + $0xa44] sm:$0xf]  ;;  %v13320_v33 = vor.u32 %v15221_v17, %v13317_v23  ;;  %v15010_v40 = vld [vmem:[#allocation7 + $0x5e4] sm:$0xf0]  ;;  %v4073_v6 = vpop.f32.mrf.mxu3  ;;  %v11956_v17 = vor.u32 %v14883_v44, %v11955_v0 }
 0x2f2   :  { %v13029_v2 = vld [vmem:[#allocation7 + $0xa60] sm:$0xf0]  ;;  %v12427_v22 = vld [vmem:[#allocation7 + $0x588] sm:$0xf] }
 0x2f3   :  { %7404 = vmatpush.bf16.msra.mxu1 %v13160_v42  ;;  %v15213_v62 = vld [vmem:[#allocation7 + $0xc44] sm:$0xf]  ;;  %v15002_v23 = vld [vmem:[#allocation7 + $0x5a4] sm:$0xf0] }
 0x2f4   :  { %v13285_v1 = vld [vmem:[#allocation7 + $0xc60] sm:$0xf0]  ;;  %7381 = vmatpush.bf16.msrb.mxu3 %v12552_v30  ;;  %v4046_v30 = vadd.f32 %v16206_v7, %v4033_v12  ;;  %v14922_v9 = vld [vmem:[#allocation7 + $0x324] sm:$0xf0] }
 0x2f5   :  { %7417 = vmatpush.bf16.msra.mxu2 %v13416_v32  ;;  %7601 = vmatpush.bf16.msra.mxu0 %v12848_v5  ;;  %v15021_v39 = vld [vmem:[#allocation7 + $0x644] sm:$0xf]  ;;  %v13032_v32 = vor.u32 %v15149_v37, %v13029_v2  ;;  %v13288_v50 = vor.u32 %v15213_v62, %v13285_v1  ;;  %v12171_v5 = vld [vmem:[#allocation7 + $0x388] sm:$0xf]  ;;  %v12428_v37 = vor.u32 %v15002_v23, %v12427_v22  ;;  %v11891_v1 = vld [vmem:[#allocation7 + $0x150] sm:$0xf] }
 0x2f6   :  { %v12517_v42 = vld [vmem:[#allocation7 + $0x660] sm:$0xf0]  ;;  %v11924_v2 = vor.u32 %v14875_v25, %v11923_v55  ;;  %v14994_v62 = vld [vmem:[#allocation7 + $0x564] sm:$0xf0]  ;;  %v4059_v7 = vadd.f32 %v16209_v26, %v4046_v30 }
 0x2f7   :  { %7405 = vmatpush.bf16.msra.mxu1 %v13128_v59  ;;  %v12520_v41 = vor.u32 %v15021_v39, %v12517_v42  ;;  %v15141_v43 = vld [vmem:[#allocation7 + $0xa04] sm:$0xf]  ;;  %v4060_v59 = vpop.f32.mrf.mxu2  ;;  %v12107_v39 = vld [vmem:[#allocation7 + $0x308] sm:$0xf]  ;;  %v11892_v42 = vor.u32 %v14867_v48, %v11891_v1 }
 0x2f8   :  { %v12997_v45 = vld [vmem:[#allocation7 + $0xa20] sm:$0xf0]  ;;  %v12075_v26 = vld [vmem:[#allocation7 + $0x2c8] sm:$0xf] }
 0x2f9   :  { %7418 = vmatpush.bf16.msra.mxu2 %v13384_v51  ;;  %v15205_v57 = vld [vmem:[#allocation7 + $0xc04] sm:$0xf]  ;;  %7602 = vmatpush.bf16.msra.mxu0 %v12816_v61  ;;  %v14946_v51 = vld [vmem:[#allocation7 + $0x3e4] sm:$0xf0]  ;;  %v13000_v46 = vor.u32 %v15141_v43, %v12997_v45  ;;  %v11859_v43 = vld [vmem:[#allocation7 + $0x110] sm:$0xf] }
 0x2fa   :  { %v13253_v27 = vld [vmem:[#allocation7 + $0xc20] sm:$0xf0]  ;;  %7382 = vmatpush.bf16.msrb.mxu3 %v12520_v41  ;;  %v12204_v10 = vor.u32 %v14946_v51, %v12203_v58  ;;  %v12395_v61 = vld [vmem:[#allocation7 + $0x548] sm:$0xf]  ;;  %v14859_v45 = vld [vmem:[#allocation7 + $0x12c] sm:$0xf0] }
 0x2fb   :  { %7406 = vmatpush.bf16.msra.mxu1 %v13096_v24  ;;  %v15013_v35 = vld [vmem:[#allocation7 + $0x604] sm:$0xf]  ;;  %v13256_v52 = vor.u32 %v15205_v57, %v13253_v27  ;;  %v7348_v24 = vpop.f32.mrf.mxu0  ;;  %v12396_v38 = vor.u32 %v14994_v62, %v12395_v61  ;;  %v12363_v41 = vld [vmem:[#allocation7 + $0x508] sm:$0xf]  ;;  %v4072_v57 = vadd.f32 %v16211_v8, %v4059_v7  ;;  %v11860_v14 = vor.u32 %v14859_v45, %v11859_v43  ;;  %v14851_v51 = vld [vmem:[#allocation7 + $0xec] sm:$0xf0] }
 0x2fc   :  { %v12485_v60 = vld [vmem:[#allocation7 + $0x620] sm:$0xf0]  ;;  %v14914_v15 = vld [vmem:[#allocation7 + $0x2e4] sm:$0xf0]  ;;  %v14843_v24 = vld [vmem:[#allocation7 + $0xac] sm:$0xf0] }
 0x2fd   :  { %7419 = vmatpush.bf16.msra.mxu2 %v13352_v53  ;;  %v12488_v4 = vor.u32 %v15013_v35, %v12485_v60  ;;  %7603 = vmatpush.bf16.msra.mxu0 %v12784_v56  ;;  %v12460_v53 = vor.u32 %v15010_v40, %v12459_v28  ;;  %v12108_v56 = vor.u32 %v14922_v9, %v12107_v39  ;;  %v12331_v58 = vld [vmem:[#allocation7 + $0x4c8] sm:$0xf]  ;;  %v11827_v60 = vld [vmem:[#allocation7 + $0xd0] sm:$0xf] }
 0x2fe   :  { %v14978_v59 = vld [vmem:[#allocation7 + $0x4e4] sm:$0xf0]  ;;  %v4085_v28 = vadd.f32 %v16159_v19, %v4072_v57  ;;  %v12076_v8 = vor.u32 %v14914_v15, %v12075_v26  ;;  %v14827_v9 = vld [vmem:[#allocation7 + $0x2c] sm:$0xf0] }
 0x2ff   :  { %7407 = vmatpush.bf16.msra.mxu1 %v13064_v16  ;;  %7383 = vmatpush.bf16.msrb.mxu3 %v12488_v4  ;;  %v12172_v16 = vor.u32 %v14938_v18, %v12171_v5  ;;  %v12332_v40 = vor.u32 %v14978_v59, %v12331_v58  ;;  %v12043_v6 = vld [vmem:[#allocation7 + $0x288] sm:$0xf]  ;;  %v11828_v4 = vor.u32 %v14851_v51, %v11827_v60  ;;  %v12979_v26 = vld [vmem:[#allocation7 + $0x9d0] sm:$0xf]  ;;  %v15317_v59 = vld [vmem:[#allocation7 + $0xf84] sm:$0xf] }
 0x300   :  { %v12299_v0 = vld [vmem:[#allocation7 + $0x488] sm:$0xf]  ;;  %v13701_v60 = vld [vmem:[#allocation7 + $0xfa0] sm:$0xf0] }
 0x301   :  { %7420 = vmatpush.bf16.msra.mxu2 %v13320_v33  ;;  %7604 = vmatpush.bf16.msra.mxu0 %v12752_v54  ;;  %v14930_v33 = vld [vmem:[#allocation7 + $0x364] sm:$0xf0]  ;;  %v11795_v54 = vld [vmem:[#allocation7 + $0x90] sm:$0xf] }
 0x302   :  { %v12140_v29 = vor.u32 %v14930_v33, %v12139_v36  ;;  %v14970_v44 = vld [vmem:[#allocation7 + $0x4a4] sm:$0xf0]  ;;  %v11796_v22 = vor.u32 %v14843_v24, %v11795_v54  ;;  %v14835_v36 = vld [vmem:[#allocation7 + $0x6c] sm:$0xf0]  ;;  %v13733_v33 = vld [vmem:[#allocation7 + $0xfe0] sm:$0xf0] }
 0x303   :  { %7408 = vmatpush.bf16.msra.mxu1 %v13032_v32  ;;  %v14986_v32 = vld [vmem:[#allocation7 + $0x524] sm:$0xf0]  ;;  %v16223_v35 = vpop.f32.mrf.mxu0  ;;  %v15131_v54 = vld [vmem:[#allocation7 + $0x9ac] sm:$0xf0]  ;;  %v15309_v24 = vld [vmem:[#allocation7 + $0xf44] sm:$0xf] }
 0x304   :  { %7605 = vmatmul.bf16.vlgmr.msra.gmra.mxu0 %v16137_v3  ;;  %v12364_v27 = vor.u32 %v14986_v32, %v12363_v41  ;;  %v12011_v18 = vld [vmem:[#allocation7 + $0x248] sm:$0xf] }
 0x305   :  { %7421 = vmatpush.bf16.msra.mxu2 %v13288_v50  ;;  %7649 = vmatpush.bf16.msrb.mxu0 %v11956_v17  ;;  %v12300_v17 = vor.u32 %v14970_v44, %v12299_v0  ;;  %v14898_v23 = vld [vmem:[#allocation7 + $0x264] sm:$0xf0]  ;;  %v13704_v0 = vor.u32 %v15317_v59, %v13701_v60  ;;  %v12851_v60 = vld [vmem:[#allocation7 + $0x8d0] sm:$0xf] }
 0x306   :  { %v12267_v55 = vld [vmem:[#allocation7 + $0x448] sm:$0xf]  ;;  %v12012_v1 = vor.u32 %v14898_v23, %v12011_v18 }
 0x307   :  { %7409 = vmatpush.bf16.msra.mxu1 %v13000_v46  ;;  %v4097_v50 = vpop.f32.mrf.mxu1  ;;  %v14906_v46 = vld [vmem:[#allocation7 + $0x2a4] sm:$0xf0] }
 0x308   :  { %v12044_v19 = vor.u32 %v14906_v46, %v12043_v6  ;;  %v14962_v25 = vld [vmem:[#allocation7 + $0x464] sm:$0xf0] }
 0x309   :  { %7422 = vmatpush.bf16.msra.mxu2 %v13256_v52  ;;  %7650 = vmatpush.bf16.msrb.mxu0 %v11924_v2  ;;  %v4098_v52 = vadd.f32 %v4097_v50, %v4085_v28  ;;  %v15325_v2 = vld [vmem:[#allocation7 + $0xfc4] sm:$0xf]  ;;  %v11979_v61 = vld [vmem:[#allocation7 + $0x208] sm:$0xf]  ;;  %v12268_v48 = vor.u32 %v14962_v25, %v12267_v55  ;;  %v12915_v25 = vld [vmem:[#allocation7 + $0x950] sm:$0xf] }
 0x30a   :  { %7410 = vmatmul.bf16.vlgmr.msra.gmra.mxu1 %v16193_v47  ;;  %v14890_v7 = vld [vmem:[#allocation7 + $0x224] sm:$0xf0]  ;;  %v13736_v32 = vor.u32 %v15325_v2, %v13733_v33 }
 0x30b   :  { %7454 = vmatpush.bf16.msrb.mxu1 %v12204_v10  ;;  %v14954_v39 = vld [vmem:[#allocation7 + $0x424] sm:$0xf0]  ;;  %v11980_v15 = vor.u32 %v14890_v7, %v11979_v61 }
 0x30c   :  { %7423 = vmatmul.bf16.vlgmr.msra.gmra.mxu2 %v16199_v49  ;;  %v13227_v43 = vld [vmem:[#allocation7 + $0xbc8] sm:$0xf] }
 0x30d   :  { %7467 = vmatpush.bf16.msrb.mxu2 %v12460_v53  ;;  %7651 = vmatpush.bf16.msrb.mxu0 %v11892_v42  ;;  %v11731_v42 = vld [vmem:[#allocation7 + $0x10] sm:$0xf]  ;;  %v15202_v45 = vld [vmem:[#allocation7 + $0xbe4] sm:$0xf0] }
 0x30e   :  { %v13483_v57 = vld [vmem:[#allocation7 + $0xdc8] sm:$0xf]  ;;  %v11732_v51 = vor.u32 %v14827_v9, %v11731_v42  ;;  %v13228_v28 = vor.u32 %v15202_v45, %v13227_v43  ;;  %v15293_v42 = vld [vmem:[#allocation7 + $0xec4] sm:$0xf] }
 0x30f   :  { %7455 = vmatpush.bf16.msrb.mxu1 %v12172_v16  ;;  %v4110_v12 = vpop.f32.mrf.mxu2  ;;  %v4099_v5 = vpop.f32.mrf.mxu1  ;;  %v13195_v6 = vld [vmem:[#allocation7 + $0xb88] sm:$0xf]  ;;  %v13605_v9 = vld [vmem:[#allocation7 + $0xee0] sm:$0xf0] }
 0x310   :  { %v4111_v53 = vadd.f32 %v4110_v12, %v4098_v52  ;;  %v7400_v16 = vpop.f32.mrf.mxu0  ;;  %v13451_v46 = vld [vmem:[#allocation7 + $0xd88] sm:$0xf]  ;;  %v12947_v52 = vld [vmem:[#allocation7 + $0x990] sm:$0xf]  ;;  %v13669_v12 = vld [vmem:[#allocation7 + $0xf60] sm:$0xf0] }
 0x311   :  { %7468 = vmatpush.bf16.msrb.mxu2 %v12428_v37  ;;  %7652 = vmatpush.bf16.msrb.mxu0 %v11860_v14  ;;  %v4123_v10 = vpop.f32.mrf.mxu3  ;;  %v11763_v37 = vld [vmem:[#allocation7 + $0x50] sm:$0xf]  ;;  %v15258_v44 = vld [vmem:[#allocation7 + $0xda4] sm:$0xf0]  ;;  %v13672_v23 = vor.u32 %v15309_v24, %v13669_v12  ;;  %v15301_v16 = vld [vmem:[#allocation7 + $0xf04] sm:$0xf] }
 0x312   :  { %v4124_v30 = vadd.f32 %v4123_v10, %v4111_v53  ;;  %v15139_v14 = vld [vmem:[#allocation7 + $0x9ec] sm:$0xf0]  ;;  %v16229_v10 = vld [vmem:[#allocation8] sm:$0xff]  ;;  %v13452_v5 = vor.u32 %v15258_v44, %v13451_v46  ;;  %v15186_v18 = vld [vmem:[#allocation7 + $0xb64] sm:$0xf0] }
 0x313   :  { %7456 = vmatpush.bf16.msrb.mxu1 %v12140_v29  ;;  %v12235_v29 = vld [vmem:[#allocation7 + $0x408] sm:$0xf]  ;;  %v15099_v24 = vld [vmem:[#allocation7 + $0x8ac] sm:$0xf0] }
 0x314   :  { %v4134_v62 = vmax.f32 %v4124_v30, 0.0  ;;  %v12236_v58 = vor.u32 %v14954_v39, %v12235_v29  ;;  %v15250_v55 = vld [vmem:[#allocation7 + $0xd64] sm:$0xf0]  ;;  %v15123_v30 = vld [vmem:[#allocation7 + $0x96c] sm:$0xf0] }
 0x315   :  { %7469 = vmatpush.bf16.msrb.mxu2 %v12396_v38  ;;  %7653 = vmatpush.bf16.msrb.mxu0 %v11828_v4  ;;  %v11764_v38 = vor.u32 %v14835_v36, %v11763_v37  ;;  %v15194_v4 = vld [vmem:[#allocation7 + $0xba4] sm:$0xf0]  ;;  %v13637_v37 = vld [vmem:[#allocation7 + $0xf20] sm:$0xf0]  ;;  %v4657_v36 = vperm.slane %v16229_v10, 0  ;;  %v12916_v61 = vor.u32 %v15123_v30, %v12915_v25 }
 0x316   :  { %v16226_v41 = vpack.c.bf16 %v4134_v62, %v4134_v62  ;;  %v13196_v53 = vor.u32 %v15194_v4, %v13195_v6  ;;  %v13131_v62 = vld [vmem:[#allocation7 + $0xb08] sm:$0xf]  ;;  %v13640_v7 = vor.u32 %v15301_v16, %v13637_v37  ;;  %v15115_v39 = vld [vmem:[#allocation7 + $0x92c] sm:$0xf0] }
 0x317   :  { %7457 = vmatpush.bf16.msrb.mxu1 %v12108_v56  ;;  %v4112_v50 = vpop.f32.mrf.mxu2  ;;  %v15242_v29 = vld [vmem:[#allocation7 + $0xd24] sm:$0xf0] }
 0x318   :  { %7332 = vmatmul.bf16.vlgmr.msra.gmra.mxu3 %v16226_v41  ;;  %v15234_v59 = vld [vmem:[#allocation7 + $0xce4] sm:$0xf0] }
 0x319   :  { %7470 = vmatpush.bf16.msrb.mxu2 %v12364_v27  ;;  %7654 = vmatpush.bf16.msrb.mxu0 %v11796_v22  ;;  %v4125_v56 = vpop.f32.mrf.mxu3  ;;  %v15266_v27 = vld [vmem:[#allocation7 + $0xde4] sm:$0xf0] }
 0x31a   :  { %7428 = vmatpush.bf16.msra.mxu3 %v13736_v32  ;;  %v13419_v22 = vld [vmem:[#allocation7 + $0xd48] sm:$0xf]  ;;  %v7243_v32 = vadd.f32 %v16178_v63, %v4657_v36  ;;  %v13573_v63 = vld [vmem:[#allocation7 + $0xea0] sm:$0xf0] }
 0x31b   :  { %7458 = vmatpush.bf16.msrb.mxu1 %v12076_v8  ;;  %v13484_v8 = vor.u32 %v15266_v27, %v13483_v57  ;;  %v13420_v33 = vor.u32 %v15250_v55, %v13419_v22  ;;  %v13099_v56 = vld [vmem:[#allocation7 + $0xac8] sm:$0xf] }
 0x31c   :  { %v15170_v27 = vld [vmem:[#allocation7 + $0xae4] sm:$0xf0] }
 0x31d   :  { %7471 = vmatpush.bf16.msrb.mxu2 %v12332_v40  ;;  %7655 = vmatpush.bf16.msrb.mxu0 %v11764_v38  ;;  %v12980_v40 = vor.u32 %v15139_v14, %v12979_v26  ;;  %v12883_v38 = vld [vmem:[#allocation7 + $0x910] sm:$0xf]  ;;  %v13355_v26 = vld [vmem:[#allocation7 + $0xcc8] sm:$0xf] }
 0x31e   :  { %7429 = vmatpush.bf16.msra.mxu3 %v13704_v0  ;;  %v12884_v50 = vor.u32 %v15115_v39, %v12883_v38  ;;  %v13067_v4 = vld [vmem:[#allocation7 + $0xa88] sm:$0xf] }
 0x31f   :  { %7459 = vmatpush.bf16.msrb.mxu1 %v12044_v19  ;;  %v12948_v19 = vor.u32 %v15131_v54, %v12947_v52  ;;  %v15162_v46 = vld [vmem:[#allocation7 + $0xaa4] sm:$0xf0]  ;;  %v12819_v54 = vld [vmem:[#allocation7 + $0x890] sm:$0xf] }
 0x320   :  { %v13323_v0 = vld [vmem:[#allocation7 + $0xc88] sm:$0xf]  ;;  %v12820_v55 = vor.u32 %v15099_v24, %v12819_v54  ;;  %v14934_v54 = vld [vmem:[#allocation7 + $0x38c] sm:$0xf] }
 0x321   :  { %7472 = vmatpush.bf16.msrb.mxu2 %v12300_v17  ;;  %7656 = vmatpush.bf16.msrb.mxu0 %v11732_v51  ;;  %v13163_v17 = vld [vmem:[#allocation7 + $0xb48] sm:$0xf]  ;;  %v15107_v51 = vld [vmem:[#allocation7 + $0x8ec] sm:$0xf0]  ;;  %v12173_v24 = vld [vmem:[#allocation7 + $0x3a8] sm:$0xf0] }
 0x322   :  { %v13164_v2 = vor.u32 %v15186_v18, %v13163_v17  ;;  %7430 = vmatpush.bf16.msra.mxu3 %v13672_v23  ;;  %v12852_v6 = vor.u32 %v15107_v51, %v12851_v60  ;;  %v15226_v52 = vld [vmem:[#allocation7 + $0xca4] sm:$0xf0]  ;;  %v13068_v18 = vor.u32 %v15162_v46, %v13067_v4 }
 0x323   :  { %7460 = vmatpush.bf16.msrb.mxu1 %v12012_v1  ;;  %v15178_v1 = vld [vmem:[#allocation7 + $0xb24] sm:$0xf0]  ;;  %v13324_v23 = vor.u32 %v15226_v52, %v13323_v0 }
 0x324   :  { %7657 = vmatmul.bf16.vlgmr.msrb.gmra.mxu0 %v16110_v13  ;;  %v13132_v43 = vor.u32 %v15178_v1, %v13131_v62  ;;  %v13035_v25 = vld [vmem:[#allocation7 + $0xa48] sm:$0xf]  ;;  %v15091_v62 = vld [vmem:[#allocation7 + $0x86c] sm:$0xf0]  ;;  %v15269_v1 = vld [vmem:[#allocation7 + $0xe04] sm:$0xf] }
 0x325   :  { %7473 = vmatpush.bf16.msrb.mxu2 %v12268_v48  ;;  %7701 = vmatpush.bf16.msra.mxu0 %v12980_v40  ;;  %v13387_v48 = vld [vmem:[#allocation7 + $0xd08] sm:$0xf]  ;;  %v13356_v40 = vor.u32 %v15234_v59, %v13355_v26  ;;  %v15006_v59 = vld [vmem:[#allocation7 + $0x5cc] sm:$0xf] }
 0x326   :  { %v13388_v57 = vor.u32 %v15242_v29, %v13387_v48  ;;  %7431 = vmatpush.bf16.msra.mxu3 %v13640_v7  ;;  %v15154_v30 = vld [vmem:[#allocation7 + $0xa64] sm:$0xf0]  ;;  %v13509_v48 = vld [vmem:[#allocation7 + $0xe20] sm:$0xf0] }
 0x327   :  { %7461 = vmatpush.bf16.msrb.mxu1 %v11980_v15  ;;  %v7255_v45 = vpop.f32.mrf.mxu1  ;;  %v16236_v15 = vpop.f32.mrf.mxu0  ;;  %v13291_v16 = vld [vmem:[#allocation7 + $0xc48] sm:$0xf]  ;;  %v13036_v7 = vor.u32 %v15154_v30, %v13035_v25  ;;  %v14926_v30 = vld [vmem:[#allocation7 + $0x34c] sm:$0xf] }
 0x328   :  { %v7256_v14 = vadd.f32 %v7255_v45, %v7243_v32  ;;  %7384 = vmatmul.bf16.vlgmr.msrb.gmra.mxu3 %v16172_v11  ;;  %v12715_v29 = vld [vmem:[#allocation7 + $0x7c8] sm:$0xf]  ;;  %v13512_v45 = vor.u32 %v15269_v1, %v13509_v48 }
 0x329   :  { %7474 = vmatpush.bf16.msrb.mxu2 %v12236_v58  ;;  %7702 = vmatpush.bf16.msra.mxu0 %v12948_v19  ;;  %v13608_v58 = vor.u32 %v15293_v42, %v13605_v9  ;;  %v15074_v38 = vld [vmem:[#allocation7 + $0x7e4] sm:$0xf0] }
 0x32a   :  { %7462 = vmatmul.bf16.vlgmr.msrb.gmra.mxu1 %v16168_v20  ;;  %v13003_v9 = vld [vmem:[#allocation7 + $0xa08] sm:$0xf]  ;;  %v12716_v26 = vor.u32 %v15074_v38, %v12715_v29 }
 0x32b   :  { %7506 = vmatpush.bf16.msra.mxu1 %v13228_v28  ;;  %v15285_v28 = vld [vmem:[#allocation7 + $0xe84] sm:$0xf]  ;;  %7432 = vmatpush.bf16.msra.mxu3 %v13608_v58  ;;  %v15146_v32 = vld [vmem:[#allocation7 + $0xa24] sm:$0xf0]  ;;  %v12205_v58 = vld [vmem:[#allocation7 + $0x3e8] sm:$0xf0] }
 0x32c   :  { %7475 = vmatmul.bf16.vlgmr.msrb.gmra.mxu2 %v16170_v34  ;;  %v13576_v44 = vor.u32 %v15285_v28, %v13573_v63  ;;  %v13004_v51 = vor.u32 %v15146_v32, %v13003_v9  ;;  %v12461_v28 = vld [vmem:[#allocation7 + $0x5e8] sm:$0xf0]  ;;  %v14879_v63 = vld [vmem:[#allocation7 + $0x1d4] sm:$0xf]  ;;  %v12683_v4 = vld [vmem:[#allocation7 + $0x788] sm:$0xf] }
 0x32d   :  { %7519 = vmatpush.bf16.msra.mxu2 %v13484_v8  ;;  %7703 = vmatpush.bf16.msra.mxu0 %v12916_v61  ;;  %v13100_v8 = vor.u32 %v15170_v27, %v13099_v56  ;;  %v12787_v61 = vld [vmem:[#allocation7 + $0x850] sm:$0xf]  ;;  %v15066_v46 = vld [vmem:[#allocation7 + $0x7a4] sm:$0xf0]  ;;  %v14982_v9 = vld [vmem:[#allocation7 + $0x50c] sm:$0xf] }
 0x32e   :  { %v12788_v42 = vor.u32 %v15091_v62, %v12787_v61  ;;  %v15083_v56 = vld [vmem:[#allocation7 + $0x82c] sm:$0xf0]  ;;  %v14863_v61 = vld [vmem:[#allocation7 + $0x154] sm:$0xf]  ;;  %v12619_v1 = vld [vmem:[#allocation7 + $0x708] sm:$0xf] }
 0x32f   :  { %7507 = vmatpush.bf16.msra.mxu1 %v13196_v53  ;;  %v7268_v12 = vpop.f32.mrf.mxu2  ;;  %v15277_v53 = vld [vmem:[#allocation7 + $0xe44] sm:$0xf]  ;;  %v7257_v22 = vpop.f32.mrf.mxu1  ;;  %7433 = vmatpush.bf16.msra.mxu3 %v13576_v44  ;;  %v12464_v44 = vor.u32 %v15006_v59, %v12461_v28  ;;  %v11893_v62 = vld [vmem:[#allocation7 + $0x170] sm:$0xf0]  ;;  %v15050_v48 = vld [vmem:[#allocation7 + $0x724] sm:$0xf0] }
 0x330   :  { %v7269_v19 = vadd.f32 %v7268_v12, %v7256_v14  ;;  %v7452_v36 = vpop.f32.mrf.mxu0  ;;  %v14942_v14 = vld [vmem:[#allocation7 + $0x3cc] sm:$0xf]  ;;  %v15058_v22 = vld [vmem:[#allocation7 + $0x764] sm:$0xf0]  ;;  %v11896_v38 = vor.u32 %v14863_v61, %v11893_v62  ;;  %v12620_v32 = vor.u32 %v15050_v48, %v12619_v1  ;;  %v14831_v1 = vld [vmem:[#allocation7 + $0x54] sm:$0xf] }
 0x331   :  { %7520 = vmatpush.bf16.msra.mxu2 %v13452_v5  ;;  %7704 = vmatpush.bf16.msra.mxu0 %v12884_v50  ;;  %v13541_v5 = vld [vmem:[#allocation7 + $0xe60] sm:$0xf0]  ;;  %v7281_v17 = vpop.f32.mrf.mxu3  ;;  %v12755_v50 = vld [vmem:[#allocation7 + $0x810] sm:$0xf]  ;;  %v12208_v0 = vor.u32 %v14942_v14, %v12205_v58  ;;  %v14998_v12 = vld [vmem:[#allocation7 + $0x58c] sm:$0xf] }
 0x332   :  { %v16239_v37 = vadd.f32 %v7281_v17, %v7269_v19  ;;  %v14871_v19 = vld [vmem:[#allocation7 + $0x194] sm:$0xf]  ;;  %v14990_v36 = vld [vmem:[#allocation7 + $0x54c] sm:$0xf] }
 0x333   :  { %7508 = vmatpush.bf16.msra.mxu1 %v13164_v2  ;;  %v13544_v2 = vor.u32 %v15277_v53, %v13541_v5  ;;  %v12684_v53 = vor.u32 %v15066_v46, %v12683_v4  ;;  %v12429_v5 = vld [vmem:[#allocation7 + $0x5a8] sm:$0xf0]  ;;  %v11925_v17 = vld [vmem:[#allocation7 + $0x1b0] sm:$0xf0]  ;;  %v12555_v4 = vld [vmem:[#allocation7 + $0x688] sm:$0xf] }
 0x334   :  { %v11928_v25 = vor.u32 %v14871_v19, %v11925_v17  ;;  %v14910_v28 = vld [vmem:[#allocation7 + $0x2cc] sm:$0xf]  ;;  %v15034_v46 = vld [vmem:[#allocation7 + $0x6a4] sm:$0xf0]  ;;  %v14839_v19 = vld [vmem:[#allocation7 + $0x94] sm:$0xf] }
 0x335   :  { %7521 = vmatpush.bf16.msra.mxu2 %v13420_v33  ;;  %7705 = vmatpush.bf16.msra.mxu0 %v12852_v6  ;;  %v15218_v33 = vld [vmem:[#allocation7 + $0xc64] sm:$0xf0]  ;;  %v12756_v6 = vor.u32 %v15083_v56, %v12755_v50  ;;  %v7295_v50 = vadd.f32 %v16202_v31, %v16239_v37  ;;  %v14847_v31 = vld [vmem:[#allocation7 + $0xd4] sm:$0xf]  ;;  %v12269_v62 = vld [vmem:[#allocation7 + $0x468] sm:$0xf0] }
 0x336   :  { %v13292_v39 = vor.u32 %v15218_v33, %v13291_v16  ;;  %7434 = vmatpush.bf16.msra.mxu3 %v13544_v2  ;;  %v12141_v16 = vld [vmem:[#allocation7 + $0x368] sm:$0xf0]  ;;  %v12587_v56 = vld [vmem:[#allocation7 + $0x6c8] sm:$0xf]  ;;  %v11829_v37 = vld [vmem:[#allocation7 + $0xf0] sm:$0xf0] }
 0x337   :  { %7509 = vmatpush.bf16.msra.mxu1 %v13132_v43  ;;  %v13259_v43 = vld [vmem:[#allocation7 + $0xc08] sm:$0xf]  ;;  %v7270_v27 = vpop.f32.mrf.mxu2  ;;  %v12397_v33 = vld [vmem:[#allocation7 + $0x568] sm:$0xf0]  ;;  %v11797_v17 = vld [vmem:[#allocation7 + $0xb0] sm:$0xf0] }
 0x338   :  { %v12400_v29 = vor.u32 %v14990_v36, %v12397_v33  ;;  %v15042_v27 = vld [vmem:[#allocation7 + $0x6e4] sm:$0xf0]  ;;  %v14894_v36 = vld [vmem:[#allocation7 + $0x24c] sm:$0xf]  ;;  %v11765_v48 = vld [vmem:[#allocation7 + $0x70] sm:$0xf0] }
 0x339   :  { %7522 = vmatpush.bf16.msra.mxu2 %v13388_v57  ;;  %7706 = vmatpush.bf16.msra.mxu0 %v12820_v55  ;;  %v15210_v57 = vld [vmem:[#allocation7 + $0xc24] sm:$0xf0]  ;;  %v7283_v60 = vpop.f32.mrf.mxu3  ;;  %v12432_v55 = vor.u32 %v14998_v12, %v12429_v5  ;;  %v14966_v12 = vld [vmem:[#allocation7 + $0x48c] sm:$0xf] }
 0x33a   :  { %7435 = vmatpush.bf16.msra.mxu3 %v13512_v45  ;;  %v14855_v45 = vld [vmem:[#allocation7 + $0x114] sm:$0xf]  ;;  %v12301_v5 = vld [vmem:[#allocation7 + $0x4a8] sm:$0xf0] }
 0x33b   :  { %7510 = vmatpush.bf16.msra.mxu1 %v13100_v8  ;;  %v11957_v8 = vld [vmem:[#allocation7 + $0x1f0] sm:$0xf0]  ;;  %v14958_v33 = vld [vmem:[#allocation7 + $0x44c] sm:$0xf] }
 0x33c   :  { %v11960_v52 = vor.u32 %v14879_v63, %v11957_v8  ;;  %v12077_v63 = vld [vmem:[#allocation7 + $0x2e8] sm:$0xf0] }
 0x33d   :  { %7523 = vmatpush.bf16.msra.mxu2 %v13356_v40  ;;  %7707 = vmatpush.bf16.msra.mxu0 %v12788_v42  ;;  %v13260_v40 = vor.u32 %v15210_v57, %v13259_v43  ;;  %v12109_v42 = vld [vmem:[#allocation7 + $0x328] sm:$0xf0]  ;;  %v11861_v57 = vld [vmem:[#allocation7 + $0x130] sm:$0xf0] }
 0x33e   :  { %7480 = vmatpush.bf16.msrb.mxu3 %v12716_v26  ;;  %v12365_v43 = vld [vmem:[#allocation7 + $0x528] sm:$0xf0] }
 0x33f   :  { %7511 = vmatpush.bf16.msra.mxu1 %v13068_v18  ;;  %v12651_v18 = vld [vmem:[#allocation7 + $0x748] sm:$0xf]  ;;  %7436 = vmatmul.bf16.vlgmr.msra.gmra.mxu3 %v16226_v41  ;;  %v12368_v60 = vor.u32 %v14982_v9, %v12365_v43  ;;  %v14974_v8 = vld [vmem:[#allocation7 + $0x4cc] sm:$0xf]  ;;  %v12272_v9 = vor.u32 %v14958_v33, %v12269_v62  ;;  %v12917_v62 = vld [vmem:[#allocation7 + $0x970] sm:$0xf0] }
 0x340   :  { %v12652_v2 = vor.u32 %v15058_v22, %v12651_v18  ;;  %v12523_v18 = vld [vmem:[#allocation7 + $0x648] sm:$0xf]  ;;  %v14886_v43 = vld [vmem:[#allocation7 + $0x20c] sm:$0xf] }
 0x341   :  { %7524 = vmatpush.bf16.msra.mxu2 %v13324_v23  ;;  %7708 = vmatpush.bf16.msra.mxu0 %v12756_v6  ;;  %v12176_v23 = vor.u32 %v14934_v54, %v12173_v24  ;;  %v16249_v59 = vpop.f32.mrf.mxu0  ;;  %v12333_v6 = vld [vmem:[#allocation7 + $0x4e8] sm:$0xf0]  ;;  %v15026_v22 = vld [vmem:[#allocation7 + $0x664] sm:$0xf0] }
 0x342   :  { %7481 = vmatpush.bf16.msrb.mxu3 %v12684_v53  ;;  %v14902_v54 = vld [vmem:[#allocation7 + $0x28c] sm:$0xf]  ;;  %v12556_v53 = vor.u32 %v15034_v46, %v12555_v4  ;;  %v12524_v61 = vor.u32 %v15026_v22, %v12523_v18  ;;  %v15322_v4 = vld [vmem:[#allocation7 + $0xfa4] sm:$0xf0] }
 0x343   :  { %7512 = vmatpush.bf16.msra.mxu1 %v13036_v7  ;;  %v12144_v7 = vor.u32 %v14926_v30, %v12141_v16  ;;  %v12045_v24 = vld [vmem:[#allocation7 + $0x2a8] sm:$0xf0]  ;;  %v12304_v30 = vor.u32 %v14966_v12, %v12301_v5  ;;  %v11800_v16 = vor.u32 %v14839_v19, %v11797_v17  ;;  %v15127_v19 = vld [vmem:[#allocation7 + $0x994] sm:$0xf]  ;;  %v13675_v18 = vld [vmem:[#allocation7 + $0xf48] sm:$0xf] }
 0x344   :  { %7709 = vmatmul.bf16.vlgmr.msra.gmra.mxu0 %v16137_v3  ;;  %v15254_v12 = vld [vmem:[#allocation7 + $0xd8c] sm:$0xf]  ;;  %v12949_v17 = vld [vmem:[#allocation7 + $0x9b0] sm:$0xf0]  ;;  %v15314_v22 = vld [vmem:[#allocation7 + $0xf64] sm:$0xf0] }
 0x345   :  { %7525 = vmatpush.bf16.msra.mxu2 %v13292_v39  ;;  %7753 = vmatpush.bf16.msrb.mxu0 %v11960_v52  ;;  %v14918_v39 = vld [vmem:[#allocation7 + $0x30c] sm:$0xf]  ;;  %v11832_v52 = vor.u32 %v14847_v31, %v11829_v37  ;;  %v13707_v37 = vld [vmem:[#allocation7 + $0xf88] sm:$0xf] }
 0x346   :  { %7482 = vmatpush.bf16.msrb.mxu3 %v12652_v2  ;;  %v12112_v14 = vor.u32 %v14918_v39, %v12109_v42  ;;  %v12013_v2 = vld [vmem:[#allocation7 + $0x268] sm:$0xf0]  ;;  %v13739_v39 = vld [vmem:[#allocation7 + $0xfc8] sm:$0xf] }
 0x347   :  { %7513 = vmatpush.bf16.msra.mxu1 %v13004_v51  ;;  %v7307_v26 = vpop.f32.mrf.mxu1  ;;  %v11864_v51 = vor.u32 %v14855_v45, %v11861_v57  ;;  %v15330_v42 = vld [vmem:[#allocation7 + $0xfe4] sm:$0xf0]  ;;  %v11981_v45 = vld [vmem:[#allocation7 + $0x228] sm:$0xf0] }
 0x348   :  { %v16247_v58 = vadd.f32 %v7307_v26, %v7295_v50  ;;  %v14950_v57 = vld [vmem:[#allocation7 + $0x40c] sm:$0xf]  ;;  %v11733_v26 = vld [vmem:[#allocation7 + $0x30] sm:$0xf0] }
 0x349   :  { %7526 = vmatpush.bf16.msra.mxu2 %v13260_v40  ;;  %7754 = vmatpush.bf16.msrb.mxu0 %v11928_v25  ;;  %v12588_v40 = vor.u32 %v15042_v27, %v12587_v56  ;;  %v7504_v25 = vpop.f32.mrf.mxu0  ;;  %v12237_v56 = vld [vmem:[#allocation7 + $0x428] sm:$0xf0]  ;;  %v14823_v27 = vld [vmem:[#allocation7 + $0x14] sm:$0xf] }
 0x34a   :  { %7514 = vmatmul.bf16.vlgmr.msra.gmra.mxu1 %v16193_v47  ;;  %7483 = vmatpush.bf16.msrb.mxu3 %v12620_v32  ;;  %v11768_v32 = vor.u32 %v14831_v1, %v11765_v48  ;;  %v12240_v31 = vor.u32 %v14950_v57, %v12237_v56  ;;  %v11736_v46 = vor.u32 %v14823_v27, %v11733_v26  ;;  %v13453_v5 = vld [vmem:[#allocation7 + $0xda8] sm:$0xf0]  ;;  %v4658_v1 = vperm.slane %v16229_v10, 1  ;;  %v13643_v48 = vld [vmem:[#allocation7 + $0xf08] sm:$0xf] }
 0x34b   :  { %7558 = vmatpush.bf16.msrb.mxu1 %v12208_v0  ;;  %v12080_v0 = vor.u32 %v14910_v28, %v12077_v63  ;;  %v15262_v28 = vld [vmem:[#allocation7 + $0xdcc] sm:$0xf]  ;;  %v11984_v63 = vor.u32 %v14886_v43, %v11981_v45  ;;  %v12952_v25 = vor.u32 %v15127_v19, %v12949_v17  ;;  %v12885_v56 = vld [vmem:[#allocation7 + $0x930] sm:$0xf0]  ;;  %v13611_v26 = vld [vmem:[#allocation7 + $0xec8] sm:$0xf] }
 0x34c   :  { %7527 = vmatmul.bf16.vlgmr.msra.gmra.mxu2 %v16199_v49  ;;  %v13421_v33 = vld [vmem:[#allocation7 + $0xd68] sm:$0xf0]  ;;  %v7347_v27 = vadd.f32 %v16213_v21, %v4658_v1  ;;  %v15103_v21 = vld [vmem:[#allocation7 + $0x8d4] sm:$0xf] }
 0x34d   :  { %7571 = vmatpush.bf16.msrb.mxu2 %v12464_v44  ;;  %7755 = vmatpush.bf16.msrb.mxu0 %v11896_v38  ;;  %v12336_v44 = vor.u32 %v14974_v8, %v12333_v6  ;;  %v12016_v38 = vor.u32 %v14894_v36, %v12013_v2  ;;  %v13485_v8 = vld [vmem:[#allocation7 + $0xde8] sm:$0xf0]  ;;  %v12981_v6 = vld [vmem:[#allocation7 + $0x9f0] sm:$0xf0]  ;;  %v13676_v2 = vor.u32 %v15314_v22, %v13675_v18 }
 0x34e   :  { %7484 = vmatpush.bf16.msrb.mxu3 %v12588_v40  ;;  %v15135_v40 = vld [vmem:[#allocation7 + $0x9d4] sm:$0xf]  ;;  %v15246_v36 = vld [vmem:[#allocation7 + $0xd4c] sm:$0xf] }
 0x34f   :  { %7559 = vmatpush.bf16.msrb.mxu1 %v12176_v23  ;;  %v7309_v23 = vpop.f32.mrf.mxu1  ;;  %v15238_v43 = vld [vmem:[#allocation7 + $0xd0c] sm:$0xf]  ;;  %v15095_v22 = vld [vmem:[#allocation7 + $0x894] sm:$0xf] }
 0x350   :  { %v13389_v57 = vld [vmem:[#allocation7 + $0xd28] sm:$0xf0] }
 0x351   :  { %7572 = vmatpush.bf16.msrb.mxu2 %v12432_v55  ;;  %7756 = vmatpush.bf16.msrb.mxu0 %v11864_v51  ;;  %v12048_v55 = vor.u32 %v14902_v54, %v12045_v24  ;;  %v13229_v51 = vld [vmem:[#allocation7 + $0xbe8] sm:$0xf0] }
 0x352   :  { %7485 = vmatpush.bf16.msrb.mxu3 %v12556_v53  ;;  %v15190_v54 = vld [vmem:[#allocation7 + $0xb8c] sm:$0xf]  ;;  %v13708_v53 = vor.u32 %v15322_v4, %v13707_v37 }
 0x353   :  { %7560 = vmatpush.bf16.msrb.mxu1 %v12144_v7  ;;  %v12491_v7 = vld [vmem:[#allocation7 + $0x608] sm:$0xf]  ;;  %v13197_v24 = vld [vmem:[#allocation7 + $0xba8] sm:$0xf0] }
 0x354   :  { %v13200_v23 = vor.u32 %v15190_v54, %v13197_v24  ;;  %v13357_v4 = vld [vmem:[#allocation7 + $0xce8] sm:$0xf0] }
 0x355   :  { %7573 = vmatpush.bf16.msrb.mxu2 %v12400_v29  ;;  %7757 = vmatpush.bf16.msrb.mxu0 %v11832_v52  ;;  %v15018_v29 = vld [vmem:[#allocation7 + $0x624] sm:$0xf0]  ;;  %v12984_v52 = vor.u32 %v15135_v40, %v12981_v6  ;;  %v13101_v6 = vld [vmem:[#allocation7 + $0xae8] sm:$0xf0] }
 0x356   :  { %7486 = vmatpush.bf16.msrb.mxu3 %v12524_v61  ;;  %v12492_v50 = vor.u32 %v15018_v29, %v12491_v7  ;;  %v15119_v61 = vld [vmem:[#allocation7 + $0x954] sm:$0xf]  ;;  %v15306_v7 = vld [vmem:[#allocation7 + $0xf24] sm:$0xf0]  ;;  %v15222_v19 = vld [vmem:[#allocation7 + $0xc8c] sm:$0xf] }
 0x357   :  { %7561 = vmatpush.bf16.msrb.mxu1 %v12112_v14  ;;  %v13740_v14 = vor.u32 %v15330_v42, %v13739_v39  ;;  %v12920_v39 = vor.u32 %v15119_v61, %v12917_v62  ;;  %v13644_v45 = vor.u32 %v15306_v7, %v13643_v48  ;;  %v13325_v18 = vld [vmem:[#allocation7 + $0xca8] sm:$0xf0] }
 0x358   :  { %v15150_v61 = vld [vmem:[#allocation7 + $0xa4c] sm:$0xf] }
 0x359   :  { %7574 = vmatpush.bf16.msrb.mxu2 %v12368_v60  ;;  %7758 = vmatpush.bf16.msrb.mxu0 %v11800_v16  ;;  %v15198_v60 = vld [vmem:[#allocation7 + $0xbcc] sm:$0xf] }
 0x35a   :  { %7487 = vmatpush.bf16.msrb.mxu3 %v12492_v50  ;;  %v13165_v16 = vld [vmem:[#allocation7 + $0xb68] sm:$0xf0]  ;;  %v7320_v42 = vpop.f32.mrf.mxu2  ;;  %v15111_v50 = vld [vmem:[#allocation7 + $0x914] sm:$0xf] }
 0x35b   :  { %7562 = vmatpush.bf16.msrb.mxu1 %v12080_v0  ;;  %v13232_v0 = vor.u32 %v15198_v60, %v13229_v51  ;;  %v16257_v10 = vadd.f32 %v7320_v42, %v16247_v58  ;;  %v12888_v40 = vor.u32 %v15111_v50, %v12885_v56  ;;  %v15166_v58 = vld [vmem:[#allocation7 + $0xacc] sm:$0xf]  ;;  %v15274_v42 = vld [vmem:[#allocation7 + $0xe24] sm:$0xf0] }
 0x35c   :  { %v13037_v62 = vld [vmem:[#allocation7 + $0xa68] sm:$0xf0] }
 0x35d   :  { %7575 = vmatpush.bf16.msrb.mxu2 %v12336_v44  ;;  %7759 = vmatpush.bf16.msrb.mxu0 %v11768_v32  ;;  %v13488_v44 = vor.u32 %v15262_v28, %v13485_v8  ;;  %v13133_v32 = vld [vmem:[#allocation7 + $0xb28] sm:$0xf0]  ;;  %v13392_v8 = vor.u32 %v15238_v43, %v13389_v57 }
 0x35e   :  { %7532 = vmatpush.bf16.msra.mxu3 %v13740_v14  ;;  %v15298_v14 = vld [vmem:[#allocation7 + $0xee4] sm:$0xf0]  ;;  %v15214_v1 = vld [vmem:[#allocation7 + $0xc4c] sm:$0xf] }
 0x35f   :  { %7563 = vmatpush.bf16.msrb.mxu1 %v12048_v55  ;;  %7488 = vmatmul.bf16.vlgmr.msrb.gmra.mxu3 %v16172_v11  ;;  %v13456_v55 = vor.u32 %v15254_v12, %v13453_v5  ;;  %v13612_v37 = vor.u32 %v15298_v14, %v13611_v26  ;;  %v13069_v5 = vld [vmem:[#allocation7 + $0xaa8] sm:$0xf0] }
 0x360   :  { %v13293_v7 = vld [vmem:[#allocation7 + $0xc68] sm:$0xf0] }
 0x361   :  { %7576 = vmatpush.bf16.msrb.mxu2 %v12304_v30  ;;  %7760 = vmatpush.bf16.msrb.mxu0 %v11736_v46  ;;  %v15182_v30 = vld [vmem:[#allocation7 + $0xb4c] sm:$0xf]  ;;  %v12853_v46 = vld [vmem:[#allocation7 + $0x8f0] sm:$0xf0] }
 0x362   :  { %7533 = vmatpush.bf16.msra.mxu3 %v13708_v53  ;;  %v13168_v29 = vor.u32 %v15182_v30, %v13165_v16  ;;  %v12856_v24 = vor.u32 %v15103_v21, %v12853_v46  ;;  %v7322_v12 = vpop.f32.mrf.mxu2  ;;  %v15158_v53 = vld [vmem:[#allocation7 + $0xa8c] sm:$0xf]  ;;  %v15011_v21 = vld [vmem:[#allocation7 + $0x5ec] sm:$0xf0]  ;;  %v11963_v46 = vld [vmem:[#allocation7 + $0x1d8] sm:$0xf] }
 0x363   :  { %7564 = vmatpush.bf16.msrb.mxu1 %v12016_v38  ;;  %v13424_v38 = vor.u32 %v15246_v36, %v13421_v33  ;;  %v13072_v16 = vor.u32 %v15158_v53, %v13069_v5  ;;  %v12717_v43 = vld [vmem:[#allocation7 + $0x7e8] sm:$0xf0]  ;;  %v12179_v5 = vld [vmem:[#allocation7 + $0x390] sm:$0xf] }
 0x364   :  { %7761 = vmatmul.bf16.vlgmr.msrb.gmra.mxu0 %v16110_v13  ;;  %v15142_v50 = vld [vmem:[#allocation7 + $0xa0c] sm:$0xf] }
 0x365   :  { %7577 = vmatpush.bf16.msrb.mxu2 %v12272_v9  ;;  %7805 = vmatpush.bf16.msra.mxu0 %v12984_v52  ;;  %v15174_v9 = vld [vmem:[#allocation7 + $0xb0c] sm:$0xf]  ;;  %v13104_v52 = vor.u32 %v15166_v58, %v13101_v6  ;;  %v12211_v6 = vld [vmem:[#allocation7 + $0x3d0] sm:$0xf] }
 0x366   :  { %7534 = vmatpush.bf16.msra.mxu3 %v13676_v2  ;;  %v13136_v51 = vor.u32 %v15174_v9, %v13133_v32  ;;  %v13328_v2 = vor.u32 %v15222_v19, %v13325_v18  ;;  %v13040_v9 = vor.u32 %v15150_v61, %v13037_v62  ;;  %v15070_v32 = vld [vmem:[#allocation7 + $0x7cc] sm:$0xf]  ;;  %v14939_v19 = vld [vmem:[#allocation7 + $0x3ac] sm:$0xf0] }
 0x367   :  { %7565 = vmatpush.bf16.msrb.mxu1 %v11984_v63  ;;  %v7359_v60 = vpop.f32.mrf.mxu1  ;;  %v16262_v63 = vpop.f32.mrf.mxu0  ;;  %v13005_v56 = vld [vmem:[#allocation7 + $0xa28] sm:$0xf0]  ;;  %v12147_v61 = vld [vmem:[#allocation7 + $0x350] sm:$0xf] }
 0x368   :  { %v16260_v28 = vadd.f32 %v7359_v60, %v7347_v27  ;;  %v15206_v27 = vld [vmem:[#allocation7 + $0xc0c] sm:$0xf]  ;;  %v14931_v62 = vld [vmem:[#allocation7 + $0x36c] sm:$0xf0] }
 0x369   :  { %7578 = vmatpush.bf16.msrb.mxu2 %v12240_v31  ;;  %7806 = vmatpush.bf16.msra.mxu0 %v12952_v25  ;;  %v15230_v31 = vld [vmem:[#allocation7 + $0xccc] sm:$0xf]  ;;  %v15282_v25 = vld [vmem:[#allocation7 + $0xe64] sm:$0xf0] }
 0x36a   :  { %7566 = vmatmul.bf16.vlgmr.msrb.gmra.mxu1 %v16168_v20  ;;  %7535 = vmatpush.bf16.msra.mxu3 %v13644_v45  ;;  %v13360_v54 = vor.u32 %v15230_v31, %v13357_v4  ;;  %v13296_v45 = vor.u32 %v15214_v1, %v13293_v7  ;;  %v13261_v60 = vld [vmem:[#allocation7 + $0xc28] sm:$0xf0]  ;;  %v14947_v31 = vld [vmem:[#allocation7 + $0x3ec] sm:$0xf0]  ;;  %v13008_v4 = vor.u32 %v15142_v50, %v13005_v56 }
 0x36b   :  { %7610 = vmatpush.bf16.msra.mxu1 %v13232_v0  ;;  %v13579_v0 = vld [vmem:[#allocation7 + $0xe88] sm:$0xf]  ;;  %v12212_v12 = vor.u32 %v14947_v31, %v12211_v6  ;;  %v12403_v1 = vld [vmem:[#allocation7 + $0x550] sm:$0xf] }
 0x36c   :  { %7579 = vmatmul.bf16.vlgmr.msrb.gmra.mxu2 %v16170_v34  ;;  %v14995_v7 = vld [vmem:[#allocation7 + $0x56c] sm:$0xf0] }
 0x36d   :  { %7623 = vmatpush.bf16.msra.mxu2 %v13488_v44  ;;  %7807 = vmatpush.bf16.msra.mxu0 %v12920_v39  ;;  %v15290_v44 = vld [vmem:[#allocation7 + $0xea4] sm:$0xf0]  ;;  %v12371_v50 = vld [vmem:[#allocation7 + $0x510] sm:$0xf] }
 0x36e   :  { %7536 = vmatpush.bf16.msra.mxu3 %v13612_v37  ;;  %v13580_v17 = vor.u32 %v15290_v44, %v13579_v0  ;;  %v13515_v39 = vld [vmem:[#allocation7 + $0xe08] sm:$0xf]  ;;  %v12467_v37 = vld [vmem:[#allocation7 + $0x5d0] sm:$0xf]  ;;  %v14884_v0 = vld [vmem:[#allocation7 + $0x1f4] sm:$0xf0]  ;;  %v13264_v44 = vor.u32 %v15206_v27, %v13261_v60 }
 0x36f   :  { %7611 = vmatpush.bf16.msra.mxu1 %v13200_v23  ;;  %v12821_v23 = vld [vmem:[#allocation7 + $0x8b0] sm:$0xf0]  ;;  %v7361_v30 = vpop.f32.mrf.mxu1  ;;  %v7556_v36 = vpop.f32.mrf.mxu0  ;;  %v13516_v26 = vor.u32 %v15274_v42, %v13515_v39  ;;  %v12468_v53 = vor.u32 %v15011_v21, %v12467_v37  ;;  %v15046_v39 = vld [vmem:[#allocation7 + $0x70c] sm:$0xf]  ;;  %v14987_v27 = vld [vmem:[#allocation7 + $0x52c] sm:$0xf0] }
 0x370   :  { %v12824_v33 = vor.u32 %v15095_v22, %v12821_v23  ;;  %v7372_v14 = vpop.f32.mrf.mxu2  ;;  %v15003_v22 = vld [vmem:[#allocation7 + $0x5ac] sm:$0xf0]  ;;  %v11931_v23 = vld [vmem:[#allocation7 + $0x198] sm:$0xf]  ;;  %v12653_v30 = vld [vmem:[#allocation7 + $0x768] sm:$0xf0]  ;;  %v12372_v31 = vor.u32 %v14987_v27, %v12371_v50 }
 0x371   :  { %7624 = vmatpush.bf16.msra.mxu2 %v13456_v55  ;;  %7808 = vmatpush.bf16.msra.mxu0 %v12888_v40  ;;  %v13547_v55 = vld [vmem:[#allocation7 + $0xe48] sm:$0xf]  ;;  %v12720_v40 = vor.u32 %v15070_v32, %v12717_v43  ;;  %v16265_v58 = vadd.f32 %v7372_v14, %v16260_v28  ;;  %v11964_v28 = vor.u32 %v14884_v0, %v11963_v46  ;;  %v12621_v42 = vld [vmem:[#allocation7 + $0x728] sm:$0xf0]  ;;  %v14860_v14 = vld [vmem:[#allocation7 + $0x134] sm:$0xf0] }
 0x372   :  { %7537 = vmatpush.bf16.msra.mxu3 %v13580_v17  ;;  %v13548_v48 = vor.u32 %v15282_v25, %v13547_v55  ;;  %v12435_v17 = vld [vmem:[#allocation7 + $0x590] sm:$0xf]  ;;  %v14876_v55 = vld [vmem:[#allocation7 + $0x1b4] sm:$0xf0]  ;;  %v15054_v25 = vld [vmem:[#allocation7 + $0x74c] sm:$0xf]  ;;  %v12404_v32 = vor.u32 %v14995_v7, %v12403_v1  ;;  %v12624_v56 = vor.u32 %v15046_v39, %v12621_v42 }
 0x373   :  { %7612 = vmatpush.bf16.msra.mxu1 %v13168_v29  ;;  %v15087_v29 = vld [vmem:[#allocation7 + $0x854] sm:$0xf]  ;;  %v14915_v21 = vld [vmem:[#allocation7 + $0x2ec] sm:$0xf0]  ;;  %v11771_v42 = vld [vmem:[#allocation7 + $0x58] sm:$0xf] }
 0x374   :  { %v12339_v46 = vld [vmem:[#allocation7 + $0x4d0] sm:$0xf]  ;;  %v13741_v50 = vld [vmem:[#allocation7 + $0xfe8] sm:$0xf0] }
 0x375   :  { %7625 = vmatpush.bf16.msra.mxu2 %v13424_v38  ;;  %7809 = vmatpush.bf16.msra.mxu0 %v12856_v24  ;;  %v12789_v38 = vld [vmem:[#allocation7 + $0x870] sm:$0xf0]  ;;  %v14899_v7 = vld [vmem:[#allocation7 + $0x26c] sm:$0xf0] }
 0x376   :  { %v12792_v57 = vor.u32 %v15087_v29, %v12789_v38  ;;  %7538 = vmatpush.bf16.msra.mxu3 %v13548_v48  ;;  %v12656_v48 = vor.u32 %v15054_v25, %v12653_v30  ;;  %v11899_v29 = vld [vmem:[#allocation7 + $0x158] sm:$0xf]  ;;  %v14963_v39 = vld [vmem:[#allocation7 + $0x46c] sm:$0xf0] }
 0x377   :  { %7613 = vmatpush.bf16.msra.mxu1 %v13136_v51  ;;  %v15079_v51 = vld [vmem:[#allocation7 + $0x814] sm:$0xf]  ;;  %v14868_v38 = vld [vmem:[#allocation7 + $0x174] sm:$0xf0] }
 0x378   :  { %v7374_v36 = vpop.f32.mrf.mxu2  ;;  %v11900_v43 = vor.u32 %v14868_v38, %v11899_v29  ;;  %v11803_v25 = vld [vmem:[#allocation7 + $0x98] sm:$0xf]  ;;  %v12275_v29 = vld [vmem:[#allocation7 + $0x450] sm:$0xf] }
 0x379   :  { %7626 = vmatpush.bf16.msra.mxu2 %v13392_v8  ;;  %7810 = vmatpush.bf16.msra.mxu0 %v12824_v33  ;;  %v12757_v8 = vld [vmem:[#allocation7 + $0x830] sm:$0xf0]  ;;  %v11932_v33 = vor.u32 %v14876_v55, %v11931_v23  ;;  %v14971_v55 = vld [vmem:[#allocation7 + $0x4ac] sm:$0xf0]  ;;  %v14844_v30 = vld [vmem:[#allocation7 + $0xb4] sm:$0xf0] }
 0x37a   :  { %7539 = vmatpush.bf16.msra.mxu3 %v13516_v26  ;;  %v12760_v24 = vor.u32 %v15079_v51, %v12757_v8  ;;  %v11867_v26 = vld [vmem:[#allocation7 + $0x118] sm:$0xf]  ;;  %v15038_v51 = vld [vmem:[#allocation7 + $0x6cc] sm:$0xf]  ;;  %v11804_v1 = vor.u32 %v14844_v30, %v11803_v25  ;;  %v15195_v25 = vld [vmem:[#allocation7 + $0xbac] sm:$0xf0] }
 0x37b   :  { %7614 = vmatpush.bf16.msra.mxu1 %v13104_v52  ;;  %v15062_v52 = vld [vmem:[#allocation7 + $0x78c] sm:$0xf]  ;;  %v11868_v37 = vor.u32 %v14860_v14, %v11867_v26  ;;  %v11987_v26 = vld [vmem:[#allocation7 + $0x210] sm:$0xf] }
 0x37c   :  { %v12589_v8 = vld [vmem:[#allocation7 + $0x6e8] sm:$0xf0]  ;;  %v14891_v14 = vld [vmem:[#allocation7 + $0x22c] sm:$0xf0] }
 0x37d   :  { %7627 = vmatpush.bf16.msra.mxu2 %v13360_v54  ;;  %7811 = vmatpush.bf16.msra.mxu0 %v12792_v57  ;;  %v12685_v54 = vld [vmem:[#allocation7 + $0x7a8] sm:$0xf0]  ;;  %v14923_v57 = vld [vmem:[#allocation7 + $0x32c] sm:$0xf0]  ;;  %v12592_v0 = vor.u32 %v15038_v51, %v12589_v8 }
 0x37e   :  { %7584 = vmatpush.bf16.msrb.mxu3 %v12720_v40  ;;  %v12688_v18 = vor.u32 %v15062_v52, %v12685_v54  ;;  %v11835_v52 = vld [vmem:[#allocation7 + $0xd8] sm:$0xf]  ;;  %v15022_v36 = vld [vmem:[#allocation7 + $0x64c] sm:$0xf]  ;;  %v12243_v51 = vld [vmem:[#allocation7 + $0x410] sm:$0xf] }
 0x37f   :  { %7615 = vmatpush.bf16.msra.mxu1 %v13072_v16  ;;  %7540 = vmatmul.bf16.vlgmr.msra.gmra.mxu3 %v16226_v41  ;;  %v12180_v16 = vor.u32 %v14939_v19, %v12179_v5  ;;  %v14852_v54 = vld [vmem:[#allocation7 + $0xf4] sm:$0xf0]  ;;  %v12051_v19 = vld [vmem:[#allocation7 + $0x290] sm:$0xf] }
 0x380   :  { %v11836_v5 = vor.u32 %v14852_v54, %v11835_v52  ;;  %v11988_v52 = vor.u32 %v14891_v14, %v11987_v26  ;;  %v15267_v54 = vld [vmem:[#allocation7 + $0xdec] sm:$0xf0] }
 0x381   :  { %7628 = vmatpush.bf16.msra.mxu2 %v13328_v2  ;;  %7812 = vmatpush.bf16.msra.mxu0 %v12760_v24  ;;  %v12436_v2 = vor.u32 %v15003_v22, %v12435_v17  ;;  %v16273_v40 = vpop.f32.mrf.mxu0  ;;  %v15030_v24 = vld [vmem:[#allocation7 + $0x68c] sm:$0xf]  ;;  %v14907_v17 = vld [vmem:[#allocation7 + $0x2ac] sm:$0xf0] }
 0x382   :  { %7585 = vmatpush.bf16.msrb.mxu3 %v12688_v18  ;;  %v12307_v18 = vld [vmem:[#allocation7 + $0x490] sm:$0xf] }
 0x383   :  { %7616 = vmatpush.bf16.msra.mxu1 %v13040_v9  ;;  %v12148_v9 = vor.u32 %v14931_v62, %v12147_v61  ;;  %v12052_v61 = vor.u32 %v14907_v17, %v12051_v19  ;;  %v12308_v62 = vor.u32 %v14971_v55, %v12307_v18  ;;  %v13203_v55 = vld [vmem:[#allocation7 + $0xb90] sm:$0xf] }
 0x384   :  { %7813 = vmatmul.bf16.vlgmr.msra.gmra.mxu0 %v16137_v3  ;;  %v13459_v30 = vld [vmem:[#allocation7 + $0xd90] sm:$0xf] }
 0x385   :  { %7629 = vmatpush.bf16.msra.mxu2 %v13296_v45  ;;  %7857 = vmatpush.bf16.msrb.mxu0 %v11964_v28  ;;  %v12115_v45 = vld [vmem:[#allocation7 + $0x310] sm:$0xf] }
 0x386   :  { %7586 = vmatpush.bf16.msrb.mxu3 %v12656_v48  ;;  %v12116_v6 = vor.u32 %v14923_v57, %v12115_v45  ;;  %v12019_v48 = vld [vmem:[#allocation7 + $0x250] sm:$0xf]  ;;  %v15326_v57 = vld [vmem:[#allocation7 + $0xfcc] sm:$0xf] }
 0x387   :  { %7617 = vmatpush.bf16.msra.mxu1 %v13008_v4  ;;  %v16271_v60 = vpop.f32.mrf.mxu1  ;;  %v12083_v4 = vld [vmem:[#allocation7 + $0x2d0] sm:$0xf]  ;;  %v12020_v45 = vor.u32 %v14899_v7, %v12019_v48  ;;  %v13204_v7 = vor.u32 %v15195_v25, %v13203_v55  ;;  %v12859_v25 = vld [vmem:[#allocation7 + $0x8d8] sm:$0xf] }
 0x388   :  { %v15235_v55 = vld [vmem:[#allocation7 + $0xcec] sm:$0xf0] }
 0x389   :  { %7630 = vmatpush.bf16.msra.mxu2 %v13264_v44  ;;  %7858 = vmatpush.bf16.msrb.mxu0 %v11932_v33  ;;  %v14979_v44 = vld [vmem:[#allocation7 + $0x4ec] sm:$0xf0]  ;;  %v7608_v33 = vpop.f32.mrf.mxu0 }
 0x38a   :  { %7618 = vmatmul.bf16.vlgmr.msra.gmra.mxu1 %v16193_v47  ;;  %7587 = vmatpush.bf16.msrb.mxu3 %v12624_v56  ;;  %v12340_v28 = vor.u32 %v14979_v44, %v12339_v46  ;;  %v12276_v56 = vor.u32 %v14963_v39, %v12275_v29  ;;  %v13235_v46 = vld [vmem:[#allocation7 + $0xbd0] sm:$0xf]  ;;  %v15132_v33 = vld [vmem:[#allocation7 + $0x9b4] sm:$0xf0] }
 0x38b   :  { %7662 = vmatpush.bf16.msrb.mxu1 %v12212_v12  ;;  %v12557_v12 = vld [vmem:[#allocation7 + $0x6a8] sm:$0xf0]  ;;  %v13491_v44 = vld [vmem:[#allocation7 + $0xdd0] sm:$0xf] }
 0x38c   :  { %7631 = vmatmul.bf16.vlgmr.msra.gmra.mxu2 %v16199_v49  ;;  %v12560_v23 = vor.u32 %v15030_v24, %v12557_v12  ;;  %v12987_v24 = vld [vmem:[#allocation7 + $0x9d8] sm:$0xf]  ;;  %v13492_v18 = vor.u32 %v15267_v54, %v13491_v44  ;;  %v13171_v39 = vld [vmem:[#allocation7 + $0xb50] sm:$0xf]  ;;  %v13613_v54 = vld [vmem:[#allocation7 + $0xee8] sm:$0xf0] }
 0x38d   :  { %7675 = vmatpush.bf16.msrb.mxu2 %v12468_v53  ;;  %7859 = vmatpush.bf16.msrb.mxu0 %v11900_v43  ;;  %v12084_v53 = vor.u32 %v14915_v21, %v12083_v4  ;;  %v12493_v43 = vld [vmem:[#allocation7 + $0x628] sm:$0xf0]  ;;  %v14828_v4 = vld [vmem:[#allocation7 + $0x34] sm:$0xf0]  ;;  %v13744_v21 = vor.u32 %v15326_v57, %v13741_v50 }
 0x38e   :  { %7588 = vmatpush.bf16.msrb.mxu3 %v12592_v0  ;;  %v15203_v0 = vld [vmem:[#allocation7 + $0xbec] sm:$0xf0]  ;;  %v15140_v12 = vld [vmem:[#allocation7 + $0x9f4] sm:$0xf0]  ;;  %v15302_v50 = vld [vmem:[#allocation7 + $0xf0c] sm:$0xf] }
 0x38f   :  { %7663 = vmatpush.bf16.msrb.mxu1 %v12180_v16  ;;  %v16275_v22 = vpop.f32.mrf.mxu2  ;;  %v7413_v16 = vpop.f32.mrf.mxu1  ;;  %v13236_v17 = vor.u32 %v15203_v0, %v13235_v46  ;;  %v15124_v57 = vld [vmem:[#allocation7 + $0x974] sm:$0xf0] }
 0x390   :  { %v15116_v46 = vld [vmem:[#allocation7 + $0x934] sm:$0xf0] }
 0x391   :  { %7676 = vmatpush.bf16.msrb.mxu2 %v12436_v2  ;;  %7860 = vmatpush.bf16.msrb.mxu0 %v11868_v37  ;;  %v12525_v2 = vld [vmem:[#allocation7 + $0x668] sm:$0xf0]  ;;  %v11739_v37 = vld [vmem:[#allocation7 + $0x18] sm:$0xf] }
 0x392   :  { %7589 = vmatpush.bf16.msrb.mxu3 %v12560_v23  ;;  %v12528_v38 = vor.u32 %v15022_v36, %v12525_v2  ;;  %v11740_v19 = vor.u32 %v14828_v4, %v11739_v37  ;;  %v12988_v23 = vor.u32 %v15140_v12, %v12987_v24  ;;  %v15259_v36 = vld [vmem:[#allocation7 + $0xdac] sm:$0xf0]  ;;  %v12955_v2 = vld [vmem:[#allocation7 + $0x998] sm:$0xf] }
 0x393   :  { %7664 = vmatpush.bf16.msrb.mxu1 %v12148_v9  ;;  %v14836_v9 = vld [vmem:[#allocation7 + $0x74] sm:$0xf0]  ;;  %v13460_v29 = vor.u32 %v15259_v36, %v13459_v30  ;;  %v15243_v4 = vld [vmem:[#allocation7 + $0xd2c] sm:$0xf0]  ;;  %v13581_v36 = vld [vmem:[#allocation7 + $0xea8] sm:$0xf0] }
 0x394   :  { %v11772_v27 = vor.u32 %v14836_v9, %v11771_v42  ;;  %v15187_v42 = vld [vmem:[#allocation7 + $0xb6c] sm:$0xf0]  ;;  %v15108_v30 = vld [vmem:[#allocation7 + $0x8f4] sm:$0xf0] }
 0x395   :  { %7677 = vmatpush.bf16.msrb.mxu2 %v12404_v32  ;;  %7861 = vmatpush.bf16.msrb.mxu0 %v11836_v5  ;;  %v15014_v32 = vld [vmem:[#allocation7 + $0x60c] sm:$0xf]  ;;  %v13427_v9 = vld [vmem:[#allocation7 + $0xd50] sm:$0xf] }
 0x396   :  { %7590 = vmatpush.bf16.msrb.mxu3 %v12528_v38  ;;  %v13709_v5 = vld [vmem:[#allocation7 + $0xfa8] sm:$0xf0]  ;;  %v12956_v38 = vor.u32 %v15132_v33, %v12955_v2  ;;  %v12860_v33 = vor.u32 %v15108_v30, %v12859_v25 }
 0x397   :  { %7665 = vmatpush.bf16.msrb.mxu1 %v12116_v6  ;;  %v7426_v8 = vpop.f32.mrf.mxu2  ;;  %v12496_v6 = vor.u32 %v15014_v32, %v12493_v43  ;;  %v15251_v43 = vld [vmem:[#allocation7 + $0xd6c] sm:$0xf0] }
 0x398   :  { %v13428_v26 = vor.u32 %v15251_v43, %v13427_v9  ;;  %v15179_v8 = vld [vmem:[#allocation7 + $0xb2c] sm:$0xf0] }
 0x399   :  { %7678 = vmatpush.bf16.msrb.mxu2 %v12372_v31  ;;  %7862 = vmatpush.bf16.msrb.mxu0 %v11804_v1  ;;  %v14955_v31 = vld [vmem:[#allocation7 + $0x42c] sm:$0xf0]  ;;  %v16278_v1 = vld [vmem:[#allocation8] sm:$0xff] }
 0x39a   :  { %7591 = vmatpush.bf16.msrb.mxu3 %v12496_v6  ;;  %v4659_v48 = vperm.slane %v16278_v1, 2  ;;  %v13395_v6 = vld [vmem:[#allocation7 + $0xd10] sm:$0xf] }
 0x39b   :  { %7666 = vmatpush.bf16.msrb.mxu1 %v12084_v53  ;;  %v12244_v53 = vor.u32 %v14955_v31, %v12243_v51  ;;  %v13139_v51 = vld [vmem:[#allocation7 + $0xb10] sm:$0xf]  ;;  %v7333_v44 = vpop.f32.mrf.mxu3 }
 0x39c   :  { %v7451_v31 = vadd.f32 %v16236_v15, %v4659_v48  ;;  %v13396_v15 = vor.u32 %v15243_v4, %v13395_v6  ;;  %v13331_v48 = vld [vmem:[#allocation7 + $0xc90] sm:$0xf]  ;;  %v15092_v4 = vld [vmem:[#allocation7 + $0x874] sm:$0xf0] }
 0x39d   :  { %7679 = vmatpush.bf16.msrb.mxu2 %v12340_v28  ;;  %7863 = vmatpush.bf16.msrb.mxu0 %v11772_v27  ;;  %v15318_v28 = vld [vmem:[#allocation7 + $0xf8c] sm:$0xf]  ;;  %v13172_v27 = vor.u32 %v15187_v42, %v13171_v39  ;;  %v12827_v39 = vld [vmem:[#allocation7 + $0x898] sm:$0xf] }
 0x39e   :  { %7636 = vmatpush.bf16.msra.mxu3 %v13744_v21  ;;  %v13712_v16 = vor.u32 %v15318_v28, %v13709_v5  ;;  %v12891_v21 = vld [vmem:[#allocation7 + $0x918] sm:$0xf]  ;;  %v13140_v28 = vor.u32 %v15179_v8, %v13139_v51  ;;  %v15155_v51 = vld [vmem:[#allocation7 + $0xa6c] sm:$0xf0] }
 0x39f   :  { %7667 = vmatpush.bf16.msrb.mxu1 %v12052_v61  ;;  %7592 = vmatmul.bf16.vlgmr.msrb.gmra.mxu3 %v16172_v11  ;;  %v15310_v61 = vld [vmem:[#allocation7 + $0xf4c] sm:$0xf]  ;;  %v12892_v5 = vor.u32 %v15116_v46, %v12891_v21  ;;  %v15100_v42 = vld [vmem:[#allocation7 + $0x8b4] sm:$0xf0]  ;;  %v13299_v8 = vld [vmem:[#allocation7 + $0xc50] sm:$0xf] }
 0x3a0   :  { %v15270_v21 = vld [vmem:[#allocation7 + $0xe0c] sm:$0xf] }
 0x3a1   :  { %7680 = vmatpush.bf16.msrb.mxu2 %v12308_v62  ;;  %v13677_v62 = vld [vmem:[#allocation7 + $0xf68] sm:$0xf0]  ;;  %7864 = vmatpush.bf16.msrb.mxu0 %v11740_v19  ;;  %v16285_v12 = vpop.f32.mrf.mxu0  ;;  %v13107_v19 = vld [vmem:[#allocation7 + $0xad0] sm:$0xf] }
 0x3a2   :  { %7637 = vmatpush.bf16.msra.mxu3 %v13712_v16  ;;  %v13680_v32 = vor.u32 %v15310_v61, %v13677_v62  ;;  %v15286_v16 = vld [vmem:[#allocation7 + $0xe8c] sm:$0xf]  ;;  %v13075_v61 = vld [vmem:[#allocation7 + $0xa90] sm:$0xf] }
 0x3a3   :  { %7668 = vmatpush.bf16.msrb.mxu1 %v12020_v45  ;;  %v12923_v45 = vld [vmem:[#allocation7 + $0x958] sm:$0xf]  ;;  %v15163_v62 = vld [vmem:[#allocation7 + $0xaac] sm:$0xf0]  ;;  %v7335_v43 = vpop.f32.mrf.mxu3  ;;  %v13517_v46 = vld [vmem:[#allocation7 + $0xe28] sm:$0xf0] }
 0x3a4   :  { %7865 = vmatmul.bf16.vlgmr.msrb.gmra.mxu0 %v16110_v13  ;;  %v12924_v14 = vor.u32 %v15124_v57, %v12923_v45  ;;  %v15278_v45 = vld [vmem:[#allocation7 + $0xe4c] sm:$0xf] }
 0x3a5   :  { %7681 = vmatpush.bf16.msrb.mxu2 %v12276_v56  ;;  %7909 = vmatpush.bf16.msra.mxu0 %v12988_v23  ;;  %v13645_v56 = vld [vmem:[#allocation7 + $0xf28] sm:$0xf0] }
 0x3a6   :  { %7638 = vmatpush.bf16.msra.mxu3 %v13680_v32  ;;  %v13648_v37 = vor.u32 %v15302_v50, %v13645_v56  ;;  %v13549_v57 = vld [vmem:[#allocation7 + $0xe68] sm:$0xf0]  ;;  %v13076_v56 = vor.u32 %v15163_v62, %v13075_v61  ;;  %v12469_v61 = vld [vmem:[#allocation7 + $0x5f0] sm:$0xf0]  ;;  %v14880_v62 = vld [vmem:[#allocation7 + $0x1dc] sm:$0xf] }
 0x3a7   :  { %7669 = vmatpush.bf16.msrb.mxu1 %v11988_v52  ;;  %v7463_v0 = vpop.f32.mrf.mxu1  ;;  %v15294_v52 = vld [vmem:[#allocation7 + $0xecc] sm:$0xf]  ;;  %v13552_v6 = vor.u32 %v15278_v45, %v13549_v57  ;;  %v14935_v57 = vld [vmem:[#allocation7 + $0x394] sm:$0xf] }
 0x3a8   :  { %v7464_v24 = vadd.f32 %v7463_v0, %v7451_v31  ;;  %v13616_v23 = vor.u32 %v15294_v52, %v13613_v54  ;;  %v15219_v31 = vld [vmem:[#allocation7 + $0xc6c] sm:$0xf0] }
 0x3a9   :  { %7682 = vmatpush.bf16.msrb.mxu2 %v12244_v53  ;;  %7910 = vmatpush.bf16.msra.mxu0 %v12956_v38  ;;  %v16288_v53 = vadd.f32 %v7333_v44, %v16257_v10  ;;  %v15227_v38 = vld [vmem:[#allocation7 + $0xcac] sm:$0xf0]  ;;  %v7660_v50 = vpop.f32.mrf.mxu0  ;;  %v13300_v54 = vor.u32 %v15219_v31, %v13299_v8 }
 0x3aa   :  { %7670 = vmatmul.bf16.vlgmr.msrb.gmra.mxu1 %v16168_v20  ;;  %7639 = vmatpush.bf16.msra.mxu3 %v13648_v37  ;;  %v12795_v37 = vld [vmem:[#allocation7 + $0x858] sm:$0xf]  ;;  %v12723_v44 = vld [vmem:[#allocation7 + $0x7d0] sm:$0xf]  ;;  %v12181_v50 = vld [vmem:[#allocation7 + $0x3b0] sm:$0xf0] }
 0x3ab   :  { %7714 = vmatpush.bf16.msra.mxu1 %v13236_v17  ;;  %v15171_v17 = vld [vmem:[#allocation7 + $0xaec] sm:$0xf0]  ;;  %v7385_v30 = vpop.f32.mrf.mxu3 }
 0x3ac   :  { %7683 = vmatmul.bf16.vlgmr.msrb.gmra.mxu2 %v16170_v34  ;;  %v13108_v2 = vor.u32 %v15171_v17, %v13107_v19  ;;  %v15075_v52 = vld [vmem:[#allocation7 + $0x7ec] sm:$0xf0]  ;;  %v13520_v17 = vor.u32 %v15270_v21, %v13517_v46  ;;  %v14927_v46 = vld [vmem:[#allocation7 + $0x354] sm:$0xf] }
 0x3ad   :  { %7727 = vmatpush.bf16.msra.mxu2 %v13492_v18  ;;  %7911 = vmatpush.bf16.msra.mxu0 %v12924_v14  ;;  %v13363_v18 = vld [vmem:[#allocation7 + $0xcd0] sm:$0xf]  ;;  %v12724_v25 = vor.u32 %v15075_v52, %v12723_v44  ;;  %v14991_v44 = vld [vmem:[#allocation7 + $0x554] sm:$0xf] }
 0x3ae   :  { %v13364_v10 = vor.u32 %v15235_v55, %v13363_v18  ;;  %7640 = vmatpush.bf16.msra.mxu3 %v13616_v23  ;;  %v13043_v14 = vld [vmem:[#allocation7 + $0xa50] sm:$0xf]  ;;  %v12763_v23 = vld [vmem:[#allocation7 + $0x818] sm:$0xf]  ;;  %v12405_v52 = vld [vmem:[#allocation7 + $0x570] sm:$0xf0] }
 0x3af   :  { %7715 = vmatpush.bf16.msra.mxu1 %v13204_v7  ;;  %v7476_v7 = vpop.f32.mrf.mxu2  ;;  %v7465_v32 = vpop.f32.mrf.mxu1  ;;  %v13044_v0 = vor.u32 %v15155_v51, %v13043_v14  ;;  %v15211_v18 = vld [vmem:[#allocation7 + $0xc2c] sm:$0xf0]  ;;  %v15084_v55 = vld [vmem:[#allocation7 + $0x834] sm:$0xf0]  ;;  %v11933_v14 = vld [vmem:[#allocation7 + $0x1b8] sm:$0xf0] }
 0x3b0   :  { %v16290_v9 = vadd.f32 %v7476_v7, %v7464_v24  ;;  %v12796_v24 = vor.u32 %v15092_v4, %v12795_v37  ;;  %v12659_v8 = vld [vmem:[#allocation7 + $0x750] sm:$0xf] }
 0x3b1   :  { %7728 = vmatpush.bf16.msra.mxu2 %v13460_v29  ;;  %7912 = vmatpush.bf16.msra.mxu0 %v12892_v5  ;;  %v13584_v29 = vor.u32 %v15286_v16, %v13581_v36  ;;  %v13267_v5 = vld [vmem:[#allocation7 + $0xc10] sm:$0xf]  ;;  %v14943_v16 = vld [vmem:[#allocation7 + $0x3d4] sm:$0xf] }
 0x3b2   :  { %v12213_v36 = vld [vmem:[#allocation7 + $0x3f0] sm:$0xf0]  ;;  %v13268_v7 = vor.u32 %v15211_v18, %v13267_v5  ;;  %v12408_v5 = vor.u32 %v14991_v44, %v12405_v52  ;;  %v15027_v44 = vld [vmem:[#allocation7 + $0x66c] sm:$0xf0] }
 0x3b3   :  { %7716 = vmatpush.bf16.msra.mxu1 %v13172_v27  ;;  %v13332_v27 = vor.u32 %v15227_v38, %v13331_v48  ;;  %7641 = vmatpush.bf16.msra.mxu3 %v13584_v29  ;;  %v11965_v48 = vld [vmem:[#allocation7 + $0x1f8] sm:$0xf0]  ;;  %v12691_v29 = vld [vmem:[#allocation7 + $0x790] sm:$0xf]  ;;  %v12216_v32 = vor.u32 %v14943_v16, %v12213_v36  ;;  %v7387_v21 = vpop.f32.mrf.mxu3  ;;  %v12117_v18 = vld [vmem:[#allocation7 + $0x330] sm:$0xf0] }
 0x3b4   :  { %v15067_v38 = vld [vmem:[#allocation7 + $0x7ac] sm:$0xf0]  ;;  %v11968_v45 = vor.u32 %v14880_v62, %v11965_v48  ;;  %v11869_v16 = vld [vmem:[#allocation7 + $0x138] sm:$0xf0] }
 0x3b5   :  { %7729 = vmatpush.bf16.msra.mxu2 %v13428_v26  ;;  %7913 = vmatpush.bf16.msra.mxu0 %v12860_v33  ;;  %v12828_v26 = vor.u32 %v15100_v42, %v12827_v39  ;;  %v12764_v42 = vor.u32 %v15084_v55, %v12763_v23  ;;  %v14983_v23 = vld [vmem:[#allocation7 + $0x514] sm:$0xf]  ;;  %v11805_v21 = vld [vmem:[#allocation7 + $0xb8] sm:$0xf0] }
 0x3b7   :  { %7717 = vmatpush.bf16.msra.mxu1 %v13140_v28  ;;  %v13011_v28 = vld [vmem:[#allocation7 + $0xa10] sm:$0xf]  ;;  %7642 = vmatpush.bf16.msra.mxu3 %v13552_v6  ;;  %v7478_v19 = vpop.f32.mrf.mxu2  ;;  %v12184_v6 = vor.u32 %v14935_v57, %v12181_v50 }
 0x3b8   :  { %v12563_v57 = vld [vmem:[#allocation7 + $0x690] sm:$0xf] }
 0x3b9   :  { %7730 = vmatpush.bf16.msra.mxu2 %v13396_v15  ;;  %7914 = vmatpush.bf16.msra.mxu0 %v12828_v26  ;;  %v15147_v15 = vld [vmem:[#allocation7 + $0xa2c] sm:$0xf0]  ;;  %v14872_v26 = vld [vmem:[#allocation7 + $0x19c] sm:$0xf] }
 0x3ba   :  { %v13012_v33 = vor.u32 %v15147_v15, %v13011_v28  ;;  %v11936_v4 = vor.u32 %v14872_v26, %v11933_v14  ;;  %v15051_v28 = vld [vmem:[#allocation7 + $0x72c] sm:$0xf0]  ;;  %v14903_v14 = vld [vmem:[#allocation7 + $0x294] sm:$0xf] }
 0x3bb   :  { %7718 = vmatpush.bf16.msra.mxu1 %v13108_v2  ;;  %v15007_v2 = vld [vmem:[#allocation7 + $0x5d4] sm:$0xf]  ;;  %7643 = vmatpush.bf16.msra.mxu3 %v13520_v17  ;;  %v15035_v50 = vld [vmem:[#allocation7 + $0x6ac] sm:$0xf0] }
 0x3bc   :  { %v12472_v43 = vor.u32 %v15007_v2, %v12469_v61  ;;  %v14919_v17 = vld [vmem:[#allocation7 + $0x314] sm:$0xf]  ;;  %v12595_v2 = vld [vmem:[#allocation7 + $0x6d0] sm:$0xf] }
 0x3bd   :  { %7731 = vmatpush.bf16.msra.mxu2 %v13364_v10  ;;  %v7386_v10 = vadd.f32 %v7385_v30, %v16265_v58  ;;  %7915 = vmatpush.bf16.msra.mxu0 %v12796_v24  ;;  %v14999_v58 = vld [vmem:[#allocation7 + $0x594] sm:$0xf]  ;;  %v11901_v24 = vld [vmem:[#allocation7 + $0x178] sm:$0xf0]  ;;  %v12120_v61 = vor.u32 %v14919_v17, %v12117_v18 }
 0x3be   :  { %7644 = vmatmul.bf16.vlgmr.msra.gmra.mxu3 %v16226_v41  ;;  %v14856_v30 = vld [vmem:[#allocation7 + $0x11c] sm:$0xf] }
 0x3bf   :  { %7719 = vmatpush.bf16.msra.mxu1 %v13076_v56  ;;  %v7399_v39 = vadd.f32 %v16223_v35, %v7386_v10  ;;  %7688 = vmatpush.bf16.msrb.mxu3 %v12724_v25  ;;  %v12692_v56 = vor.u32 %v15067_v38, %v12691_v29  ;;  %v15059_v35 = vld [vmem:[#allocation7 + $0x76c] sm:$0xf0]  ;;  %v12373_v25 = vld [vmem:[#allocation7 + $0x530] sm:$0xf0]  ;;  %v11872_v48 = vor.u32 %v14856_v30, %v11869_v16  ;;  %v11773_v17 = vld [vmem:[#allocation7 + $0x78] sm:$0xf0] }
 0x3c0   :  { %v15043_v10 = vld [vmem:[#allocation7 + $0x6ec] sm:$0xf0]  ;;  %v12376_v62 = vor.u32 %v14983_v23, %v12373_v25  ;;  %v12085_v29 = vld [vmem:[#allocation7 + $0x2f0] sm:$0xf0] }
 0x3c1   :  { %7732 = vmatpush.bf16.msra.mxu2 %v13332_v27  ;;  %v12437_v27 = vld [vmem:[#allocation7 + $0x5b0] sm:$0xf0]  ;;  %v7412_v51 = vadd.f32 %v16271_v60, %v7399_v39  ;;  %7916 = vmatpush.bf16.msra.mxu0 %v12764_v42  ;;  %v12660_v60 = vor.u32 %v15059_v35, %v12659_v8  ;;  %v12596_v39 = vor.u32 %v15043_v10, %v12595_v2  ;;  %v12499_v23 = vld [vmem:[#allocation7 + $0x610] sm:$0xf] }
 0x3c2   :  { %v12440_v37 = vor.u32 %v14999_v58, %v12437_v27  ;;  %v14975_v38 = vld [vmem:[#allocation7 + $0x4d4] sm:$0xf]  ;;  %v13747_v30 = vld [vmem:[#allocation7 + $0xfd0] sm:$0xf] }
 0x3c3   :  { %7720 = vmatpush.bf16.msra.mxu1 %v13044_v0  ;;  %v7425_v31 = vadd.f32 %v16275_v22, %v7412_v51  ;;  %v12149_v0 = vld [vmem:[#allocation7 + $0x370] sm:$0xf0]  ;;  %7689 = vmatpush.bf16.msrb.mxu3 %v12692_v56  ;;  %v12627_v22 = vld [vmem:[#allocation7 + $0x710] sm:$0xf] }
 0x3c4   :  { %7917 = vmatmul.bf16.vlgmr.msra.gmra.mxu0 %v16137_v3  ;;  %v12152_v15 = vor.u32 %v14927_v46, %v12149_v0  ;;  %v12628_v55 = vor.u32 %v15051_v28, %v12627_v22  ;;  %v12341_v42 = vld [vmem:[#allocation7 + $0x4f0] sm:$0xf0]  ;;  %v12531_v0 = vld [vmem:[#allocation7 + $0x650] sm:$0xf] }
 0x3c5   :  { %7733 = vmatpush.bf16.msra.mxu2 %v13300_v54  ;;  %7961 = vmatpush.bf16.msrb.mxu0 %v11968_v45  ;;  %v14864_v54 = vld [vmem:[#allocation7 + $0x15c] sm:$0xf]  ;;  %v7437_v45 = vpop.f32.mrf.mxu3  ;;  %v12344_v27 = vor.u32 %v14975_v38, %v12341_v42  ;;  %v12053_v51 = vld [vmem:[#allocation7 + $0x2b0] sm:$0xf0]  ;;  %v15331_v16 = vld [vmem:[#allocation7 + $0xfec] sm:$0xf0] }
 0x3c6   :  { %v11904_v19 = vor.u32 %v14864_v54, %v11901_v24  ;;  %v16304_v58 = vadd.f32 %v7437_v45, %v7425_v31  ;;  %v14967_v8 = vld [vmem:[#allocation7 + $0x494] sm:$0xf]  ;;  %v11741_v42 = vld [vmem:[#allocation7 + $0x38] sm:$0xf0] }
 0x3c7   :  { %7721 = vmatpush.bf16.msra.mxu1 %v13012_v33  ;;  %7690 = vmatpush.bf16.msrb.mxu3 %v12660_v60  ;;  %v16300_v36 = vpop.f32.mrf.mxu1  ;;  %v16302_v33 = vpop.f32.mrf.mxu0  ;;  %v12056_v60 = vor.u32 %v14903_v14, %v12053_v51  ;;  %v14895_v24 = vld [vmem:[#allocation7 + $0x254] sm:$0xf]  ;;  %v13715_v51 = vld [vmem:[#allocation7 + $0xf90] sm:$0xf] }
 0x3c8   :  { %v12021_v22 = vld [vmem:[#allocation7 + $0x270] sm:$0xf0] }
 0x3c9   :  { %7734 = vmatpush.bf16.msra.mxu2 %v13268_v7  ;;  %7962 = vmatpush.bf16.msrb.mxu0 %v11936_v4  ;;  %v14911_v7 = vld [vmem:[#allocation7 + $0x2d4] sm:$0xf]  ;;  %v14840_v4 = vld [vmem:[#allocation7 + $0x9c] sm:$0xf]  ;;  %v12024_v25 = vor.u32 %v14895_v24, %v12021_v22  ;;  %v13683_v24 = vld [vmem:[#allocation7 + $0xf50] sm:$0xf] }
 0x3ca   :  { %7722 = vmatmul.bf16.vlgmr.msra.gmra.mxu1 %v16193_v47  ;;  %v12088_v56 = vor.u32 %v14911_v7, %v12085_v29  ;;  %v11808_v54 = vor.u32 %v14840_v4, %v11805_v21  ;;  %v14959_v28 = vld [vmem:[#allocation7 + $0x454] sm:$0xf]  ;;  %v15315_v22 = vld [vmem:[#allocation7 + $0xf6c] sm:$0xf0] }
 0x3cb   :  { %7766 = vmatpush.bf16.msrb.mxu1 %v12216_v32  ;;  %7691 = vmatpush.bf16.msrb.mxu3 %v12628_v55  ;;  %v14848_v32 = vld [vmem:[#allocation7 + $0xdc] sm:$0xf]  ;;  %v15019_v55 = vld [vmem:[#allocation7 + $0x62c] sm:$0xf0]  ;;  %v12245_v38 = vld [vmem:[#allocation7 + $0x430] sm:$0xf0] }
 0x3cc   :  { %7735 = vmatmul.bf16.vlgmr.msra.gmra.mxu2 %v16199_v49  ;;  %v12500_v29 = vor.u32 %v15019_v55, %v12499_v23  ;;  %v13237_v45 = vld [vmem:[#allocation7 + $0xbf0] sm:$0xf0]  ;;  %v13684_v55 = vor.u32 %v15315_v22, %v13683_v24 }
 0x3cd   :  { %7779 = vmatpush.bf16.msrb.mxu2 %v12472_v43  ;;  %7963 = vmatpush.bf16.msrb.mxu0 %v11904_v19  ;;  %v11837_v43 = vld [vmem:[#allocation7 + $0xf8] sm:$0xf0]  ;;  %v7439_v18 = vpop.f32.mrf.mxu3  ;;  %v15247_v23 = vld [vmem:[#allocation7 + $0xd54] sm:$0xf] }
 0x3ce   :  { %v11840_v26 = vor.u32 %v14848_v32, %v11837_v43  ;;  %v14832_v19 = vld [vmem:[#allocation7 + $0x5c] sm:$0xf]  ;;  %v13748_v32 = vor.u32 %v15331_v16, %v13747_v30  ;;  %v15199_v43 = vld [vmem:[#allocation7 + $0xbd4] sm:$0xf] }
 0x3cf   :  { %7767 = vmatpush.bf16.msrb.mxu1 %v12184_v6  ;;  %7692 = vmatpush.bf16.msrb.mxu3 %v12596_v39  ;;  %v16306_v35 = vpop.f32.mrf.mxu2  ;;  %v12564_v6 = vor.u32 %v15035_v50, %v12563_v57  ;;  %v7517_v46 = vpop.f32.mrf.mxu1  ;;  %v11776_v10 = vor.u32 %v14832_v19, %v11773_v17  ;;  %v14824_v39 = vld [vmem:[#allocation7 + $0x1c] sm:$0xf]  ;;  %v15263_v57 = vld [vmem:[#allocation7 + $0xdd4] sm:$0xf] }
 0x3d0   :  { %v7712_v31 = vpop.f32.mrf.mxu0  ;;  %v15191_v46 = vld [vmem:[#allocation7 + $0xb94] sm:$0xf]  ;;  %v15120_v30 = vld [vmem:[#allocation7 + $0x95c] sm:$0xf] }
 0x3d1   :  { %7780 = vmatpush.bf16.msrb.mxu2 %v12440_v37  ;;  %7964 = vmatpush.bf16.msrb.mxu0 %v11872_v48  ;;  %v12309_v37 = vld [vmem:[#allocation7 + $0x4b0] sm:$0xf0]  ;;  %v12925_v16 = vld [vmem:[#allocation7 + $0x978] sm:$0xf0] }
 0x3d2   :  { %v12312_v52 = vor.u32 %v14967_v8, %v12309_v37  ;;  %v14951_v48 = vld [vmem:[#allocation7 + $0x414] sm:$0xf]  ;;  %v15323_v8 = vld [vmem:[#allocation7 + $0xfac] sm:$0xf0]  ;;  %v13240_v37 = vor.u32 %v15199_v43, %v13237_v45  ;;  %v12893_v43 = vld [vmem:[#allocation7 + $0x938] sm:$0xf0] }
 0x3d3   :  { %7768 = vmatpush.bf16.msrb.mxu1 %v12152_v15  ;;  %7693 = vmatpush.bf16.msrb.mxu3 %v12564_v6  ;;  %v12532_v15 = vor.u32 %v15027_v44, %v12531_v0  ;;  %v12248_v14 = vor.u32 %v14951_v48, %v12245_v38  ;;  %v11744_v6 = vor.u32 %v14824_v39, %v11741_v42  ;;  %v13205_v0 = vld [vmem:[#allocation7 + $0xbb0] sm:$0xf0] }
 0x3d4   :  { %v15255_v44 = vld [vmem:[#allocation7 + $0xd94] sm:$0xf]  ;;  %v13716_v31 = vor.u32 %v15323_v8, %v13715_v51 }
 0x3d5   :  { %7781 = vmatpush.bf16.msrb.mxu2 %v12408_v5  ;;  %7965 = vmatpush.bf16.msrb.mxu0 %v11840_v26  ;;  %v12277_v5 = vld [vmem:[#allocation7 + $0x470] sm:$0xf0]  ;;  %v12989_v26 = vld [vmem:[#allocation7 + $0x9f8] sm:$0xf0] }
 0x3d6   :  { %v12280_v2 = vor.u32 %v14959_v28, %v12277_v5  ;;  %v4660_v28 = vperm.slane %v16278_v1, 3  ;;  %v15183_v17 = vld [vmem:[#allocation7 + $0xb54] sm:$0xf]  ;;  %v13651_v1 = vld [vmem:[#allocation7 + $0xf10] sm:$0xf] }
 0x3d7   :  { %7769 = vmatpush.bf16.msrb.mxu1 %v12120_v61  ;;  %v14887_v61 = vld [vmem:[#allocation7 + $0x214] sm:$0xf]  ;;  %7694 = vmatpush.bf16.msrb.mxu3 %v12532_v15  ;;  %v7530_v7 = vpop.f32.mrf.mxu2  ;;  %v13208_v15 = vor.u32 %v15191_v46, %v13205_v0  ;;  %v12861_v46 = vld [vmem:[#allocation7 + $0x8f8] sm:$0xf0] }
 0x3d8   :  { %v13173_v18 = vld [vmem:[#allocation7 + $0xb70] sm:$0xf0]  ;;  %v7555_v38 = vadd.f32 %v16262_v63, %v4660_v28 }
 0x3d9   :  { %7782 = vmatpush.bf16.msrb.mxu2 %v12376_v62  ;;  %7966 = vmatpush.bf16.msrb.mxu0 %v11808_v54  ;;  %v11989_v62 = vld [vmem:[#allocation7 + $0x230] sm:$0xf0]  ;;  %v12957_v54 = vld [vmem:[#allocation7 + $0x9b8] sm:$0xf0] }
 0x3da   :  { %v11992_v50 = vor.u32 %v14887_v61, %v11989_v62  ;;  %v12928_v62 = vor.u32 %v15120_v30, %v12925_v16  ;;  %v15175_v48 = vld [vmem:[#allocation7 + $0xb14] sm:$0xf]  ;;  %v15283_v30 = vld [vmem:[#allocation7 + $0xe6c] sm:$0xf0] }
 0x3db   :  { %7770 = vmatpush.bf16.msrb.mxu1 %v12088_v56  ;;  %v13493_v56 = vld [vmem:[#allocation7 + $0xdf0] sm:$0xf0]  ;;  %7695 = vmatpush.bf16.msrb.mxu3 %v12500_v29 }
 0x3dc   :  { %v13496_v4 = vor.u32 %v15263_v57, %v13493_v56  ;;  %v13141_v7 = vld [vmem:[#allocation7 + $0xb30] sm:$0xf0]  ;;  %v15299_v57 = vld [vmem:[#allocation7 + $0xeec] sm:$0xf0] }
 0x3dd   :  { %7783 = vmatpush.bf16.msrb.mxu2 %v12344_v27  ;;  %v15136_v27 = vld [vmem:[#allocation7 + $0x9dc] sm:$0xf]  ;;  %7967 = vmatpush.bf16.msrb.mxu0 %v11776_v10  ;;  %v13176_v10 = vor.u32 %v15183_v17, %v13173_v18  ;;  %v15239_v29 = vld [vmem:[#allocation7 + $0xd14] sm:$0xf] }
 0x3de   :  { %v12992_v21 = vor.u32 %v15136_v27, %v12989_v26  ;;  %7696 = vmatmul.bf16.vlgmr.msrb.gmra.mxu3 %v16172_v11  ;;  %v13397_v42 = vld [vmem:[#allocation7 + $0xd30] sm:$0xf0]  ;;  %v13144_v27 = vor.u32 %v15175_v48, %v13141_v7  ;;  %v15096_v18 = vld [vmem:[#allocation7 + $0x89c] sm:$0xf] }
 0x3df   :  { %7771 = vmatpush.bf16.msrb.mxu1 %v12056_v60  ;;  %7740 = vmatpush.bf16.msra.mxu3 %v13748_v32  ;;  %v13461_v60 = vld [vmem:[#allocation7 + $0xdb0] sm:$0xf0]  ;;  %v15112_v32 = vld [vmem:[#allocation7 + $0x91c] sm:$0xf]  ;;  %v13400_v26 = vor.u32 %v15239_v29, %v13397_v42 }
 0x3e0   :  { %v13464_v5 = vor.u32 %v15255_v44, %v13461_v60  ;;  %v15167_v51 = vld [vmem:[#allocation7 + $0xad4] sm:$0xf]  ;;  %v13587_v44 = vld [vmem:[#allocation7 + $0xe90] sm:$0xf]  ;;  %v15088_v42 = vld [vmem:[#allocation7 + $0x85c] sm:$0xf] }
 0x3e1   :  { %7784 = vmatpush.bf16.msrb.mxu2 %v12312_v52  ;;  %v15128_v52 = vld [vmem:[#allocation7 + $0x99c] sm:$0xf]  ;;  %7968 = vmatpush.bf16.msrb.mxu0 %v11744_v6  ;;  %v16314_v56 = vpop.f32.mrf.mxu0  ;;  %v13109_v8 = vld [vmem:[#allocation7 + $0xaf0] sm:$0xf0] }
 0x3e2   :  { %v12960_v19 = vor.u32 %v15128_v52, %v12957_v54  ;;  %v15231_v63 = vld [vmem:[#allocation7 + $0xcd4] sm:$0xf]  ;;  %v13112_v60 = vor.u32 %v15167_v51, %v13109_v8 }
 0x3e3   :  { %7772 = vmatpush.bf16.msrb.mxu1 %v12024_v25  ;;  %7741 = vmatpush.bf16.msra.mxu3 %v13716_v31  ;;  %v13429_v25 = vld [vmem:[#allocation7 + $0xd70] sm:$0xf0]  ;;  %v15291_v31 = vld [vmem:[#allocation7 + $0xeac] sm:$0xf0] }
 0x3e4   :  { %7969 = vmatmul.bf16.vlgmr.msrb.gmra.mxu0 %v16110_v13  ;;  %v13432_v61 = vor.u32 %v15247_v23, %v13429_v25  ;;  %v13619_v13 = vld [vmem:[#allocation7 + $0xed0] sm:$0xf]  ;;  %v15159_v22 = vld [vmem:[#allocation7 + $0xa94] sm:$0xf]  ;;  %v12829_v23 = vld [vmem:[#allocation7 + $0x8b8] sm:$0xf0] }
 0x3e5   :  { %7785 = vmatpush.bf16.msrb.mxu2 %v12280_v2  ;;  %8013 = vmatpush.bf16.msra.mxu0 %v12992_v21  ;;  %v15307_v2 = vld [vmem:[#allocation7 + $0xf2c] sm:$0xf0]  ;;  %v13620_v6 = vor.u32 %v15299_v57, %v13619_v13  ;;  %v15104_v21 = vld [vmem:[#allocation7 + $0x8dc] sm:$0xf]  ;;  %v13077_v28 = vld [vmem:[#allocation7 + $0xab0] sm:$0xf0] }
 0x3e6   :  { %v13652_v39 = vor.u32 %v15307_v2, %v13651_v1  ;;  %v12864_v24 = vor.u32 %v15104_v21, %v12861_v46  ;;  %v13333_v17 = vld [vmem:[#allocation7 + $0xcb0] sm:$0xf0]  ;;  %v13555_v25 = vld [vmem:[#allocation7 + $0xe50] sm:$0xf]  ;;  %v13080_v1 = vor.u32 %v15159_v22, %v13077_v28  ;;  %v12219_v21 = vld [vmem:[#allocation7 + $0x3d8] sm:$0xf] }
 0x3e7   :  { %7773 = vmatpush.bf16.msrb.mxu1 %v11992_v50  ;;  %7742 = vmatpush.bf16.msra.mxu3 %v13684_v55  ;;  %v7567_v45 = vpop.f32.mrf.mxu1  ;;  %v15215_v48 = vld [vmem:[#allocation7 + $0xc54] sm:$0xf]  ;;  %v13556_v29 = vor.u32 %v15283_v30, %v13555_v25  ;;  %v14948_v46 = vld [vmem:[#allocation7 + $0x3f4] sm:$0xf0]  ;;  %v13811_v30 = vld [vmem:[#allocation10 + $0x60] sm:$0xf] }
 0x3e8   :  { %v7568_v50 = vadd.f32 %v7567_v45, %v7555_v38  ;;  %v15071_v13 = vld [vmem:[#allocation7 + $0x7d4] sm:$0xf]  ;;  %v15004_v25 = vld [vmem:[#allocation7 + $0x5b4] sm:$0xf0] }
 0x3e9   :  { %7786 = vmatpush.bf16.msrb.mxu2 %v12248_v14  ;;  %8014 = vmatpush.bf16.msra.mxu0 %v12960_v19  ;;  %v12896_v14 = vor.u32 %v15112_v32, %v12893_v43  ;;  %v13588_v19 = vor.u32 %v15291_v31, %v13587_v44  ;;  %v12797_v32 = vld [vmem:[#allocation7 + $0x878] sm:$0xf0]  ;;  %v15275_v43 = vld [vmem:[#allocation7 + $0xe2c] sm:$0xf0]  ;;  %v12725_v57 = vld [vmem:[#allocation7 + $0x7f0] sm:$0xf0] }
 0x3ea   :  { %7774 = vmatmul.bf16.vlgmr.msrb.gmra.mxu1 %v16168_v20  ;;  %v15012_v31 = vld [vmem:[#allocation7 + $0x5f4] sm:$0xf0]  ;;  %v12693_v22 = vld [vmem:[#allocation7 + $0x7b0] sm:$0xf0] }
 0x3eb   :  { %7818 = vmatpush.bf16.msra.mxu1 %v13240_v37  ;;  %7743 = vmatpush.bf16.msra.mxu3 %v13652_v39  ;;  %v7489_v37 = vpop.f32.mrf.mxu3  ;;  %v13301_v39 = vld [vmem:[#allocation7 + $0xc70] sm:$0xf0] }
 0x3ec   :  { %7787 = vmatmul.bf16.vlgmr.msrb.gmra.mxu2 %v16170_v34  ;;  %v7490_v0 = vadd.f32 %v7489_v37, %v16290_v9  ;;  %v12765_v37 = vld [vmem:[#allocation7 + $0x838] sm:$0xf0] }
 0x3ed   :  { %7831 = vmatpush.bf16.msra.mxu2 %v13496_v4  ;;  %8015 = vmatpush.bf16.msra.mxu0 %v12928_v62  ;;  %v13365_v4 = vld [vmem:[#allocation7 + $0xcf0] sm:$0xf0] }
 0x3ee   :  { %v7503_v52 = vadd.f32 %v16249_v59, %v7490_v0  ;;  %v13368_v54 = vor.u32 %v15231_v63, %v13365_v4  ;;  %v7764_v59 = vpop.f32.mrf.mxu0  ;;  %v13045_v62 = vld [vmem:[#allocation7 + $0xa70] sm:$0xf0]  ;;  %v12728_v4 = vor.u32 %v15071_v13, %v12725_v57  ;;  %v12475_v0 = vld [vmem:[#allocation7 + $0x5d8] sm:$0xf] }
 0x3ef   :  { %7819 = vmatpush.bf16.msra.mxu1 %v13208_v15  ;;  %v15223_v15 = vld [vmem:[#allocation7 + $0xc94] sm:$0xf]  ;;  %7744 = vmatpush.bf16.msra.mxu3 %v13620_v6  ;;  %v7569_v55 = vpop.f32.mrf.mxu1  ;;  %v15080_v6 = vld [vmem:[#allocation7 + $0x81c] sm:$0xf] }
 0x3f0   :  { %v7516_v16 = vadd.f32 %v16300_v36, %v7503_v52  ;;  %v13336_v2 = vor.u32 %v15223_v15, %v13333_v17  ;;  %v13523_v36 = vld [vmem:[#allocation7 + $0xe10] sm:$0xf]  ;;  %v13269_v63 = vld [vmem:[#allocation7 + $0xc30] sm:$0xf0]  ;;  %v15348_v52 = vld [vmem:[#allocation10 + $0x74] sm:$0xf0]  ;;  %v12768_v28 = vor.u32 %v15080_v6, %v12765_v37  ;;  %v12220_v15 = vor.u32 %v14948_v46, %v12219_v21 }
 0x3f1   :  { %7832 = vmatpush.bf16.msra.mxu2 %v13464_v5  ;;  %8016 = vmatpush.bf16.msra.mxu0 %v12896_v14  ;;  %v7580_v5 = vpop.f32.mrf.mxu2  ;;  %v13013_v14 = vld [vmem:[#allocation7 + $0xa30] sm:$0xf0]  ;;  %v13524_v8 = vor.u32 %v15275_v43, %v13523_v36  ;;  %v12187_v17 = vld [vmem:[#allocation7 + $0x398] sm:$0xf] }
 0x3f2   :  { %v16318_v9 = vadd.f32 %v7580_v5, %v7568_v50  ;;  %v16322_v7 = vadd.f32 %v16306_v35, %v7516_v16  ;;  %v13304_v50 = vor.u32 %v15215_v48, %v13301_v39  ;;  %v15207_v35 = vld [vmem:[#allocation7 + $0xc14] sm:$0xf]  ;;  %v12476_v5 = vor.u32 %v15012_v31, %v12475_v0  ;;  %v15346_v16 = vld [vmem:[#allocation10 + $0x64] sm:$0xf0]  ;;  %v14932_v48 = vld [vmem:[#allocation7 + $0x374] sm:$0xf0] }
 0x3f3   :  { %7820 = vmatpush.bf16.msra.mxu1 %v13176_v10  ;;  %v12832_v10 = vor.u32 %v15096_v18, %v12829_v23  ;;  %7745 = vmatpush.bf16.msra.mxu3 %v13588_v19  ;;  %v7491_v38 = vpop.f32.mrf.mxu3  ;;  %v14940_v18 = vld [vmem:[#allocation7 + $0x3b4] sm:$0xf0]  ;;  %v15055_v59 = vld [vmem:[#allocation7 + $0x754] sm:$0xf] }
 0x3f4   :  { %v12443_v23 = vld [vmem:[#allocation7 + $0x598] sm:$0xf]  ;;  %v15047_v36 = vld [vmem:[#allocation7 + $0x714] sm:$0xf] }
 0x3f5   :  { %7833 = vmatpush.bf16.msra.mxu2 %v13432_v61  ;;  %8017 = vmatpush.bf16.msra.mxu0 %v12864_v24  ;;  %v15151_v61 = vld [vmem:[#allocation7 + $0xa54] sm:$0xf]  ;;  %v14996_v39 = vld [vmem:[#allocation7 + $0x574] sm:$0xf0] }
 0x3f6   :  { %v13048_v45 = vor.u32 %v15151_v61, %v13045_v62  ;;  %v15063_v24 = vld [vmem:[#allocation7 + $0x794] sm:$0xf]  ;;  %v13812_v61 = vor.u32 %v15346_v16, %v13811_v30  ;;  %v12155_v62 = vld [vmem:[#allocation7 + $0x358] sm:$0xf] }
 0x3f7   :  { %7821 = vmatpush.bf16.msra.mxu1 %v13144_v27  ;;  %v12800_v27 = vor.u32 %v15088_v42, %v12797_v32  ;;  %7746 = vmatpush.bf16.msra.mxu3 %v13556_v29  ;;  %v12696_v55 = vor.u32 %v15063_v24, %v12693_v22  ;;  %v12411_v29 = vld [vmem:[#allocation7 + $0x558] sm:$0xf]  ;;  %v15344_v32 = vld [vmem:[#allocation10 + $0x54] sm:$0xf0]  ;;  %v12629_v43 = vld [vmem:[#allocation7 + $0x730] sm:$0xf0] }
 0x3f8   :  { %v13803_v42 = vld [vmem:[#allocation10 + $0x50] sm:$0xf]  ;;  %v12412_v13 = vor.u32 %v14996_v39, %v12411_v29  ;;  %v15039_v6 = vld [vmem:[#allocation7 + $0x6d4] sm:$0xf]  ;;  %v15340_v22 = vld [vmem:[#allocation10 + $0x34] sm:$0xf0] }
 0x3f9   :  { %7834 = vmatpush.bf16.msra.mxu2 %v13400_v26  ;;  %8018 = vmatpush.bf16.msra.mxu0 %v12832_v10  ;;  %v15143_v26 = vld [vmem:[#allocation7 + $0xa14] sm:$0xf]  ;;  %v7582_v51 = vpop.f32.mrf.mxu2  ;;  %v12444_v10 = vor.u32 %v15004_v25, %v12443_v23  ;;  %v13804_v57 = vor.u32 %v15344_v32, %v13803_v42  ;;  %v12091_v0 = vld [vmem:[#allocation7 + $0x2d8] sm:$0xf] }
 0x3fa   :  { %v13016_v44 = vor.u32 %v15143_v26, %v13013_v14  ;;  %v12379_v26 = vld [vmem:[#allocation7 + $0x518] sm:$0xf]  ;;  %v12632_v14 = vor.u32 %v15047_v36, %v12629_v43  ;;  %v13795_v51 = vld [vmem:[#allocation10 + $0x40] sm:$0xf] }
 0x3fb   :  { %7822 = vmatpush.bf16.msra.mxu1 %v13112_v60  ;;  %v13819_v60 = vld [vmem:[#allocation10 + $0x70] sm:$0xf]  ;;  %7747 = vmatpush.bf16.msra.mxu3 %v13524_v8  ;;  %v15342_v8 = vld [vmem:[#allocation10 + $0x44] sm:$0xf0] }
 0x3fc   :  { %v13820_v19 = vor.u32 %v15348_v52, %v13819_v60  ;;  %v13796_v46 = vor.u32 %v15342_v8, %v13795_v51  ;;  %v12347_v31 = vld [vmem:[#allocation7 + $0x4d8] sm:$0xf] }
 0x3fd   :  { %7835 = vmatpush.bf16.msra.mxu2 %v13368_v54  ;;  %8019 = vmatpush.bf16.msra.mxu0 %v12800_v27  ;;  %v13272_v54 = vor.u32 %v15207_v35, %v13269_v63  ;;  %v14924_v27 = vld [vmem:[#allocation7 + $0x334] sm:$0xf0] }
 0x3fe   :  { %7748 = vmatmul.bf16.vlgmr.msra.gmra.mxu3 %v16226_v41  ;;  %v14988_v35 = vld [vmem:[#allocation7 + $0x534] sm:$0xf0] }
 0x3ff   :  { %7823 = vmatpush.bf16.msra.mxu1 %v13080_v1  ;;  %7792 = vmatpush.bf16.msrb.mxu3 %v12728_v4  ;;  %v12661_v1 = vld [vmem:[#allocation7 + $0x770] sm:$0xf0]  ;;  %v12380_v21 = vor.u32 %v14988_v35, %v12379_v26  ;;  %v13787_v24 = vld [vmem:[#allocation10 + $0x30] sm:$0xf] }
 0x400   :  { %v12664_v38 = vor.u32 %v15055_v59, %v12661_v1  ;;  %v12059_v23 = vld [vmem:[#allocation7 + $0x298] sm:$0xf]  ;;  %v13779_v1 = vld [vmem:[#allocation10 + $0x20] sm:$0xf]  ;;  %v13749_v35 = vld [vmem:[#allocation7 + $0xff0] sm:$0xf0] }
 0x401   :  { %7836 = vmatpush.bf16.msra.mxu2 %v13336_v2  ;;  %8020 = vmatpush.bf16.msra.mxu0 %v12768_v28  ;;  %v12188_v2 = vor.u32 %v14940_v18, %v12187_v17  ;;  %v16330_v37 = vpop.f32.mrf.mxu0  ;;  %v13788_v18 = vor.u32 %v15340_v22, %v13787_v24  ;;  %v12315_v25 = vld [vmem:[#allocation7 + $0x498] sm:$0xf] }
 0x402   :  { %v7541_v52 = vpop.f32.mrf.mxu3  ;;  %v14972_v59 = vld [vmem:[#allocation7 + $0x4b4] sm:$0xf0] }
 0x403   :  { %7824 = vmatpush.bf16.msra.mxu1 %v13048_v45  ;;  %7793 = vmatpush.bf16.msrb.mxu3 %v12696_v55  ;;  %v12156_v45 = vor.u32 %v14932_v48, %v12155_v62  ;;  %v16333_v28 = vadd.f32 %v7541_v52, %v16322_v7  ;;  %v14908_v55 = vld [vmem:[#allocation7 + $0x2b4] sm:$0xf0]  ;;  %v12316_v29 = vor.u32 %v14972_v59, %v12315_v25 }
 0x404   :  { %8021 = vmatmul.bf16.vlgmr.msra.gmra.mxu0 %v16137_v3  ;;  %v12597_v3 = vld [vmem:[#allocation7 + $0x6f0] sm:$0xf0]  ;;  %v12060_v48 = vor.u32 %v14908_v55, %v12059_v23  ;;  %v12027_v39 = vld [vmem:[#allocation7 + $0x258] sm:$0xf] }
 0x405   :  { %7837 = vmatpush.bf16.msra.mxu2 %v13304_v50  ;;  %8855 = vmatpush.bf16.msrb.mxu0 %v13820_v19  ;;  %v12123_v50 = vld [vmem:[#allocation7 + $0x318] sm:$0xf]  ;;  %v12600_v60 = vor.u32 %v15039_v6, %v12597_v3 }
 0x406   :  { %v12124_v4 = vor.u32 %v14924_v27, %v12123_v50  ;;  %v14900_v42 = vld [vmem:[#allocation7 + $0x274] sm:$0xf0]  ;;  %v15015_v50 = vld [vmem:[#allocation7 + $0x614] sm:$0xf] }
 0x407   :  { %7825 = vmatpush.bf16.msra.mxu1 %v13016_v44  ;;  %7794 = vmatpush.bf16.msrb.mxu3 %v12664_v38  ;;  %v16328_v63 = vpop.f32.mrf.mxu1  ;;  %v14916_v44 = vld [vmem:[#allocation7 + $0x2f4] sm:$0xf0]  ;;  %v12501_v27 = vld [vmem:[#allocation7 + $0x630] sm:$0xf0]  ;;  %v12028_v26 = vor.u32 %v14900_v42, %v12027_v39 }
 0x408   :  { %v12092_v19 = vor.u32 %v14916_v44, %v12091_v0  ;;  %v12283_v32 = vld [vmem:[#allocation7 + $0x458] sm:$0xf]  ;;  %v13763_v44 = vld [vmem:[#allocation10] sm:$0xf] }
 0x409   :  { %7838 = vmatpush.bf16.msra.mxu2 %v13272_v54  ;;  %8856 = vmatpush.bf16.msrb.mxu0 %v13812_v61  ;;  %v14980_v54 = vld [vmem:[#allocation7 + $0x4f4] sm:$0xf0]  ;;  %v12533_v61 = vld [vmem:[#allocation7 + $0x670] sm:$0xf0]  ;;  %v7816_v62 = vpop.f32.mrf.mxu0 }
 0x40a   :  { %7826 = vmatmul.bf16.vlgmr.msra.gmra.mxu1 %v16193_v47  ;;  %v12348_v17 = vor.u32 %v14980_v54, %v12347_v31  ;;  %v7543_v43 = vpop.f32.mrf.mxu3  ;;  %v11995_v6 = vld [vmem:[#allocation7 + $0x218] sm:$0xf]  ;;  %v15334_v31 = vld [vmem:[#allocation10 + $0x4] sm:$0xf0]  ;;  %v16339_v62 = vld [vmem:[#allocation8] sm:$0xff] }
 0x40b   :  { %7870 = vmatpush.bf16.msrb.mxu1 %v12220_v15  ;;  %7795 = vmatpush.bf16.msrb.mxu3 %v12632_v14  ;;  %v15031_v15 = vld [vmem:[#allocation7 + $0x694] sm:$0xf]  ;;  %v14892_v3 = vld [vmem:[#allocation7 + $0x234] sm:$0xf0]  ;;  %v13764_v23 = vor.u32 %v15334_v31, %v13763_v44 }
 0x40c   :  { %7839 = vmatmul.bf16.vlgmr.msra.gmra.mxu2 %v16199_v49  ;;  %v15327_v14 = vld [vmem:[#allocation7 + $0xfd4] sm:$0xf]  ;;  %v14956_v0 = vld [vmem:[#allocation7 + $0x434] sm:$0xf0]  ;;  %v11996_v22 = vor.u32 %v14892_v3, %v11995_v6 }
 0x40d   :  { %7883 = vmatpush.bf16.msrb.mxu2 %v12476_v5  ;;  %8857 = vmatpush.bf16.msrb.mxu0 %v13804_v57  ;;  %v12565_v5 = vld [vmem:[#allocation7 + $0x6b0] sm:$0xf0]  ;;  %v15336_v57 = vld [vmem:[#allocation10 + $0x14] sm:$0xf0]  ;;  %v13243_v52 = vld [vmem:[#allocation7 + $0xbd8] sm:$0xf] }
 0x40e   :  { %v12568_v16 = vor.u32 %v15031_v15, %v12565_v5  ;;  %v15204_v54 = vld [vmem:[#allocation7 + $0xbf4] sm:$0xf0]  ;;  %v15319_v5 = vld [vmem:[#allocation7 + $0xf94] sm:$0xf] }
 0x40f   :  { %7871 = vmatpush.bf16.msrb.mxu1 %v12188_v2  ;;  %7796 = vmatpush.bf16.msrb.mxu3 %v12600_v60  ;;  %v16335_v30 = vpop.f32.mrf.mxu2  ;;  %v15338_v2 = vld [vmem:[#allocation10 + $0x24] sm:$0xf0]  ;;  %v7621_v7 = vpop.f32.mrf.mxu1  ;;  %v13752_v60 = vor.u32 %v15327_v14, %v13749_v35  ;;  %v13499_v24 = vld [vmem:[#allocation7 + $0xdd8] sm:$0xf]  ;;  %v13244_v55 = vor.u32 %v15204_v54, %v13243_v52  ;;  %v15295_v6 = vld [vmem:[#allocation7 + $0xed4] sm:$0xf] }
 0x410   :  { %v13780_v38 = vor.u32 %v15338_v2, %v13779_v1  ;;  %v15268_v15 = vld [vmem:[#allocation7 + $0xdf4] sm:$0xf0]  ;;  %v13621_v3 = vld [vmem:[#allocation7 + $0xef0] sm:$0xf0] }
 0x411   :  { %7884 = vmatpush.bf16.msrb.mxu2 %v12444_v10  ;;  %8858 = vmatpush.bf16.msrb.mxu0 %v13796_v46  ;;  %v15023_v10 = vld [vmem:[#allocation7 + $0x654] sm:$0xf]  ;;  %v12504_v46 = vor.u32 %v15015_v50, %v12501_v27  ;;  %v13500_v25 = vor.u32 %v15268_v15, %v13499_v24  ;;  %v13211_v59 = vld [vmem:[#allocation7 + $0xb98] sm:$0xf]  ;;  %v13624_v31 = vor.u32 %v15295_v6, %v13621_v3 }
 0x412   :  { %v12536_v36 = vor.u32 %v15023_v10, %v12533_v61  ;;  %v15196_v1 = vld [vmem:[#allocation7 + $0xbb4] sm:$0xf0]  ;;  %v15311_v10 = vld [vmem:[#allocation7 + $0xf54] sm:$0xf] }
 0x413   :  { %7872 = vmatpush.bf16.msrb.mxu1 %v12156_v45  ;;  %7797 = vmatpush.bf16.msrb.mxu3 %v12568_v16  ;;  %v14964_v45 = vld [vmem:[#allocation7 + $0x474] sm:$0xf0]  ;;  %v13685_v61 = vld [vmem:[#allocation7 + $0xf70] sm:$0xf0] }
 0x414   :  { %v12284_v51 = vor.u32 %v14964_v45, %v12283_v32  ;;  %v13467_v2 = vld [vmem:[#allocation7 + $0xd98] sm:$0xf]  ;;  %v13688_v39 = vor.u32 %v15311_v10, %v13685_v61  ;;  %v15303_v45 = vld [vmem:[#allocation7 + $0xf14] sm:$0xf] }
 0x415   :  { %7885 = vmatpush.bf16.msrb.mxu2 %v12412_v13  ;;  %8859 = vmatpush.bf16.msrb.mxu0 %v13788_v18  ;;  %v13771_v13 = vld [vmem:[#allocation10 + $0x10] sm:$0xf]  ;;  %v8065_v18 = vmax.f32 %v16288_v53, 0.0  ;;  %v4661_v53 = vperm.slane %v16339_v62, 4  ;;  %v15287_v15 = vld [vmem:[#allocation7 + $0xe94] sm:$0xf] }
 0x416   :  { %v13772_v8 = vor.u32 %v15336_v57, %v13771_v13  ;;  %v15260_v7 = vld [vmem:[#allocation7 + $0xdb4] sm:$0xf0]  ;;  %v13653_v13 = vld [vmem:[#allocation7 + $0xf30] sm:$0xf0] }
 0x417   :  { %7873 = vmatpush.bf16.msrb.mxu1 %v12124_v4  ;;  %v12251_v4 = vld [vmem:[#allocation7 + $0x418] sm:$0xf]  ;;  %7798 = vmatpush.bf16.msrb.mxu3 %v12536_v36  ;;  %v13656_v27 = vor.u32 %v15303_v45, %v13653_v13  ;;  %v15412_v45 = vld [vmem:[#allocation10 + $0x274] sm:$0xf0] }
 0x418   :  { %v13179_v42 = vld [vmem:[#allocation7 + $0xb58] sm:$0xf] }
 0x419   :  { %7886 = vmatpush.bf16.msrb.mxu2 %v12380_v21  ;;  %8860 = vmatpush.bf16.msrb.mxu0 %v13780_v38  ;;  %v7634_v21 = vpop.f32.mrf.mxu2  ;;  %v13468_v38 = vor.u32 %v15260_v7, %v13467_v2  ;;  %v15188_v32 = vld [vmem:[#allocation7 + $0xb74] sm:$0xf0]  ;;  %v15279_v2 = vld [vmem:[#allocation7 + $0xe54] sm:$0xf] }
 0x41a   :  { %v13435_v36 = vld [vmem:[#allocation7 + $0xd58] sm:$0xf]  ;;  %v13180_v57 = vor.u32 %v15188_v32, %v13179_v42  ;;  %v13557_v7 = vld [vmem:[#allocation7 + $0xe70] sm:$0xf0] }
 0x41b   :  { %7874 = vmatpush.bf16.msrb.mxu1 %v12092_v19  ;;  %v13717_v19 = vld [vmem:[#allocation7 + $0xfb0] sm:$0xf0]  ;;  %7799 = vmatpush.bf16.msrb.mxu3 %v12504_v46  ;;  %v15252_v43 = vld [vmem:[#allocation7 + $0xd74] sm:$0xf0]  ;;  %v13560_v42 = vor.u32 %v15279_v2, %v13557_v7  ;;  %v12445_v2 = vld [vmem:[#allocation7 + $0x5b8] sm:$0xf0] }
 0x41c   :  { %v13720_v16 = vor.u32 %v15319_v5, %v13717_v19  ;;  %v13436_v50 = vor.u32 %v15252_v43, %v13435_v36  ;;  %v15180_v14 = vld [vmem:[#allocation7 + $0xb34] sm:$0xf0] }
 0x41d   :  { %7887 = vmatpush.bf16.msrb.mxu2 %v12348_v17  ;;  %8861 = vmatpush.bf16.msrb.mxu0 %v13772_v8  ;;  %v12252_v17 = vor.u32 %v14956_v0, %v12251_v4  ;;  %v13403_v35 = vld [vmem:[#allocation7 + $0xd18] sm:$0xf] }
 0x41e   :  { %7800 = vmatmul.bf16.vlgmr.msrb.gmra.mxu3 %v16172_v11  ;;  %v15244_v8 = vld [vmem:[#allocation7 + $0xd34] sm:$0xf0] }
 0x41f   :  { %7875 = vmatpush.bf16.msrb.mxu1 %v12060_v48  ;;  %7844 = vmatpush.bf16.msra.mxu3 %v13752_v60  ;;  %v13212_v48 = vor.u32 %v15196_v1, %v13211_v59  ;;  %v13404_v44 = vor.u32 %v15244_v8, %v13403_v35  ;;  %v13115_v60 = vld [vmem:[#allocation7 + $0xad8] sm:$0xf] }
 0x420   :  { %v15172_v52 = vld [vmem:[#allocation7 + $0xaf4] sm:$0xf0] }
 0x421   :  { %7888 = vmatpush.bf16.msrb.mxu2 %v12316_v29  ;;  %8862 = vmatpush.bf16.msrb.mxu0 %v13764_v23  ;;  %v16342_v29 = vpack.c.bf16 %v8065_v18, %v8065_v18  ;;  %v16348_v46 = vpop.f32.mrf.mxu0  ;;  %v13371_v54 = vld [vmem:[#allocation7 + $0xcd8] sm:$0xf]  ;;  %v13116_v19 = vor.u32 %v15172_v52, %v13115_v60  ;;  %v12221_v60 = vld [vmem:[#allocation7 + $0x3f8] sm:$0xf0] }
 0x422   :  { %v7593_v24 = vpop.f32.mrf.mxu3  ;;  %v15228_v1 = vld [vmem:[#allocation7 + $0xcb4] sm:$0xf0]  ;;  %v15008_v52 = vld [vmem:[#allocation7 + $0x5dc] sm:$0xf] }
 0x423   :  { %7876 = vmatpush.bf16.msrb.mxu1 %v12028_v26  ;;  %7845 = vmatpush.bf16.msra.mxu3 %v13720_v16  ;;  %v13147_v26 = vld [vmem:[#allocation7 + $0xb18] sm:$0xf]  ;;  %v7594_v5 = vadd.f32 %v7593_v24, %v16318_v9  ;;  %v12477_v24 = vld [vmem:[#allocation7 + $0x5f8] sm:$0xf0] }
 0x424   :  { %8863 = vmatmul.bf16.vlgmr.msrb.gmra.mxu0 %v16342_v29  ;;  %v13148_v0 = vor.u32 %v15180_v14, %v13147_v26  ;;  %v13339_v16 = vld [vmem:[#allocation7 + $0xc98] sm:$0xf] }
 0x425   :  { %7889 = vmatpush.bf16.msrb.mxu2 %v12284_v51  ;;  %v7659_v51 = vadd.f32 %v16285_v12, %v4661_v53  ;;  %v13589_v12 = vld [vmem:[#allocation7 + $0xeb0] sm:$0xf0]  ;;  %v13307_v32 = vld [vmem:[#allocation7 + $0xc58] sm:$0xf] }
 0x426   :  { %v13592_v23 = vor.u32 %v15287_v15, %v13589_v12  ;;  %v14075_v43 = vld [vmem:[#allocation10 + $0x270] sm:$0xf] }
 0x427   :  { %7877 = vmatpush.bf16.msrb.mxu1 %v11996_v22  ;;  %7846 = vmatpush.bf16.msra.mxu3 %v13688_v39  ;;  %v7671_v4 = vpop.f32.mrf.mxu1  ;;  %v15236_v22 = vld [vmem:[#allocation7 + $0xcf4] sm:$0xf0] }
 0x428   :  { %v7672_v21 = vadd.f32 %v7671_v4, %v7659_v51  ;;  %v13372_v18 = vor.u32 %v15236_v22, %v13371_v54  ;;  %v15156_v39 = vld [vmem:[#allocation7 + $0xa74] sm:$0xf0]  ;;  %v15410_v54 = vld [vmem:[#allocation10 + $0x264] sm:$0xf0] }
 0x429   :  { %7890 = vmatpush.bf16.msrb.mxu2 %v12252_v17  ;;  %v7607_v17 = vadd.f32 %v16273_v40, %v7594_v5  ;;  %v7868_v53 = vpop.f32.mrf.mxu0  ;;  %v13340_v40 = vor.u32 %v15228_v1, %v13339_v16  ;;  %v12731_v26 = vld [vmem:[#allocation7 + $0x7d8] sm:$0xf]  ;;  %v15000_v16 = vld [vmem:[#allocation7 + $0x59c] sm:$0xf]  ;;  %v15408_v1 = vld [vmem:[#allocation10 + $0x254] sm:$0xf0] }
 0x42a   :  { %7878 = vmatmul.bf16.vlgmr.msrb.gmra.mxu1 %v16168_v20  ;;  %v7595_v13 = vpop.f32.mrf.mxu3  ;;  %v15076_v14 = vld [vmem:[#allocation7 + $0x7f4] sm:$0xf0] }
 0x42b   :  { %7922 = vmatpush.bf16.msra.mxu1 %v13244_v55  ;;  %7847 = vmatpush.bf16.msra.mxu3 %v13656_v27  ;;  %v13083_v55 = vld [vmem:[#allocation7 + $0xa98] sm:$0xf]  ;;  %v7620_v9 = vadd.f32 %v16328_v63, %v7607_v17  ;;  %v13525_v27 = vld [vmem:[#allocation7 + $0xe30] sm:$0xf0]  ;;  %v14076_v63 = vor.u32 %v15412_v45, %v14075_v43  ;;  %v15406_v43 = vld [vmem:[#allocation10 + $0x244] sm:$0xf0] }
 0x42c   :  { %7891 = vmatmul.bf16.vlgmr.msrb.gmra.mxu2 %v16170_v34  ;;  %v13019_v51 = vld [vmem:[#allocation7 + $0xa18] sm:$0xf]  ;;  %v12413_v45 = vld [vmem:[#allocation7 + $0x578] sm:$0xf0] }
 0x42d   :  { %7935 = vmatpush.bf16.msra.mxu2 %v13500_v25  ;;  %v15164_v25 = vld [vmem:[#allocation7 + $0xab4] sm:$0xf0]  ;;  %v16356_v36 = vadd.f32 %v16335_v30, %v7620_v9  ;;  %8907 = vmatpush.bf16.msra.mxu0 %v14076_v63  ;;  %v14920_v63 = vld [vmem:[#allocation7 + $0x31c] sm:$0xf] }
 0x42e   :  { %v15148_v8 = vld [vmem:[#allocation7 + $0xa34] sm:$0xf0] }
 0x42f   :  { %7923 = vmatpush.bf16.msra.mxu1 %v13212_v48  ;;  %7848 = vmatpush.bf16.msra.mxu3 %v13624_v31  ;;  %v7684_v59 = vpop.f32.mrf.mxu2  ;;  %v7673_v61 = vpop.f32.mrf.mxu1  ;;  %v13084_v48 = vor.u32 %v15164_v25, %v13083_v55  ;;  %v13275_v6 = vld [vmem:[#allocation7 + $0xc18] sm:$0xf]  ;;  %v12732_v31 = vor.u32 %v15076_v14, %v12731_v26  ;;  %v13020_v5 = vor.u32 %v15148_v8, %v13019_v51  ;;  %v12125_v51 = vld [vmem:[#allocation7 + $0x338] sm:$0xf0] }
 0x430   :  { %v16352_v10 = vadd.f32 %v7684_v59, %v7672_v21  ;;  %v15212_v4 = vld [vmem:[#allocation7 + $0xc34] sm:$0xf0]  ;;  %v14944_v21 = vld [vmem:[#allocation7 + $0x3dc] sm:$0xf]  ;;  %v12480_v55 = vor.u32 %v15008_v52, %v12477_v24 }
 0x431   :  { %7936 = vmatpush.bf16.msra.mxu2 %v13468_v38  ;;  %v13051_v38 = vld [vmem:[#allocation7 + $0xa58] sm:$0xf]  ;;  %v12224_v17 = vor.u32 %v14944_v21, %v12221_v60  ;;  %v14984_v8 = vld [vmem:[#allocation7 + $0x51c] sm:$0xf] }
 0x432   :  { %v13052_v35 = vor.u32 %v15156_v39, %v13051_v38  ;;  %v12699_v22 = vld [vmem:[#allocation7 + $0x798] sm:$0xf]  ;;  %v12157_v38 = vld [vmem:[#allocation7 + $0x378] sm:$0xf0]  ;;  %v12448_v39 = vor.u32 %v15000_v16, %v12445_v2 }
 0x433   :  { %7924 = vmatpush.bf16.msra.mxu1 %v13180_v57  ;;  %7849 = vmatpush.bf16.msra.mxu3 %v13592_v23  ;;  %v15220_v57 = vld [vmem:[#allocation7 + $0xc74] sm:$0xf0]  ;;  %v12189_v23 = vld [vmem:[#allocation7 + $0x3b8] sm:$0xf0] }
 0x434   :  { %v13308_v3 = vor.u32 %v15220_v57, %v13307_v32  ;;  %v15068_v15 = vld [vmem:[#allocation7 + $0x7b4] sm:$0xf0]  ;;  %v14051_v32 = vld [vmem:[#allocation10 + $0x240] sm:$0xf]  ;;  %v12093_v60 = vld [vmem:[#allocation7 + $0x2f8] sm:$0xf0] }
 0x435   :  { %7937 = vmatpush.bf16.msra.mxu2 %v13436_v50  ;;  %v15271_v50 = vld [vmem:[#allocation7 + $0xe14] sm:$0xf]  ;;  %v12700_v25 = vor.u32 %v15068_v15, %v12699_v22  ;;  %v14059_v59 = vld [vmem:[#allocation10 + $0x250] sm:$0xf]  ;;  %v14976_v22 = vld [vmem:[#allocation7 + $0x4dc] sm:$0xf] }
 0x436   :  { %v13528_v30 = vor.u32 %v15271_v50, %v13525_v27  ;;  %v12667_v7 = vld [vmem:[#allocation7 + $0x758] sm:$0xf]  ;;  %v14060_v9 = vor.u32 %v15408_v1, %v14059_v59  ;;  %v14052_v50 = vor.u32 %v15406_v43, %v14051_v32  ;;  %v14035_v15 = vld [vmem:[#allocation10 + $0x220] sm:$0xf]  ;;  %v14904_v16 = vld [vmem:[#allocation7 + $0x29c] sm:$0xf] }
 0x437   :  { %7925 = vmatpush.bf16.msra.mxu1 %v13148_v0  ;;  %7850 = vmatpush.bf16.msra.mxu3 %v13560_v42  ;;  %v14067_v0 = vld [vmem:[#allocation10 + $0x260] sm:$0xf]  ;;  %v15060_v61 = vld [vmem:[#allocation7 + $0x774] sm:$0xf0]  ;;  %v14992_v42 = vld [vmem:[#allocation7 + $0x55c] sm:$0xf] }
 0x438   :  { %v14068_v12 = vor.u32 %v15410_v54, %v14067_v0  ;;  %v12635_v13 = vld [vmem:[#allocation7 + $0x718] sm:$0xf]  ;;  %v12416_v14 = vor.u32 %v14992_v42, %v12413_v45  ;;  %v12061_v59 = vld [vmem:[#allocation7 + $0x2b8] sm:$0xf0] }
 0x439   :  { %7938 = vmatpush.bf16.msra.mxu2 %v13404_v44  ;;  %v7686_v44 = vpop.f32.mrf.mxu2  ;;  %v15052_v57 = vld [vmem:[#allocation7 + $0x734] sm:$0xf0]  ;;  %v14896_v42 = vld [vmem:[#allocation7 + $0x25c] sm:$0xf]  ;;  %v12064_v32 = vor.u32 %v14904_v16, %v12061_v59 }
 0x43a   :  { %8908 = vmatpush.bf16.msra.mxu0 %v14068_v12  ;;  %v14043_v26 = vld [vmem:[#allocation10 + $0x230] sm:$0xf]  ;;  %v12128_v44 = vor.u32 %v14920_v63, %v12125_v51  ;;  %v15402_v12 = vld [vmem:[#allocation10 + $0x224] sm:$0xf0]  ;;  %v12029_v43 = vld [vmem:[#allocation7 + $0x278] sm:$0xf0] }
 0x43b   :  { %7926 = vmatpush.bf16.msra.mxu1 %v13116_v19  ;;  %7851 = vmatpush.bf16.msra.mxu3 %v13528_v30  ;;  %v13276_v19 = vor.u32 %v15212_v4, %v13275_v6  ;;  %v15404_v6 = vld [vmem:[#allocation10 + $0x234] sm:$0xf0]  ;;  %v12603_v30 = vld [vmem:[#allocation7 + $0x6d8] sm:$0xf]  ;;  %v14960_v45 = vld [vmem:[#allocation7 + $0x45c] sm:$0xf] }
 0x43c   :  { %v15044_v4 = vld [vmem:[#allocation7 + $0x6f4] sm:$0xf0]  ;;  %v14044_v21 = vor.u32 %v15404_v6, %v14043_v26  ;;  %v14019_v63 = vld [vmem:[#allocation10 + $0x200] sm:$0xf]  ;;  %v15398_v26 = vld [vmem:[#allocation10 + $0x204] sm:$0xf0] }
 0x43d   :  { %7939 = vmatpush.bf16.msra.mxu2 %v13372_v18  ;;  %v14936_v18 = vld [vmem:[#allocation7 + $0x39c] sm:$0xf]  ;;  %v12604_v24 = vor.u32 %v15044_v4, %v12603_v30  ;;  %v15020_v51 = vld [vmem:[#allocation7 + $0x634] sm:$0xf0]  ;;  %v13821_v6 = vld [vmem:[#allocation10 + $0x78] sm:$0xf0] }
 0x43e   :  { %7852 = vmatmul.bf16.vlgmr.msra.gmra.mxu3 %v16226_v41  ;;  %v12192_v53 = vor.u32 %v14936_v18, %v12189_v23  ;;  %8909 = vmatpush.bf16.msra.mxu0 %v14060_v9  ;;  %v14036_v18 = vor.u32 %v15402_v12, %v14035_v15  ;;  %v15400_v9 = vld [vmem:[#allocation10 + $0x214] sm:$0xf0]  ;;  %v13755_v30 = vld [vmem:[#allocation7 + $0xfd8] sm:$0xf]  ;;  %v12253_v15 = vld [vmem:[#allocation7 + $0x438] sm:$0xf0] }
 0x43f   :  { %7927 = vmatpush.bf16.msra.mxu1 %v13084_v48  ;;  %7896 = vmatpush.bf16.msrb.mxu3 %v12732_v31  ;;  %v14928_v48 = vld [vmem:[#allocation7 + $0x35c] sm:$0xf]  ;;  %v15332_v4 = vld [vmem:[#allocation7 + $0xff4] sm:$0xf0] }
 0x440   :  { %v12160_v27 = vor.u32 %v14928_v48, %v12157_v38  ;;  %v14912_v31 = vld [vmem:[#allocation7 + $0x2dc] sm:$0xf]  ;;  %v12539_v48 = vld [vmem:[#allocation7 + $0x658] sm:$0xf] }
 0x441   :  { %7940 = vmatpush.bf16.msra.mxu2 %v13340_v40  ;;  %v12668_v40 = vor.u32 %v15060_v61, %v12667_v7  ;;  %v16363_v52 = vpop.f32.mrf.mxu0  ;;  %v7645_v23 = vpop.f32.mrf.mxu3  ;;  %v14968_v7 = vld [vmem:[#allocation7 + $0x49c] sm:$0xf]  ;;  %v14027_v61 = vld [vmem:[#allocation10 + $0x210] sm:$0xf] }
 0x442   :  { %8910 = vmatpush.bf16.msra.mxu0 %v14052_v50  ;;  %v15028_v38 = vld [vmem:[#allocation7 + $0x674] sm:$0xf0]  ;;  %v15200_v12 = vld [vmem:[#allocation7 + $0xbdc] sm:$0xf] }
 0x443   :  { %7928 = vmatpush.bf16.msra.mxu1 %v13052_v35  ;;  %7897 = vmatpush.bf16.msrb.mxu3 %v12700_v25  ;;  %v12636_v35 = vor.u32 %v15052_v57, %v12635_v13  ;;  %v12096_v25 = vor.u32 %v14912_v31, %v12093_v60  ;;  %v12285_v13 = vld [vmem:[#allocation7 + $0x478] sm:$0xf0]  ;;  %v13723_v59 = vld [vmem:[#allocation7 + $0xf98] sm:$0xf] }
 0x444   :  { %v14888_v31 = vld [vmem:[#allocation7 + $0x21c] sm:$0xf] }
 0x445   :  { %7941 = vmatpush.bf16.msra.mxu2 %v13308_v3  ;;  %v12381_v3 = vld [vmem:[#allocation7 + $0x538] sm:$0xf0] }
 0x446   :  { %v12384_v54 = vor.u32 %v14984_v8, %v12381_v3  ;;  %8911 = vmatpush.bf16.msra.mxu0 %v14044_v21  ;;  %v14020_v8 = vor.u32 %v15398_v26, %v14019_v63  ;;  %v11997_v60 = vld [vmem:[#allocation7 + $0x238] sm:$0xf0] }
 0x447   :  { %7929 = vmatpush.bf16.msra.mxu1 %v13020_v5  ;;  %7898 = vmatpush.bf16.msrb.mxu3 %v12668_v40  ;;  %v16361_v0 = vpop.f32.mrf.mxu1  ;;  %v12349_v5 = vld [vmem:[#allocation7 + $0x4f8] sm:$0xf0] }
 0x448   :  { %v12352_v1 = vor.u32 %v14976_v22, %v12349_v5  ;;  %v15345_v5 = vld [vmem:[#allocation10 + $0x64] sm:$0xf]  ;;  %v13501_v16 = vld [vmem:[#allocation7 + $0xdf8] sm:$0xf0] }
 0x449   :  { %7942 = vmatpush.bf16.msra.mxu2 %v13276_v19  ;;  %v12571_v19 = vld [vmem:[#allocation7 + $0x698] sm:$0xf]  ;;  %v7920_v57 = vpop.f32.mrf.mxu0  ;;  %v7647_v3 = vpop.f32.mrf.mxu3  ;;  %v13181_v63 = vld [vmem:[#allocation7 + $0xb78] sm:$0xf0] }
 0x44a   :  { %7930 = vmatmul.bf16.vlgmr.msra.gmra.mxu1 %v16193_v47  ;;  %8912 = vmatpush.bf16.msra.mxu0 %v14036_v18  ;;  %v15264_v18 = vld [vmem:[#allocation7 + $0xddc] sm:$0xf]  ;;  %v13659_v3 = vld [vmem:[#allocation7 + $0xf18] sm:$0xf] }
 0x44b   :  { %7974 = vmatpush.bf16.msrb.mxu1 %v12224_v17  ;;  %7899 = vmatpush.bf16.msrb.mxu3 %v12636_v35  ;;  %v15036_v17 = vld [vmem:[#allocation7 + $0x6b4] sm:$0xf0] }
 0x44c   :  { %7943 = vmatmul.bf16.vlgmr.msra.gmra.mxu2 %v16199_v49  ;;  %v12572_v2 = vor.u32 %v15036_v17, %v12571_v19  ;;  %v12507_v35 = vld [vmem:[#allocation7 + $0x618] sm:$0xf]  ;;  %v13756_v19 = vor.u32 %v15332_v4, %v13755_v30  ;;  %v13245_v17 = vld [vmem:[#allocation7 + $0xbf8] sm:$0xf0] }
 0x44d   :  { %7987 = vmatpush.bf16.msrb.mxu2 %v12480_v55  ;;  %v16366_v55 = vadd.f32 %v7645_v23, %v16356_v36  ;;  %v12508_v22 = vor.u32 %v15020_v51, %v12507_v35  ;;  %v13813_v23 = vld [vmem:[#allocation10 + $0x68] sm:$0xf0]  ;;  %v15248_v35 = vld [vmem:[#allocation7 + $0xd5c] sm:$0xf]  ;;  %v15341_v51 = vld [vmem:[#allocation10 + $0x44] sm:$0xf] }
 0x44e   :  { %v15308_v30 = vld [vmem:[#allocation7 + $0xf34] sm:$0xf0] }
 0x44f   :  { %7975 = vmatpush.bf16.msrb.mxu1 %v12192_v53  ;;  %7900 = vmatpush.bf16.msrb.mxu3 %v12604_v24  ;;  %v12317_v53 = vld [vmem:[#allocation7 + $0x4b8] sm:$0xf0]  ;;  %v16368_v40 = vpop.f32.mrf.mxu2  ;;  %v7725_v36 = vpop.f32.mrf.mxu1  ;;  %v12288_v24 = vor.u32 %v14960_v45, %v12285_v13  ;;  %v13691_v45 = vld [vmem:[#allocation7 + $0xf58] sm:$0xf] }
 0x450   :  { %v12320_v50 = vor.u32 %v14968_v7, %v12317_v53  ;;  %v12000_v7 = vor.u32 %v14888_v31, %v11997_v60  ;;  %v15192_v53 = vld [vmem:[#allocation7 + $0xb9c] sm:$0xf]  ;;  %v15316_v13 = vld [vmem:[#allocation7 + $0xf74] sm:$0xf0] }
 0x451   :  { %7988 = vmatpush.bf16.msrb.mxu2 %v12448_v39  ;;  %v14028_v39 = vor.u32 %v15400_v9, %v14027_v61  ;;  %v13248_v9 = vor.u32 %v15200_v12, %v13245_v17  ;;  %v15343_v36 = vld [vmem:[#allocation10 + $0x54] sm:$0xf] }
 0x452   :  { %v15176_v31 = vld [vmem:[#allocation7 + $0xb1c] sm:$0xf] }
 0x453   :  { %7976 = vmatpush.bf16.msrb.mxu1 %v12160_v27  ;;  %7901 = vmatpush.bf16.msrb.mxu3 %v12572_v2  ;;  %v12540_v27 = vor.u32 %v15028_v38, %v12539_v48  ;;  %v13816_v2 = vor.u32 %v15345_v5, %v13813_v23  ;;  %v13213_v48 = vld [vmem:[#allocation7 + $0xbb8] sm:$0xf0]  ;;  %v13504_v38 = vor.u32 %v15264_v18, %v13501_v16  ;;  %v13627_v5 = vld [vmem:[#allocation7 + $0xed8] sm:$0xf] }
 0x454   :  { %8913 = vmatpush.bf16.msra.mxu0 %v14028_v39  ;;  %v15339_v60 = vld [vmem:[#allocation10 + $0x34] sm:$0xf] }
 0x455   :  { %7989 = vmatpush.bf16.msrb.mxu2 %v12416_v14  ;;  %v15347_v14 = vld [vmem:[#allocation10 + $0x74] sm:$0xf] }
 0x456   :  { %v13824_v21 = vor.u32 %v15347_v14, %v13821_v6  ;;  %v13692_v14 = vor.u32 %v15316_v13, %v13691_v45  ;;  %v13437_v6 = vld [vmem:[#allocation7 + $0xd78] sm:$0xf0] }
 0x457   :  { %7977 = vmatpush.bf16.msrb.mxu1 %v12128_v44  ;;  %v12032_v44 = vor.u32 %v14896_v42, %v12029_v43  ;;  %7902 = vmatpush.bf16.msrb.mxu3 %v12540_v27  ;;  %v15256_v42 = vld [vmem:[#allocation7 + $0xd9c] sm:$0xf] }
 0x458   :  { %8914 = vmatpush.bf16.msra.mxu0 %v14020_v8  ;;  %v13469_v43 = vld [vmem:[#allocation7 + $0xdb8] sm:$0xf0]  ;;  %v13797_v8 = vld [vmem:[#allocation10 + $0x48] sm:$0xf0] }
 0x459   :  { %7990 = vmatpush.bf16.msrb.mxu2 %v12384_v54  ;;  %v14952_v54 = vld [vmem:[#allocation7 + $0x41c] sm:$0xf]  ;;  %v13472_v26 = vor.u32 %v15256_v42, %v13469_v43  ;;  %v13800_v4 = vor.u32 %v15341_v51, %v13797_v8 }
 0x45a   :  { %v12256_v61 = vor.u32 %v14952_v54, %v12253_v15  ;;  %v15184_v27 = vld [vmem:[#allocation7 + $0xb5c] sm:$0xf]  ;;  %v13440_v54 = vor.u32 %v15248_v35, %v13437_v6 }
 0x45b   :  { %7978 = vmatpush.bf16.msrb.mxu1 %v12096_v25  ;;  %v7738_v25 = vpop.f32.mrf.mxu2  ;;  %7903 = vmatpush.bf16.msrb.mxu3 %v12508_v22  ;;  %v13149_v22 = vld [vmem:[#allocation7 + $0xb38] sm:$0xf0] }
 0x45c   :  { %8959 = vmatpush.bf16.msrb.mxu0 %v13824_v21  ;;  %v4662_v21 = vperm.slane %v16339_v62, 5  ;;  %v15240_v15 = vld [vmem:[#allocation7 + $0xd1c] sm:$0xf]  ;;  %v13152_v62 = vor.u32 %v15176_v31, %v13149_v22  ;;  %v15333_v31 = vld [vmem:[#allocation10 + $0x4] sm:$0xf] }
 0x45d   :  { %7991 = vmatpush.bf16.msrb.mxu2 %v12352_v1  ;;  %v15324_v1 = vld [vmem:[#allocation7 + $0xfb4] sm:$0xf0]  ;;  %v13405_v12 = vld [vmem:[#allocation7 + $0xd38] sm:$0xf0] }
 0x45e   :  { %v13724_v39 = vor.u32 %v15324_v1, %v13723_v59  ;;  %7904 = vmatmul.bf16.vlgmr.msrb.gmra.mxu3 %v16172_v11  ;;  %v15168_v18 = vld [vmem:[#allocation7 + $0xadc] sm:$0xf]  ;;  %v13408_v16 = vor.u32 %v15240_v15, %v13405_v12  ;;  %v13531_v22 = vld [vmem:[#allocation7 + $0xe18] sm:$0xf] }
 0x45f   :  { %7979 = vmatpush.bf16.msrb.mxu1 %v12064_v32  ;;  %7948 = vmatpush.bf16.msra.mxu3 %v13756_v19  ;;  %v13805_v32 = vld [vmem:[#allocation10 + $0x58] sm:$0xf0]  ;;  %v15300_v19 = vld [vmem:[#allocation7 + $0xef4] sm:$0xf0]  ;;  %v13117_v23 = vld [vmem:[#allocation7 + $0xaf8] sm:$0xf0] }
 0x460   :  { %8960 = vmatpush.bf16.msrb.mxu0 %v13816_v2  ;;  %v13808_v57 = vor.u32 %v15343_v36, %v13805_v32  ;;  %v13628_v59 = vor.u32 %v15300_v19, %v13627_v5  ;;  %v15232_v1 = vld [vmem:[#allocation7 + $0xcdc] sm:$0xf]  ;;  %v15337_v2 = vld [vmem:[#allocation10 + $0x24] sm:$0xf]  ;;  %v13120_v42 = vor.u32 %v15168_v18, %v13117_v23  ;;  %v15276_v15 = vld [vmem:[#allocation7 + $0xe34] sm:$0xf0] }
 0x461   :  { %7992 = vmatpush.bf16.msrb.mxu2 %v12320_v50  ;;  %v13216_v50 = vor.u32 %v15192_v53, %v13213_v48  ;;  %v13373_v53 = vld [vmem:[#allocation7 + $0xcf8] sm:$0xf0]  ;;  %v13595_v48 = vld [vmem:[#allocation7 + $0xe98] sm:$0xf]  ;;  %v13532_v18 = vor.u32 %v15276_v15, %v13531_v22  ;;  %v13923_v22 = vld [vmem:[#allocation10 + $0x140] sm:$0xf] }
 0x462   :  { %v15160_v36 = vld [vmem:[#allocation7 + $0xa9c] sm:$0xf]  ;;  %v13376_v43 = vor.u32 %v15232_v1, %v13373_v53  ;;  %v13883_v1 = vld [vmem:[#allocation10 + $0xf0] sm:$0xf]  ;;  %v15374_v15 = vld [vmem:[#allocation10 + $0x144] sm:$0xf0] }
 0x463   :  { %7980 = vmatpush.bf16.msrb.mxu1 %v12032_v44  ;;  %7949 = vmatpush.bf16.msra.mxu3 %v13724_v39  ;;  %v13184_v44 = vor.u32 %v15184_v27, %v13181_v63  ;;  %v16377_v39 = vpop.f32.mrf.mxu3  ;;  %v13085_v32 = vld [vmem:[#allocation7 + $0xab8] sm:$0xf0]  ;;  %v13563_v63 = vld [vmem:[#allocation7 + $0xe58] sm:$0xf] }
 0x464   :  { %8961 = vmatpush.bf16.msrb.mxu0 %v13808_v57  ;;  %v15224_v13 = vld [vmem:[#allocation7 + $0xc9c] sm:$0xf]  ;;  %v13088_v51 = vor.u32 %v15160_v36, %v13085_v32 }
 0x465   :  { %7993 = vmatpush.bf16.msrb.mxu2 %v12288_v24  ;;  %v13660_v24 = vor.u32 %v15308_v30, %v13659_v3  ;;  %v15335_v57 = vld [vmem:[#allocation10 + $0x14] sm:$0xf] }
 0x466   :  { %v13341_v27 = vld [vmem:[#allocation7 + $0xcb8] sm:$0xf0] }
 0x467   :  { %7981 = vmatpush.bf16.msrb.mxu1 %v12000_v7  ;;  %7950 = vmatpush.bf16.msra.mxu3 %v13692_v14  ;;  %v7775_v25 = vpop.f32.mrf.mxu1  ;;  %v13781_v7 = vld [vmem:[#allocation10 + $0x28] sm:$0xf0]  ;;  %v15152_v8 = vld [vmem:[#allocation7 + $0xa5c] sm:$0xf] }
 0x468   :  { %8962 = vmatpush.bf16.msrb.mxu0 %v13800_v4  ;;  %v13053_v6 = vld [vmem:[#allocation7 + $0xa78] sm:$0xf0]  ;;  %v13344_v4 = vor.u32 %v15224_v13, %v13341_v27  ;;  %v15362_v13 = vld [vmem:[#allocation10 + $0xe4] sm:$0xf0] }
 0x469   :  { %7994 = vmatpush.bf16.msrb.mxu2 %v12256_v61  ;;  %v15072_v12 = vld [vmem:[#allocation7 + $0x7dc] sm:$0xf] }
 0x46a   :  { %7982 = vmatmul.bf16.vlgmr.msrb.gmra.mxu1 %v16168_v20  ;;  %v13789_v20 = vld [vmem:[#allocation10 + $0x38] sm:$0xf0]  ;;  %v12733_v5 = vld [vmem:[#allocation7 + $0x7f8] sm:$0xf0] }
 0x46b   :  { %8026 = vmatpush.bf16.msra.mxu1 %v13248_v9  ;;  %v13792_v17 = vor.u32 %v15339_v60, %v13789_v20  ;;  %7951 = vmatpush.bf16.msra.mxu3 %v13660_v24  ;;  %v16375_v9 = vpop.f32.mrf.mxu0  ;;  %v13765_v60 = vld [vmem:[#allocation10 + $0x8] sm:$0xf0]  ;;  %v13309_v24 = vld [vmem:[#allocation7 + $0xc78] sm:$0xf0]  ;;  %v7699_v19 = vpop.f32.mrf.mxu3 }
 0x46c   :  { %7995 = vmatmul.bf16.vlgmr.msrb.gmra.mxu2 %v16170_v34  ;;  %v7763_v34 = vadd.f32 %v16314_v56, %v4662_v21  ;;  %v13784_v56 = vor.u32 %v15337_v2, %v13781_v7  ;;  %v13768_v20 = vor.u32 %v15333_v31, %v13765_v60  ;;  %v13021_v23 = vld [vmem:[#allocation7 + $0xa38] sm:$0xf0]  ;;  %v15364_v2 = vld [vmem:[#allocation10 + $0xf4] sm:$0xf0]  ;;  %v13947_v7 = vld [vmem:[#allocation10 + $0x170] sm:$0xf] }
 0x46d   :  { %8039 = vmatpush.bf16.msra.mxu2 %v13504_v38  ;;  %v15292_v38 = vld [vmem:[#allocation7 + $0xeb4] sm:$0xf0]  ;;  %8963 = vmatpush.bf16.msrb.mxu0 %v13792_v17  ;;  %v13056_v17 = vor.u32 %v15152_v8, %v13053_v6  ;;  %v15064_v53 = vld [vmem:[#allocation7 + $0x79c] sm:$0xf]  ;;  %v13884_v36 = vor.u32 %v15364_v2, %v13883_v1  ;;  %v15360_v6 = vld [vmem:[#allocation10 + $0xd4] sm:$0xf0] }
 0x46e   :  { %v7776_v61 = vadd.f32 %v7775_v25, %v7763_v34  ;;  %v13596_v45 = vor.u32 %v15292_v38, %v13595_v48  ;;  %v15144_v34 = vld [vmem:[#allocation7 + $0xa1c] sm:$0xf]  ;;  %v13867_v8 = vld [vmem:[#allocation10 + $0xd0] sm:$0xf] }
 0x46f   :  { %8027 = vmatpush.bf16.msra.mxu1 %v13216_v50  ;;  %7952 = vmatpush.bf16.msra.mxu3 %v13628_v59  ;;  %v13773_v50 = vld [vmem:[#allocation10 + $0x18] sm:$0xf0]  ;;  %v7788_v35 = vpop.f32.mrf.mxu2  ;;  %v7777_v30 = vpop.f32.mrf.mxu1  ;;  %v15208_v25 = vld [vmem:[#allocation7 + $0xc1c] sm:$0xf]  ;;  %v12736_v59 = vor.u32 %v15072_v12, %v12733_v5  ;;  %v13851_v19 = vld [vmem:[#allocation10 + $0xb0] sm:$0xf] }
 0x470   :  { %v13776_v14 = vor.u32 %v15335_v57, %v13773_v50  ;;  %v16379_v3 = vadd.f32 %v7788_v35, %v7776_v61  ;;  %v15380_v61 = vld [vmem:[#allocation10 + $0x174] sm:$0xf0]  ;;  %v12701_v48 = vld [vmem:[#allocation7 + $0x7b8] sm:$0xf0]  ;;  %v13939_v57 = vld [vmem:[#allocation10 + $0x160] sm:$0xf] }
 0x471   :  { %8040 = vmatpush.bf16.msra.mxu2 %v13472_v26  ;;  %v15284_v26 = vld [vmem:[#allocation7 + $0xe74] sm:$0xf0]  ;;  %8964 = vmatpush.bf16.msrb.mxu0 %v13784_v56  ;;  %v13024_v56 = vor.u32 %v15144_v34, %v13021_v23  ;;  %v13948_v32 = vor.u32 %v15380_v61, %v13947_v7  ;;  %v15378_v50 = vld [vmem:[#allocation10 + $0x164] sm:$0xf0]  ;;  %v15056_v27 = vld [vmem:[#allocation7 + $0x75c] sm:$0xf] }
 0x472   :  { %v13564_v21 = vor.u32 %v15284_v26, %v13563_v63  ;;  %v12669_v63 = vld [vmem:[#allocation7 + $0x778] sm:$0xf0]  ;;  %v7698_v26 = vadd.f32 %v16377_v39, %v16352_v10  ;;  %v13940_v35 = vor.u32 %v15378_v50, %v13939_v57  ;;  %v13931_v30 = vld [vmem:[#allocation10 + $0x150] sm:$0xf]  ;;  %v13868_v10 = vor.u32 %v15360_v6, %v13867_v8  ;;  %v13843_v61 = vld [vmem:[#allocation10 + $0xa0] sm:$0xf] }
 0x473   :  { %8028 = vmatpush.bf16.msra.mxu1 %v13184_v44  ;;  %7953 = vmatpush.bf16.msra.mxu3 %v13596_v45  ;;  %v15216_v44 = vld [vmem:[#allocation7 + $0xc5c] sm:$0xf]  ;;  %v13875_v45 = vld [vmem:[#allocation10 + $0xe0] sm:$0xf]  ;;  %v13915_v34 = vld [vmem:[#allocation10 + $0x130] sm:$0xf] }
 0x474   :  { %v7711_v31 = vadd.f32 %v16302_v33, %v7698_v26  ;;  %v12605_v12 = vld [vmem:[#allocation7 + $0x6f8] sm:$0xf0]  ;;  %v13835_v57 = vld [vmem:[#allocation10 + $0x90] sm:$0xf] }
 0x475   :  { %8041 = vmatpush.bf16.msra.mxu2 %v13440_v54  ;;  %v7972_v54 = vpop.f32.mrf.mxu0  ;;  %8965 = vmatpush.bf16.msrb.mxu0 %v13776_v14  ;;  %v13876_v14 = vor.u32 %v15362_v13, %v13875_v45  ;;  %v15032_v23 = vld [vmem:[#allocation7 + $0x69c] sm:$0xf]  ;;  %v13899_v26 = vld [vmem:[#allocation10 + $0x110] sm:$0xf] }
 0x476   :  { %v13859_v54 = vld [vmem:[#allocation10 + $0xc0] sm:$0xf]  ;;  %v7724_v5 = vadd.f32 %v16361_v0, %v7711_v31  ;;  %v15016_v6 = vld [vmem:[#allocation7 + $0x61c] sm:$0xf]  ;;  %v15409_v31 = vld [vmem:[#allocation10 + $0x264] sm:$0xf] }
 0x477   :  { %8029 = vmatpush.bf16.msra.mxu1 %v13152_v62  ;;  %7954 = vmatpush.bf16.msra.mxu3 %v13564_v21  ;;  %v13312_v62 = vor.u32 %v15216_v44, %v13309_v24  ;;  %v7790_v38 = vpop.f32.mrf.mxu2  ;;  %v15048_v21 = vld [vmem:[#allocation7 + $0x71c] sm:$0xf]  ;;  %v15358_v24 = vld [vmem:[#allocation10 + $0xc4] sm:$0xf0] }
 0x478   :  { %v12637_v44 = vld [vmem:[#allocation7 + $0x738] sm:$0xf0] }
 0x479   :  { %8042 = vmatpush.bf16.msra.mxu2 %v13408_v16  ;;  %v13277_v16 = vld [vmem:[#allocation7 + $0xc38] sm:$0xf0]  ;;  %8966 = vmatpush.bf16.msrb.mxu0 %v13768_v20  ;;  %v12640_v60 = vor.u32 %v15048_v21, %v12637_v44 }
 0x47a   :  { %v15040_v20 = vld [vmem:[#allocation7 + $0x6dc] sm:$0xf] }
 0x47b   :  { %8030 = vmatpush.bf16.msra.mxu1 %v13120_v42  ;;  %7955 = vmatpush.bf16.msra.mxu3 %v13532_v18  ;;  %v13280_v42 = vor.u32 %v15208_v25, %v13277_v16  ;;  %v12608_v33 = vor.u32 %v15040_v20, %v12605_v12  ;;  %v15372_v18 = vld [vmem:[#allocation10 + $0x134] sm:$0xf0]  ;;  %v12573_v25 = vld [vmem:[#allocation7 + $0x6b8] sm:$0xf0]  ;;  %v13891_v20 = vld [vmem:[#allocation10 + $0x100] sm:$0xf] }
 0x47c   :  { %v13916_v2 = vor.u32 %v15372_v18, %v13915_v34  ;;  %v12576_v7 = vor.u32 %v15032_v23, %v12573_v25  ;;  %v13757_v44 = vld [vmem:[#allocation7 + $0xff8] sm:$0xf0]  ;;  %v15366_v12 = vld [vmem:[#allocation10 + $0x104] sm:$0xf0]  ;;  %v14061_v18 = vld [vmem:[#allocation10 + $0x258] sm:$0xf0] }
 0x47d   :  { %8043 = vmatpush.bf16.msra.mxu2 %v13376_v43  ;;  %v12704_v43 = vor.u32 %v15064_v53, %v12701_v48  ;;  %v15354_v53 = vld [vmem:[#allocation10 + $0xa4] sm:$0xf0]  ;;  %v13907_v48 = vld [vmem:[#allocation10 + $0x120] sm:$0xf]  ;;  %v15407_v34 = vld [vmem:[#allocation10 + $0x254] sm:$0xf] }
 0x47e   :  { %7956 = vmatmul.bf16.vlgmr.msra.gmra.mxu3 %v16226_v41  ;;  %v13844_v13 = vor.u32 %v15354_v53, %v13843_v61  ;;  %v8066_v25 = vmax.f32 %v16304_v58, 0.0  ;;  %v14064_v61 = vor.u32 %v15407_v34, %v14061_v18  ;;  %v14131_v53 = vld [vmem:[#allocation10 + $0x2e0] sm:$0xf] }
 0x47f   :  { %8031 = vmatpush.bf16.msra.mxu1 %v13088_v51  ;;  %8000 = vmatpush.bf16.msrb.mxu3 %v12736_v59  ;;  %v12672_v51 = vor.u32 %v15056_v27, %v12669_v63  ;;  %v7737_v59 = vadd.f32 %v16368_v40, %v7724_v5  ;;  %v15352_v63 = vld [vmem:[#allocation10 + $0x94] sm:$0xf0]  ;;  %v14099_v18 = vld [vmem:[#allocation10 + $0x2a0] sm:$0xf] }
 0x480   :  { %v16401_v58 = vpack.c.bf16 %v8066_v25, %v8066_v25  ;;  %v15280_v25 = vld [vmem:[#allocation7 + $0xe5c] sm:$0xf] }
 0x481   :  { %8044 = vmatpush.bf16.msra.mxu2 %v13344_v4  ;;  %v15376_v4 = vld [vmem:[#allocation10 + $0x154] sm:$0xf0]  ;;  %v16390_v16 = vpop.f32.mrf.mxu0  ;;  %v7749_v0 = vpop.f32.mrf.mxu3 }
 0x482   :  { %v13932_v39 = vor.u32 %v15376_v4, %v13931_v30  ;;  %v7750_v38 = vadd.f32 %v7749_v0, %v7737_v59  ;;  %v12509_v30 = vld [vmem:[#allocation7 + $0x638] sm:$0xf0]  ;;  %v8067_v59 = vmax.f32 %v16333_v28, 0.0  ;;  %v13892_v0 = vor.u32 %v15366_v12, %v13891_v20 }
 0x483   :  { %8032 = vmatpush.bf16.msra.mxu1 %v13056_v17  ;;  %8001 = vmatpush.bf16.msrb.mxu3 %v12704_v43  ;;  %v15356_v17 = vld [vmem:[#allocation10 + $0xb4] sm:$0xf0]  ;;  %v14077_v43 = vld [vmem:[#allocation10 + $0x278] sm:$0xf0]  ;;  %v15328_v4 = vld [vmem:[#allocation7 + $0xfdc] sm:$0xf] }
 0x484   :  { %v13852_v1 = vor.u32 %v15356_v17, %v13851_v19  ;;  %v8069_v45 = vmax.f32 %v7750_v38, 0.0  ;;  %v15320_v19 = vld [vmem:[#allocation7 + $0xf9c] sm:$0xf] }
 0x485   :  { %8045 = vmatpush.bf16.msra.mxu2 %v13312_v62  ;;  %v13725_v17 = vld [vmem:[#allocation7 + $0xfb8] sm:$0xf0] }
 0x486   :  { %v15312_v38 = vld [vmem:[#allocation7 + $0xf5c] sm:$0xf] }
 0x487   :  { %8033 = vmatpush.bf16.msra.mxu1 %v13024_v56  ;;  %8002 = vmatpush.bf16.msrb.mxu3 %v12672_v51  ;;  %v16388_v62 = vpop.f32.mrf.mxu1  ;;  %v15370_v56 = vld [vmem:[#allocation10 + $0x124] sm:$0xf0]  ;;  %v13597_v12 = vld [vmem:[#allocation7 + $0xeb8] sm:$0xf0] }
 0x488   :  { %v13908_v50 = vor.u32 %v15370_v56, %v13907_v48  ;;  %v15426_v48 = vld [vmem:[#allocation10 + $0x2e4] sm:$0xf0]  ;;  %v13693_v56 = vld [vmem:[#allocation7 + $0xf78] sm:$0xf0] }
 0x489   :  { %8046 = vmatpush.bf16.msra.mxu2 %v13280_v42  ;;  %v15024_v42 = vld [vmem:[#allocation7 + $0x65c] sm:$0xf]  ;;  %v8024_v21 = vpop.f32.mrf.mxu0  ;;  %v14132_v28 = vor.u32 %v15426_v48, %v14131_v53 }
 0x48a   :  { %8034 = vmatmul.bf16.vlgmr.msra.gmra.mxu1 %v16193_v47  ;;  %v13860_v47 = vor.u32 %v15358_v24, %v13859_v54  ;;  %v7751_v54 = vpop.f32.mrf.mxu3  ;;  %v15296_v21 = vld [vmem:[#allocation7 + $0xedc] sm:$0xf] }
 0x48b   :  { %8868 = vmatpush.bf16.msrb.mxu1 %v13884_v36  ;;  %8003 = vmatpush.bf16.msrb.mxu3 %v12640_v60  ;;  %v12541_v36 = vld [vmem:[#allocation7 + $0x678] sm:$0xf0]  ;;  %v13827_v60 = vld [vmem:[#allocation10 + $0x80] sm:$0xf] }
 0x48c   :  { %8047 = vmatmul.bf16.vlgmr.msra.gmra.mxu2 %v16199_v49  ;;  %v13924_v49 = vor.u32 %v15374_v15, %v13923_v22  ;;  %v12544_v27 = vor.u32 %v15024_v42, %v12541_v36  ;;  %v12512_v22 = vor.u32 %v15016_v6, %v12509_v30  ;;  %v15350_v15 = vld [vmem:[#allocation10 + $0x84] sm:$0xf0]  ;;  %v15405_v42 = vld [vmem:[#allocation10 + $0x244] sm:$0xf]  ;;  %v14053_v36 = vld [vmem:[#allocation10 + $0x248] sm:$0xf0] }
 0x48d   :  { %8881 = vmatpush.bf16.msrb.mxu2 %v13948_v32  ;;  %v15411_v32 = vld [vmem:[#allocation10 + $0x274] sm:$0xf]  ;;  %v13828_v23 = vor.u32 %v15350_v15, %v13827_v60  ;;  %v14115_v30 = vld [vmem:[#allocation10 + $0x2c0] sm:$0xf] }
 0x48e   :  { %v14080_v8 = vor.u32 %v15411_v32, %v14077_v43  ;;  %v16403_v32 = vpack.c.bf16 %v8067_v59, %v8067_v59  ;;  %v13696_v43 = vor.u32 %v15312_v38, %v13693_v56  ;;  %v15288_v15 = vld [vmem:[#allocation7 + $0xe9c] sm:$0xf]  ;;  %v15416_v38 = vld [vmem:[#allocation10 + $0x294] sm:$0xf0]  ;;  %v14203_v56 = vld [vmem:[#allocation10 + $0x370] sm:$0xf] }
 0x48f   :  { %8869 = vmatpush.bf16.msrb.mxu1 %v13876_v14  ;;  %8004 = vmatpush.bf16.msrb.mxu3 %v12608_v33  ;;  %v16393_v40 = vpop.f32.mrf.mxu2  ;;  %v15368_v14 = vld [vmem:[#allocation10 + $0x114] sm:$0xf0]  ;;  %v7829_v51 = vpop.f32.mrf.mxu1 }
 0x490   :  { %v13900_v24 = vor.u32 %v15368_v14, %v13899_v26  ;;  %v15428_v33 = vld [vmem:[#allocation10 + $0x2f4] sm:$0xf0] }
 0x491   :  { %8882 = vmatpush.bf16.msrb.mxu2 %v13940_v35  ;;  %v16395_v35 = vpack.c.bf16 %v8069_v45, %v8069_v45  ;;  %v14056_v45 = vor.u32 %v15405_v42, %v14053_v36  ;;  %v16407_v26 = vld [vmem:[#allocation8] sm:$0xff] }
 0x492   :  { %v4663_v14 = vperm.slane %v16407_v26, 6  ;;  %v15444_v42 = vld [vmem:[#allocation10 + $0x374] sm:$0xf0] }
 0x493   :  { %8870 = vmatpush.bf16.msrb.mxu1 %v13868_v10  ;;  %8005 = vmatpush.bf16.msrb.mxu3 %v12576_v7  ;;  %v14069_v10 = vld [vmem:[#allocation10 + $0x268] sm:$0xf0]  ;;  %v13728_v7 = vor.u32 %v15320_v19, %v13725_v17  ;;  %v13600_v17 = vor.u32 %v15288_v15, %v13597_v12  ;;  %v15440_v15 = vld [vmem:[#allocation10 + $0x354] sm:$0xf0]  ;;  %v15361_v12 = vld [vmem:[#allocation10 + $0xe4] sm:$0xf] }
 0x494   :  { %8915 = vmatmul.bf16.vlgmr.msra.gmra.mxu0 %v16395_v35  ;;  %v14072_v5 = vor.u32 %v15409_v31, %v14069_v10  ;;  %v15401_v31 = vld [vmem:[#allocation10 + $0x224] sm:$0xf]  ;;  %v14037_v10 = vld [vmem:[#allocation10 + $0x228] sm:$0xf0]  ;;  %v7867_v20 = vadd.f32 %v16348_v46, %v4663_v14 }
 0x495   :  { %8883 = vmatpush.bf16.msrb.mxu2 %v13932_v39  ;;  %v13836_v39 = vor.u32 %v15352_v63, %v13835_v57  ;;  %9011 = vmatpush.bf16.msra.mxu0 %v14080_v8  ;;  %v15424_v57 = vld [vmem:[#allocation10 + $0x2d4] sm:$0xf0]  ;;  %v15403_v63 = vld [vmem:[#allocation10 + $0x234] sm:$0xf]  ;;  %v14040_v54 = vor.u32 %v15401_v31, %v14037_v10  ;;  %v15397_v46 = vld [vmem:[#allocation10 + $0x204] sm:$0xf] }
 0x496   :  { %v14003_v10 = vld [vmem:[#allocation10 + $0x1e0] sm:$0xf] }
 0x497   :  { %8871 = vmatpush.bf16.msrb.mxu1 %v13860_v47  ;;  %8006 = vmatpush.bf16.msrb.mxu3 %v12544_v27  ;;  %v13760_v47 = vor.u32 %v15328_v4, %v13757_v44  ;;  %v13661_v27 = vld [vmem:[#allocation7 + $0xf38] sm:$0xf0]  ;;  %v15422_v4 = vld [vmem:[#allocation10 + $0x2c4] sm:$0xf0] }
 0x498   :  { %v13629_v44 = vld [vmem:[#allocation7 + $0xef8] sm:$0xf0] }
 0x499   :  { %8884 = vmatpush.bf16.msrb.mxu2 %v13924_v49  ;;  %v14139_v49 = vld [vmem:[#allocation10 + $0x2f0] sm:$0xf]  ;;  %9012 = vmatpush.bf16.msra.mxu0 %v14072_v5  ;;  %v13632_v60 = vor.u32 %v15296_v21, %v13629_v44  ;;  %v14029_v5 = vld [vmem:[#allocation10 + $0x218] sm:$0xf0]  ;;  %v15363_v21 = vld [vmem:[#allocation10 + $0xf4] sm:$0xf] }
 0x49a   :  { %v13885_v44 = vld [vmem:[#allocation10 + $0xf8] sm:$0xf0] }
 0x49b   :  { %8872 = vmatpush.bf16.msrb.mxu1 %v13852_v1  ;;  %v7842_v1 = vpop.f32.mrf.mxu2  ;;  %8007 = vmatpush.bf16.msrb.mxu3 %v12512_v22  ;;  %v15420_v22 = vld [vmem:[#allocation10 + $0x2b4] sm:$0xf0] }
 0x49c   :  { %v13565_v1 = vld [vmem:[#allocation7 + $0xe78] sm:$0xf0] }
 0x49d   :  { %8885 = vmatpush.bf16.msrb.mxu2 %v13916_v2  ;;  %v14140_v2 = vor.u32 %v15428_v33, %v14139_v49  ;;  %9013 = vmatpush.bf16.msra.mxu0 %v14064_v61  ;;  %v13568_v53 = vor.u32 %v15280_v25, %v13565_v1  ;;  %v13869_v25 = vld [vmem:[#allocation10 + $0xd8] sm:$0xf0] }
 0x49e   :  { %8008 = vmatmul.bf16.vlgmr.msrb.gmra.mxu3 %v16172_v11  ;;  %v14045_v11 = vld [vmem:[#allocation10 + $0x238] sm:$0xf0] }
 0x49f   :  { %8873 = vmatpush.bf16.msrb.mxu1 %v13844_v13  ;;  %8052 = vmatpush.bf16.msra.mxu3 %v13760_v47  ;;  %v14123_v13 = vld [vmem:[#allocation10 + $0x2d0] sm:$0xf]  ;;  %v14048_v6 = vor.u32 %v15403_v63, %v14045_v11  ;;  %v15399_v47 = vld [vmem:[#allocation10 + $0x214] sm:$0xf]  ;;  %v14083_v11 = vld [vmem:[#allocation10 + $0x280] sm:$0xf] }
 0x4a0   :  { %v14124_v51 = vor.u32 %v15424_v57, %v14123_v13  ;;  %v14032_v34 = vor.u32 %v15399_v47, %v14029_v5  ;;  %v14011_v57 = vld [vmem:[#allocation10 + $0x1f0] sm:$0xf]  ;;  %v13877_v47 = vld [vmem:[#allocation10 + $0xe8] sm:$0xf0] }
 0x4a1   :  { %8886 = vmatpush.bf16.msrb.mxu2 %v13908_v50  ;;  %v15304_v50 = vld [vmem:[#allocation7 + $0xf1c] sm:$0xf]  ;;  %9014 = vmatpush.bf16.msra.mxu0 %v14056_v45  ;;  %v16412_v19 = vpop.f32.mrf.mxu0  ;;  %v16414_v59 = vpop.f32.mrf.mxu3  ;;  %v14204_v45 = vor.u32 %v15444_v42, %v14203_v56 }
 0x4a2   :  { %v13664_v8 = vor.u32 %v15304_v50, %v13661_v27  ;;  %v15396_v50 = vld [vmem:[#allocation10 + $0x1f4] sm:$0xf0] }
 0x4a3   :  { %8874 = vmatpush.bf16.msrb.mxu1 %v13836_v39  ;;  %8053 = vmatpush.bf16.msra.mxu3 %v13728_v7  ;;  %v14116_v39 = vor.u32 %v15422_v4, %v14115_v30  ;;  %v14091_v7 = vld [vmem:[#allocation10 + $0x290] sm:$0xf]  ;;  %v14012_v4 = vor.u32 %v15396_v50, %v14011_v57  ;;  %v15355_v57 = vld [vmem:[#allocation10 + $0xb4] sm:$0xf]  ;;  %v13853_v50 = vld [vmem:[#allocation10 + $0xb8] sm:$0xf0] }
 0x4a4   :  { %8967 = vmatmul.bf16.vlgmr.msrb.gmra.mxu0 %v16342_v29  ;;  %v14092_v63 = vor.u32 %v15416_v38, %v14091_v7  ;;  %v15436_v7 = vld [vmem:[#allocation10 + $0x334] sm:$0xf0]  ;;  %v13861_v38 = vld [vmem:[#allocation10 + $0xc8] sm:$0xf0] }
 0x4a5   :  { %8887 = vmatpush.bf16.msrb.mxu2 %v13900_v24  ;;  %9015 = vmatpush.bf16.msra.mxu0 %v14048_v6  ;;  %v14107_v24 = vld [vmem:[#allocation10 + $0x2b0] sm:$0xf]  ;;  %v15442_v6 = vld [vmem:[#allocation10 + $0x364] sm:$0xf0] }
 0x4a6   :  { %v14108_v29 = vor.u32 %v15420_v22, %v14107_v24  ;;  %v13888_v24 = vor.u32 %v15363_v21, %v13885_v44  ;;  %v14187_v22 = vld [vmem:[#allocation10 + $0x350] sm:$0xf]  ;;  %v13845_v21 = vld [vmem:[#allocation10 + $0xa8] sm:$0xf0] }
 0x4a7   :  { %8875 = vmatpush.bf16.msrb.mxu1 %v13828_v23  ;;  %8054 = vmatpush.bf16.msra.mxu3 %v13696_v43  ;;  %v7879_v49 = vpop.f32.mrf.mxu1  ;;  %v15418_v23 = vld [vmem:[#allocation10 + $0x2a4] sm:$0xf0]  ;;  %v13533_v43 = vld [vmem:[#allocation7 + $0xe38] sm:$0xf0]  ;;  %v14188_v5 = vor.u32 %v15440_v15, %v14187_v22  ;;  %v14147_v22 = vld [vmem:[#allocation10 + $0x300] sm:$0xf] }
 0x4a8   :  { %v7880_v33 = vadd.f32 %v7879_v49, %v7867_v20  ;;  %v13995_v49 = vld [vmem:[#allocation10 + $0x1d0] sm:$0xf]  ;;  %v15430_v15 = vld [vmem:[#allocation10 + $0x304] sm:$0xf0] }
 0x4a9   :  { %8888 = vmatpush.bf16.msrb.mxu2 %v13892_v0  ;;  %9016 = vmatpush.bf16.msra.mxu0 %v14040_v54  ;;  %v14021_v0 = vld [vmem:[#allocation10 + $0x208] sm:$0xf0]  ;;  %v8866_v27 = vpop.f32.mrf.mxu0  ;;  %v7803_v30 = vpop.f32.mrf.mxu3 }
 0x4aa   :  { %8876 = vmatmul.bf16.vlgmr.msrb.gmra.mxu1 %v16401_v58  ;;  %v14024_v48 = vor.u32 %v15397_v46, %v14021_v0  ;;  %v13987_v46 = vld [vmem:[#allocation10 + $0x1c0] sm:$0xf]  ;;  %v15390_v0 = vld [vmem:[#allocation10 + $0x1c4] sm:$0xf0] }
 0x4ab   :  { %8920 = vmatpush.bf16.msra.mxu1 %v14140_v2  ;;  %8055 = vmatpush.bf16.msra.mxu3 %v13664_v8  ;;  %v14100_v2 = vor.u32 %v15418_v23, %v14099_v18  ;;  %v14195_v8 = vld [vmem:[#allocation10 + $0x360] sm:$0xf]  ;;  %v15359_v23 = vld [vmem:[#allocation10 + $0xd4] sm:$0xf] }
 0x4ac   :  { %8889 = vmatmul.bf16.vlgmr.msrb.gmra.mxu2 %v16403_v32  ;;  %v14196_v31 = vor.u32 %v15442_v6, %v14195_v8  ;;  %v15432_v8 = vld [vmem:[#allocation10 + $0x314] sm:$0xf0] }
 0x4ad   :  { %9017 = vmatpush.bf16.msra.mxu0 %v14032_v34  ;;  %8933 = vmatpush.bf16.msra.mxu2 %v14204_v45  ;;  %v7802_v34 = vadd.f32 %v16414_v59, %v16379_v3  ;;  %v13979_v3 = vld [vmem:[#allocation10 + $0x1b0] sm:$0xf]  ;;  %v15388_v59 = vld [vmem:[#allocation10 + $0x1b4] sm:$0xf0] }
 0x4ae   :  { %v13980_v45 = vor.u32 %v15388_v59, %v13979_v3  ;;  %v13933_v3 = vld [vmem:[#allocation10 + $0x158] sm:$0xf0] }
 0x4af   :  { %8921 = vmatpush.bf16.msra.mxu1 %v14132_v28  ;;  %8056 = vmatpush.bf16.msra.mxu3 %v13632_v60  ;;  %v7892_v61 = vpop.f32.mrf.mxu2  ;;  %v15272_v28 = vld [vmem:[#allocation7 + $0xe1c] sm:$0xf]  ;;  %v7881_v13 = vpop.f32.mrf.mxu1 }
 0x4b0   :  { %v16416_v36 = vadd.f32 %v7892_v61, %v7880_v33  ;;  %v13536_v14 = vor.u32 %v15272_v28, %v13533_v43  ;;  %v15392_v33 = vld [vmem:[#allocation10 + $0x1d4] sm:$0xf0]  ;;  %v7815_v61 = vadd.f32 %v16330_v37, %v7802_v34  ;;  %v14163_v28 = vld [vmem:[#allocation10 + $0x320] sm:$0xf]  ;;  %v15434_v43 = vld [vmem:[#allocation10 + $0x324] sm:$0xf0] }
 0x4b1   :  { %9018 = vmatpush.bf16.msra.mxu0 %v14024_v48  ;;  %8934 = vmatpush.bf16.msra.mxu2 %v14196_v31  ;;  %v13996_v18 = vor.u32 %v15392_v33, %v13995_v49  ;;  %v15357_v48 = vld [vmem:[#allocation10 + $0xc4] sm:$0xf]  ;;  %v14164_v27 = vor.u32 %v15434_v43, %v14163_v28  ;;  %v13971_v37 = vld [vmem:[#allocation10 + $0x1a0] sm:$0xf]  ;;  %v13963_v31 = vld [vmem:[#allocation10 + $0x190] sm:$0xf] }
 0x4b2   :  { %v13864_v42 = vor.u32 %v15357_v48, %v13861_v38  ;;  %v7828_v13 = vadd.f32 %v16388_v62, %v7815_v61  ;;  %v13955_v33 = vld [vmem:[#allocation10 + $0x180] sm:$0xf]  ;;  %v14141_v61 = vld [vmem:[#allocation10 + $0x2f8] sm:$0xf0]  ;;  %v15425_v28 = vld [vmem:[#allocation10 + $0x2e4] sm:$0xf] }
 0x4b3   :  { %8922 = vmatpush.bf16.msra.mxu1 %v14124_v51  ;;  %8057 = vmatpush.bf16.msra.mxu3 %v13600_v17  ;;  %v15414_v51 = vld [vmem:[#allocation10 + $0x284] sm:$0xf0]  ;;  %v14133_v43 = vld [vmem:[#allocation10 + $0x2e8] sm:$0xf0] }
 0x4b4   :  { %9019 = vmatmul.bf16.vlgmr.msra.gmra.mxu0 %v16395_v35  ;;  %v14084_v60 = vor.u32 %v15414_v51, %v14083_v11  ;;  %v14179_v35 = vld [vmem:[#allocation10 + $0x340] sm:$0xf]  ;;  %v15438_v17 = vld [vmem:[#allocation10 + $0x344] sm:$0xf0]  ;;  %v14155_v51 = vld [vmem:[#allocation10 + $0x310] sm:$0xf]  ;;  %v7841_v6 = vadd.f32 %v16393_v40, %v7828_v13 }
 0x4b5   :  { %8935 = vmatpush.bf16.msra.mxu2 %v14188_v5  ;;  %v14180_v1 = vor.u32 %v15438_v17, %v14179_v35  ;;  %v14156_v44 = vor.u32 %v15432_v8, %v14155_v51  ;;  %v15379_v40 = vld [vmem:[#allocation10 + $0x174] sm:$0xf]  ;;  %v13949_v5 = vld [vmem:[#allocation10 + $0x178] sm:$0xf0]  ;;  %v15373_v13 = vld [vmem:[#allocation10 + $0x144] sm:$0xf] }
 0x4b6   :  { %v13952_v35 = vor.u32 %v15379_v40, %v13949_v5  ;;  %v15365_v40 = vld [vmem:[#allocation10 + $0x104] sm:$0xf]  ;;  %v13893_v5 = vld [vmem:[#allocation10 + $0x108] sm:$0xf0] }
 0x4b7   :  { %8923 = vmatpush.bf16.msra.mxu1 %v14116_v39  ;;  %8058 = vmatpush.bf16.msra.mxu3 %v13568_v53  ;;  %v15394_v39 = vld [vmem:[#allocation10 + $0x1e4] sm:$0xf0]  ;;  %v7894_v54 = vpop.f32.mrf.mxu2  ;;  %v13988_v53 = vor.u32 %v15390_v0, %v13987_v46  ;;  %v15377_v46 = vld [vmem:[#allocation10 + $0x164] sm:$0xf]  ;;  %v13941_v0 = vld [vmem:[#allocation10 + $0x168] sm:$0xf0] }
 0x4b8   :  { %v14004_v20 = vor.u32 %v15394_v39, %v14003_v10  ;;  %v15384_v10 = vld [vmem:[#allocation10 + $0x194] sm:$0xf0] }
 0x4b9   :  { %8936 = vmatpush.bf16.msra.mxu2 %v14180_v1  ;;  %v13829_v1 = vld [vmem:[#allocation10 + $0x88] sm:$0xf0] }
 0x4bb   :  { %8924 = vmatpush.bf16.msra.mxu1 %v14108_v29  ;;  %8059 = vmatpush.bf16.msra.mxu3 %v13536_v14  ;;  %v13880_v29 = vor.u32 %v15361_v12, %v13877_v47  ;;  %v13856_v14 = vor.u32 %v15355_v57, %v13853_v50  ;;  %v13964_v12 = vor.u32 %v15384_v10, %v13963_v31  ;;  %v13925_v57 = vld [vmem:[#allocation10 + $0x148] sm:$0xf0]  ;;  %v15423_v50 = vld [vmem:[#allocation10 + $0x2d4] sm:$0xf] }
 0x4bc   :  { %v14148_v47 = vor.u32 %v15430_v15, %v14147_v22  ;;  %v15367_v22 = vld [vmem:[#allocation10 + $0x114] sm:$0xf]  ;;  %v13901_v15 = vld [vmem:[#allocation10 + $0x118] sm:$0xf0] }
 0x4be   :  { %8060 = vmatmul.bf16.vlgmr.msra.gmra.mxu3 %v16226_v41  ;;  %v14171_v41 = vld [vmem:[#allocation10 + $0x330] sm:$0xf] }
 0x4bf   :  { %8925 = vmatpush.bf16.msra.mxu1 %v14100_v2  ;;  %8894 = vmatpush.bf16.msrb.mxu3 %v14012_v4  ;;  %v13872_v2 = vor.u32 %v15359_v23, %v13869_v25  ;;  %v14172_v56 = vor.u32 %v15436_v7, %v14171_v41  ;;  %v15353_v4 = vld [vmem:[#allocation10 + $0xa4] sm:$0xf]  ;;  %v15427_v7 = vld [vmem:[#allocation10 + $0x2f4] sm:$0xf] }
 0x4c0   :  { %v13848_v54 = vor.u32 %v15353_v4, %v13845_v21  ;;  %v15349_v23 = vld [vmem:[#allocation10 + $0x84] sm:$0xf]  ;;  %v14144_v38 = vor.u32 %v15427_v7, %v14141_v61  ;;  %v14117_v4 = vld [vmem:[#allocation10 + $0x2c8] sm:$0xf0] }
 0x4c1   :  { %8937 = vmatpush.bf16.msra.mxu2 %v14172_v56  ;;  %v7853_v62 = vpop.f32.mrf.mxu3  ;;  %v13832_v48 = vor.u32 %v15349_v23, %v13829_v1  ;;  %v15375_v56 = vld [vmem:[#allocation10 + $0x154] sm:$0xf]  ;;  %v15369_v21 = vld [vmem:[#allocation10 + $0x124] sm:$0xf]  ;;  %v14093_v23 = vld [vmem:[#allocation10 + $0x298] sm:$0xf0] }
 0x4c2   :  { %v7854_v39 = vadd.f32 %v7853_v62, %v7841_v6  ;;  %v4664_v6 = vperm.slane %v16407_v26, 7  ;;  %v15413_v61 = vld [vmem:[#allocation10 + $0x284] sm:$0xf] }
 0x4c3   :  { %8926 = vmatpush.bf16.msra.mxu1 %v14092_v63  ;;  %8895 = vmatpush.bf16.msrb.mxu3 %v14004_v20  ;;  %v15386_v63 = vld [vmem:[#allocation10 + $0x1a4] sm:$0xf0] }
 0x4c4   :  { %v13972_v30 = vor.u32 %v15386_v63, %v13971_v37  ;;  %v8070_v20 = vmax.f32 %v7854_v39, 0.0  ;;  %v14125_v37 = vld [vmem:[#allocation10 + $0x2d8] sm:$0xf0]  ;;  %v15371_v63 = vld [vmem:[#allocation10 + $0x134] sm:$0xf]  ;;  %v7971_v10 = vadd.f32 %v16375_v9, %v4664_v6 }
 0x4c5   :  { %8938 = vmatpush.bf16.msra.mxu2 %v14164_v27  ;;  %v13928_v27 = vor.u32 %v15373_v13, %v13925_v57  ;;  %v14128_v51 = vor.u32 %v15423_v50, %v14125_v37  ;;  %v15419_v39 = vld [vmem:[#allocation10 + $0x2b4] sm:$0xf]  ;;  %v14267_v9 = vld [vmem:[#allocation10 + $0x3f0] sm:$0xf]  ;;  %v15452_v50 = vld [vmem:[#allocation10 + $0x3b4] sm:$0xf0] }
 0x4c6   :  { %v16429_v17 = vpack.c.bf16 %v8070_v20, %v8070_v20  ;;  %v13904_v20 = vor.u32 %v15367_v22, %v13901_v15  ;;  %v14235_v57 = vld [vmem:[#allocation10 + $0x3b0] sm:$0xf]  ;;  %v14013_v22 = vld [vmem:[#allocation10 + $0x1f8] sm:$0xf0] }
 0x4c7   :  { %8927 = vmatpush.bf16.msra.mxu1 %v14084_v60  ;;  %8896 = vmatpush.bf16.msrb.mxu3 %v13996_v18  ;;  %v16424_v11 = vpop.f32.mrf.mxu1  ;;  %v15351_v60 = vld [vmem:[#allocation10 + $0x94] sm:$0xf]  ;;  %v14236_v37 = vor.u32 %v15452_v50, %v14235_v57  ;;  %v15385_v50 = vld [vmem:[#allocation10 + $0x1a4] sm:$0xf] }
 0x4c9   :  { %8939 = vmatpush.bf16.msra.mxu2 %v14156_v44  ;;  %v7855_v41 = vpop.f32.mrf.mxu3  ;;  %v13909_v44 = vld [vmem:[#allocation10 + $0x128] sm:$0xf0] }
 0x4ca   :  { %8928 = vmatmul.bf16.vlgmr.msra.gmra.mxu1 %v16429_v17  ;;  %v13912_v31 = vor.u32 %v15369_v21, %v13909_v44  ;;  %v15458_v41 = vld [vmem:[#allocation10 + $0x3e4] sm:$0xf0] }
 0x4cb   :  { %8972 = vmatpush.bf16.msrb.mxu1 %v13888_v24  ;;  %8897 = vmatpush.bf16.msrb.mxu3 %v13988_v53  ;;  %v13837_v24 = vld [vmem:[#allocation10 + $0x98] sm:$0xf0]  ;;  %v13944_v53 = vor.u32 %v15377_v46, %v13941_v0 }
 0x4cc   :  { %v13840_v18 = vor.u32 %v15351_v60, %v13837_v24  ;;  %v14109_v60 = vld [vmem:[#allocation10 + $0x2b8] sm:$0xf0] }
 0x4cd   :  { %8940 = vmatpush.bf16.msra.mxu2 %v14148_v47  ;;  %v14112_v26 = vor.u32 %v15419_v39, %v14109_v60  ;;  %v14101_v47 = vld [vmem:[#allocation10 + $0x2a8] sm:$0xf0] }
 0x4cf   :  { %8973 = vmatpush.bf16.msrb.mxu1 %v13880_v29  ;;  %8898 = vmatpush.bf16.msrb.mxu3 %v13980_v45  ;;  %v16427_v49 = vpop.f32.mrf.mxu2  ;;  %v15382_v29 = vld [vmem:[#allocation10 + $0x184] sm:$0xf0]  ;;  %v7933_v34 = vpop.f32.mrf.mxu1  ;;  %v13936_v45 = vor.u32 %v15375_v56, %v13933_v3  ;;  %v14251_v56 = vld [vmem:[#allocation10 + $0x3d0] sm:$0xf]  ;;  %v15456_v3 = vld [vmem:[#allocation10 + $0x3d4] sm:$0xf0] }
 0x4d0   :  { %v13956_v25 = vor.u32 %v15382_v29, %v13955_v33  ;;  %v13896_v29 = vor.u32 %v15365_v40, %v13893_v5 }
 0x4d1   :  { %8985 = vmatpush.bf16.msrb.mxu2 %v13952_v35  ;;  %v15460_v35 = vld [vmem:[#allocation10 + $0x3f4] sm:$0xf0] }
 0x4d3   :  { %8974 = vmatpush.bf16.msrb.mxu1 %v13872_v2  ;;  %8899 = vmatpush.bf16.msrb.mxu3 %v13972_v30  ;;  %v8068_v2 = vmax.f32 %v16366_v55, 0.0  ;;  %v14136_v55 = vor.u32 %v15425_v28, %v14133_v43  ;;  %v15421_v30 = vld [vmem:[#allocation10 + $0x2c4] sm:$0xf]  ;;  %v14252_v28 = vor.u32 %v15456_v3, %v14251_v56  ;;  %v14243_v43 = vld [vmem:[#allocation10 + $0x3c0] sm:$0xf] }
 0x4d4   :  { %v14120_v62 = vor.u32 %v15421_v30, %v14117_v4  ;;  %v14219_v30 = vld [vmem:[#allocation10 + $0x390] sm:$0xf]  ;;  %v15448_v4 = vld [vmem:[#allocation10 + $0x394] sm:$0xf0]  ;;  %v15435_v56 = vld [vmem:[#allocation10 + $0x334] sm:$0xf] }
 0x4d5   :  { %v16433_v59 = vpack.c.bf16 %v8068_v2, %v8068_v2  ;;  %8986 = vmatpush.bf16.msrb.mxu2 %v13944_v53  ;;  %v14259_v2 = vld [vmem:[#allocation10 + $0x3e0] sm:$0xf]  ;;  %v14085_v53 = vld [vmem:[#allocation10 + $0x288] sm:$0xf0]  ;;  %v14173_v3 = vld [vmem:[#allocation10 + $0x338] sm:$0xf0] }
 0x4d7   :  { %8975 = vmatpush.bf16.msrb.mxu1 %v13864_v42  ;;  %8900 = vmatpush.bf16.msrb.mxu3 %v13964_v12  ;;  %v7946_v42 = vpop.f32.mrf.mxu2 }
 0x4d9   :  { %8987 = vmatpush.bf16.msrb.mxu2 %v13936_v45  ;;  %v15454_v45 = vld [vmem:[#allocation10 + $0x3c4] sm:$0xf0] }
 0x4db   :  { %8976 = vmatpush.bf16.msrb.mxu1 %v13856_v14  ;;  %8901 = vmatpush.bf16.msrb.mxu3 %v13956_v25  ;;  %v13917_v14 = vld [vmem:[#allocation10 + $0x138] sm:$0xf0]  ;;  %v14268_v25 = vor.u32 %v15460_v35, %v14267_v9  ;;  %v15391_v35 = vld [vmem:[#allocation10 + $0x1d4] sm:$0xf] }
 0x4dc   :  { %v13920_v8 = vor.u32 %v15371_v63, %v13917_v14  ;;  %v14227_v63 = vld [vmem:[#allocation10 + $0x3a0] sm:$0xf]  ;;  %v15450_v14 = vld [vmem:[#allocation10 + $0x3a4] sm:$0xf0]  ;;  %v14189_v9 = vld [vmem:[#allocation10 + $0x358] sm:$0xf0] }
 0x4dd   :  { %8988 = vmatpush.bf16.msrb.mxu2 %v13928_v27 }
 0x4de   :  { %8902 = vmatmul.bf16.vlgmr.msrb.gmra.mxu3 %v16433_v59 }
 0x4df   :  { %8977 = vmatpush.bf16.msrb.mxu1 %v13848_v54  ;;  %8946 = vmatpush.bf16.msra.mxu3 %v14268_v25 }
 0x4e1   :  { %8989 = vmatpush.bf16.msrb.mxu2 %v13920_v8  ;;  %v7905_v12 = vpop.f32.mrf.mxu3  ;;  %v14228_v8 = vor.u32 %v15450_v14, %v14227_v63 }
 0x4e2   :  { %v7906_v13 = vadd.f32 %v7905_v12, %v16416_v36 }
 0x4e3   :  { %8978 = vmatpush.bf16.msrb.mxu1 %v13840_v18  ;;  %v15415_v18 = vld [vmem:[#allocation10 + $0x294] sm:$0xf] }
 0x4e4   :  { %v14096_v0 = vor.u32 %v15415_v18, %v14093_v23  ;;  %v7919_v27 = vadd.f32 %v16363_v52, %v7906_v13  ;;  %v14211_v52 = vld [vmem:[#allocation10 + $0x380] sm:$0xf]  ;;  %v14165_v13 = vld [vmem:[#allocation10 + $0x328] sm:$0xf0] }
 0x4e5   :  { %8990 = vmatpush.bf16.msrb.mxu2 %v13912_v31  ;;  %v14205_v31 = vld [vmem:[#allocation10 + $0x378] sm:$0xf0] }
 0x4e7   :  { %8979 = vmatpush.bf16.msrb.mxu1 %v13832_v48  ;;  %v7983_v54 = vpop.f32.mrf.mxu1  ;;  %v14260_v48 = vor.u32 %v15458_v41, %v14259_v2  ;;  %v15389_v41 = vld [vmem:[#allocation10 + $0x1c4] sm:$0xf] }
 0x4e8   :  { %v7984_v24 = vadd.f32 %v7983_v54, %v7971_v10  ;;  %v15446_v10 = vld [vmem:[#allocation10 + $0x384] sm:$0xf0]  ;;  %v15395_v54 = vld [vmem:[#allocation10 + $0x1f4] sm:$0xf] }
 0x4e9   :  { %8991 = vmatpush.bf16.msrb.mxu2 %v13904_v20  ;;  %v7907_v7 = vpop.f32.mrf.mxu3  ;;  %8947 = vmatpush.bf16.msra.mxu3 %v14260_v48  ;;  %v14212_v60 = vor.u32 %v15446_v10, %v14211_v52  ;;  %v15441_v20 = vld [vmem:[#allocation10 + $0x364] sm:$0xf]  ;;  %v14016_v12 = vor.u32 %v15395_v54, %v14013_v22  ;;  %v15387_v48 = vld [vmem:[#allocation10 + $0x1b4] sm:$0xf] }
 0x4ea   :  { %8980 = vmatmul.bf16.vlgmr.msrb.gmra.mxu1 %v16401_v58  ;;  %v15417_v58 = vld [vmem:[#allocation10 + $0x2a4] sm:$0xf]  ;;  %v13989_v7 = vld [vmem:[#allocation10 + $0x1c8] sm:$0xf0] }
 0x4eb   :  { %9024 = vmatpush.bf16.msra.mxu1 %v14144_v38  ;;  %v14104_v33 = vor.u32 %v15417_v58, %v14101_v47  ;;  %v14088_v38 = vor.u32 %v15413_v61, %v14085_v53  ;;  %v15393_v58 = vld [vmem:[#allocation10 + $0x1e4] sm:$0xf]  ;;  %v14005_v47 = vld [vmem:[#allocation10 + $0x1e8] sm:$0xf0]  ;;  %v13992_v53 = vor.u32 %v15389_v41, %v13989_v7  ;;  %v15455_v41 = vld [vmem:[#allocation10 + $0x3d4] sm:$0xf] }
 0x4ec   :  { %v15381_v10 = vld [vmem:[#allocation10 + $0x184] sm:$0xf] }
 0x4ed   :  { %8992 = vmatpush.bf16.msrb.mxu2 %v13896_v29  ;;  %8948 = vmatpush.bf16.msra.mxu3 %v14252_v28  ;;  %v14008_v29 = vor.u32 %v15393_v58, %v14005_v47  ;;  %v15453_v7 = vld [vmem:[#allocation10 + $0x3c4] sm:$0xf] }
 0x4ef   :  { %9025 = vmatpush.bf16.msra.mxu1 %v14136_v55  ;;  %v7996_v34 = vpop.f32.mrf.mxu2  ;;  %v7985_v46 = vpop.f32.mrf.mxu1  ;;  %v14244_v55 = vor.u32 %v15454_v45, %v14243_v43  ;;  %v14176_v43 = vor.u32 %v15435_v56, %v14173_v3  ;;  %v15449_v3 = vld [vmem:[#allocation10 + $0x3a4] sm:$0xf] }
 0x4f0   :  { %v16439_v1 = vadd.f32 %v7996_v34, %v7984_v24  ;;  %v13997_v34 = vld [vmem:[#allocation10 + $0x1d8] sm:$0xf0]  ;;  %v15437_v46 = vld [vmem:[#allocation10 + $0x344] sm:$0xf] }
 0x4f1   :  { %8949 = vmatpush.bf16.msra.mxu3 %v14244_v55  ;;  %v14000_v18 = vor.u32 %v15391_v35, %v13997_v34  ;;  %v15433_v55 = vld [vmem:[#allocation10 + $0x324] sm:$0xf]  ;;  %v15459_v35 = vld [vmem:[#allocation10 + $0x3f4] sm:$0xf]  ;;  %v14269_v34 = vld [vmem:[#allocation10 + $0x3f8] sm:$0xf0] }
 0x4f3   :  { %9026 = vmatpush.bf16.msra.mxu1 %v14128_v51  ;;  %v7932_v51 = vadd.f32 %v16424_v11, %v7919_v27  ;;  %v13973_v27 = vld [vmem:[#allocation10 + $0x1a8] sm:$0xf0] }
 0x4f4   :  { %v13976_v63 = vor.u32 %v15385_v50, %v13973_v27 }
 0x4f5   :  { %8950 = vmatpush.bf16.msra.mxu3 %v14236_v37  ;;  %v7945_v36 = vadd.f32 %v16427_v49, %v7932_v51  ;;  %v14197_v49 = vld [vmem:[#allocation10 + $0x368] sm:$0xf0]  ;;  %v14168_v37 = vor.u32 %v15433_v55, %v14165_v13  ;;  %v15431_v51 = vld [vmem:[#allocation10 + $0x314] sm:$0xf]  ;;  %v14221_v13 = vld [vmem:[#allocation10 + $0x398] sm:$0xf0] }
 0x4f6   :  { %v14200_v5 = vor.u32 %v15441_v20, %v14197_v49  ;;  %v15447_v55 = vld [vmem:[#allocation10 + $0x394] sm:$0xf] }
 0x4f7   :  { %9027 = vmatpush.bf16.msra.mxu1 %v14120_v62  ;;  %v7998_v42 = vpop.f32.mrf.mxu2  ;;  %v15443_v62 = vld [vmem:[#allocation10 + $0x374] sm:$0xf]  ;;  %v14224_v50 = vor.u32 %v15447_v55, %v14221_v13 }
 0x4f8   :  { %v14208_v24 = vor.u32 %v15443_v62, %v14205_v31  ;;  %v16455_v42 = vld [vmem:[#allocation11] sm:$0x3]  ;;  %v15429_v62 = vld [vmem:[#allocation10 + $0x304] sm:$0xf]  ;;  %v14149_v31 = vld [vmem:[#allocation10 + $0x308] sm:$0xf0] }
 0x4f9   :  { %8951 = vmatpush.bf16.msra.mxu3 %v14228_v8  ;;  %v8211_v45 = vperm.slane %v16455_v42, 0  ;;  %v14157_v8 = vld [vmem:[#allocation10 + $0x318] sm:$0xf0] }
 0x4fb   :  { %9028 = vmatpush.bf16.msra.mxu1 %v14112_v26  ;;  %v8865_v14 = vadd.f32 %v16412_v19, %v8211_v45  ;;  %v14152_v19 = vor.u32 %v15429_v62, %v14149_v31 }
 0x4ff   :  { %9029 = vmatpush.bf16.msra.mxu1 %v14104_v33  ;;  %v15439_v33 = vld [vmem:[#allocation10 + $0x354] sm:$0xf] }
 0x500   :  { %v14192_v25 = vor.u32 %v15439_v33, %v14189_v9 }
 0x501   :  { %v7957_v21 = vpop.f32.mrf.mxu3 }
 0x502   :  { %v7958_v44 = vadd.f32 %v7957_v21, %v7945_v36  ;;  %v15383_v36 = vld [vmem:[#allocation10 + $0x194] sm:$0xf]  ;;  %v14160_v21 = vor.u32 %v15431_v51, %v14157_v8 }
 0x503   :  { %9030 = vmatpush.bf16.msra.mxu1 %v14096_v0  ;;  %v14181_v0 = vld [vmem:[#allocation10 + $0x348] sm:$0xf0] }
 0x504   :  { %v8071_v39 = vmax.f32 %v7958_v44, 0.0  ;;  %v14184_v61 = vor.u32 %v15437_v46, %v14181_v0  ;;  %v14261_v46 = vld [vmem:[#allocation10 + $0x3e8] sm:$0xf0] }
 0x506   :  { %v16450_v15 = vpack.c.bf16 %v8071_v39, %v8071_v39  ;;  %v13957_v39 = vld [vmem:[#allocation10 + $0x188] sm:$0xf0] }
 0x507   :  { %9031 = vmatpush.bf16.msra.mxu1 %v14088_v38  ;;  %v16445_v6 = vpop.f32.mrf.mxu1  ;;  %v13981_v38 = vld [vmem:[#allocation10 + $0x1b8] sm:$0xf0] }
 0x508   :  { %8941 = vmatmul.bf16.vlgmr.msra.gmra.mxu2 %v16450_v15  ;;  %v13984_v28 = vor.u32 %v15387_v48, %v13981_v38  ;;  %v15451_v48 = vld [vmem:[#allocation10 + $0x3b4] sm:$0xf]  ;;  %v14237_v38 = vld [vmem:[#allocation10 + $0x3b8] sm:$0xf0] }
 0x509   :  { %v7959_v40 = vpop.f32.mrf.mxu3  ;;  %9037 = vmatpush.bf16.msra.mxu2 %v14208_v24  ;;  %v14240_v56 = vor.u32 %v15451_v48, %v14237_v38  ;;  %v15470_v38 = vld [vmem:[%s16593_s9] sm:$0xff]  }
 0x50a   :  { %9032 = vmatmul.bf16.vlgmr.msra.gmra.mxu1 %v16429_v17  ;;  %v14220_v17 = vor.u32 %v15448_v4, %v14219_v30 }
 0x50c   :  { %8952 = vmatpush.bf16.msra.mxu3 %v14220_v17  ;;  %v13965_v17 = vld [vmem:[#allocation10 + $0x198] sm:$0xf0] }
 0x50d   :  { %9038 = vmatpush.bf16.msra.mxu2 %v14200_v5  ;;  %v13968_v44 = vor.u32 %v15383_v36, %v13965_v17 }
 0x50f   :  { %v16448_v11 = vpop.f32.mrf.mxu2  ;;  %v8037_v26 = vpop.f32.mrf.mxu1 }
 0x510   :  { %8953 = vmatpush.bf16.msra.mxu3 %v14212_v60  ;;  %v13960_v60 = vor.u32 %v15381_v10, %v13957_v39 }
 0x511   :  { %v16453_v2 = vpop.f32.mrf.mxu0  ;;  %9039 = vmatpush.bf16.msra.mxu2 %v14192_v25  ;;  %v15457_v25 = vld [vmem:[#allocation10 + $0x3e4] sm:$0xf] }
 0x512   :  { %v14264_v0 = vor.u32 %v15457_v25, %v14261_v46  ;;  %v15461_v46 = vld [vmem:[#allocation13] sm:$0xff] }
 0x514   :  { %8998 = vmatpush.bf16.msrb.mxu3 %v14016_v12 }
 0x515   :  { %9040 = vmatpush.bf16.msra.mxu2 %v14184_v61  ;;  %v14245_v61 = vld [vmem:[#allocation10 + $0x3c8] sm:$0xf0] }
 0x517   :  { %v8050_v23 = vpop.f32.mrf.mxu2 }
 0x518   :  { %8999 = vmatpush.bf16.msrb.mxu3 %v14008_v29  ;;  %8993 = vmatmul.bf16.vlgmr.msrb.gmra.mxu2 %v16403_v32  ;;  %v14272_v23 = vor.u32 %v15459_v35, %v14269_v34 }
 0x519   :  { %v8918_v57 = vpop.f32.mrf.mxu0  ;;  %9041 = vmatpush.bf16.msra.mxu2 %v14176_v43 }
 0x51a   :  { %v8212_v57 = vperm.slane %v16455_v42, 1 }
 0x51c   :  { %9000 = vmatpush.bf16.msrb.mxu3 %v14000_v18 }
 0x51d   :  { %9042 = vmatpush.bf16.msra.mxu2 %v14168_v37  ;;  %v15445_v37 = vld [vmem:[#allocation10 + $0x384] sm:$0xf] }
 0x520   :  { %9001 = vmatpush.bf16.msrb.mxu3 %v13992_v53  ;;  %v14248_v53 = vor.u32 %v15453_v7, %v14245_v61 }
 0x521   :  { %v8009_v32 = vpop.f32.mrf.mxu3  ;;  %v16460_v52 = vpop.f32.mrf.mxu0  ;;  %9043 = vmatpush.bf16.msra.mxu2 %v14160_v21 }
 0x522   :  { %v8010_v12 = vadd.f32 %v8009_v32, %v16439_v1  ;;  %v8969_v51 = vadd.f32 %v16460_v52, %v8212_v57 }
 0x524   :  { %9002 = vmatpush.bf16.msrb.mxu3 %v13984_v28  ;;  %v8023_v47 = vadd.f32 %v16390_v16, %v8010_v12  ;;  %v14253_v16 = vld [vmem:[#allocation10 + $0x3d8] sm:$0xf0]  ;;  %v14229_v28 = vld [vmem:[#allocation10 + $0x3a8] sm:$0xf0] }
 0x525   :  { %9044 = vmatpush.bf16.msra.mxu2 %v14152_v19  ;;  %v14232_v45 = vor.u32 %v15449_v3, %v14229_v28  ;;  %v15466_v12 = vld [vmem:[#allocation13 + $0x28] sm:$0xff] }
 0x526   :  { %v8036_v40 = vadd.f32 %v16445_v6, %v8023_v47  ;;  %v14256_v6 = vor.u32 %v15455_v41, %v14253_v16  ;;  %v16480_v28 = vld [vmem:[%s16593_s9 + $0x8] sm:$0xff]  }
 0x527   :  { %v8877_v30 = vpop.f32.mrf.mxu1 }
 0x528   :  { %v8878_v4 = vadd.f32 %v8877_v30, %v8865_v14  ;;  %9003 = vmatpush.bf16.msrb.mxu3 %v13976_v63  ;;  %9045 = vmatmul.bf16.vlgmr.msra.gmra.mxu2 %v16450_v15  ;;  %v8049_v33 = vadd.f32 %v16448_v11, %v8036_v40  ;;  %v14213_v63 = vld [vmem:[#allocation10 + $0x388] sm:$0xf0] }
 0x529   :  { %v8011_v26 = vpop.f32.mrf.mxu3  ;;  %v8970_v20 = vpop.f32.mrf.mxu0 }
 0x52a   :  { %v15467_v20 = vld [vmem:[#allocation13 + $0x30] sm:$0xff] }
 0x52c   :  { %9004 = vmatpush.bf16.msrb.mxu3 %v13968_v44 }
 0x52f   :  { %v8890_v54 = vpop.f32.mrf.mxu2  ;;  %v8879_v22 = vpop.f32.mrf.mxu1 }
 0x530   :  { %v8891_v24 = vadd.f32 %v8890_v54, %v8878_v4  ;;  %9005 = vmatpush.bf16.msrb.mxu3 %v13960_v60  ;;  %v15468_v22 = vld [vmem:[#allocation13 + $0x38] sm:$0xff] }
 0x531   :  { %v16464_v58 = vpop.f32.mrf.mxu0  ;;  %9445 = vmatpush.bf16.msrb.mxu0 %v15468_v22 }
 0x535   :  { %9446 = vmatpush.bf16.msrb.mxu0 %v15467_v20 }
 0x537   :  { %v8892_v49 = vpop.f32.mrf.mxu2 }
 0x539   :  { %v9022_v5 = vpop.f32.mrf.mxu0  ;;  %9447 = vmatpush.bf16.msrb.mxu0 %v15466_v12 }
 0x53a   :  { %v15465_v5 = vld [vmem:[#allocation13 + $0x20] sm:$0xff] }
 0x53d   :  { %9448 = vmatpush.bf16.msrb.mxu0 %v15465_v5 }
 0x541   :  { %v8061_v29 = vpop.f32.mrf.mxu3 }
 0x542   :  { %v8062_v9 = vadd.f32 %v8061_v29, %v8049_v33  ;;  %v15464_v29 = vld [vmem:[#allocation13 + $0x18] sm:$0xff] }
 0x543   :  { %9449 = vmatpush.bf16.msrb.mxu0 %v15464_v29 }
 0x544   :  { %v8072_v18 = vmax.f32 %v8062_v9, 0.0 }
 0x546   :  { %v8080_v15 = vpack.c.bf16 %v8072_v18, %v8072_v18  ;;  %v15463_v18 = vld [vmem:[#allocation13 + $0x10] sm:$0xff] }
 0x547   :  { %v8929_v11 = vpop.f32.mrf.mxu1  ;;  %9450 = vmatpush.bf16.msrb.mxu0 %v15463_v18 }
 0x548   :  { %8954 = vmatmul.bf16.vlgmr.msra.gmra.mxu3 %v8080_v15 }
 0x549   :  { %v8063_v1 = vpop.f32.mrf.mxu3  ;;  %9050 = vmatpush.bf16.msra.mxu3 %v14272_v23 }
 0x54d   :  { %9051 = vmatpush.bf16.msra.mxu3 %v14264_v0 }
 0x54f   :  { %v8931_v43 = vpop.f32.mrf.mxu1 }
 0x551   :  { %9052 = vmatpush.bf16.msra.mxu3 %v14256_v6 }
 0x555   :  { %9053 = vmatpush.bf16.msra.mxu3 %v14248_v53 }
 0x558   :  { %9006 = vmatmul.bf16.vlgmr.msrb.gmra.mxu3 %v16433_v59  ;;  %v14216_v59 = vor.u32 %v15445_v37, %v14213_v63 }
 0x559   :  { %9054 = vmatpush.bf16.msra.mxu3 %v14240_v56 }
 0x55d   :  { %9055 = vmatpush.bf16.msra.mxu3 %v14232_v45 }
 0x561   :  { %v8903_v27 = vpop.f32.mrf.mxu3  ;;  %9056 = vmatpush.bf16.msra.mxu3 %v14224_v50 }
 0x562   :  { %v8904_v14 = vadd.f32 %v8903_v27, %v8891_v24  ;;  %v15471_v27 = vunpack.c.l.bf16 %v15470_v38 }
 0x564   :  { %v8917_v8 = vadd.f32 %v16453_v2, %v8904_v14  ;;  %v15472_v14 = vunpack.c.h.bf16 %v15470_v38 }
 0x565   :  { %9057 = vmatpush.bf16.msra.mxu3 %v14216_v59 }
 0x566   :  { %v8930_v36 = vadd.f32 %v8929_v11, %v8917_v8 }
 0x567   :  { %v8981_v30 = vpop.f32.mrf.mxu1 }
 0x568   :  { %v8982_v4 = vadd.f32 %v8981_v30, %v8969_v51  ;;  %9058 = vmatmul.bf16.vlgmr.msra.gmra.mxu3 %v8080_v15  ;;  %v15462_v15 = vld [vmem:[#allocation13 + $0x8] sm:$0xff]  ;;  %v15475_v51 = vunpack.c.l.bf16 %v16480_v28 }
 0x569   :  { %v8905_v17 = vpop.f32.mrf.mxu3  ;;  %9451 = vmatpush.bf16.msrb.mxu0 %v15462_v15 }
 0x56d   :  { %9452 = vmatpush.bf16.msrb.mxu0 %v15461_v46 }
 0x56f   :  { %v8983_v21 = vpop.f32.mrf.mxu1 }
 0x587   :  { %v9033_v42 = vpop.f32.mrf.mxu1 }
 0x58b   :  { %v8942_v32 = vpop.f32.mrf.mxu2 }
 0x58c   :  { %v8943_v60 = vadd.f32 %v8942_v32, %v8930_v36 }
 0x58f   :  { %v9035_v44 = vpop.f32.mrf.mxu1 }
 0x593   :  { %v8944_v62 = vpop.f32.mrf.mxu2 }
 0x594   :  { %v9244_v62 = vrot.slane %v15471_v27, 4 }
 0x59b   :  { %v8994_v31 = vpop.f32.mrf.mxu2 }
 0x59c   :  { %v8995_v10 = vadd.f32 %v8994_v31, %v8982_v4  ;;  %v15476_v4 = vunpack.c.h.bf16 %v16480_v28 }
 0x5a3   :  { %v8996_v39 = vpop.f32.mrf.mxu2 }
 0x5a4   :  { %v9245_v39 = vrot.slane %v15472_v14, 4 }
 0x5ab   :  { %v9046_v19 = vpop.f32.mrf.mxu2 }
 0x5b3   :  { %v9048_v52 = vpop.f32.mrf.mxu2 }
 0x5cb   :  { %v8955_v2 = vpop.f32.mrf.mxu3 }
 0x5cc   :  { %v8956_v54 = vadd.f32 %v8955_v2, %v8943_v60 }
 0x5ce   :  { %9063 = vst [vmem:[#allocation16] sm:$0xff] %v8956_v54 }
 0x5cf   :  { %9628 = dma.vmem_to_hbm [thread:$0]  %s9624_s4, 128, %s9626_s19, [#allocation4]  }
 0x5d3   :  { %v8957_v24 = vpop.f32.mrf.mxu3 }
 0x5db   :  { %v9007_v26 = vpop.f32.mrf.mxu3 }
 0x5dc   :  { %v9008_v49 = vadd.f32 %v9007_v26, %v8995_v10 }
 0x5de   :  { %v9021_v47 = vadd.f32 %v16464_v58, %v9008_v49 }
 0x5e0   :  { %v9034_v33 = vadd.f32 %v9033_v42, %v9021_v47 }
 0x5e2   :  { %v9047_v9 = vadd.f32 %v9046_v19, %v9034_v33  ;;  %v9246_v19 = vrot.slane %v15475_v51, 4 }
 0x5e3   :  { %v9009_v40 = vpop.f32.mrf.mxu3 }
 0x5eb   :  { %v9059_v35 = vpop.f32.mrf.mxu3 }
 0x5ec   :  { %v9060_v34 = vadd.f32 %v9059_v35, %v9047_v9  ;;  %v15524_v35 = vld [vmem:[%s16593_s9 + $0x10] sm:$0xff]  }
 0x5ed   :  { %v15480_v28 = vunpack.c.h.bf16 %v15524_v35 }
 0x5ee   :  { %9064 = vst [vmem:[#allocation17] sm:$0xff] %v9060_v34  ;;  %v9065_v23 = vmul.f32 1.442695, %v9060_v34 }
 0x5ef   :  { %9639 = dma.vmem_to_hbm [thread:$0]  %s9635_s21, 128, %s9637_s8, [#allocation18]  }
 0x5f0   :  { %15550 = vpow2.f32 %v9065_v23 }
 0x5f3   :  { %v9061_v25 = vpop.f32.mrf.mxu3 }
 0x5f4   :  { %v16490_v25 = vld [vmem:[%s16593_s9 + $0x18] sm:$0xff]  }
 0x5f6   :  { %v15551_v58 = vpop.eup %15550 }
 0x5f7   :  { %v9067_v1 = vadd.f32 %v15551_v58, %v8956_v54  ;;  %v9247_v54 = vrot.slane %v15476_v4, 4 }
 0x5f9   :  { %v9068_v0 = vpack.c.bf16 %v9067_v1, %v9067_v1 }
 0x5fb   :  { %v9070_v41 = vrot.slane %v9068_v0, 3 }
 0x5fd   :  { %v9074_v16 = vsel %vm9071_vm0, %v9068_v0, %v9070_v41  ;;  %v9077_v6 = vsel %vm9076_vm1, %v9068_v0, %v9070_v41  ;;  %v9081_v7 = vsel %vm9080_vm2, %v9068_v0, %v9070_v41  ;;  %v9085_v61 = vsel %vm9084_vm3, %v9068_v0, %v9070_v41 }
 0x5fe   :  { %v9079_v11 = vrot.slane %v9077_v6, 1  ;;  %v9083_v53 = vrot.slane %v9081_v7, 2  ;;  %v9089_v48 = vunpack.i.h.s16 %v9074_v16  ;;  %v9087_v56 = vrot.slane %v9085_v61, 3 }
 0x5ff   :  { %v14273_v3 = vpack.i.b16 %v9074_v16, %v9074_v16  ;;  %v15479_v7 = vunpack.c.l.bf16 %v15524_v35  ;;  %v15483_v61 = vunpack.c.l.bf16 %v16490_v25 }
 0x600   :  { %v9091_v43 = vunpack.i.h.s16 %v9079_v11  ;;  %v9093_v45 = vunpack.i.h.s16 %v9083_v53  ;;  %v9097_v55 = vpack.i.b16 %v9089_v48, %v9089_v48  ;;  %v14274_v13 = vpack.i.b16 %v9079_v11, %v9079_v11 }
 0x601   :  { %v14275_v57 = vpack.i.b16 %v9083_v53, %v9083_v53  ;;  %v9104_v50 = vperm.slane %v14273_v3, 0  ;;  %v9095_v8 = vunpack.i.h.s16 %v9087_v56  ;;  %v14276_v31 = vpack.i.b16 %v9087_v56, %v9087_v56 }
 0x602   :  { %v9099_v37 = vpack.i.b16 %v9091_v43, %v9091_v43  ;;  %v9105_v63 = vperm.slane %v9097_v55, 0  ;;  %v9106_v30 = vperm.slane %v14274_v13, 0  ;;  %v9101_v36 = vpack.i.b16 %v9093_v45, %v9093_v45 }
 0x603   :  { %v9113_v59 = vpack.i.b16 %v9104_v50, %v9104_v50  ;;  %v9108_v21 = vperm.slane %v14275_v57, 0  ;;  %v9103_v24 = vpack.i.b16 %v9095_v8, %v9095_v8  ;;  %v9110_v5 = vperm.slane %v14276_v31, 0  ;;  %v15526_v31 = vld [vmem:[%s16593_s9 + $0x20] sm:$0xff]  }
 0x604   :  { %v9107_v17 = vperm.slane %v9099_v37, 0  ;;  %v9117_v42 = vpack.i.b16 %v9105_v63, %v9105_v63  ;;  %v9121_v32 = vpack.i.b16 %v9106_v30, %v9106_v30  ;;  %v9109_v22 = vperm.slane %v9101_v36, 0 }
 0x605   :  { %v9115_v44 = vperm.slane %v9113_v59, 0  ;;  %v9129_v26 = vpack.i.b16 %v9108_v21, %v9108_v21  ;;  %v15484_v11 = vunpack.c.h.bf16 %v16490_v25  ;;  %v9111_v38 = vperm.slane %v9103_v24, 0 }
 0x606   :  { %v9119_v10 = vperm.slane %v9117_v42, 0  ;;  %v9123_v52 = vperm.slane %v9121_v32, 0  ;;  %v9125_v60 = vpack.i.b16 %v9107_v17, %v9107_v17  ;;  %v9133_v16 = vpack.i.b16 %v9109_v22, %v9109_v22 }
 0x607   :  { %v9152_v2 = vrot.slane %v9115_v44, 2  ;;  %v9153_v20 = vrot.slane %v9115_v44, 4  ;;  %v9196_v49 = vunpack.c.l.bf16 %v9115_v44  ;;  %v9131_v41 = vperm.slane %v9129_v26, 0 }
 0x608   :  { %v9199_v47 = vunpack.c.l.bf16 %v9119_v10  ;;  %v9154_v40 = vrot.slane %v9119_v10, 2  ;;  %v9155_v29 = vrot.slane %v9119_v10, 4  ;;  %v9156_v9 = vrot.slane %v9123_v52, 2 }
 0x609   :  { %v9197_v12 = vunpack.c.l.bf16 %v9152_v2  ;;  %v9198_v33 = vunpack.c.l.bf16 %v9153_v20  ;;  %v9127_v34 = vperm.slane %v9125_v60, 0  ;;  %v9268_v18 = vadd.f32 %v15471_v27, %v9196_v49  ;;  %v15527_v2 = vld [vmem:[%s16593_s9 + $0x28] sm:$0xff]  }
 0x60a   :  { %v9271_v15 = vadd.f32 %v9245_v39, %v9199_v47  ;;  %v9200_v58 = vunpack.c.l.bf16 %v9154_v40  ;;  %v9201_v1 = vunpack.c.l.bf16 %v9155_v29  ;;  %v9202_v0 = vunpack.c.l.bf16 %v9123_v52 }
 0x60b   :  { %v9269_v23 = vadd.f32 %v9244_v62, %v9197_v12  ;;  %v9270_v46 = vadd.f32 %v15472_v14, %v9198_v33  ;;  %9316 = vst [vmem:[#allocation1] ss:$2 sm:$0xff] %v9268_v18  ;;  %v9203_v6 = vunpack.c.l.bf16 %v9156_v9  ;;  %v9137_v56 = vpack.i.b16 %v9110_v5, %v9110_v5 }
 0x60c   :  { %v9272_v53 = vadd.f32 %v15475_v51, %v9200_v58  ;;  %v9273_v48 = vadd.f32 %v9246_v19, %v9201_v1  ;;  %v9274_v3 = vadd.f32 %v15476_v4, %v9202_v0  ;;  %9322 = vst [vmem:[#allocation1 + $0x11] ss:$2 sm:$0xff] %v9271_v15  ;;  %v9157_v45 = vrot.slane %v9123_v52, 4 }
 0x60d   :  { %9318 = vst [vmem:[#allocation1 + $0x1] ss:$2 sm:$0xff] %v9269_v23  ;;  %v9275_v43 = vadd.f32 %v9247_v54, %v9203_v6  ;;  %v9158_v55 = vrot.slane %v9127_v34, 2  ;;  %v9159_v13 = vrot.slane %v9127_v34, 4  ;;  %v9135_v57 = vperm.slane %v9133_v16, 0 }
 0x60e   :  { %9320 = vst [vmem:[#allocation1 + $0x10] ss:$2 sm:$0xff] %v9270_v46  ;;  %v9160_v50 = vrot.slane %v9131_v41, 2  ;;  %v9205_v27 = vunpack.c.l.bf16 %v9127_v34  ;;  %v9248_v37 = vrot.slane %v15479_v7, 4  ;;  %v9161_v63 = vrot.slane %v9131_v41, 4 }
 0x60f   :  { %9324 = vst [vmem:[#allocation1 + $0x20] ss:$2 sm:$0xff] %v9272_v53  ;;  %v9204_v14 = vunpack.c.l.bf16 %v9157_v45  ;;  %v9206_v51 = vunpack.c.l.bf16 %v9158_v55  ;;  %v9141_v8 = vpack.i.b16 %v9111_v38, %v9111_v38  ;;  %v9207_v30 = vunpack.c.l.bf16 %v9159_v13 }
 0x610   :  { %9326 = vst [vmem:[#allocation1 + $0x21] ss:$2 sm:$0xff] %v9273_v48  ;;  %v9249_v59 = vrot.slane %v15480_v28, 4  ;;  %v9139_v4 = vperm.slane %v9137_v56, 0  ;;  %v9208_v36 = vunpack.c.l.bf16 %v9131_v41  ;;  %v9250_v17 = vrot.slane %v15483_v61, 4 }
 0x611   :  { %9328 = vst [vmem:[#allocation1 + $0x30] ss:$2 sm:$0xff] %v9274_v3  ;;  %v9276_v21 = vadd.f32 %v15479_v7, %v9204_v14  ;;  %v9209_v44 = vunpack.c.l.bf16 %v9160_v50  ;;  %v9251_v32 = vrot.slane %v15484_v11, 4  ;;  %v9162_v62 = vrot.slane %v9135_v57, 2 }
 0x612   :  { %9330 = vst [vmem:[#allocation1 + $0x31] ss:$2 sm:$0xff] %v9275_v43  ;;  %v9277_v10 = vadd.f32 %v9248_v37, %v9205_v27  ;;  %v9210_v39 = vunpack.c.l.bf16 %v9161_v63  ;;  %v9163_v19 = vrot.slane %v9135_v57, 4  ;;  %v15487_v52 = vunpack.c.l.bf16 %v15526_v31 }
 0x613   :  { %v9278_v60 = vadd.f32 %v15480_v28, %v9206_v51  ;;  %v9143_v54 = vperm.slane %v9141_v8, 0  ;;  %v9211_v22 = vunpack.c.l.bf16 %v9135_v57  ;;  %v9279_v26 = vadd.f32 %v9249_v59, %v9207_v30 }
 0x614   :  { %v9331_v42 = vld.sshfl [vmem:[#allocation1] sm:$0xff pattern:$0x75316420]  ;;  %v9280_v49 = vadd.f32 %v15483_v61, %v9208_v36  ;;  %v9164_v12 = vrot.slane %v9139_v4, 2  ;;  %v15488_v47 = vunpack.c.h.bf16 %v15526_v31  ;;  %v9281_v40 = vadd.f32 %v9250_v17, %v9209_v44  ;;  %v15549_v17 = vld [vmem:[#allocation14] ss:$0 sm:$0xff] }
 0x615   :  { %9335 = vst [vmem:[#allocation1] ss:$2 sm:$0xff] %v9276_v21  ;;  %v9332_v24 = vld.sshfl [vmem:[#allocation1 + $0x10] sm:$0xff pattern:$0x75316420]  ;;  %v9212_v33 = vunpack.c.l.bf16 %v9162_v62  ;;  %v9165_v29 = vrot.slane %v9139_v4, 4  ;;  %v9282_v9 = vadd.f32 %v15484_v11, %v9210_v39  ;;  %v9213_v35 = vunpack.c.l.bf16 %v9163_v19 }
 0x616   :  { %9336 = vst [vmem:[#allocation1 + $0x1] ss:$2 sm:$0xff] %v9277_v10  ;;  %v9371_v20 = vpack.c.bf16 %v9332_v24, %v9331_v42  ;;  %v9252_v34 = vrot.slane %v15487_v52, 4  ;;  %v15491_v18 = vunpack.c.l.bf16 %v15527_v2  ;;  %v9283_v23 = vadd.f32 %v9251_v32, %v9211_v22 }
 0x617   :  { %9337 = vst [vmem:[#allocation1 + $0x10] ss:$2 sm:$0xff] %v9278_v60  ;;  %v9333_v5 = vld.sshfl [vmem:[#allocation1 + $0x20] sm:$0xff pattern:$0x75316420]  ;;  %v9214_v25 = vunpack.c.l.bf16 %v9139_v4  ;;  %v9166_v46 = vrot.slane %v9143_v54, 2  ;;  %v9215_v58 = vunpack.c.l.bf16 %v9164_v12  ;;  %v15492_v41 = vunpack.c.h.bf16 %v15527_v2 }
 0x618   :  { %9338 = vst [vmem:[#allocation1 + $0x11] ss:$2 sm:$0xff] %v9279_v26  ;;  %9453 = vmatmul.bf16.vlgmr.msrb.gmra.mxu0 %v9371_v20  ;;  %v9253_v1 = vrot.slane %v15488_v47, 4  ;;  %v9167_v0 = vrot.slane %v9143_v54, 4  ;;  %v9284_v16 = vadd.f32 %v15487_v52, %v9212_v33  ;;  %v9216_v6 = vunpack.c.l.bf16 %v9165_v29 }
 0x619   :  { %9339 = vst [vmem:[#allocation1 + $0x20] ss:$2 sm:$0xff] %v9280_v49  ;;  %v9334_v15 = vld.sshfl [vmem:[#allocation1 + $0x30] sm:$0xff pattern:$0x75316420]  ;;  %v9285_v7 = vadd.f32 %v9252_v34, %v9213_v35  ;;  %v9217_v11 = vunpack.c.l.bf16 %v9143_v54  ;;  %v9254_v53 = vrot.slane %v15491_v18, 4  ;;  %v9286_v48 = vadd.f32 %v15488_v47, %v9214_v25 }
 0x61a   :  { %9340 = vst [vmem:[#allocation1 + $0x21] ss:$2 sm:$0xff] %v9281_v40  ;;  %v9218_v38 = vunpack.c.l.bf16 %v9166_v46  ;;  %v9287_v56 = vadd.f32 %v9253_v1, %v9215_v58  ;;  %v9219_v28 = vunpack.c.l.bf16 %v9167_v0  ;;  %v9255_v43 = vrot.slane %v15492_v41, 4 }
 0x61b   :  { %9341 = vst [vmem:[#allocation1 + $0x30] ss:$2 sm:$0xff] %v9282_v9  ;;  %v9288_v45 = vadd.f32 %v15491_v18, %v9216_v6  ;;  %v9289_v55 = vadd.f32 %v9254_v53, %v9217_v11  ;;  %v9372_v37 = vpack.c.bf16 %v9334_v15, %v9333_v5 }
 0x61c   :  { %9342 = vst [vmem:[#allocation1 + $0x31] ss:$2 sm:$0xff] %v9283_v23  ;;  %v9290_v57 = vadd.f32 %v15492_v41, %v9218_v38  ;;  %v9291_v50 = vadd.f32 %v9255_v43, %v9219_v28 }
 0x61d   :  { %v9343_v61 = vld.sshfl [vmem:[#allocation1] sm:$0xff pattern:$0x75316420] }
 0x61e   :  { %9347 = vst [vmem:[#allocation1] ss:$2 sm:$0xff] %v9284_v16 }
 0x61f   :  { %v9344_v3 = vld.sshfl [vmem:[#allocation1 + $0x10] sm:$0xff pattern:$0x75316420]  ;;  %9348 = vst [vmem:[#allocation1 + $0x1] ss:$2 sm:$0xff] %v9285_v7 }
 0x620   :  { %9349 = vst [vmem:[#allocation1 + $0x10] ss:$2 sm:$0xff] %v9286_v48  ;;  %v9373_v63 = vpack.c.bf16 %v9344_v3, %v9343_v61 }
 0x621   :  { %9350 = vst [vmem:[#allocation1 + $0x11] ss:$2 sm:$0xff] %v9287_v56  ;;  %v9345_v13 = vld.sshfl [vmem:[#allocation1 + $0x20] sm:$0xff pattern:$0x75316420] }
 0x622   :  { %9351 = vst [vmem:[#allocation1 + $0x20] ss:$2 sm:$0xff] %v9288_v45 }
 0x623   :  { %v9346_v27 = vld.sshfl [vmem:[#allocation1 + $0x30] sm:$0xff pattern:$0x75316420]  ;;  %9352 = vst [vmem:[#allocation1 + $0x21] ss:$2 sm:$0xff] %v9289_v55 }
 0x624   :  { %9353 = vst [vmem:[#allocation1 + $0x30] ss:$2 sm:$0xff] %v9290_v57  ;;  %v9374_v14 = vpack.c.bf16 %v9346_v27, %v9345_v13 }
 0x625   :  { %9354 = vst [vmem:[#allocation1 + $0x31] ss:$2 sm:$0xff] %v9291_v50 }
 0x626   :  { %v9355_v51 = vld.sshfl [vmem:[#allocation1] sm:$0xff pattern:$0x75316420] }
 0x628   :  { %9458 = vmatmul.bf16.gmra.mxu0 %v9372_v37  ;;  %v9356_v8 = vld.sshfl [vmem:[#allocation1 + $0x10] sm:$0xff pattern:$0x75316420] }
 0x629   :  { %v9375_v30 = vpack.c.bf16 %v9356_v8, %v9355_v51 }
 0x62a   :  { %v9357_v59 = vld.sshfl [vmem:[#allocation1 + $0x20] sm:$0xff pattern:$0x75316420] }
 0x62c   :  { %v9358_v4 = vld.sshfl [vmem:[#allocation1 + $0x30] sm:$0xff pattern:$0x75316420] }
 0x62d   :  { %v9376_v36 = vpack.c.bf16 %v9358_v4, %v9357_v59 }
 0x638   :  { %9463 = vmatmul.bf16.gmra.mxu0 %v9373_v63 }
 0x648   :  { %9468 = vmatmul.bf16.gmra.mxu0 %v9374_v14 }
 0x658   :  { %9473 = vmatmul.bf16.gmra.mxu0 %v9375_v30 }
 0x668   :  { %9478 = vmatmul.bf16.gmra.mxu0 %v9376_v36 }
 0x695   :  { %v9454_v21 = vpop.f32.mrf.mxu0 }
 0x696   :  { %v9455_v42 = vadd.f32 %v15549_v17, %v9454_v21 }
 0x698   :  { %9484 = vmax.xlane.f32.xlu0 %v9455_v42 }
 0x69d   :  { %v9456_v44 = vpop.f32.mrf.mxu0 }
 0x69e   :  { %v9457_v32 = vadd.f32 %v15549_v17, %v9456_v44 }
 0x6a0   :  { %9486 = vmax.xlane.f32.xlu0 %v9457_v32 }
 0x6a5   :  { %v9459_v62 = vpop.f32.mrf.mxu0 }
 0x6a6   :  { %v9460_v31 = vadd.f32 %v15549_v17, %v9459_v62 }
 0x6a8   :  { %9488 = vmax.xlane.f32.xlu1 %v9460_v31 }
 0x6ad   :  { %v9461_v10 = vpop.f32.mrf.mxu0 }
 0x6ae   :  { %v9462_v39 = vadd.f32 %v15549_v17, %v9461_v10 }
 0x6b0   :  { %9490 = vmax.xlane.f32.xlu1 %v9462_v39 }
 0x6b5   :  { %v9464_v19 = vpop.f32.mrf.mxu0 }
 0x6b6   :  { %v9465_v52 = vadd.f32 %v15549_v17, %v9464_v19 }
 0x6b8   :  { %9492 = vmax.xlane.f32.xlu2 %v9465_v52 }
 0x6bd   :  { %v9466_v60 = vpop.f32.mrf.mxu0 }
 0x6be   :  { %v9467_v2 = vadd.f32 %v15549_v17, %v9466_v60 }
 0x6c0   :  { %9494 = vmax.xlane.f32.xlu2 %v9467_v2 }
 0x6c5   :  { %v9469_v54 = vpop.f32.mrf.mxu0 }
 0x6c6   :  { %v9470_v24 = vadd.f32 %v15549_v17, %v9469_v54 }
 0x6c8   :  { %9496 = vmax.xlane.f32.xlu0 %v9470_v24 }
 0x6cd   :  { %v9471_v22 = vpop.f32.mrf.mxu0 }
 0x6ce   :  { %v9472_v26 = vadd.f32 %v15549_v17, %v9471_v22 }
 0x6d0   :  { %9498 = vmax.xlane.f32.xlu1 %v9472_v26 }
 0x6d5   :  { %v9474_v20 = vpop.f32.mrf.mxu0 }
 0x6d6   :  { %v9475_v49 = vadd.f32 %v15549_v17, %v9474_v20 }
 0x6d8   :  { %9500 = vmax.xlane.f32.xlu2 %v9475_v49 }
 0x6dd   :  { %v9476_v12 = vpop.f32.mrf.mxu0 }
 0x6de   :  { %v16500_v47 = vadd.f32 %v15549_v17, %v9476_v12 }
 0x6e0   :  { %9502 = vmax.xlane.f32.xlu0 %v16500_v47 }
 0x6e5   :  { %v9479_v40 = vpop.f32.mrf.mxu0 }
 0x6e6   :  { %v16503_v5 = vadd.f32 %v15549_v17, %v9479_v40 }
 0x6e8   :  { %9504 = vmax.xlane.f32.xlu1 %v16503_v5 }
 0x6ed   :  { %v9481_v33 = vpop.f32.mrf.mxu0 }
 0x6ee   :  { %v16506_v29 = vadd.f32 %v15549_v17, %v9481_v33 }
 0x6f0   :  { %9506 = vmax.xlane.f32.xlu2 %v16506_v29 }
 0x70b   :  { %v9485_v9 = vpop.xlane.xlu0 %9484 }
 0x70c   :  { %v9508_v35 = vsub.f32 %v9455_v42, %v9485_v9 }
 0x70e   :  { %v9520_v34 = vmul.f32 1.442695, %v9508_v35 }
 0x710   :  { %15552 = vpow2.f32 %v9520_v34 }
 0x713   :  { %v9487_v18 = vpop.xlane.xlu0 %9486 }
 0x714   :  { %v9509_v23 = vsub.f32 %v9457_v32, %v9487_v18 }
 0x716   :  { %v16509_v15 = vpop.eup %15552  ;;  %v9522_v25 = vmul.f32 1.442695, %v9509_v23 }
 0x717   :  { %9544 = vadd.xlane.f32.xlu0 %v16509_v15 }
 0x718   :  { %15554 = vpow2.f32 %v9522_v25 }
 0x71b   :  { %v9489_v46 = vpop.xlane.xlu1 %9488 }
 0x71c   :  { %v9510_v58 = vsub.f32 %v9460_v31, %v9489_v46 }
 0x71e   :  { %v16512_v1 = vpop.eup %15554  ;;  %v9524_v0 = vmul.f32 1.442695, %v9510_v58 }
 0x71f   :  { %9546 = vadd.xlane.f32.xlu1 %v16512_v1 }
 0x720   :  { %15556 = vpow2.f32 %v9524_v0 }
 0x723   :  { %v9491_v41 = vpop.xlane.xlu1 %9490 }
 0x724   :  { %v9511_v16 = vsub.f32 %v9462_v39, %v9491_v41 }
 0x726   :  { %v16515_v6 = vpop.eup %15556  ;;  %v9526_v7 = vmul.f32 1.442695, %v9511_v16 }
 0x727   :  { %9548 = vadd.xlane.f32.xlu2 %v16515_v6 }
 0x728   :  { %15558 = vpow2.f32 %v9526_v7 }
 0x72b   :  { %v9493_v61 = vpop.xlane.xlu2 %9492 }
 0x72c   :  { %v9512_v11 = vsub.f32 %v9465_v52, %v9493_v61 }
 0x72e   :  { %v16518_v53 = vpop.eup %15558  ;;  %v9528_v48 = vmul.f32 1.442695, %v9512_v11 }
 0x72f   :  { %9550 = vadd.xlane.f32.xlu0 %v16518_v53 }
 0x730   :  { %15560 = vpow2.f32 %v9528_v48 }
 0x733   :  { %v9495_v38 = vpop.xlane.xlu2 %9494 }
 0x734   :  { %v9513_v56 = vsub.f32 %v9467_v2, %v9495_v38 }
 0x736   :  { %v16521_v3 = vpop.eup %15560  ;;  %v9530_v28 = vmul.f32 1.442695, %v9513_v56 }
 0x737   :  { %9552 = vadd.xlane.f32.xlu1 %v16521_v3 }
 0x738   :  { %15562 = vpow2.f32 %v9530_v28 }
 0x73b   :  { %v9497_v43 = vpop.xlane.xlu0 %9496 }
 0x73c   :  { %v9514_v45 = vsub.f32 %v9470_v24, %v9497_v43 }
 0x73e   :  { %v16524_v55 = vpop.eup %15562  ;;  %v9532_v13 = vmul.f32 1.442695, %v9514_v45 }
 0x73f   :  { %9554 = vadd.xlane.f32.xlu2 %v16524_v55 }
 0x740   :  { %15564 = vpow2.f32 %v9532_v13 }
 0x743   :  { %v9499_v57 = vpop.xlane.xlu1 %9498 }
 0x744   :  { %v9515_v50 = vsub.f32 %v9472_v26, %v9499_v57 }
 0x746   :  { %v16527_v27 = vpop.eup %15564  ;;  %v9534_v37 = vmul.f32 1.442695, %v9515_v50 }
 0x747   :  { %9556 = vadd.xlane.f32.xlu0 %v16527_v27 }
 0x748   :  { %15566 = vpow2.f32 %v9534_v37 }
 0x74b   :  { %v9501_v63 = vpop.xlane.xlu2 %9500 }
 0x74c   :  { %v9516_v14 = vsub.f32 %v9475_v49, %v9501_v63 }
 0x74e   :  { %v16530_v51 = vpop.eup %15566  ;;  %v9536_v8 = vmul.f32 1.442695, %v9516_v14 }
 0x74f   :  { %9558 = vadd.xlane.f32.xlu1 %v16530_v51 }
 0x750   :  { %15568 = vpow2.f32 %v9536_v8 }
 0x753   :  { %v9503_v30 = vpop.xlane.xlu0 %9502 }
 0x754   :  { %v9517_v59 = vsub.f32 %v16500_v47, %v9503_v30 }
 0x756   :  { %v16534_v4 = vpop.eup %15568  ;;  %v9538_v36 = vmul.f32 1.442695, %v9517_v59 }
 0x757   :  { %9560 = vadd.xlane.f32.xlu2 %v16534_v4 }
 0x758   :  { %15570 = vpow2.f32 %v9538_v36 }
 0x75b   :  { %v9505_v17 = vpop.xlane.xlu1 %9504 }
 0x75c   :  { %v9518_v21 = vsub.f32 %v16503_v5, %v9505_v17 }
 0x75e   :  { %v16538_v42 = vpop.eup %15570  ;;  %v9540_v44 = vmul.f32 1.442695, %v9518_v21 }
 0x75f   :  { %9562 = vadd.xlane.f32.xlu0 %v16538_v42 }
 0x760   :  { %15572 = vpow2.f32 %v9540_v44 }
 0x763   :  { %v9507_v32 = vpop.xlane.xlu2 %9506 }
 0x764   :  { %v9519_v62 = vsub.f32 %v16506_v29, %v9507_v32 }
 0x766   :  { %v16542_v31 = vpop.eup %15572  ;;  %v9542_v10 = vmul.f32 1.442695, %v9519_v62 }
 0x767   :  { %9564 = vadd.xlane.f32.xlu1 %v16542_v31 }
 0x768   :  { %15574 = vpow2.f32 %v9542_v10 }
 0x76e   :  { %v16545_v39 = vpop.eup %15574 }
 0x76f   :  { %9566 = vadd.xlane.f32.xlu2 %v16545_v39 }
 0x78a   :  { %v9545_v19 = vpop.xlane.xlu0 %9544 }
 0x78b   :  { %15576 = vrcp.f32 %v9545_v19 }
 0x791   :  { %v15577_v60 = vpop.eup %15576 }
 0x792   :  { %v9547_v52 = vpop.xlane.xlu1 %9546  ;;  %v9580_v54 = vmul.f32 %v15577_v60, %v16509_v15 }
 0x793   :  { %15578 = vrcp.f32 %v9547_v52 }
 0x799   :  { %v15579_v2 = vpop.eup %15578 }
 0x79a   :  { %v9581_v24 = vmul.f32 %v15579_v2, %v16512_v1  ;;  %v9549_v26 = vpop.xlane.xlu2 %9548 }
 0x79b   :  { %15580 = vrcp.f32 %v9549_v26 }
 0x79c   :  { %v15496_v22 = vpack.c.bf16 %v9581_v24, %v9580_v54 }
 0x79e   :  { %15497 = vst [vmem:[%s16594_s10] sm:$0xff] %v15496_v22  }
 0x7a1   :  { %v15581_v49 = vpop.eup %15580 }
 0x7a2   :  { %v9551_v20 = vpop.xlane.xlu0 %9550  ;;  %v9582_v47 = vmul.f32 %v15581_v49, %v16515_v6 }
 0x7a3   :  { %15582 = vrcp.f32 %v9551_v20 }
 0x7a9   :  { %v15583_v12 = vpop.eup %15582 }
 0x7aa   :  { %v9583_v40 = vmul.f32 %v15583_v12, %v16518_v53  ;;  %v9553_v33 = vpop.xlane.xlu1 %9552 }
 0x7ab   :  { %15584 = vrcp.f32 %v9553_v33 }
 0x7ac   :  { %v15501_v5 = vpack.c.bf16 %v9583_v40, %v9582_v47 }
 0x7ae   :  { %15528 = vst [vmem:[%s16594_s10 + $0x8] sm:$0xff] %v15501_v5  }
 0x7b1   :  { %v15585_v9 = vpop.eup %15584 }
 0x7b2   :  { %v9555_v29 = vpop.xlane.xlu2 %9554  ;;  %v9584_v34 = vmul.f32 %v15585_v9, %v16521_v3 }
 0x7b3   :  { %15586 = vrcp.f32 %v9555_v29 }
 0x7b9   :  { %v15587_v35 = vpop.eup %15586 }
 0x7ba   :  { %v9585_v18 = vmul.f32 %v15587_v35, %v16524_v55  ;;  %v9557_v15 = vpop.xlane.xlu0 %9556 }
 0x7bb   :  { %15588 = vrcp.f32 %v9557_v15 }
 0x7bc   :  { %v15506_v23 = vpack.c.bf16 %v9585_v18, %v9584_v34 }
 0x7be   :  { %15529 = vst [vmem:[%s16594_s10 + $0x10] sm:$0xff] %v15506_v23  }
 0x7c1   :  { %v15589_v46 = vpop.eup %15588 }
 0x7c2   :  { %v9559_v25 = vpop.xlane.xlu1 %9558  ;;  %v9586_v1 = vmul.f32 %v15589_v46, %v16527_v27 }
 0x7c3   :  { %15590 = vrcp.f32 %v9559_v25 }
 0x7c9   :  { %v15591_v58 = vpop.eup %15590 }
 0x7ca   :  { %v9587_v0 = vmul.f32 %v15591_v58, %v16530_v51  ;;  %v9561_v16 = vpop.xlane.xlu2 %9560 }
 0x7cb   :  { %15592 = vrcp.f32 %v9561_v16 }
 0x7cc   :  { %v15511_v41 = vpack.c.bf16 %v9587_v0, %v9586_v1 }
 0x7ce   :  { %15530 = vst [vmem:[%s16594_s10 + $0x18] sm:$0xff] %v15511_v41  }
 0x7d1   :  { %v15593_v7 = vpop.eup %15592 }
 0x7d2   :  { %v9563_v6 = vpop.xlane.xlu0 %9562  ;;  %v9588_v11 = vmul.f32 %v15593_v7, %v16534_v4 }
 0x7d3   :  { %15594 = vrcp.f32 %v9563_v6 }
 0x7d9   :  { %v15595_v61 = vpop.eup %15594 }
 0x7da   :  { %v9589_v53 = vmul.f32 %v15595_v61, %v16538_v42  ;;  %v9565_v38 = vpop.xlane.xlu1 %9564 }
 0x7db   :  { %15596 = vrcp.f32 %v9565_v38 }
 0x7dc   :  { %v15516_v48 = vpack.c.bf16 %v9589_v53, %v9588_v11 }
 0x7de   :  { %15531 = vst [vmem:[%s16594_s10 + $0x20] sm:$0xff] %v15516_v48  }
 0x7e1   :  { %v15597_v3 = vpop.eup %15596 }
 0x7e2   :  { %v9567_v56 = vpop.xlane.xlu2 %9566  ;;  %v9590_v43 = vmul.f32 %v15597_v3, %v16542_v31 }
 0x7e3   :  { %15598 = vrcp.f32 %v9567_v56 }
 0x7e9   :  { %v15599_v28 = vpop.eup %15598 }
 0x7ea   :  { %v9591_v45 = vmul.f32 %v15599_v28, %v16545_v39 }
 0x7ec   :  { %v15521_v55 = vpack.c.bf16 %v9591_v45, %v9590_v43 }
 0x7ee   :  { %15532 = vst [vmem:[%s16594_s10 + $0x28] sm:$0xff] %v15521_v55  }
 0x7ef   :  { %15856 = dma.done.wait [#allocation4], 128  }
 0x7f0   :  { %15857 = vsyncadd [#allocation4], 4294967168 }
 0x7f1   :  { %15858 = dma.done.wait [#allocation18], 128  }
 0x7f2   :  { %15859 = vsyncadd [#allocation18], 4294967168 }
 0x7f3   :  { %9650 = vsyncpa [#allocation3], 1 }
 0x7f4   :  { %9651 = vsyncpa [#allocation6], 1 }
 0x7f5   :  { %9652 = vsyncpa [#allocation9], 1 }
 0x7f6   :  { %9653 = vsyncpa [#allocation12], 1 }
 0x7f7   :  { %9654 = vsyncpa [#allocation15], 1 }
 0x7f8   :  { %9655 = vsyncpa [#allocation4], 1 }
 0x7f9   :  { %9656 = vsyncpa [#allocation18], 1 }

</bundles_post_ra>
